<compile_context>
chip_gen: v7x
topology: tpu7x:2x2x1
jax: 0.10.0
libtpu: 0.0.40
codegen_flags: <defaults>
</compile_context>

<pallas_src>
import functools

import jax
import jax.numpy as jnp
from jax.experimental import pallas as pl
from jax.experimental.pallas import tpu as pltpu

D_IN, D_H1, D_H2, D_OUT = 3072, 1024, 512, 40
D_OUT_PAD = 128  # lane-dense padded output width (>= D_OUT, multiple of 128)


def fc_kernel(x_ref, w1_ref, b1_ref, w2_ref, b2_ref, w3_ref, b3_ref, o_ref):
    # Layer 1: Linear(3072 -> 1024) + ReLU  (bf16 inputs, f32 accumulate)
    h1 = jnp.dot(x_ref[...], w1_ref[...], preferred_element_type=jnp.float32)
    h1 = jnp.maximum(h1 + b1_ref[...], 0.0)
    # Dropout(0.5): identity in eval mode.
    # Layer 2: Linear(1024 -> 512) + ReLU
    h2 = jnp.dot(h1.astype(jnp.bfloat16), w2_ref[...],
                 preferred_element_type=jnp.float32)
    h2 = jnp.maximum(h2 + b2_ref[...], 0.0)
    # Dropout(0.5): identity in eval mode.
    # Layer 3: Linear(512 -> 40), padded to 128 output lanes.
    out = jnp.dot(h2.astype(jnp.bfloat16), w3_ref[...],
                  preferred_element_type=jnp.float32)
    o_ref[...] = (out + b3_ref[...]).astype(o_ref.dtype)


def fc_forward(x, params, *, training=False, tm=None):
    """x: [B, 3072] (any float dtype). Returns [B, 40] float32."""
    if training:
        raise NotImplementedError("training-mode dropout not implemented")
    w1, b1, w2, b2, w3p, b3p = params
    B = x.shape[0]

    # Batch tile: 256 rows for large B, otherwise round B up to a multiple of 8.
    if tm is None:
        tm = 256 if B >= 256 else max(8, ((B + 7) // 8) * 8)
    b_pad = pl.cdiv(B, tm) * tm

    xb = x.astype(jnp.bfloat16)
    if b_pad != B:
        xb = jnp.pad(xb, ((0, b_pad - B), (0, 0)))

    grid = (b_pad // tm,)
    resident = lambda i: (0, 0)  # weights/biases stay pinned in VMEM across steps

    out_padded = pl.pallas_call(
        fc_kernel,
        out_shape=jax.ShapeDtypeStruct((b_pad, D_OUT_PAD), jnp.float32),
        grid_spec=pltpu.PrefetchScalarGridSpec(
            num_scalar_prefetch=0,
            grid=grid,
            in_specs=[
                pl.BlockSpec((tm, D_IN), lambda i: (i, 0)),        # x tile
                pl.BlockSpec((D_IN, D_H1), resident),              # w1
                pl.BlockSpec((1, D_H1), resident),                 # b1
                pl.BlockSpec((D_H1, D_H2), resident),              # w2
                pl.BlockSpec((1, D_H2), resident),                 # b2
                pl.BlockSpec((D_H2, D_OUT_PAD), resident),         # w3 (padded)
                pl.BlockSpec((1, D_OUT_PAD), resident),            # b3 (padded)
            ],
            out_specs=pl.BlockSpec((tm, D_OUT_PAD), lambda i: (i, 0)),
        ),
        compiler_params=pltpu.CompilerParams(
            dimension_semantics=("parallel",),
            vmem_limit_bytes=32 << 20,  # ~18 MiB actual; safe under v7x's 64 MiB
        ),
    )(xb, w1, b1, w2, b2, w3p, b3p)

    return out_padded[:B, :D_OUT]


def init_params(key):
    """PyTorch-style uniform(-1/sqrt(fan_in), 1/sqrt(fan_in)) init.
    Weights stored [in, out] (pre-transposed for x @ W), bf16; biases f32.
    Layer-3 weight/bias zero-padded to 128 output columns."""
    ks = jax.random.split(key, 6)

    def lin(kw, kb, fan_in, fan_out):
        bound = 1.0 / jnp.sqrt(fan_in)
        w = jax.random.uniform(kw, (fan_in, fan_out), jnp.float32, -bound, bound)
        b = jax.random.uniform(kb, (1, fan_out), jnp.float32, -bound, bound)
        return w.astype(jnp.bfloat16), b

    w1, b1 = lin(ks[0], ks[1], D_IN, D_H1)
    w2, b2 = lin(ks[2], ks[3], D_H1, D_H2)
    w3, b3 = lin(ks[4], ks[5], D_H2, D_OUT)
    w3p = jnp.zeros((D_H2, D_OUT_PAD), jnp.bfloat16).at[:, :D_OUT].set(w3)
    b3p = jnp.zeros((1, D_OUT_PAD), jnp.float32).at[:, :D_OUT].set(b3)
    return (w1, b1, w2, b2, w3p, b3p)


def fc_reference(x, params):
    """Mirrors the kernel math (bf16 operands, f32 accumulation)."""
    w1, b1, w2, b2, w3p, b3p = params
    h = jnp.dot(x.astype(jnp.bfloat16), w1, preferred_element_type=jnp.float32)
    h = jnp.maximum(h + b1, 0.0)
    h = jnp.dot(h.astype(jnp.bfloat16), w2, preferred_element_type=jnp.float32)
    h = jnp.maximum(h + b2, 0.0)
    out = jnp.dot(h.astype(jnp.bfloat16), w3p, preferred_element_type=jnp.float32)
    return (out + b3p)[:, :D_OUT]


if __name__ == "__main__":
    key = jax.random.PRNGKey(0)
    kx, kp = jax.random.split(key)

    B = 8
    x = jax.random.normal(kx, (B, D_IN), dtype=jnp.float32)
    params = init_params(kp)

    out = fc_forward(x, params)
    out = jax.block_until_ready(out)

    ref = fc_reference(x, params)
    assert out.shape == (B, D_OUT), out.shape
    assert jnp.allclose(out, ref, atol=1e-2, rtol=1e-2), "mismatch vs reference"

    print("KERNEL_OK")
</pallas_src>

<mosaic_0001>
module attributes {stable_mosaic.version = 11 : i64} {
  func.func @fc_kernel(%arg0: i32, %arg1: memref<8x3072xbf16, #tpu.memory_space<vmem>>, %arg2: memref<3072x1024xbf16, #tpu.memory_space<vmem>>, %arg3: memref<1x1024xf32, #tpu.memory_space<vmem>>, %arg4: memref<1024x512xbf16, #tpu.memory_space<vmem>>, %arg5: memref<1x512xf32, #tpu.memory_space<vmem>>, %arg6: memref<512x128xbf16, #tpu.memory_space<vmem>>, %arg7: memref<1x128xf32, #tpu.memory_space<vmem>>, %arg8: memref<8x128xf32, #tpu.memory_space<vmem>>) attributes {dimension_semantics = [#tpu.dimension_semantics<parallel>], iteration_bounds = array<i64: 1>, scalar_prefetch = 0 : i64, scratch_operands = 0 : i64, tpu.core_type = #tpu.core_type<tc>, window_params = [{transform_indices = @transform_0, window_bounds = array<i64: 8, 3072>}, {pipeline_mode = #tpu.pipeline_mode<synchronous>, transform_indices = @transform_1, window_bounds = array<i64: 3072, 1024>}, {pipeline_mode = #tpu.pipeline_mode<synchronous>, transform_indices = @transform_2, window_bounds = array<i64: 1, 1024>}, {pipeline_mode = #tpu.pipeline_mode<synchronous>, transform_indices = @transform_3, window_bounds = array<i64: 1024, 512>}, {pipeline_mode = #tpu.pipeline_mode<synchronous>, transform_indices = @transform_4, window_bounds = array<i64: 1, 512>}, {pipeline_mode = #tpu.pipeline_mode<synchronous>, transform_indices = @transform_5, window_bounds = array<i64: 512, 128>}, {pipeline_mode = #tpu.pipeline_mode<synchronous>, transform_indices = @transform_6, window_bounds = array<i64: 1, 128>}, {transform_indices = @transform_7, window_bounds = array<i64: 8, 128>}]} {
    %c0 = arith.constant 0 : index
    %c0_0 = arith.constant 0 : index
    %0 = vector.load %arg1[%c0, %c0_0] : memref<8x3072xbf16, #tpu.memory_space<vmem>>, vector<8x3072xbf16>
    %c0_1 = arith.constant 0 : index
    %c0_2 = arith.constant 0 : index
    %1 = vector.load %arg2[%c0_1, %c0_2] : memref<3072x1024xbf16, #tpu.memory_space<vmem>>, vector<3072x1024xbf16>
    %cst = arith.constant dense<0.000000e+00> : vector<8x1024xf32>
    %2 = tpu.matmul %0, %1, %cst {dimension_numbers = #tpu.dot_dimension_numbers<[1], [0], [0], [1], [0, 0, 1, 1], [], []>} : vector<8x3072xbf16>, vector<3072x1024xbf16>, vector<8x1024xf32> -> vector<8x1024xf32>
    %c0_3 = arith.constant 0 : index
    %c0_4 = arith.constant 0 : index
    %3 = vector.load %arg3[%c0_3, %c0_4] : memref<1x1024xf32, #tpu.memory_space<vmem>>, vector<1x1024xf32>
    %4 = vector.broadcast %3 : vector<1x1024xf32> to vector<8x1024xf32>
    %5 = arith.addf %2, %4 : vector<8x1024xf32>
    %cst_5 = arith.constant 0.000000e+00 : f32
    %6 = vector.broadcast %cst_5 : f32 to vector<8x1024xf32>
    %7 = arith.maximumf %5, %6 : vector<8x1024xf32>
    %8 = arith.truncf %7 : vector<8x1024xf32> to vector<8x1024xbf16>
    %c0_6 = arith.constant 0 : index
    %c0_7 = arith.constant 0 : index
    %9 = vector.load %arg4[%c0_6, %c0_7] : memref<1024x512xbf16, #tpu.memory_space<vmem>>, vector<1024x512xbf16>
    %cst_8 = arith.constant dense<0.000000e+00> : vector<8x512xf32>
    %10 = tpu.matmul %8, %9, %cst_8 {dimension_numbers = #tpu.dot_dimension_numbers<[1], [0], [0], [1], [0, 0, 1, 1], [], []>} : vector<8x1024xbf16>, vector<1024x512xbf16>, vector<8x512xf32> -> vector<8x512xf32>
    %c0_9 = arith.constant 0 : index
    %c0_10 = arith.constant 0 : index
    %11 = vector.load %arg5[%c0_9, %c0_10] : memref<1x512xf32, #tpu.memory_space<vmem>>, vector<1x512xf32>
    %12 = vector.broadcast %11 : vector<1x512xf32> to vector<8x512xf32>
    %13 = arith.addf %10, %12 : vector<8x512xf32>
    %cst_11 = arith.constant 0.000000e+00 : f32
    %14 = vector.broadcast %cst_11 : f32 to vector<8x512xf32>
    %15 = arith.maximumf %13, %14 : vector<8x512xf32>
    %16 = arith.truncf %15 : vector<8x512xf32> to vector<8x512xbf16>
    %c0_12 = arith.constant 0 : index
    %c0_13 = arith.constant 0 : index
    %17 = vector.load %arg6[%c0_12, %c0_13] : memref<512x128xbf16, #tpu.memory_space<vmem>>, vector<512x128xbf16>
    %cst_14 = arith.constant dense<0.000000e+00> : vector<8x128xf32>
    %18 = tpu.matmul %16, %17, %cst_14 {dimension_numbers = #tpu.dot_dimension_numbers<[1], [0], [0], [1], [0, 0, 1, 1], [], []>} : vector<8x512xbf16>, vector<512x128xbf16>, vector<8x128xf32> -> vector<8x128xf32>
    %c0_15 = arith.constant 0 : index
    %c0_16 = arith.constant 0 : index
    %19 = vector.load %arg7[%c0_15, %c0_16] : memref<1x128xf32, #tpu.memory_space<vmem>>, vector<1x128xf32>
    %20 = vector.broadcast %19 : vector<1x128xf32> to vector<8x128xf32>
    %21 = arith.addf %18, %20 : vector<8x128xf32>
    %c0_17 = arith.constant 0 : index
    %c0_18 = arith.constant 0 : index
    %22 = vector.load %arg8[%c0_17, %c0_18] : memref<8x128xf32, #tpu.memory_space<vmem>>, vector<8x128xf32>
    tpu.vector_store %arg8[%c0_17, %c0_18], %21 {strides = array<i32>} : memref<8x128xf32, #tpu.memory_space<vmem>>, vector<8x128xf32>,
    return
  }
  func.func @transform_0(%arg0: i32) -> (i32, i32) {
    %c0_i32 = arith.constant 0 : i32
    %c0_i32_0 = arith.constant 0 : i32
    return %arg0, %c0_i32 : i32, i32
  }
  func.func @transform_1(%arg0: i32) -> (i32, i32) {
    %c0_i32 = arith.constant 0 : i32
    %c0_i32_0 = arith.constant 0 : i32
    %c0_i32_1 = arith.constant 0 : i32
    return %c0_i32, %c0_i32_0 : i32, i32
  }
  func.func @transform_2(%arg0: i32) -> (i32, i32) {
    %c0_i32 = arith.constant 0 : i32
    %c0_i32_0 = arith.constant 0 : i32
    %c0_i32_1 = arith.constant 0 : i32
    return %c0_i32, %c0_i32_0 : i32, i32
  }
  func.func @transform_3(%arg0: i32) -> (i32, i32) {
    %c0_i32 = arith.constant 0 : i32
    %c0_i32_0 = arith.constant 0 : i32
    %c0_i32_1 = arith.constant 0 : i32
    return %c0_i32, %c0_i32_0 : i32, i32
  }
  func.func @transform_4(%arg0: i32) -> (i32, i32) {
    %c0_i32 = arith.constant 0 : i32
    %c0_i32_0 = arith.constant 0 : i32
    %c0_i32_1 = arith.constant 0 : i32
    return %c0_i32, %c0_i32_0 : i32, i32
  }
  func.func @transform_5(%arg0: i32) -> (i32, i32) {
    %c0_i32 = arith.constant 0 : i32
    %c0_i32_0 = arith.constant 0 : i32
    %c0_i32_1 = arith.constant 0 : i32
    return %c0_i32, %c0_i32_0 : i32, i32
  }
  func.func @transform_6(%arg0: i32) -> (i32, i32) {
    %c0_i32 = arith.constant 0 : i32
    %c0_i32_0 = arith.constant 0 : i32
    %c0_i32_1 = arith.constant 0 : i32
    return %c0_i32, %c0_i32_0 : i32, i32
  }
  func.func @transform_7(%arg0: i32) -> (i32, i32) {
    %c0_i32 = arith.constant 0 : i32
    %c0_i32_0 = arith.constant 0 : i32
    return %arg0, %c0_i32 : i32, i32
  }
}

</mosaic_0001>

<bundles_post_ra>
// kernel: tpu_custom_call.1
= control target key start
LH: loop header
LB: loop body
LE: loop exit
PB: predicated region body
PF: predicated region fallthrough
CT: control target
= control target key end

     0   :  { %12 = vsyncpa [#allocation3], 0  ;;  %s16871_s0 = inlined_call_operand.hbm [shape: bf16[8,3072], index: 0, kind: input, shape index: {}]   ;;  %s16872_s1 = inlined_call_operand.hbm [shape: bf16[3072,1024], index: 1, kind: input, shape index: {}]   ;;  %s16873_s2 = inlined_call_operand.hbm [shape: f32[1,1024], index: 2, kind: input, shape index: {}]   ;;  %s16874_s3 = inlined_call_operand.hbm [shape: bf16[1024,512], index: 3, kind: input, shape index: {}]   ;;  %s16875_s4 = inlined_call_operand.hbm [shape: f32[1,512], index: 4, kind: input, shape index: {}]   ;;  %s16876_s5 = inlined_call_operand.hbm [shape: bf16[512,128], index: 5, kind: input, shape index: {}]   ;;  %s16877_s6 = inlined_call_operand.hbm [shape: f32[1,128], index: 6, kind: input, shape index: {}]   ;;  %s16878_s7 = inlined_call_operand.hbm [shape: f32[8,128], index: 7, kind: output, shape index: {}]  }
   0x1   :  { %13 = vsyncpa [#allocation6], 0 }
   0x2   :  { %14 = vsyncpa [#allocation9], 0 }
   0x3   :  { %15 = vsyncpa [#allocation12], 0 }
   0x4   :  { %16 = vsyncpa [#allocation4], 0  ;;  %s16455_s24 = smov [#allocation5]   ;;  %s16269_s28 = scalar_lea.hbm %s16872_s1, 196608 }
   0x5   :  { %s32_s25 = sshll.u32 %s16455_s24, 4  ;;  %p16270_p0 = scmp.ne.s32.totalorder %s16872_s1, %s16269_s28  ;;  %s33_s25 = int_to_ptr.vmem [resolvable:$true] %s32_s25 }
   0x6   :  { %p16273_p1 = scmp.lt.u32.totalorder %s16269_s28, %s16872_s1 }
   0x8   :  { %p16275_p2 = pnand %p16273_p1, %p16270_p0 }
   0xa   :  { %16278 = shalt.err (!%p16275_p2)
}
   0xb   :  { %s16279_s10 = scalar_lea.vmem %s33_s25, 196608  ;;  %p16284_p4 = scmp.lt.s32.totalorder %s33_s25, %s33_s25 }
   0xc   :  { %p16280_p3 = scmp.ne.s32.totalorder %s33_s25, %s16279_s10  ;;  %p16285_p5 = scmp.lt.s32.totalorder %s16279_s10, %s16279_s10 }
   0xe   :  { %p16286_p6 = por %p16285_p5, %p16284_p4 }
  0x10   :  { %p16287_p7 = pnand %p16286_p6, %p16280_p3 }
  0x12   :  { %16290 = shalt.err (!%p16287_p7)
}
  0x13   :  { %s16456_s11 = smov 512   ;;  %s16457_s12 = smov 32  }
  0x14   :  { %38 = dma.hbm_to_vmem [thread:$0]  %s16872_s1, 196608, %s33_s25, [#allocation6], %s16456_s11, %s16456_s11, %s16457_s12  }
  0x15   :  { %s16458_s15 = smov [#allocation8]   ;;  %s16291_s19 = scalar_lea.hbm %s16874_s3, 32768 }
  0x16   :  { %s54_s16 = sshll.u32 %s16458_s15, 4  ;;  %p16292_p8 = scmp.ne.s32.totalorder %s16874_s3, %s16291_s19  ;;  %s55_s16 = int_to_ptr.vmem [resolvable:$true] %s54_s16 }
  0x17   :  { %p16295_p9 = scmp.lt.u32.totalorder %s16291_s19, %s16874_s3 }
  0x19   :  { %p16297_p10 = pnand %p16295_p9, %p16292_p8 }
  0x1b   :  { %16300 = shalt.err (!%p16297_p10)
}
  0x1c   :  { %s16301_s24 = scalar_lea.vmem %s55_s16, 32768  ;;  %p16306_p12 = scmp.lt.s32.totalorder %s55_s16, %s55_s16 }
  0x1d   :  { %p16302_p11 = scmp.ne.s32.totalorder %s55_s16, %s16301_s24  ;;  %p16307_p13 = scmp.lt.s32.totalorder %s16301_s24, %s16301_s24 }
  0x1f   :  { %p16308_p0 = por %p16307_p13, %p16306_p12 }
  0x21   :  { %p16309_p1 = pnand %p16308_p0, %p16302_p11 }
  0x23   :  { %16312 = shalt.err (!%p16309_p1)
}
  0x24   :  { %s16459_s1 = smov 256   ;;  %s16460_s25 = smov 16  }
  0x25   :  { %60 = dma.hbm_to_vmem [thread:$0]  %s16874_s3, 32768, %s55_s16, [#allocation9], %s16459_s1, %s16459_s1, %s16460_s25  }
  0x26   :  { %s16461_s28 = smov [#allocation11]   ;;  %s16313_s9 = scalar_lea.hbm %s16876_s5, 4096 }
  0x27   :  { %s76_s29 = sshll.u32 %s16461_s28, 4  ;;  %p16314_p2 = scmp.ne.s32.totalorder %s16876_s5, %s16313_s9  ;;  %s77_s29 = int_to_ptr.vmem [resolvable:$true] %s76_s29 }
  0x28   :  { %p16317_p3 = scmp.lt.u32.totalorder %s16313_s9, %s16876_s5 }
  0x2a   :  { %p16319_p4 = pnand %p16317_p3, %p16314_p2 }
  0x2c   :  { %16322 = shalt.err (!%p16319_p4)
}
  0x2d   :  { %s16323_s14 = scalar_lea.vmem %s77_s29, 4096  ;;  %p16328_p6 = scmp.lt.s32.totalorder %s77_s29, %s77_s29 }
  0x2e   :  { %p16324_p5 = scmp.ne.s32.totalorder %s77_s29, %s16323_s14  ;;  %p16329_p7 = scmp.lt.s32.totalorder %s16323_s14, %s16323_s14 }
  0x30   :  { %p16330_p8 = por %p16329_p7, %p16328_p6 }
  0x32   :  { %p16331_p9 = pnand %p16330_p8, %p16324_p5 }
  0x34   :  { %16334 = shalt.err (!%p16331_p9)
}
  0x35   :  { %s16462_s3 = smov 64   ;;  %s16463_s15 = smov 4  }
  0x36   :  { %82 = dma.hbm_to_vmem [thread:$0]  %s16876_s5, 4096, %s77_s29, [#allocation12], %s16462_s3, %s16462_s3, %s16463_s15  }
  0x37   :  { %s16464_s18 = smov [#allocation2]   ;;  %s16465_s20 = smov [#allocation7]  }
  0x38   :  { %s23_s19 = sshll.u32 %s16464_s18, 4  ;;  %s45_s21 = sshll.u32 %s16465_s20, 4  ;;  %s24_s19 = int_to_ptr.vmem [resolvable:$true] %s23_s19  ;;  %s46_s21 = int_to_ptr.vmem [resolvable:$true] %s45_s21 }
  0x39   :  { %s16335_s24 = scalar_lea.hbm %s16871_s0, 1536 }
  0x3a   :  { %p16336_p10 = scmp.ne.s32.totalorder %s16871_s0, %s16335_s24  ;;  %p16339_p11 = scmp.lt.u32.totalorder %s16335_s24, %s16871_s0 }
  0x3c   :  { %p16341_p12 = pnand %p16339_p11, %p16336_p10 }
  0x3e   :  { %16344 = shalt.err (!%p16341_p12)
}
  0x3f   :  { %s16345_s5 = scalar_lea.vmem %s24_s19, 1536  ;;  %p16350_p0 = scmp.lt.s32.totalorder %s24_s19, %s24_s19 }
  0x40   :  { %p16346_p13 = scmp.ne.s32.totalorder %s24_s19, %s16345_s5  ;;  %p16351_p1 = scmp.lt.s32.totalorder %s16345_s5, %s16345_s5 }
  0x42   :  { %p16352_p2 = por %p16351_p1, %p16350_p0 }
  0x44   :  { %p16353_p3 = pnand %p16352_p2, %p16346_p13 }
  0x46   :  { %16356 = shalt.err (!%p16353_p3)
}
  0x47   :  { %26 = dma.hbm_to_vmem [thread:$0]  %s16871_s0, 1536, %s24_s19, [#allocation3]  }
  0x48   :  { %s16357_s9 = scalar_lea.hbm %s16873_s2, 128 }
  0x49   :  { %p16358_p4 = scmp.ne.s32.totalorder %s16873_s2, %s16357_s9  ;;  %p16361_p5 = scmp.lt.u32.totalorder %s16357_s9, %s16873_s2 }
  0x4b   :  { %p16363_p6 = pnand %p16361_p5, %p16358_p4 }
  0x4d   :  { %16366 = shalt.err (!%p16363_p6)
}
  0x4e   :  { %s16367_s14 = scalar_lea.vmem %s46_s21, 128  ;;  %p16372_p8 = scmp.lt.s32.totalorder %s46_s21, %s46_s21 }
  0x4f   :  { %p16368_p7 = scmp.ne.s32.totalorder %s46_s21, %s16367_s14  ;;  %p16373_p9 = scmp.lt.s32.totalorder %s16367_s14, %s16367_s14 }
  0x51   :  { %p16374_p10 = por %p16373_p9, %p16372_p8 }
  0x53   :  { %p16375_p11 = pnand %p16374_p10, %p16368_p7 }
  0x55   :  { %16378 = shalt.err (!%p16375_p11)
}
  0x56   :  { %48 = dma.hbm_to_vmem [thread:$0]  %s16873_s2, 128, %s46_s21, [#allocation6]  }
  0x57   :  { %s16466_s15 = smov [#allocation10]   ;;  %s16467_s17 = smov [#allocation13]  }
  0x58   :  { %s67_s16 = sshll.u32 %s16466_s15, 4  ;;  %s89_s18 = sshll.u32 %s16467_s17, 4  ;;  %s68_s16 = int_to_ptr.vmem [resolvable:$true] %s67_s16  ;;  %s90_s18 = int_to_ptr.vmem [resolvable:$true] %s89_s18 }
  0x59   :  { %s16379_s22 = scalar_lea.hbm %s16875_s4, 64 }
  0x5a   :  { %p16380_p12 = scmp.ne.s32.totalorder %s16875_s4, %s16379_s22  ;;  %p16383_p13 = scmp.lt.u32.totalorder %s16379_s22, %s16875_s4 }
  0x5c   :  { %p16385_p0 = pnand %p16383_p13, %p16380_p12 }
  0x5e   :  { %16388 = shalt.err (!%p16385_p0)
}
  0x5f   :  { %s16389_s2 = scalar_lea.vmem %s68_s16, 64  ;;  %p16394_p2 = scmp.lt.s32.totalorder %s68_s16, %s68_s16 }
  0x60   :  { %p16390_p1 = scmp.ne.s32.totalorder %s68_s16, %s16389_s2  ;;  %p16395_p3 = scmp.lt.s32.totalorder %s16389_s2, %s16389_s2 }
  0x62   :  { %p16396_p4 = por %p16395_p3, %p16394_p2 }
  0x64   :  { %p16397_p5 = pnand %p16396_p4, %p16390_p1 }
  0x66   :  { %16400 = shalt.err (!%p16397_p5)
}
  0x67   :  { %70 = dma.hbm_to_vmem [thread:$0]  %s16875_s4, 64, %s68_s16, [#allocation9]  }
  0x68   :  { %s16401_s28 = scalar_lea.hbm %s16877_s6, 16 }
  0x69   :  { %p16402_p6 = scmp.ne.s32.totalorder %s16877_s6, %s16401_s28  ;;  %p16405_p7 = scmp.lt.u32.totalorder %s16401_s28, %s16877_s6 }
  0x6b   :  { %p16407_p8 = pnand %p16405_p7, %p16402_p6 }
  0x6d   :  { %16410 = shalt.err (!%p16407_p8)
}
  0x6e   :  { %s16411_s10 = scalar_lea.vmem %s90_s18, 16  ;;  %s16415_s11 = scalar_lea.vmem %s90_s18, 32 }
  0x6f   :  { %p16412_p9 = scmp.ne.s32.totalorder %s90_s18, %s16411_s10  ;;  %p16416_p10 = scmp.lt.s32.totalorder %s90_s18, %s90_s18 }
  0x70   :  { %p16417_p11 = scmp.lt.s32.totalorder %s16415_s11, %s16411_s10 }
  0x72   :  { %p16418_p12 = por %p16417_p11, %p16416_p10 }
  0x74   :  { %p16419_p13 = pnand %p16418_p12, %p16412_p9 }
  0x76   :  { %16422 = shalt.err (!%p16419_p13)
}
  0x77   :  { %92 = dma.hbm_to_vmem [thread:$0]  %s16877_s6, 16, %s90_s18, [#allocation12]  }
  0x78   :  { %16445 = dma.done.wait [#allocation3], 1536  }
  0x79   :  { %16446 = vsyncadd [#allocation3], 4294965760 }
  0x7a   :  { %16447 = dma.done.wait [#allocation6], 196736  }
  0x7b   :  { %16448 = vsyncadd [#allocation6], 4294770560 }
  0x7c   :  { %16449 = dma.done.wait [#allocation9], 32832  }
  0x7d   :  { %16450 = vsyncadd [#allocation9], 4294934464 }
  0x7e   :  { %16451 = dma.done.wait [#allocation12], 4112  }
  0x7f   :  { %16452 = vsyncadd [#allocation12], 4294963184  ;;  %v127_v0 = vld [vmem:[#allocation5] sm:$0xff]  ;;  %v128_v2 = vld [vmem:[#allocation5 + $0x8] sm:$0xff]  ;;  %s16468_s6 = smov [#allocation14]  }
  0x80   :  { %v131_v1 = vld [vmem:[#allocation5 + $0x20] sm:$0xff]  ;;  %v132_v4 = vld [vmem:[#allocation5 + $0x28] sm:$0xff]  ;;  %s13697_s13 = sshll.u32 %s16468_s6, 4  ;;  %s13698_s13 = int_to_ptr.vmem [resolvable:$true] %s13697_s13 }
  0x81   :  { %v13734_v3 = vcombine.high %v127_v0, %v131_v1  ;;  %v13733_v5 = vcombine.low %v127_v0, %v131_v1  ;;  %v135_v6 = vld [vmem:[#allocation5 + $0x40] sm:$0xff]  ;;  %v13736_v8 = vcombine.high %v128_v2, %v132_v4  ;;  %v13735_v9 = vcombine.low %v128_v2, %v132_v4  ;;  %v136_v11 = vld [vmem:[#allocation5 + $0x48] sm:$0xff]  ;;  %s16423_s14 = scalar_lea.vmem %s13698_s13, 128  ;;  %p16428_p1 = scmp.lt.s32.totalorder %s13698_s13, %s13698_s13 }
  0x82   :  { %v139_v7 = vld [vmem:[#allocation5 + $0x60] sm:$0xff]  ;;  %v140_v12 = vld [vmem:[#allocation5 + $0x68] sm:$0xff]  ;;  %p16424_p0 = scmp.ne.s32.totalorder %s13698_s13, %s16423_s14  ;;  %p16429_p2 = scmp.lt.s32.totalorder %s16423_s14, %s16423_s14 }
  0x83   :  { %v13742_v10 = vcombine.high %v135_v6, %v139_v7  ;;  %v143_v13 = vld [vmem:[#allocation5 + $0x80] sm:$0xff]  ;;  %9469 = vmatprep.subr.bf16.mxu0 %v13734_v3  ;;  %v13744_v14 = vcombine.high %v136_v11, %v140_v12  ;;  %v144_v16 = vld [vmem:[#allocation5 + $0x88] sm:$0xff]  ;;  %9961 = vmatprep.subr.bf16.mxu1 %v13736_v8  ;;  %v13741_v18 = vcombine.low %v135_v6, %v139_v7 }
  0x84   :  { %v147_v15 = vld [vmem:[#allocation5 + $0xa0] sm:$0xff]  ;;  %v148_v17 = vld [vmem:[#allocation5 + $0xa8] sm:$0xff]  ;;  %9470 = vmatpush1.bf16.msra.mxu0 %v13733_v5  ;;  %9962 = vmatpush1.bf16.msra.mxu1 %v13735_v9  ;;  %v13743_v19 = vcombine.low %v136_v11, %v140_v12  ;;  %p16430_p3 = por %p16429_p2, %p16428_p1 }
  0x85   :  { %9471 = vmatprep.subr.bf16.mxu0 %v13742_v10  ;;  %v13750_v20 = vcombine.high %v143_v13, %v147_v15  ;;  %9963 = vmatprep.subr.bf16.mxu1 %v13744_v14  ;;  %v13752_v21 = vcombine.high %v144_v16, %v148_v17  ;;  %v151_v22 = vld [vmem:[#allocation5 + $0xc0] sm:$0xff]  ;;  %v152_v24 = vld [vmem:[#allocation5 + $0xc8] sm:$0xff]  ;;  %v13749_v26 = vcombine.low %v143_v13, %v147_v15 }
  0x86   :  { %v155_v23 = vld [vmem:[#allocation5 + $0xe0] sm:$0xff]  ;;  %v156_v25 = vld [vmem:[#allocation5 + $0xe8] sm:$0xff]  ;;  %v13751_v27 = vcombine.low %v144_v16, %v148_v17  ;;  %p16431_p4 = pnand %p16430_p3, %p16424_p0 }
  0x87   :  { %v13758_v28 = vcombine.high %v151_v22, %v155_v23  ;;  %v13760_v29 = vcombine.high %v152_v24, %v156_v25  ;;  %v159_v30 = vld [vmem:[#allocation5 + $0x100] sm:$0xff]  ;;  %v160_v32 = vld [vmem:[#allocation5 + $0x108] sm:$0xff]  ;;  %v13757_v34 = vcombine.low %v151_v22, %v155_v23  ;;  %v13759_v35 = vcombine.low %v152_v24, %v156_v25 }
  0x88   :  { %9472 = vmatpush1.bf16.msra.mxu0 %v13741_v18  ;;  %9964 = vmatpush1.bf16.msra.mxu1 %v13743_v19  ;;  %v163_v31 = vld [vmem:[#allocation5 + $0x120] sm:$0xff]  ;;  %v164_v33 = vld [vmem:[#allocation5 + $0x128] sm:$0xff] }
  0x89   :  { %9473 = vmatprep.subr.bf16.mxu0 %v13750_v20  ;;  %9965 = vmatprep.subr.bf16.mxu1 %v13752_v21  ;;  %v13766_v36 = vcombine.high %v159_v30, %v163_v31  ;;  %v13768_v37 = vcombine.high %v160_v32, %v164_v33  ;;  %v167_v38 = vld [vmem:[#allocation5 + $0x140] sm:$0xff]  ;;  %v168_v40 = vld [vmem:[#allocation5 + $0x148] sm:$0xff]  ;;  %v13765_v42 = vcombine.low %v159_v30, %v163_v31 }
  0x8a   :  { %v171_v39 = vld [vmem:[#allocation5 + $0x160] sm:$0xff]  ;;  %v172_v41 = vld [vmem:[#allocation5 + $0x168] sm:$0xff]  ;;  %v13767_v43 = vcombine.low %v160_v32, %v164_v33 }
  0x8b   :  { %v13774_v44 = vcombine.high %v167_v38, %v171_v39  ;;  %v13776_v45 = vcombine.high %v168_v40, %v172_v41  ;;  %v175_v46 = vld [vmem:[#allocation5 + $0x180] sm:$0xff]  ;;  %v176_v48 = vld [vmem:[#allocation5 + $0x188] sm:$0xff]  ;;  %v13773_v50 = vcombine.low %v167_v38, %v171_v39  ;;  %v13775_v51 = vcombine.low %v168_v40, %v172_v41 }
  0x8c   :  { %9474 = vmatpush1.bf16.msra.mxu0 %v13749_v26  ;;  %9966 = vmatpush1.bf16.msra.mxu1 %v13751_v27  ;;  %v179_v47 = vld [vmem:[#allocation5 + $0x1a0] sm:$0xff]  ;;  %v180_v49 = vld [vmem:[#allocation5 + $0x1a8] sm:$0xff] }
  0x8d   :  { %9475 = vmatprep.subr.bf16.mxu0 %v13758_v28  ;;  %9967 = vmatprep.subr.bf16.mxu1 %v13760_v29  ;;  %v13782_v52 = vcombine.high %v175_v46, %v179_v47  ;;  %v16593_v53 = vld [vmem:[#allocation2] sm:$0xff]  ;;  %v13784_v54 = vcombine.high %v176_v48, %v180_v49  ;;  %v184_v58 = vld [vmem:[#allocation5 + $0x1c8] sm:$0xff]  ;;  %v13781_v60 = vcombine.low %v175_v46, %v179_v47 }
  0x8e   :  { %v183_v55 = vld [vmem:[#allocation5 + $0x1c0] sm:$0xff]  ;;  %v16597_v57 = vcombine.high %v16593_v53, %v16593_v53  ;;  %v188_v59 = vld [vmem:[#allocation5 + $0x1e8] sm:$0xff]  ;;  %v13783_v61 = vcombine.low %v176_v48, %v180_v49 }
  0x8f   :  { %v187_v56 = vld [vmem:[#allocation5 + $0x1e0] sm:$0xff]  ;;  %v13792_v63 = vcombine.high %v184_v58, %v188_v59  ;;  %v192_v2 = vld [vmem:[#allocation5 + $0x208] sm:$0xff]  ;;  %v13791_v5 = vcombine.low %v184_v58, %v188_v59 }
  0x90   :  { %9476 = vmatpush1.bf16.msra.mxu0 %v13757_v34  ;;  %9968 = vmatpush1.bf16.msra.mxu1 %v13759_v35  ;;  %v13790_v62 = vcombine.high %v183_v55, %v187_v56  ;;  %v191_v0 = vld [vmem:[#allocation5 + $0x200] sm:$0xff]  ;;  %v196_v3 = vld [vmem:[#allocation5 + $0x228] sm:$0xff]  ;;  %v13789_v4 = vcombine.low %v183_v55, %v187_v56 }
  0x91   :  { %9477 = vmatprep.subr.bf16.mxu0 %v13766_v36  ;;  %9969 = vmatprep.subr.bf16.mxu1 %v13768_v37  ;;  %v195_v1 = vld [vmem:[#allocation5 + $0x220] sm:$0xff]  ;;  %v13800_v7 = vcombine.high %v192_v2, %v196_v3  ;;  %v200_v10 = vld [vmem:[#allocation5 + $0x248] sm:$0xff]  ;;  %v13799_v13 = vcombine.low %v192_v2, %v196_v3 }
  0x92   :  { %9501 = vmatprep.mubr.bf16.mxu0 %v16597_v57  ;;  %9993 = vmatprep.mubr.bf16.mxu1 %v16597_v57  ;;  %v13798_v6 = vcombine.high %v191_v0, %v195_v1  ;;  %v199_v8 = vld [vmem:[#allocation5 + $0x240] sm:$0xff]  ;;  %v204_v11 = vld [vmem:[#allocation5 + $0x268] sm:$0xff]  ;;  %v13797_v12 = vcombine.low %v191_v0, %v195_v1 }
  0x93   :  { %v203_v9 = vld [vmem:[#allocation5 + $0x260] sm:$0xff]  ;;  %v13808_v15 = vcombine.high %v200_v10, %v204_v11  ;;  %v208_v18 = vld [vmem:[#allocation5 + $0x288] sm:$0xff]  ;;  %v13807_v21 = vcombine.low %v200_v10, %v204_v11 }
  0x94   :  { %9478 = vmatpush1.bf16.msra.mxu0 %v13765_v42  ;;  %9970 = vmatpush1.bf16.msra.mxu1 %v13767_v43  ;;  %v13806_v14 = vcombine.high %v199_v8, %v203_v9  ;;  %v207_v16 = vld [vmem:[#allocation5 + $0x280] sm:$0xff]  ;;  %v212_v19 = vld [vmem:[#allocation5 + $0x2a8] sm:$0xff]  ;;  %v13805_v20 = vcombine.low %v199_v8, %v203_v9 }
  0x95   :  { %9479 = vmatprep.subr.bf16.mxu0 %v13774_v44  ;;  %9971 = vmatprep.subr.bf16.mxu1 %v13776_v45  ;;  %v211_v17 = vld [vmem:[#allocation5 + $0x2a0] sm:$0xff]  ;;  %v13816_v23 = vcombine.high %v208_v18, %v212_v19  ;;  %v216_v26 = vld [vmem:[#allocation5 + $0x2c8] sm:$0xff]  ;;  %v13815_v29 = vcombine.low %v208_v18, %v212_v19 }
  0x96   :  { %v13814_v22 = vcombine.high %v207_v16, %v211_v17  ;;  %v215_v24 = vld [vmem:[#allocation5 + $0x2c0] sm:$0xff]  ;;  %v220_v27 = vld [vmem:[#allocation5 + $0x2e8] sm:$0xff]  ;;  %v13813_v28 = vcombine.low %v207_v16, %v211_v17 }
  0x97   :  { %v219_v25 = vld [vmem:[#allocation5 + $0x2e0] sm:$0xff]  ;;  %v13824_v31 = vcombine.high %v216_v26, %v220_v27  ;;  %v224_v34 = vld [vmem:[#allocation5 + $0x308] sm:$0xff]  ;;  %v13823_v37 = vcombine.low %v216_v26, %v220_v27 }
  0x98   :  { %9480 = vmatpush1.bf16.msra.mxu0 %v13773_v50  ;;  %9972 = vmatpush1.bf16.msra.mxu1 %v13775_v51  ;;  %v13822_v30 = vcombine.high %v215_v24, %v219_v25  ;;  %v223_v32 = vld [vmem:[#allocation5 + $0x300] sm:$0xff]  ;;  %v228_v35 = vld [vmem:[#allocation5 + $0x328] sm:$0xff]  ;;  %v13821_v36 = vcombine.low %v215_v24, %v219_v25 }
  0x99   :  { %9481 = vmatprep.subr.bf16.mxu0 %v13782_v52  ;;  %9973 = vmatprep.subr.bf16.mxu1 %v13784_v54  ;;  %v227_v33 = vld [vmem:[#allocation5 + $0x320] sm:$0xff]  ;;  %v13832_v39 = vcombine.high %v224_v34, %v228_v35  ;;  %v232_v42 = vld [vmem:[#allocation5 + $0x348] sm:$0xff]  ;;  %v13831_v45 = vcombine.low %v224_v34, %v228_v35 }
  0x9a   :  { %v13830_v38 = vcombine.high %v223_v32, %v227_v33  ;;  %v231_v40 = vld [vmem:[#allocation5 + $0x340] sm:$0xff]  ;;  %v236_v43 = vld [vmem:[#allocation5 + $0x368] sm:$0xff]  ;;  %v13829_v44 = vcombine.low %v223_v32, %v227_v33 }
  0x9b   :  { %v235_v41 = vld [vmem:[#allocation5 + $0x360] sm:$0xff]  ;;  %v13840_v47 = vcombine.high %v232_v42, %v236_v43  ;;  %v240_v50 = vld [vmem:[#allocation5 + $0x388] sm:$0xff]  ;;  %v13839_v54 = vcombine.low %v232_v42, %v236_v43 }
  0x9c   :  { %9482 = vmatpush1.bf16.msra.mxu0 %v13781_v60  ;;  %9974 = vmatpush1.bf16.msra.mxu1 %v13783_v61  ;;  %v13838_v46 = vcombine.high %v231_v40, %v235_v41  ;;  %v239_v48 = vld [vmem:[#allocation5 + $0x380] sm:$0xff]  ;;  %v244_v51 = vld [vmem:[#allocation5 + $0x3a8] sm:$0xff]  ;;  %v13837_v52 = vcombine.low %v231_v40, %v235_v41 }
  0x9d   :  { %9483 = vmatprep.subr.bf16.mxu0 %v13790_v62  ;;  %9975 = vmatprep.subr.bf16.mxu1 %v13792_v63  ;;  %v243_v49 = vld [vmem:[#allocation5 + $0x3a0] sm:$0xff]  ;;  %v13848_v56 = vcombine.high %v240_v50, %v244_v51  ;;  %v248_v60 = vld [vmem:[#allocation5 + $0x3c8] sm:$0xff]  ;;  %v13847_v63 = vcombine.low %v240_v50, %v244_v51 }
  0x9e   :  { %v13846_v55 = vcombine.high %v239_v48, %v243_v49  ;;  %v247_v58 = vld [vmem:[#allocation5 + $0x3c0] sm:$0xff]  ;;  %v252_v61 = vld [vmem:[#allocation5 + $0x3e8] sm:$0xff]  ;;  %v13845_v62 = vcombine.low %v239_v48, %v243_v49 }
  0x9f   :  { %v251_v59 = vld [vmem:[#allocation5 + $0x3e0] sm:$0xff]  ;;  %v13856_v1 = vcombine.high %v248_v60, %v252_v61 }
  0xa0   :  { %9484 = vmatpush1.bf16.msra.mxu0 %v13789_v4  ;;  %9976 = vmatpush1.bf16.msra.mxu1 %v13791_v5  ;;  %v13854_v0 = vcombine.high %v247_v58, %v251_v59  ;;  %v255_v2 = vld [vmem:[#allocation5 + $0x400] sm:$0xff]  ;;  %v256_v4 = vld [vmem:[#allocation5 + $0x408] sm:$0xff] }
  0xa1   :  { %9485 = vmatprep.subr.bf16.mxu0 %v13798_v6  ;;  %9977 = vmatprep.subr.bf16.mxu1 %v13800_v7  ;;  %v259_v3 = vld [vmem:[#allocation5 + $0x420] sm:$0xff]  ;;  %v260_v5 = vld [vmem:[#allocation5 + $0x428] sm:$0xff]  ;;  %v13853_v6 = vcombine.low %v247_v58, %v251_v59  ;;  %v13855_v7 = vcombine.low %v248_v60, %v252_v61 }
  0xa2   :  { %v13862_v8 = vcombine.high %v255_v2, %v259_v3  ;;  %v13864_v9 = vcombine.high %v256_v4, %v260_v5  ;;  %v263_v10 = vld [vmem:[#allocation5 + $0x440] sm:$0xff]  ;;  %v13861_v16 = vcombine.low %v255_v2, %v259_v3  ;;  %v13863_v17 = vcombine.low %v256_v4, %v260_v5 }
  0xa3   :  { %v267_v11 = vld [vmem:[#allocation5 + $0x460] sm:$0xff] }
  0xa4   :  { %9486 = vmatpush1.bf16.msra.mxu0 %v13797_v12  ;;  %9978 = vmatpush1.bf16.msra.mxu1 %v13799_v13  ;;  %v16603_v12 = vcombine.low %v16593_v53, %v16593_v53  ;;  %v264_v13 = vld [vmem:[#allocation5 + $0x448] sm:$0xff]  ;;  %v13870_v18 = vcombine.high %v263_v10, %v267_v11  ;;  %v271_v19 = vld [vmem:[#allocation5 + $0x480] sm:$0xff]  ;;  %v13869_v24 = vcombine.low %v263_v10, %v267_v11 }
  0xa5   :  { %9487 = vmatprep.subr.bf16.mxu0 %v13806_v14  ;;  %9979 = vmatprep.subr.bf16.mxu1 %v13808_v15  ;;  %v268_v14 = vld [vmem:[#allocation5 + $0x468] sm:$0xff]  ;;  %v279_v27 = vld [vmem:[#allocation5 + $0x4c0] sm:$0xff] }
  0xa6   :  { %v16605_v15 = vld [vmem:[#allocation2 + $0x8] sm:$0xff]  ;;  %v13871_v25 = vcombine.low %v264_v13, %v268_v14  ;;  %v287_v35 = vld [vmem:[#allocation5 + $0x500] sm:$0xff] }
  0xa7   :  { %v16609_v53 = vcombine.high %v16605_v15, %v16605_v15  ;;  %v295_v43 = vld [vmem:[#allocation5 + $0x540] sm:$0xff] }
  0xa8   :  { %9488 = vmatpush1.bf16.msra.mxu0 %v13805_v20  ;;  %9980 = vmatpush1.bf16.msra.mxu1 %v13807_v21  ;;  %v275_v20 = vld [vmem:[#allocation5 + $0x4a0] sm:$0xff]  ;;  %v13872_v21 = vcombine.high %v264_v13, %v268_v14 }
  0xa9   :  { %9489 = vmatprep.subr.bf16.mxu0 %v13814_v22  ;;  %9981 = vmatprep.subr.bf16.mxu1 %v13816_v23  ;;  %v272_v22 = vld [vmem:[#allocation5 + $0x488] sm:$0xff]  ;;  %v13878_v26 = vcombine.high %v271_v19, %v275_v20  ;;  %v13877_v32 = vcombine.low %v271_v19, %v275_v20  ;;  %v303_v51 = vld [vmem:[#allocation5 + $0x580] sm:$0xff] }
  0xaa   :  { %v276_v23 = vld [vmem:[#allocation5 + $0x4a8] sm:$0xff]  ;;  %v311_v61 = vld [vmem:[#allocation5 + $0x5c0] sm:$0xff] }
  0xab   :  { %v13879_v33 = vcombine.low %v272_v22, %v276_v23  ;;  %v319_v5 = vld [vmem:[#allocation5 + $0x600] sm:$0xff]  ;;  %v332_v19 = vld [vmem:[#allocation5 + $0x668] sm:$0xff] }
  0xac   :  { %9490 = vmatpush1.bf16.msra.mxu0 %v13813_v28  ;;  %9982 = vmatpush1.bf16.msra.mxu1 %v13815_v29  ;;  %v283_v28 = vld [vmem:[#allocation5 + $0x4e0] sm:$0xff]  ;;  %v280_v29 = vld [vmem:[#allocation5 + $0x4c8] sm:$0xff] }
  0xad   :  { %9491 = vmatprep.subr.bf16.mxu0 %v13822_v30  ;;  %9983 = vmatprep.subr.bf16.mxu1 %v13824_v31  ;;  %v13880_v30 = vcombine.high %v272_v22, %v276_v23  ;;  %v284_v31 = vld [vmem:[#allocation5 + $0x4e8] sm:$0xff]  ;;  %v13886_v34 = vcombine.high %v279_v27, %v283_v28  ;;  %v13885_v40 = vcombine.low %v279_v27, %v283_v28  ;;  %v327_v14 = vld [vmem:[#allocation5 + $0x640] sm:$0xff] }
  0xae   :  { %v13887_v41 = vcombine.low %v280_v29, %v284_v31  ;;  %v335_v23 = vld [vmem:[#allocation5 + $0x680] sm:$0xff]  ;;  %v340_v27 = vld [vmem:[#allocation5 + $0x6a8] sm:$0xff] }
  0xb0   :  { %9492 = vmatpush1.bf16.msra.mxu0 %v13821_v36  ;;  %9984 = vmatpush1.bf16.msra.mxu1 %v13823_v37  ;;  %v291_v36 = vld [vmem:[#allocation5 + $0x520] sm:$0xff]  ;;  %v288_v37 = vld [vmem:[#allocation5 + $0x508] sm:$0xff] }
  0xb1   :  { %9493 = vmatprep.subr.bf16.mxu0 %v13830_v38  ;;  %9985 = vmatprep.subr.bf16.mxu1 %v13832_v39  ;;  %v13888_v38 = vcombine.high %v280_v29, %v284_v31  ;;  %v292_v39 = vld [vmem:[#allocation5 + $0x528] sm:$0xff]  ;;  %v13894_v42 = vcombine.high %v287_v35, %v291_v36  ;;  %v13893_v48 = vcombine.low %v287_v35, %v291_v36  ;;  %v343_v31 = vld [vmem:[#allocation5 + $0x6c0] sm:$0xff] }
  0xb2   :  { %v13895_v49 = vcombine.low %v288_v37, %v292_v39  ;;  %v348_v35 = vld [vmem:[#allocation5 + $0x6e8] sm:$0xff] }
  0xb4   :  { %9494 = vmatpush1.bf16.msra.mxu0 %v13829_v44  ;;  %9986 = vmatpush1.bf16.msra.mxu1 %v13831_v45  ;;  %v299_v44 = vld [vmem:[#allocation5 + $0x560] sm:$0xff]  ;;  %v296_v45 = vld [vmem:[#allocation5 + $0x548] sm:$0xff] }
  0xb5   :  { %9495 = vmatprep.subr.bf16.mxu0 %v13838_v46  ;;  %9987 = vmatprep.subr.bf16.mxu1 %v13840_v47  ;;  %v13896_v46 = vcombine.high %v288_v37, %v292_v39  ;;  %v300_v47 = vld [vmem:[#allocation5 + $0x568] sm:$0xff]  ;;  %v13902_v50 = vcombine.high %v295_v43, %v299_v44  ;;  %v13901_v58 = vcombine.low %v295_v43, %v299_v44  ;;  %v351_v39 = vld [vmem:[#allocation5 + $0x700] sm:$0xff] }
  0xb6   :  { %v13903_v59 = vcombine.low %v296_v45, %v300_v47  ;;  %v356_v43 = vld [vmem:[#allocation5 + $0x728] sm:$0xff] }
  0xb8   :  { %9496 = vmatpush1.bf16.msra.mxu0 %v13837_v52  ;;  %9988 = vmatpush1.bf16.msra.mxu1 %v13839_v54  ;;  %v307_v52 = vld [vmem:[#allocation5 + $0x5a0] sm:$0xff]  ;;  %v304_v54 = vld [vmem:[#allocation5 + $0x588] sm:$0xff] }
  0xb9   :  { %9497 = vmatprep.subr.bf16.mxu0 %v13846_v55  ;;  %9989 = vmatprep.subr.bf16.mxu1 %v13848_v56  ;;  %v13904_v55 = vcombine.high %v296_v45, %v300_v47  ;;  %v308_v56 = vld [vmem:[#allocation5 + $0x5a8] sm:$0xff]  ;;  %v13910_v60 = vcombine.high %v303_v51, %v307_v52  ;;  %v13909_v2 = vcombine.low %v303_v51, %v307_v52  ;;  %v359_v47 = vld [vmem:[#allocation5 + $0x740] sm:$0xff] }
  0xba   :  { %v13911_v3 = vcombine.low %v304_v54, %v308_v56  ;;  %v364_v51 = vld [vmem:[#allocation5 + $0x768] sm:$0xff] }
  0xbc   :  { %9498 = vmatpush1.bf16.msra.mxu0 %v13845_v62  ;;  %9990 = vmatpush1.bf16.msra.mxu1 %v13847_v63  ;;  %v315_v62 = vld [vmem:[#allocation5 + $0x5e0] sm:$0xff]  ;;  %v312_v63 = vld [vmem:[#allocation5 + $0x5c8] sm:$0xff] }
  0xbd   :  { %9499 = vmatprep.subr.bf16.mxu0 %v13854_v0  ;;  %9991 = vmatprep.subr.bf16.mxu1 %v13856_v1  ;;  %v13912_v0 = vcombine.high %v304_v54, %v308_v56  ;;  %v316_v1 = vld [vmem:[#allocation5 + $0x5e8] sm:$0xff]  ;;  %v13918_v4 = vcombine.high %v311_v61, %v315_v62  ;;  %v13917_v10 = vcombine.low %v311_v61, %v315_v62  ;;  %v367_v56 = vld [vmem:[#allocation5 + $0x780] sm:$0xff] }
  0xbe   :  { %v13919_v11 = vcombine.low %v312_v63, %v316_v1  ;;  %v372_v61 = vld [vmem:[#allocation5 + $0x7a8] sm:$0xff] }
  0xc0   :  { %9500 = vmatpush1.bf16.msra.mxu0 %v13853_v6  ;;  %9992 = vmatpush1.bf16.msra.mxu1 %v13855_v7  ;;  %v323_v6 = vld [vmem:[#allocation5 + $0x620] sm:$0xff]  ;;  %v320_v7 = vld [vmem:[#allocation5 + $0x608] sm:$0xff] }
  0xc1   :  { %9510 = vmatprep.subr.bf16.mxu0 %v13862_v8  ;;  %10002 = vmatprep.subr.bf16.mxu1 %v13864_v9  ;;  %v13920_v8 = vcombine.high %v312_v63, %v316_v1  ;;  %v324_v9 = vld [vmem:[#allocation5 + $0x628] sm:$0xff]  ;;  %v13926_v13 = vcombine.high %v319_v5, %v323_v6  ;;  %v13925_v20 = vcombine.low %v319_v5, %v323_v6  ;;  %v375_v1 = vld [vmem:[#allocation5 + $0x7c0] sm:$0xff] }
  0xc2   :  { %v380_v5 = vld [vmem:[#allocation5 + $0x7e8] sm:$0xff] }
  0xc3   :  { %9502 = vmatmul.mubr.bf16.vlgmr.msra.gmra.mrb[0].mxu0 %v16603_v12  ;;  %9994 = vmatmul.mubr.bf16.vlgmr.msra.gmra.mrb[0].mxu1 %v16603_v12 }
  0xc4   :  { %9511 = vmatpush1.bf16.msra.mxu0 %v13861_v16  ;;  %10003 = vmatpush1.bf16.msra.mxu1 %v13863_v17  ;;  %v331_v16 = vld [vmem:[#allocation5 + $0x660] sm:$0xff]  ;;  %v328_v17 = vld [vmem:[#allocation5 + $0x648] sm:$0xff] }
  0xc5   :  { %9512 = vmatprep.subr.bf16.mxu0 %v13870_v18  ;;  %10004 = vmatprep.subr.bf16.mxu1 %v13872_v21  ;;  %v13928_v18 = vcombine.high %v320_v7, %v324_v9  ;;  %v13927_v21 = vcombine.low %v320_v7, %v324_v9  ;;  %v13934_v22 = vcombine.high %v327_v14, %v331_v16  ;;  %v383_v9 = vld [vmem:[#allocation5 + $0x800] sm:$0xff] }
  0xc6   :  { %9542 = vmatprep.mubr.bf16.mxu0 %v16609_v53  ;;  %10034 = vmatprep.mubr.bf16.mxu1 %v16609_v53  ;;  %v13933_v28 = vcombine.low %v327_v14, %v331_v16  ;;  %v13935_v29 = vcombine.low %v328_v17, %v332_v19  ;;  %v388_v14 = vld [vmem:[#allocation5 + $0x828] sm:$0xff] }
  0xc8   :  { %9513 = vmatpush1.bf16.msra.mxu0 %v13869_v24  ;;  %10005 = vmatpush1.bf16.msra.mxu1 %v13871_v25  ;;  %v339_v24 = vld [vmem:[#allocation5 + $0x6a0] sm:$0xff]  ;;  %v336_v25 = vld [vmem:[#allocation5 + $0x688] sm:$0xff] }
  0xc9   :  { %9514 = vmatprep.subr.bf16.mxu0 %v13878_v26  ;;  %10006 = vmatprep.subr.bf16.mxu1 %v13880_v30  ;;  %v13936_v26 = vcombine.high %v328_v17, %v332_v19  ;;  %v13942_v30 = vcombine.high %v335_v23, %v339_v24  ;;  %v13941_v36 = vcombine.low %v335_v23, %v339_v24  ;;  %v391_v17 = vld [vmem:[#allocation5 + $0x840] sm:$0xff]  ;;  %v16615_v24 = vld [vmem:[#allocation2 + $0x10] sm:$0xff] }
  0xca   :  { %v13943_v37 = vcombine.low %v336_v25, %v340_v27 }
  0xcc   :  { %9515 = vmatpush1.bf16.msra.mxu0 %v13877_v32  ;;  %10007 = vmatpush1.bf16.msra.mxu1 %v13879_v33  ;;  %v347_v32 = vld [vmem:[#allocation5 + $0x6e0] sm:$0xff]  ;;  %v344_v33 = vld [vmem:[#allocation5 + $0x6c8] sm:$0xff] }
  0xcd   :  { %9516 = vmatprep.subr.bf16.mxu0 %v13886_v34  ;;  %10008 = vmatprep.subr.bf16.mxu1 %v13888_v38  ;;  %v13944_v34 = vcombine.high %v336_v25, %v340_v27  ;;  %v13950_v38 = vcombine.high %v343_v31, %v347_v32  ;;  %v13949_v44 = vcombine.low %v343_v31, %v347_v32  ;;  %v400_v32 = vld [vmem:[#allocation5 + $0x888] sm:$0xff] }
  0xce   :  { %v13951_v45 = vcombine.low %v344_v33, %v348_v35  ;;  %v16619_v25 = vcombine.low %v16605_v15, %v16605_v15 }
  0xd0   :  { %9517 = vmatpush1.bf16.msra.mxu0 %v13885_v40  ;;  %10009 = vmatpush1.bf16.msra.mxu1 %v13887_v41  ;;  %v355_v40 = vld [vmem:[#allocation5 + $0x720] sm:$0xff]  ;;  %v352_v41 = vld [vmem:[#allocation5 + $0x708] sm:$0xff] }
  0xd1   :  { %9518 = vmatprep.subr.bf16.mxu0 %v13894_v42  ;;  %10010 = vmatprep.subr.bf16.mxu1 %v13896_v46  ;;  %v13952_v42 = vcombine.high %v344_v33, %v348_v35  ;;  %v13958_v46 = vcombine.high %v351_v39, %v355_v40  ;;  %v13957_v52 = vcombine.low %v351_v39, %v355_v40  ;;  %v404_v33 = vld [vmem:[#allocation5 + $0x8a8] sm:$0xff] }
  0xd2   :  { %v13959_v54 = vcombine.low %v352_v41, %v356_v43  ;;  %v408_v39 = vld [vmem:[#allocation5 + $0x8c8] sm:$0xff]  ;;  %v14008_v40 = vcombine.high %v400_v32, %v404_v33 }
  0xd4   :  { %9519 = vmatpush1.bf16.msra.mxu0 %v13893_v48  ;;  %10011 = vmatpush1.bf16.msra.mxu1 %v13895_v49  ;;  %v363_v48 = vld [vmem:[#allocation5 + $0x760] sm:$0xff]  ;;  %v360_v49 = vld [vmem:[#allocation5 + $0x748] sm:$0xff] }
  0xd5   :  { %9520 = vmatprep.subr.bf16.mxu0 %v13902_v50  ;;  %10012 = vmatprep.subr.bf16.mxu1 %v13904_v55  ;;  %v13960_v50 = vcombine.high %v352_v41, %v356_v43  ;;  %v13966_v55 = vcombine.high %v359_v47, %v363_v48  ;;  %v13965_v62 = vcombine.low %v359_v47, %v363_v48  ;;  %v412_v41 = vld [vmem:[#allocation5 + $0x8e8] sm:$0xff] }
  0xd6   :  { %v13967_v63 = vcombine.low %v360_v49, %v364_v51  ;;  %v14007_v43 = vcombine.low %v400_v32, %v404_v33  ;;  %v416_v47 = vld [vmem:[#allocation5 + $0x908] sm:$0xff]  ;;  %v14016_v48 = vcombine.high %v408_v39, %v412_v41 }
  0xd8   :  { %9521 = vmatpush1.bf16.msra.mxu0 %v13901_v58  ;;  %10013 = vmatpush1.bf16.msra.mxu1 %v13903_v59  ;;  %v371_v58 = vld [vmem:[#allocation5 + $0x7a0] sm:$0xff]  ;;  %v368_v59 = vld [vmem:[#allocation5 + $0x788] sm:$0xff] }
  0xd9   :  { %9522 = vmatprep.subr.bf16.mxu0 %v13910_v60  ;;  %10014 = vmatprep.subr.bf16.mxu1 %v13912_v0  ;;  %v13968_v60 = vcombine.high %v360_v49, %v364_v51  ;;  %v13974_v0 = vcombine.high %v367_v56, %v371_v58  ;;  %v13973_v6 = vcombine.low %v367_v56, %v371_v58  ;;  %v420_v49 = vld [vmem:[#allocation5 + $0x928] sm:$0xff] }
  0xda   :  { %v13975_v7 = vcombine.low %v368_v59, %v372_v61  ;;  %v14015_v51 = vcombine.low %v408_v39, %v412_v41  ;;  %v424_v56 = vld [vmem:[#allocation5 + $0x948] sm:$0xff]  ;;  %v14024_v58 = vcombine.high %v416_v47, %v420_v49 }
  0xdb   :  { %v468_v39 = vld [vmem:[#allocation5 + $0xaa8] sm:$0xff] }
  0xdc   :  { %9523 = vmatpush1.bf16.msra.mxu0 %v13909_v2  ;;  %10015 = vmatpush1.bf16.msra.mxu1 %v13911_v3  ;;  %v379_v2 = vld [vmem:[#allocation5 + $0x7e0] sm:$0xff]  ;;  %v376_v3 = vld [vmem:[#allocation5 + $0x7c8] sm:$0xff] }
  0xdd   :  { %9524 = vmatprep.subr.bf16.mxu0 %v13918_v4  ;;  %10016 = vmatprep.subr.bf16.mxu1 %v13920_v8  ;;  %v13976_v4 = vcombine.high %v368_v59, %v372_v61  ;;  %v13982_v8 = vcombine.high %v375_v1, %v379_v2  ;;  %v13981_v16 = vcombine.low %v375_v1, %v379_v2  ;;  %v428_v59 = vld [vmem:[#allocation5 + $0x968] sm:$0xff] }
  0xde   :  { %v14023_v61 = vcombine.low %v416_v47, %v420_v49  ;;  %v432_v1 = vld [vmem:[#allocation5 + $0x988] sm:$0xff]  ;;  %v14032_v2 = vcombine.high %v424_v56, %v428_v59 }
  0xdf   :  { %v476_v47 = vld [vmem:[#allocation5 + $0xae8] sm:$0xff] }
  0xe0   :  { %9525 = vmatpush1.bf16.msra.mxu0 %v13917_v10  ;;  %10017 = vmatpush1.bf16.msra.mxu1 %v13919_v11  ;;  %v387_v10 = vld [vmem:[#allocation5 + $0x820] sm:$0xff]  ;;  %v384_v11 = vld [vmem:[#allocation5 + $0x808] sm:$0xff] }
  0xe1   :  { %9526 = vmatprep.subr.bf16.mxu0 %v13926_v13  ;;  %10018 = vmatprep.subr.bf16.mxu1 %v13928_v18  ;;  %v13984_v13 = vcombine.high %v376_v3, %v380_v5  ;;  %v13983_v18 = vcombine.low %v376_v3, %v380_v5  ;;  %v13990_v19 = vcombine.high %v383_v9, %v387_v10  ;;  %v436_v3 = vld [vmem:[#allocation5 + $0x9a8] sm:$0xff] }
  0xe2   :  { %v13992_v23 = vcombine.high %v384_v11, %v388_v14  ;;  %v13991_v27 = vcombine.low %v384_v11, %v388_v14  ;;  %v14031_v5 = vcombine.low %v424_v56, %v428_v59  ;;  %v444_v11 = vld [vmem:[#allocation5 + $0x9e8] sm:$0xff]  ;;  %v14039_v14 = vcombine.low %v432_v1, %v436_v3 }
  0xe3   :  { %v484_v56 = vld [vmem:[#allocation5 + $0xb28] sm:$0xff] }
  0xe4   :  { %9527 = vmatpush1.bf16.msra.mxu0 %v13925_v20  ;;  %10019 = vmatpush1.bf16.msra.mxu1 %v13927_v21  ;;  %v395_v20 = vld [vmem:[#allocation5 + $0x860] sm:$0xff]  ;;  %v392_v21 = vld [vmem:[#allocation5 + $0x848] sm:$0xff] }
  0xe5   :  { %9528 = vmatprep.subr.bf16.mxu0 %v13934_v22  ;;  %10020 = vmatprep.subr.bf16.mxu1 %v13936_v26  ;;  %v396_v22 = vld [vmem:[#allocation5 + $0x868] sm:$0xff]  ;;  %v13989_v26 = vcombine.low %v383_v9, %v387_v10  ;;  %v13997_v15 = vcombine.low %v391_v17, %v395_v20  ;;  %v14040_v10 = vcombine.high %v432_v1, %v436_v3 }
  0xe6   :  { %v14000_v31 = vcombine.high %v392_v21, %v396_v22  ;;  %v13999_v35 = vcombine.low %v392_v21, %v396_v22  ;;  %v440_v9 = vld [vmem:[#allocation5 + $0x9c8] sm:$0xff] }
  0xe7   :  { %v452_v21 = vld [vmem:[#allocation5 + $0xa28] sm:$0xff] }
  0xe8   :  { %9529 = vmatpush1.bf16.msra.mxu0 %v13933_v28  ;;  %10021 = vmatpush1.bf16.msra.mxu1 %v13935_v29  ;;  %v13998_v28 = vcombine.high %v391_v17, %v395_v20  ;;  %v399_v29 = vld [vmem:[#allocation5 + $0x880] sm:$0xff]  ;;  %v14048_v20 = vcombine.high %v440_v9, %v444_v11  ;;  %v492_v1 = vld [vmem:[#allocation5 + $0xb68] sm:$0xff] }
  0xe9   :  { %9530 = vmatprep.subr.bf16.mxu0 %v13942_v30  ;;  %10022 = vmatprep.subr.bf16.mxu1 %v13944_v34  ;;  %v403_v30 = vld [vmem:[#allocation5 + $0x8a0] sm:$0xff]  ;;  %v16623_v34 = vcombine.high %v16615_v24, %v16615_v24 }
  0xea   :  { %v447_v17 = vld [vmem:[#allocation5 + $0xa00] sm:$0xff] }
  0xec   :  { %9531 = vmatpush1.bf16.msra.mxu0 %v13941_v36  ;;  %10023 = vmatpush1.bf16.msra.mxu1 %v13943_v37  ;;  %v14006_v36 = vcombine.high %v399_v29, %v403_v30  ;;  %v407_v37 = vld [vmem:[#allocation5 + $0x8c0] sm:$0xff] }
  0xed   :  { %9532 = vmatprep.subr.bf16.mxu0 %v13950_v38  ;;  %10024 = vmatprep.subr.bf16.mxu1 %v13952_v42  ;;  %v411_v38 = vld [vmem:[#allocation5 + $0x8e0] sm:$0xff]  ;;  %v14005_v42 = vcombine.low %v399_v29, %v403_v30  ;;  %v456_v29 = vld [vmem:[#allocation5 + $0xa48] sm:$0xff] }
  0xf0   :  { %9533 = vmatpush1.bf16.msra.mxu0 %v13949_v44  ;;  %10025 = vmatpush1.bf16.msra.mxu1 %v13951_v45  ;;  %v14014_v44 = vcombine.high %v407_v37, %v411_v38  ;;  %v415_v45 = vld [vmem:[#allocation5 + $0x900] sm:$0xff] }
  0xf1   :  { %9534 = vmatprep.subr.bf16.mxu0 %v13958_v46  ;;  %10026 = vmatprep.subr.bf16.mxu1 %v13960_v50  ;;  %v419_v46 = vld [vmem:[#allocation5 + $0x920] sm:$0xff]  ;;  %v14013_v50 = vcombine.low %v407_v37, %v411_v38  ;;  %v464_v37 = vld [vmem:[#allocation5 + $0xa88] sm:$0xff] }
  0xf2   :  { %v14071_v49 = vcombine.low %v464_v37, %v468_v39 }
  0xf4   :  { %9535 = vmatpush1.bf16.msra.mxu0 %v13957_v52  ;;  %10027 = vmatpush1.bf16.msra.mxu1 %v13959_v54  ;;  %v14022_v52 = vcombine.high %v415_v45, %v419_v46  ;;  %v423_v54 = vld [vmem:[#allocation5 + $0x940] sm:$0xff] }
  0xf5   :  { %9536 = vmatprep.subr.bf16.mxu0 %v13966_v55  ;;  %10028 = vmatprep.subr.bf16.mxu1 %v13968_v60  ;;  %v427_v55 = vld [vmem:[#allocation5 + $0x960] sm:$0xff]  ;;  %v14021_v60 = vcombine.low %v415_v45, %v419_v46  ;;  %v472_v45 = vld [vmem:[#allocation5 + $0xac8] sm:$0xff]  ;;  %v14072_v46 = vcombine.high %v464_v37, %v468_v39  ;;  %v16633_v39 = vcombine.low %v16615_v24, %v16615_v24 }
  0xf6   :  { %v14079_v59 = vcombine.low %v472_v45, %v476_v47 }
  0xf8   :  { %9537 = vmatpush1.bf16.msra.mxu0 %v13965_v62  ;;  %10029 = vmatpush1.bf16.msra.mxu1 %v13967_v63  ;;  %v14030_v62 = vcombine.high %v423_v54, %v427_v55  ;;  %v431_v63 = vld [vmem:[#allocation5 + $0x980] sm:$0xff] }
  0xf9   :  { %9538 = vmatprep.subr.bf16.mxu0 %v13974_v0  ;;  %10030 = vmatprep.subr.bf16.mxu1 %v13976_v4  ;;  %v435_v0 = vld [vmem:[#allocation5 + $0x9a0] sm:$0xff]  ;;  %v14029_v4 = vcombine.low %v423_v54, %v427_v55  ;;  %v480_v54 = vld [vmem:[#allocation5 + $0xb08] sm:$0xff]  ;;  %v14080_v55 = vcombine.high %v472_v45, %v476_v47 }
  0xfa   :  { %v14087_v3 = vcombine.low %v480_v54, %v484_v56  ;;  %v532_v47 = vld [vmem:[#allocation5 + $0xca8] sm:$0xff] }
  0xfc   :  { %9539 = vmatpush1.bf16.msra.mxu0 %v13973_v6  ;;  %10031 = vmatpush1.bf16.msra.mxu1 %v13975_v7  ;;  %v14038_v6 = vcombine.high %v431_v63, %v435_v0  ;;  %v439_v7 = vld [vmem:[#allocation5 + $0x9c0] sm:$0xff] }
  0xfd   :  { %9540 = vmatprep.subr.bf16.mxu0 %v13982_v8  ;;  %10032 = vmatprep.subr.bf16.mxu1 %v13984_v13  ;;  %v443_v8 = vld [vmem:[#allocation5 + $0x9e0] sm:$0xff]  ;;  %v14037_v13 = vcombine.low %v431_v63, %v435_v0  ;;  %v488_v63 = vld [vmem:[#allocation5 + $0xb48] sm:$0xff]  ;;  %v14088_v0 = vcombine.high %v480_v54, %v484_v56 }
  0xfe   :  { %v14045_v22 = vcombine.low %v439_v7, %v443_v8  ;;  %v536_v54 = vld [vmem:[#allocation5 + $0xcc8] sm:$0xff] }
  0xff   :  { %v540_v56 = vld [vmem:[#allocation5 + $0xce8] sm:$0xff] }
 0x100   :  { %9541 = vmatpush1.bf16.msra.mxu0 %v13981_v16  ;;  %10033 = vmatpush1.bf16.msra.mxu1 %v13983_v18  ;;  %v14046_v16 = vcombine.high %v439_v7, %v443_v8  ;;  %v451_v18 = vld [vmem:[#allocation5 + $0xa20] sm:$0xff]  ;;  %v496_v7 = vld [vmem:[#allocation5 + $0xb88] sm:$0xff]  ;;  %v14096_v8 = vcombine.high %v488_v63, %v492_v1 }
 0x101   :  { %9551 = vmatprep.subr.bf16.mxu0 %v13990_v19  ;;  %10043 = vmatprep.subr.bf16.mxu1 %v13992_v23  ;;  %v448_v19 = vld [vmem:[#allocation5 + $0xa08] sm:$0xff]  ;;  %v14047_v23 = vcombine.low %v440_v9, %v444_v11  ;;  %v14053_v32 = vcombine.low %v447_v17, %v451_v18  ;;  %v14095_v11 = vcombine.low %v488_v63, %v492_v1 }
 0x102   :  { %v14056_v30 = vcombine.high %v448_v19, %v452_v21  ;;  %v14055_v33 = vcombine.low %v448_v19, %v452_v21  ;;  %v500_v9 = vld [vmem:[#allocation5 + $0xba8] sm:$0xff] }
 0x103   :  { %9543 = vmatmul.mubr.bf16.vlgmr.msra.gmra.mrb[0].mxu0 %v16619_v25  ;;  %10035 = vmatmul.mubr.bf16.vlgmr.msra.gmra.mrb[0].mxu1 %v16619_v25  ;;  %v508_v19 = vld [vmem:[#allocation5 + $0xbe8] sm:$0xff]  ;;  %v14103_v21 = vcombine.low %v496_v7, %v500_v9 }
 0x104   :  { %9552 = vmatpush1.bf16.msra.mxu0 %v13989_v26  ;;  %10044 = vmatpush1.bf16.msra.mxu1 %v13991_v27  ;;  %v14054_v26 = vcombine.high %v447_v17, %v451_v18  ;;  %v455_v27 = vld [vmem:[#allocation5 + $0xa40] sm:$0xff]  ;;  %v504_v17 = vld [vmem:[#allocation5 + $0xbc8] sm:$0xff]  ;;  %v14104_v18 = vcombine.high %v496_v7, %v500_v9 }
 0x105   :  { %9553 = vmatprep.subr.bf16.mxu0 %v13998_v28  ;;  %10045 = vmatprep.subr.bf16.mxu1 %v14000_v31  ;;  %v459_v28 = vld [vmem:[#allocation5 + $0xa60] sm:$0xff]  ;;  %v460_v31 = vld [vmem:[#allocation5 + $0xa68] sm:$0xff] }
 0x106   :  { %9583 = vmatprep.mubr.bf16.mxu0 %v16623_v34  ;;  %10075 = vmatprep.mubr.bf16.mxu1 %v16623_v34  ;;  %v14064_v38 = vcombine.high %v456_v29, %v460_v31  ;;  %v14063_v41 = vcombine.low %v456_v29, %v460_v31  ;;  %v516_v29 = vld [vmem:[#allocation5 + $0xc28] sm:$0xff]  ;;  %v519_v31 = vld [vmem:[#allocation5 + $0xc40] sm:$0xff] }
 0x107   :  { %v544_v63 = vld [vmem:[#allocation5 + $0xd08] sm:$0xff] }
 0x108   :  { %9554 = vmatpush1.bf16.msra.mxu0 %v13997_v15  ;;  %10046 = vmatpush1.bf16.msra.mxu1 %v13999_v35  ;;  %v14062_v15 = vcombine.high %v455_v27, %v459_v28  ;;  %v463_v35 = vld [vmem:[#allocation5 + $0xa80] sm:$0xff]  ;;  %v548_v1 = vld [vmem:[#allocation5 + $0xd28] sm:$0xff] }
 0x109   :  { %9555 = vmatprep.subr.bf16.mxu0 %v14006_v36  ;;  %10047 = vmatprep.subr.bf16.mxu1 %v14008_v40  ;;  %v467_v36 = vld [vmem:[#allocation5 + $0xaa0] sm:$0xff]  ;;  %v14061_v40 = vcombine.low %v455_v27, %v459_v28  ;;  %v512_v27 = vld [vmem:[#allocation5 + $0xc08] sm:$0xff]  ;;  %v14112_v28 = vcombine.high %v504_v17, %v508_v19 }
 0x10a   :  { %v14120_v37 = vcombine.high %v512_v27, %v516_v29  ;;  %v552_v7 = vld [vmem:[#allocation5 + $0xd48] sm:$0xff] }
 0x10b   :  { %v556_v9 = vld [vmem:[#allocation5 + $0xd68] sm:$0xff] }
 0x10c   :  { %9556 = vmatpush1.bf16.msra.mxu0 %v14005_v42  ;;  %10048 = vmatpush1.bf16.msra.mxu1 %v14007_v43  ;;  %v14070_v42 = vcombine.high %v463_v35, %v467_v36  ;;  %v471_v43 = vld [vmem:[#allocation5 + $0xac0] sm:$0xff] }
 0x10d   :  { %9557 = vmatprep.subr.bf16.mxu0 %v14014_v44  ;;  %10049 = vmatprep.subr.bf16.mxu1 %v14016_v48  ;;  %v475_v44 = vld [vmem:[#allocation5 + $0xae0] sm:$0xff]  ;;  %v14069_v48 = vcombine.low %v463_v35, %v467_v36  ;;  %v520_v35 = vld [vmem:[#allocation5 + $0xc48] sm:$0xff] }
 0x10e   :  { %v524_v36 = vld [vmem:[#allocation5 + $0xc68] sm:$0xff] }
 0x10f   :  { %v14128_v45 = vcombine.high %v520_v35, %v524_v36 }
 0x110   :  { %9558 = vmatpush1.bf16.msra.mxu0 %v14013_v50  ;;  %10050 = vmatpush1.bf16.msra.mxu1 %v14015_v51  ;;  %v14078_v50 = vcombine.high %v471_v43, %v475_v44  ;;  %v479_v51 = vld [vmem:[#allocation5 + $0xb00] sm:$0xff] }
 0x111   :  { %9559 = vmatprep.subr.bf16.mxu0 %v14022_v52  ;;  %10051 = vmatprep.subr.bf16.mxu1 %v14024_v58  ;;  %v483_v52 = vld [vmem:[#allocation5 + $0xb20] sm:$0xff]  ;;  %v14077_v58 = vcombine.low %v471_v43, %v475_v44 }
 0x112   :  { %v527_v43 = vld [vmem:[#allocation5 + $0xc80] sm:$0xff] }
 0x113   :  { %v531_v44 = vld [vmem:[#allocation5 + $0xca0] sm:$0xff] }
 0x114   :  { %9560 = vmatpush1.bf16.msra.mxu0 %v14021_v60  ;;  %10052 = vmatpush1.bf16.msra.mxu1 %v14023_v61  ;;  %v14086_v60 = vcombine.high %v479_v51, %v483_v52  ;;  %v487_v61 = vld [vmem:[#allocation5 + $0xb40] sm:$0xff] }
 0x115   :  { %9561 = vmatprep.subr.bf16.mxu0 %v14030_v62  ;;  %10053 = vmatprep.subr.bf16.mxu1 %v14032_v2  ;;  %v491_v62 = vld [vmem:[#allocation5 + $0xb60] sm:$0xff]  ;;  %v14085_v2 = vcombine.low %v479_v51, %v483_v52 }
 0x116   :  { %v535_v51 = vld [vmem:[#allocation5 + $0xcc0] sm:$0xff] }
 0x117   :  { %v539_v52 = vld [vmem:[#allocation5 + $0xce0] sm:$0xff] }
 0x118   :  { %9562 = vmatpush1.bf16.msra.mxu0 %v14029_v4  ;;  %10054 = vmatpush1.bf16.msra.mxu1 %v14031_v5  ;;  %v14094_v4 = vcombine.high %v487_v61, %v491_v62  ;;  %v495_v5 = vld [vmem:[#allocation5 + $0xb80] sm:$0xff] }
 0x119   :  { %9563 = vmatprep.subr.bf16.mxu0 %v14038_v6  ;;  %10055 = vmatprep.subr.bf16.mxu1 %v14040_v10  ;;  %v499_v6 = vld [vmem:[#allocation5 + $0xba0] sm:$0xff]  ;;  %v14093_v10 = vcombine.low %v487_v61, %v491_v62 }
 0x11a   :  { %v543_v61 = vld [vmem:[#allocation5 + $0xd00] sm:$0xff] }
 0x11b   :  { %v547_v62 = vld [vmem:[#allocation5 + $0xd20] sm:$0xff] }
 0x11c   :  { %9564 = vmatpush1.bf16.msra.mxu0 %v14037_v13  ;;  %10056 = vmatpush1.bf16.msra.mxu1 %v14039_v14  ;;  %v14102_v13 = vcombine.high %v495_v5, %v499_v6  ;;  %v503_v14 = vld [vmem:[#allocation5 + $0xbc0] sm:$0xff] }
 0x11d   :  { %9565 = vmatprep.subr.bf16.mxu0 %v14046_v16  ;;  %10057 = vmatprep.subr.bf16.mxu1 %v14048_v20  ;;  %v507_v16 = vld [vmem:[#allocation5 + $0xbe0] sm:$0xff]  ;;  %v14101_v20 = vcombine.low %v495_v5, %v499_v6 }
 0x11e   :  { %v551_v5 = vld [vmem:[#allocation5 + $0xd40] sm:$0xff] }
 0x11f   :  { %v555_v6 = vld [vmem:[#allocation5 + $0xd60] sm:$0xff] }
 0x120   :  { %9566 = vmatpush1.bf16.msra.mxu0 %v14045_v22  ;;  %10058 = vmatpush1.bf16.msra.mxu1 %v14047_v23  ;;  %v14110_v22 = vcombine.high %v503_v14, %v507_v16  ;;  %v511_v23 = vld [vmem:[#allocation5 + $0xc00] sm:$0xff] }
 0x121   :  { %9567 = vmatprep.subr.bf16.mxu0 %v14054_v26  ;;  %10059 = vmatprep.subr.bf16.mxu1 %v14056_v30  ;;  %v515_v26 = vld [vmem:[#allocation5 + $0xc20] sm:$0xff]  ;;  %v14109_v30 = vcombine.low %v503_v14, %v507_v16 }
 0x122   :  { %v559_v14 = vld [vmem:[#allocation5 + $0xd80] sm:$0xff] }
 0x123   :  { %v563_v16 = vld [vmem:[#allocation5 + $0xda0] sm:$0xff] }
 0x124   :  { %9568 = vmatpush1.bf16.msra.mxu0 %v14053_v32  ;;  %10060 = vmatpush1.bf16.msra.mxu1 %v14055_v33  ;;  %v14111_v32 = vcombine.low %v504_v17, %v508_v19  ;;  %v14118_v33 = vcombine.high %v511_v23, %v515_v26  ;;  %v560_v17 = vld [vmem:[#allocation5 + $0xd88] sm:$0xff] }
 0x125   :  { %9569 = vmatprep.subr.bf16.mxu0 %v14062_v15  ;;  %10061 = vmatprep.subr.bf16.mxu1 %v14064_v38  ;;  %v523_v15 = vld [vmem:[#allocation5 + $0xc60] sm:$0xff]  ;;  %v16629_v38 = vld [vmem:[#allocation2 + $0x18] sm:$0xff]  ;;  %v564_v19 = vld [vmem:[#allocation5 + $0xda8] sm:$0xff] }
 0x126   :  { %v14125_v24 = vcombine.low %v519_v31, %v523_v15 }
 0x128   :  { %9570 = vmatpush1.bf16.msra.mxu0 %v14061_v40  ;;  %10062 = vmatpush1.bf16.msra.mxu1 %v14063_v41  ;;  %v14117_v40 = vcombine.low %v511_v23, %v515_v26  ;;  %v14119_v41 = vcombine.low %v512_v27, %v516_v29  ;;  %v567_v23 = vld [vmem:[#allocation5 + $0xdc0] sm:$0xff]  ;;  %v568_v27 = vld [vmem:[#allocation5 + $0xdc8] sm:$0xff] }
 0x129   :  { %9571 = vmatprep.subr.bf16.mxu0 %v14070_v42  ;;  %10063 = vmatprep.subr.bf16.mxu1 %v14072_v46  ;;  %v14126_v42 = vcombine.high %v519_v31, %v523_v15  ;;  %v528_v46 = vld [vmem:[#allocation5 + $0xc88] sm:$0xff]  ;;  %v571_v26 = vld [vmem:[#allocation5 + $0xde0] sm:$0xff]  ;;  %v14167_v31 = vcombine.low %v560_v17, %v564_v19 }
 0x12a   :  { %v572_v29 = vld [vmem:[#allocation5 + $0xde8] sm:$0xff]  ;;  %v579_v15 = vld [vmem:[#allocation5 + $0xe20] sm:$0xff] }
 0x12c   :  { %9572 = vmatpush1.bf16.msra.mxu0 %v14069_v48  ;;  %10064 = vmatpush1.bf16.msra.mxu1 %v14071_v49  ;;  %v16637_v48 = vcombine.high %v16629_v38, %v16629_v38  ;;  %v14127_v49 = vcombine.low %v520_v35, %v524_v36  ;;  %v576_v35 = vld [vmem:[#allocation5 + $0xe08] sm:$0xff]  ;;  %v14176_v36 = vcombine.high %v568_v27, %v572_v29 }
 0x12d   :  { %9573 = vmatprep.subr.bf16.mxu0 %v14078_v50  ;;  %10065 = vmatprep.subr.bf16.mxu1 %v14080_v55  ;;  %v14134_v50 = vcombine.high %v527_v43, %v531_v44  ;;  %v14136_v55 = vcombine.high %v528_v46, %v532_v47 }
 0x130   :  { %9574 = vmatpush1.bf16.msra.mxu0 %v14077_v58  ;;  %10066 = vmatpush1.bf16.msra.mxu1 %v14079_v59  ;;  %v14133_v58 = vcombine.low %v527_v43, %v531_v44  ;;  %v14135_v59 = vcombine.low %v528_v46, %v532_v47  ;;  %v583_v43 = vld [vmem:[#allocation5 + $0xe40] sm:$0xff]  ;;  %v588_v47 = vld [vmem:[#allocation5 + $0xe68] sm:$0xff] }
 0x131   :  { %9575 = vmatprep.subr.bf16.mxu0 %v14086_v60  ;;  %10067 = vmatprep.subr.bf16.mxu1 %v14088_v0  ;;  %v14142_v60 = vcombine.high %v535_v51, %v539_v52  ;;  %v14144_v0 = vcombine.high %v536_v54, %v540_v56  ;;  %v587_v44 = vld [vmem:[#allocation5 + $0xe60] sm:$0xff] }
 0x134   :  { %9576 = vmatpush1.bf16.msra.mxu0 %v14085_v2  ;;  %10068 = vmatpush1.bf16.msra.mxu1 %v14087_v3  ;;  %v14141_v2 = vcombine.low %v535_v51, %v539_v52  ;;  %v14143_v3 = vcombine.low %v536_v54, %v540_v56  ;;  %v591_v51 = vld [vmem:[#allocation5 + $0xe80] sm:$0xff]  ;;  %v596_v56 = vld [vmem:[#allocation5 + $0xea8] sm:$0xff] }
 0x135   :  { %9577 = vmatprep.subr.bf16.mxu0 %v14094_v4  ;;  %10069 = vmatprep.subr.bf16.mxu1 %v14096_v8  ;;  %v14150_v4 = vcombine.high %v543_v61, %v547_v62  ;;  %v14152_v8 = vcombine.high %v544_v63, %v548_v1  ;;  %v595_v54 = vld [vmem:[#allocation5 + $0xea0] sm:$0xff] }
 0x138   :  { %9578 = vmatpush1.bf16.msra.mxu0 %v14093_v10  ;;  %10070 = vmatpush1.bf16.msra.mxu1 %v14095_v11  ;;  %v14149_v10 = vcombine.low %v543_v61, %v547_v62  ;;  %v14151_v11 = vcombine.low %v544_v63, %v548_v1  ;;  %v599_v62 = vld [vmem:[#allocation5 + $0xec0] sm:$0xff]  ;;  %v604_v1 = vld [vmem:[#allocation5 + $0xee8] sm:$0xff] }
 0x139   :  { %9579 = vmatprep.subr.bf16.mxu0 %v14102_v13  ;;  %10071 = vmatprep.subr.bf16.mxu1 %v14104_v18  ;;  %v14158_v13 = vcombine.high %v551_v5, %v555_v6  ;;  %v14160_v18 = vcombine.high %v552_v7, %v556_v9  ;;  %v603_v63 = vld [vmem:[#allocation5 + $0xee0] sm:$0xff] }
 0x13c   :  { %9580 = vmatpush1.bf16.msra.mxu0 %v14101_v20  ;;  %10072 = vmatpush1.bf16.msra.mxu1 %v14103_v21  ;;  %v14157_v20 = vcombine.low %v551_v5, %v555_v6  ;;  %v14159_v21 = vcombine.low %v552_v7, %v556_v9  ;;  %v607_v6 = vld [vmem:[#allocation5 + $0xf00] sm:$0xff]  ;;  %v612_v9 = vld [vmem:[#allocation5 + $0xf28] sm:$0xff] }
 0x13d   :  { %9581 = vmatprep.subr.bf16.mxu0 %v14110_v22  ;;  %10073 = vmatprep.subr.bf16.mxu1 %v14112_v28  ;;  %v14166_v22 = vcombine.high %v559_v14, %v563_v16  ;;  %v14168_v28 = vcombine.high %v560_v17, %v564_v19  ;;  %v611_v7 = vld [vmem:[#allocation5 + $0xf20] sm:$0xff]  ;;  %v620_v19 = vld [vmem:[#allocation5 + $0xf68] sm:$0xff] }
 0x13e   :  { %v619_v17 = vld [vmem:[#allocation5 + $0xf60] sm:$0xff] }
 0x140   :  { %9582 = vmatpush1.bf16.msra.mxu0 %v14109_v30  ;;  %10074 = vmatpush1.bf16.msra.mxu1 %v14111_v32  ;;  %v14165_v30 = vcombine.low %v559_v14, %v563_v16  ;;  %v14174_v32 = vcombine.high %v567_v23, %v571_v26  ;;  %v615_v16 = vld [vmem:[#allocation5 + $0xf40] sm:$0xff] }
 0x141   :  { %9592 = vmatprep.subr.bf16.mxu0 %v14118_v33  ;;  %10084 = vmatprep.subr.bf16.mxu1 %v14120_v37  ;;  %v575_v33 = vld [vmem:[#allocation5 + $0xe00] sm:$0xff]  ;;  %v580_v37 = vld [vmem:[#allocation5 + $0xe28] sm:$0xff] }
 0x142   :  { %v14184_v46 = vcombine.high %v576_v35, %v580_v37 }
 0x143   :  { %9584 = vmatmul.mubr.bf16.vlgmr.msra.gmra.mrb[0].mxu0 %v16633_v39  ;;  %10076 = vmatmul.mubr.bf16.vlgmr.msra.gmra.mrb[0].mxu1 %v16633_v39 }
 0x144   :  { %9593 = vmatpush1.bf16.msra.mxu0 %v14117_v40  ;;  %10085 = vmatpush1.bf16.msra.mxu1 %v14119_v41  ;;  %v14173_v40 = vcombine.low %v567_v23, %v571_v26  ;;  %v14175_v41 = vcombine.low %v568_v27, %v572_v29  ;;  %v623_v26 = vld [vmem:[#allocation5 + $0xf80] sm:$0xff]  ;;  %v628_v29 = vld [vmem:[#allocation5 + $0xfa8] sm:$0xff] }
 0x145   :  { %9594 = vmatprep.subr.bf16.mxu0 %v14126_v42  ;;  %10086 = vmatprep.subr.bf16.mxu1 %v14128_v45  ;;  %v14182_v42 = vcombine.high %v575_v33, %v579_v15  ;;  %v584_v45 = vld [vmem:[#allocation5 + $0xe48] sm:$0xff]  ;;  %v627_v27 = vld [vmem:[#allocation5 + $0xfa0] sm:$0xff] }
 0x146   :  { %9624 = vmatprep.mubr.bf16.mxu0 %v16637_v48  ;;  %10116 = vmatprep.mubr.bf16.mxu1 %v16637_v48  ;;  %v14192_v52 = vcombine.high %v584_v45, %v588_v47 }
 0x148   :  { %9595 = vmatpush1.bf16.msra.mxu0 %v14125_v24  ;;  %10087 = vmatpush1.bf16.msra.mxu1 %v14127_v49  ;;  %v14181_v24 = vcombine.low %v575_v33, %v579_v15  ;;  %v14183_v49 = vcombine.low %v576_v35, %v580_v37  ;;  %v631_v15 = vld [vmem:[#allocation5 + $0xfc0] sm:$0xff]  ;;  %v636_v37 = vld [vmem:[#allocation5 + $0xfe8] sm:$0xff] }
 0x149   :  { %9596 = vmatprep.subr.bf16.mxu0 %v14134_v50  ;;  %10088 = vmatprep.subr.bf16.mxu1 %v14136_v55  ;;  %v14190_v50 = vcombine.high %v583_v43, %v587_v44  ;;  %v592_v55 = vld [vmem:[#allocation5 + $0xe88] sm:$0xff]  ;;  %v635_v35 = vld [vmem:[#allocation5 + $0xfe0] sm:$0xff] }
 0x14a   :  { %v14200_v61 = vcombine.high %v592_v55, %v596_v56 }
 0x14c   :  { %9597 = vmatpush1.bf16.msra.mxu0 %v14133_v58  ;;  %10089 = vmatpush1.bf16.msra.mxu1 %v14135_v59  ;;  %v14189_v58 = vcombine.low %v583_v43, %v587_v44  ;;  %v14191_v59 = vcombine.low %v584_v45, %v588_v47  ;;  %v639_v44 = vld [vmem:[#allocation5 + $0x1000] sm:$0xff]  ;;  %v644_v47 = vld [vmem:[#allocation5 + $0x1028] sm:$0xff] }
 0x14d   :  { %9598 = vmatprep.subr.bf16.mxu0 %v14142_v60  ;;  %10090 = vmatprep.subr.bf16.mxu1 %v14144_v0  ;;  %v14198_v60 = vcombine.high %v591_v51, %v595_v54  ;;  %v600_v0 = vld [vmem:[#allocation5 + $0xec8] sm:$0xff]  ;;  %v643_v45 = vld [vmem:[#allocation5 + $0x1020] sm:$0xff] }
 0x14e   :  { %v14208_v5 = vcombine.high %v600_v0, %v604_v1 }
 0x150   :  { %9599 = vmatpush1.bf16.msra.mxu0 %v14141_v2  ;;  %10091 = vmatpush1.bf16.msra.mxu1 %v14143_v3  ;;  %v14197_v2 = vcombine.low %v591_v51, %v595_v54  ;;  %v14199_v3 = vcombine.low %v592_v55, %v596_v56  ;;  %v651_v54 = vld [vmem:[#allocation5 + $0x1060] sm:$0xff]  ;;  %v16645_v55 = vcombine.low %v16629_v38, %v16629_v38  ;;  %v648_v56 = vld [vmem:[#allocation5 + $0x1048] sm:$0xff] }
 0x151   :  { %9600 = vmatprep.subr.bf16.mxu0 %v14150_v4  ;;  %10092 = vmatprep.subr.bf16.mxu1 %v14152_v8  ;;  %v14206_v4 = vcombine.high %v599_v62, %v603_v63  ;;  %v608_v8 = vld [vmem:[#allocation5 + $0xf08] sm:$0xff] }
 0x152   :  { %v14216_v14 = vcombine.high %v608_v8, %v612_v9  ;;  %v656_v38 = vld [vmem:[#allocation5 + $0x1088] sm:$0xff] }
 0x154   :  { %9601 = vmatpush1.bf16.msra.mxu0 %v14149_v10  ;;  %10093 = vmatpush1.bf16.msra.mxu1 %v14151_v11  ;;  %v14205_v10 = vcombine.low %v599_v62, %v603_v63  ;;  %v14207_v11 = vcombine.low %v600_v0, %v604_v1  ;;  %v655_v0 = vld [vmem:[#allocation5 + $0x1080] sm:$0xff] }
 0x155   :  { %9602 = vmatprep.subr.bf16.mxu0 %v14158_v13  ;;  %10094 = vmatprep.subr.bf16.mxu1 %v14160_v18  ;;  %v14214_v13 = vcombine.high %v607_v6, %v611_v7  ;;  %v616_v18 = vld [vmem:[#allocation5 + $0xf48] sm:$0xff]  ;;  %v659_v1 = vld [vmem:[#allocation5 + $0x10a0] sm:$0xff] }
 0x156   :  { %v14224_v23 = vcombine.high %v616_v18, %v620_v19 }
 0x158   :  { %9603 = vmatpush1.bf16.msra.mxu0 %v14157_v20  ;;  %10095 = vmatpush1.bf16.msra.mxu1 %v14159_v21  ;;  %v14213_v20 = vcombine.low %v607_v6, %v611_v7  ;;  %v14215_v21 = vcombine.low %v608_v8, %v612_v9  ;;  %v14262_v6 = vcombine.high %v655_v0, %v659_v1  ;;  %v663_v8 = vld [vmem:[#allocation5 + $0x10c0] sm:$0xff] }
 0x159   :  { %9604 = vmatprep.subr.bf16.mxu0 %v14166_v22  ;;  %10096 = vmatprep.subr.bf16.mxu1 %v14168_v28  ;;  %v14222_v22 = vcombine.high %v615_v16, %v619_v17  ;;  %v624_v28 = vld [vmem:[#allocation5 + $0xf88] sm:$0xff]  ;;  %v667_v9 = vld [vmem:[#allocation5 + $0x10e0] sm:$0xff] }
 0x15a   :  { %v14232_v33 = vcombine.high %v624_v28, %v628_v29 }
 0x15c   :  { %9605 = vmatpush1.bf16.msra.mxu0 %v14165_v30  ;;  %10097 = vmatpush1.bf16.msra.mxu1 %v14167_v31  ;;  %v14221_v30 = vcombine.low %v615_v16, %v619_v17  ;;  %v14223_v31 = vcombine.low %v616_v18, %v620_v19  ;;  %v14270_v16 = vcombine.high %v663_v8, %v667_v9  ;;  %v671_v18 = vld [vmem:[#allocation5 + $0x1100] sm:$0xff] }
 0x15d   :  { %9606 = vmatprep.subr.bf16.mxu0 %v14174_v32  ;;  %10098 = vmatprep.subr.bf16.mxu1 %v14176_v36  ;;  %v14230_v32 = vcombine.high %v623_v26, %v627_v27  ;;  %v632_v36 = vld [vmem:[#allocation5 + $0xfc8] sm:$0xff]  ;;  %v675_v19 = vld [vmem:[#allocation5 + $0x1120] sm:$0xff] }
 0x15e   :  { %v14240_v43 = vcombine.high %v632_v36, %v636_v37 }
 0x160   :  { %9607 = vmatpush1.bf16.msra.mxu0 %v14173_v40  ;;  %10099 = vmatpush1.bf16.msra.mxu1 %v14175_v41  ;;  %v14229_v40 = vcombine.low %v623_v26, %v627_v27  ;;  %v14231_v41 = vcombine.low %v624_v28, %v628_v29  ;;  %v14278_v26 = vcombine.high %v671_v18, %v675_v19  ;;  %v679_v28 = vld [vmem:[#allocation5 + $0x1140] sm:$0xff] }
 0x161   :  { %9608 = vmatprep.subr.bf16.mxu0 %v14182_v42  ;;  %10100 = vmatprep.subr.bf16.mxu1 %v14184_v46  ;;  %v14238_v42 = vcombine.high %v631_v15, %v635_v35  ;;  %v640_v46 = vld [vmem:[#allocation5 + $0x1008] sm:$0xff]  ;;  %v683_v29 = vld [vmem:[#allocation5 + $0x1160] sm:$0xff] }
 0x162   :  { %v14248_v51 = vcombine.high %v640_v46, %v644_v47 }
 0x164   :  { %9609 = vmatpush1.bf16.msra.mxu0 %v14181_v24  ;;  %10101 = vmatpush1.bf16.msra.mxu1 %v14183_v49  ;;  %v14237_v24 = vcombine.low %v631_v15, %v635_v35  ;;  %v14239_v49 = vcombine.low %v632_v36, %v636_v37  ;;  %v14286_v15 = vcombine.high %v679_v28, %v683_v29  ;;  %v687_v36 = vld [vmem:[#allocation5 + $0x1180] sm:$0xff] }
 0x165   :  { %9610 = vmatprep.subr.bf16.mxu0 %v14190_v50  ;;  %10102 = vmatprep.subr.bf16.mxu1 %v14192_v52  ;;  %v14246_v50 = vcombine.high %v639_v44, %v643_v45  ;;  %v647_v52 = vld [vmem:[#allocation5 + $0x1040] sm:$0xff] }
 0x166   :  { %v14254_v62 = vcombine.high %v647_v52, %v651_v54  ;;  %v691_v37 = vld [vmem:[#allocation5 + $0x11a0] sm:$0xff] }
 0x168   :  { %9611 = vmatpush1.bf16.msra.mxu0 %v14189_v58  ;;  %10103 = vmatpush1.bf16.msra.mxu1 %v14191_v59  ;;  %v652_v58 = vld [vmem:[#allocation5 + $0x1068] sm:$0xff]  ;;  %v16647_v59 = vld [vmem:[#allocation2 + $0x20] sm:$0xff] }
 0x169   :  { %9612 = vmatprep.subr.bf16.mxu0 %v14198_v60  ;;  %10104 = vmatprep.subr.bf16.mxu1 %v14200_v61  ;;  %v14245_v60 = vcombine.low %v639_v44, %v643_v45  ;;  %v14247_v61 = vcombine.low %v640_v46, %v644_v47  ;;  %v14256_v63 = vcombine.high %v648_v56, %v652_v58  ;;  %v695_v46 = vld [vmem:[#allocation5 + $0x11c0] sm:$0xff] }
 0x16a   :  { %v14294_v44 = vcombine.high %v687_v36, %v691_v37  ;;  %v699_v47 = vld [vmem:[#allocation5 + $0x11e0] sm:$0xff] }
 0x16c   :  { %9613 = vmatpush1.bf16.msra.mxu0 %v14197_v2  ;;  %10105 = vmatpush1.bf16.msra.mxu1 %v14199_v3  ;;  %v16651_v2 = vcombine.high %v16647_v59, %v16647_v59  ;;  %v660_v3 = vld [vmem:[#allocation5 + $0x10a8] sm:$0xff] }
 0x16d   :  { %9614 = vmatprep.subr.bf16.mxu0 %v14206_v4  ;;  %10106 = vmatprep.subr.bf16.mxu1 %v14208_v5  ;;  %v14253_v4 = vcombine.low %v647_v52, %v651_v54  ;;  %v14255_v5 = vcombine.low %v648_v56, %v652_v58  ;;  %v14264_v7 = vcombine.high %v656_v38, %v660_v3  ;;  %v703_v56 = vld [vmem:[#allocation5 + $0x1200] sm:$0xff] }
 0x16e   :  { %v14302_v52 = vcombine.high %v695_v46, %v699_v47  ;;  %v707_v58 = vld [vmem:[#allocation5 + $0x1220] sm:$0xff] }
 0x170   :  { %9615 = vmatpush1.bf16.msra.mxu0 %v14205_v10  ;;  %10107 = vmatpush1.bf16.msra.mxu1 %v14207_v11  ;;  %v664_v10 = vld [vmem:[#allocation5 + $0x10c8] sm:$0xff] }
 0x171   :  { %9616 = vmatprep.subr.bf16.mxu0 %v14214_v13  ;;  %10108 = vmatprep.subr.bf16.mxu1 %v14216_v14  ;;  %v668_v11 = vld [vmem:[#allocation5 + $0x10e8] sm:$0xff]  ;;  %v14261_v13 = vcombine.low %v655_v0, %v659_v1  ;;  %v14263_v14 = vcombine.low %v656_v38, %v660_v3  ;;  %v14310_v0 = vcombine.high %v703_v56, %v707_v58  ;;  %v711_v38 = vld [vmem:[#allocation5 + $0x1240] sm:$0xff] }
 0x172   :  { %v14272_v17 = vcombine.high %v664_v10, %v668_v11  ;;  %v715_v3 = vld [vmem:[#allocation5 + $0x1260] sm:$0xff] }
 0x174   :  { %9617 = vmatpush1.bf16.msra.mxu0 %v14213_v20  ;;  %10109 = vmatpush1.bf16.msra.mxu1 %v14215_v21  ;;  %v672_v20 = vld [vmem:[#allocation5 + $0x1108] sm:$0xff] }
 0x175   :  { %9618 = vmatprep.subr.bf16.mxu0 %v14222_v22  ;;  %10110 = vmatprep.subr.bf16.mxu1 %v14224_v23  ;;  %v676_v21 = vld [vmem:[#allocation5 + $0x1128] sm:$0xff]  ;;  %v14269_v22 = vcombine.low %v663_v8, %v667_v9  ;;  %v14271_v23 = vcombine.low %v664_v10, %v668_v11  ;;  %v14318_v8 = vcombine.high %v711_v38, %v715_v3  ;;  %v719_v10 = vld [vmem:[#allocation5 + $0x1280] sm:$0xff] }
 0x176   :  { %v14280_v27 = vcombine.high %v672_v20, %v676_v21  ;;  %v723_v11 = vld [vmem:[#allocation5 + $0x12a0] sm:$0xff] }
 0x178   :  { %9619 = vmatpush1.bf16.msra.mxu0 %v14221_v30  ;;  %10111 = vmatpush1.bf16.msra.mxu1 %v14223_v31  ;;  %v680_v30 = vld [vmem:[#allocation5 + $0x1148] sm:$0xff] }
 0x179   :  { %9620 = vmatprep.subr.bf16.mxu0 %v14230_v32  ;;  %10112 = vmatprep.subr.bf16.mxu1 %v14232_v33  ;;  %v684_v31 = vld [vmem:[#allocation5 + $0x1168] sm:$0xff]  ;;  %v14277_v32 = vcombine.low %v671_v18, %v675_v19  ;;  %v14279_v33 = vcombine.low %v672_v20, %v676_v21  ;;  %v14326_v18 = vcombine.high %v719_v10, %v723_v11  ;;  %v727_v20 = vld [vmem:[#allocation5 + $0x12c0] sm:$0xff] }
 0x17a   :  { %v14288_v35 = vcombine.high %v680_v30, %v684_v31  ;;  %v731_v21 = vld [vmem:[#allocation5 + $0x12e0] sm:$0xff] }
 0x17c   :  { %9621 = vmatpush1.bf16.msra.mxu0 %v14229_v40  ;;  %10113 = vmatpush1.bf16.msra.mxu1 %v14231_v41  ;;  %v688_v40 = vld [vmem:[#allocation5 + $0x1188] sm:$0xff] }
 0x17d   :  { %9622 = vmatprep.subr.bf16.mxu0 %v14238_v42  ;;  %10114 = vmatprep.subr.bf16.mxu1 %v14240_v43  ;;  %v692_v41 = vld [vmem:[#allocation5 + $0x11a8] sm:$0xff]  ;;  %v14285_v42 = vcombine.low %v679_v28, %v683_v29  ;;  %v14287_v43 = vcombine.low %v680_v30, %v684_v31  ;;  %v14334_v28 = vcombine.high %v727_v20, %v731_v21  ;;  %v735_v30 = vld [vmem:[#allocation5 + $0x1300] sm:$0xff] }
 0x17e   :  { %v14296_v45 = vcombine.high %v688_v40, %v692_v41  ;;  %v739_v31 = vld [vmem:[#allocation5 + $0x1320] sm:$0xff] }
 0x180   :  { %9623 = vmatpush1.bf16.msra.mxu0 %v14237_v24  ;;  %10115 = vmatpush1.bf16.msra.mxu1 %v14239_v49  ;;  %v696_v24 = vld [vmem:[#allocation5 + $0x11c8] sm:$0xff] }
 0x181   :  { %9633 = vmatprep.subr.bf16.mxu0 %v14246_v50  ;;  %10125 = vmatprep.subr.bf16.mxu1 %v14248_v51  ;;  %v700_v49 = vld [vmem:[#allocation5 + $0x11e8] sm:$0xff]  ;;  %v14293_v50 = vcombine.low %v687_v36, %v691_v37  ;;  %v14295_v51 = vcombine.low %v688_v40, %v692_v41  ;;  %v14342_v36 = vcombine.high %v735_v30, %v739_v31  ;;  %v743_v40 = vld [vmem:[#allocation5 + $0x1340] sm:$0xff] }
 0x182   :  { %v14304_v54 = vcombine.high %v696_v24, %v700_v49  ;;  %v747_v41 = vld [vmem:[#allocation5 + $0x1360] sm:$0xff] }
 0x183   :  { %9625 = vmatmul.mubr.bf16.vlgmr.msra.gmra.mrb[0].mxu0 %v16645_v55  ;;  %10117 = vmatmul.mubr.bf16.vlgmr.msra.gmra.mrb[0].mxu1 %v16645_v55 }
 0x184   :  { %9634 = vmatpush1.bf16.msra.mxu0 %v14245_v60  ;;  %10126 = vmatpush1.bf16.msra.mxu1 %v14247_v61  ;;  %v704_v60 = vld [vmem:[#allocation5 + $0x1208] sm:$0xff] }
 0x185   :  { %9635 = vmatprep.subr.bf16.mxu0 %v14254_v62  ;;  %10127 = vmatprep.subr.bf16.mxu1 %v14256_v63  ;;  %v708_v61 = vld [vmem:[#allocation5 + $0x1228] sm:$0xff]  ;;  %v14301_v62 = vcombine.low %v695_v46, %v699_v47  ;;  %v14303_v63 = vcombine.low %v696_v24, %v700_v49  ;;  %v14350_v46 = vcombine.high %v743_v40, %v747_v41  ;;  %v751_v24 = vld [vmem:[#allocation5 + $0x1380] sm:$0xff] }
 0x186   :  { %9665 = vmatprep.mubr.bf16.mxu0 %v16651_v2  ;;  %10157 = vmatprep.mubr.bf16.mxu1 %v16651_v2  ;;  %v14312_v1 = vcombine.high %v704_v60, %v708_v61  ;;  %v755_v49 = vld [vmem:[#allocation5 + $0x13a0] sm:$0xff] }
 0x188   :  { %9636 = vmatpush1.bf16.msra.mxu0 %v14253_v4  ;;  %10128 = vmatpush1.bf16.msra.mxu1 %v14255_v5  ;;  %v712_v4 = vld [vmem:[#allocation5 + $0x1248] sm:$0xff] }
 0x189   :  { %9637 = vmatprep.subr.bf16.mxu0 %v14262_v6  ;;  %10129 = vmatprep.subr.bf16.mxu1 %v14264_v7  ;;  %v716_v5 = vld [vmem:[#allocation5 + $0x1268] sm:$0xff]  ;;  %v14309_v6 = vcombine.low %v703_v56, %v707_v58  ;;  %v14311_v7 = vcombine.low %v704_v60, %v708_v61  ;;  %v14358_v56 = vcombine.high %v751_v24, %v755_v49  ;;  %v759_v60 = vld [vmem:[#allocation5 + $0x13c0] sm:$0xff] }
 0x18a   :  { %v14320_v9 = vcombine.high %v712_v4, %v716_v5  ;;  %v763_v61 = vld [vmem:[#allocation5 + $0x13e0] sm:$0xff] }
 0x18c   :  { %9638 = vmatpush1.bf16.msra.mxu0 %v14261_v13  ;;  %10130 = vmatpush1.bf16.msra.mxu1 %v14263_v14  ;;  %v720_v13 = vld [vmem:[#allocation5 + $0x1288] sm:$0xff] }
 0x18d   :  { %9639 = vmatprep.subr.bf16.mxu0 %v14270_v16  ;;  %10131 = vmatprep.subr.bf16.mxu1 %v14272_v17  ;;  %v724_v14 = vld [vmem:[#allocation5 + $0x12a8] sm:$0xff]  ;;  %v14317_v16 = vcombine.low %v711_v38, %v715_v3  ;;  %v14319_v17 = vcombine.low %v712_v4, %v716_v5  ;;  %v14366_v38 = vcombine.high %v759_v60, %v763_v61  ;;  %v767_v4 = vld [vmem:[#allocation5 + $0x1400] sm:$0xff] }
 0x18e   :  { %v14328_v19 = vcombine.high %v720_v13, %v724_v14  ;;  %v771_v5 = vld [vmem:[#allocation5 + $0x1420] sm:$0xff] }
 0x190   :  { %9640 = vmatpush1.bf16.msra.mxu0 %v14269_v22  ;;  %10132 = vmatpush1.bf16.msra.mxu1 %v14271_v23  ;;  %v728_v22 = vld [vmem:[#allocation5 + $0x12c8] sm:$0xff] }
 0x191   :  { %9641 = vmatprep.subr.bf16.mxu0 %v14278_v26  ;;  %10133 = vmatprep.subr.bf16.mxu1 %v14280_v27  ;;  %v732_v23 = vld [vmem:[#allocation5 + $0x12e8] sm:$0xff]  ;;  %v14325_v26 = vcombine.low %v719_v10, %v723_v11  ;;  %v14327_v27 = vcombine.low %v720_v13, %v724_v14  ;;  %v14374_v10 = vcombine.high %v767_v4, %v771_v5  ;;  %v775_v13 = vld [vmem:[#allocation5 + $0x1440] sm:$0xff] }
 0x192   :  { %v14336_v29 = vcombine.high %v728_v22, %v732_v23  ;;  %v779_v14 = vld [vmem:[#allocation5 + $0x1460] sm:$0xff] }
 0x194   :  { %9642 = vmatpush1.bf16.msra.mxu0 %v14277_v32  ;;  %10134 = vmatpush1.bf16.msra.mxu1 %v14279_v33  ;;  %v736_v32 = vld [vmem:[#allocation5 + $0x1308] sm:$0xff] }
 0x195   :  { %9643 = vmatprep.subr.bf16.mxu0 %v14286_v15  ;;  %10135 = vmatprep.subr.bf16.mxu1 %v14288_v35  ;;  %v740_v33 = vld [vmem:[#allocation5 + $0x1328] sm:$0xff]  ;;  %v14333_v15 = vcombine.low %v727_v20, %v731_v21  ;;  %v14335_v35 = vcombine.low %v728_v22, %v732_v23  ;;  %v14373_v20 = vcombine.low %v767_v4, %v771_v5 }
 0x196   :  { %v14344_v37 = vcombine.high %v736_v32, %v740_v33  ;;  %v14382_v22 = vcombine.high %v775_v13, %v779_v14 }
 0x198   :  { %9644 = vmatpush1.bf16.msra.mxu0 %v14285_v42  ;;  %10136 = vmatpush1.bf16.msra.mxu1 %v14287_v43  ;;  %v744_v42 = vld [vmem:[#allocation5 + $0x1348] sm:$0xff] }
 0x199   :  { %9645 = vmatprep.subr.bf16.mxu0 %v14294_v44  ;;  %10137 = vmatprep.subr.bf16.mxu1 %v14296_v45  ;;  %v748_v43 = vld [vmem:[#allocation5 + $0x1368] sm:$0xff]  ;;  %v14341_v44 = vcombine.low %v735_v30, %v739_v31  ;;  %v14343_v45 = vcombine.low %v736_v32, %v740_v33  ;;  %v14381_v30 = vcombine.low %v775_v13, %v779_v14 }
 0x19a   :  { %v14352_v47 = vcombine.high %v744_v42, %v748_v43 }
 0x19c   :  { %9646 = vmatpush1.bf16.msra.mxu0 %v14293_v50  ;;  %10138 = vmatpush1.bf16.msra.mxu1 %v14295_v51  ;;  %v752_v50 = vld [vmem:[#allocation5 + $0x1388] sm:$0xff] }
 0x19d   :  { %9647 = vmatprep.subr.bf16.mxu0 %v14302_v52  ;;  %10139 = vmatprep.subr.bf16.mxu1 %v14304_v54  ;;  %v756_v51 = vld [vmem:[#allocation5 + $0x13a8] sm:$0xff]  ;;  %v14349_v52 = vcombine.low %v743_v40, %v747_v41  ;;  %v14351_v54 = vcombine.low %v744_v42, %v748_v43 }
 0x19e   :  { %v14360_v58 = vcombine.high %v752_v50, %v756_v51 }
 0x1a0   :  { %9648 = vmatpush1.bf16.msra.mxu0 %v14301_v62  ;;  %10140 = vmatpush1.bf16.msra.mxu1 %v14303_v63  ;;  %v760_v62 = vld [vmem:[#allocation5 + $0x13c8] sm:$0xff] }
 0x1a1   :  { %9649 = vmatprep.subr.bf16.mxu0 %v14310_v0  ;;  %10141 = vmatprep.subr.bf16.mxu1 %v14312_v1  ;;  %v764_v63 = vld [vmem:[#allocation5 + $0x13e8] sm:$0xff]  ;;  %v14357_v0 = vcombine.low %v751_v24, %v755_v49  ;;  %v14359_v1 = vcombine.low %v752_v50, %v756_v51 }
 0x1a2   :  { %v14368_v3 = vcombine.high %v760_v62, %v764_v63 }
 0x1a4   :  { %9650 = vmatpush1.bf16.msra.mxu0 %v14309_v6  ;;  %10142 = vmatpush1.bf16.msra.mxu1 %v14311_v7  ;;  %v768_v6 = vld [vmem:[#allocation5 + $0x1408] sm:$0xff] }
 0x1a5   :  { %9651 = vmatprep.subr.bf16.mxu0 %v14318_v8  ;;  %10143 = vmatprep.subr.bf16.mxu1 %v14320_v9  ;;  %v772_v7 = vld [vmem:[#allocation5 + $0x1428] sm:$0xff]  ;;  %v14365_v8 = vcombine.low %v759_v60, %v763_v61  ;;  %v14367_v9 = vcombine.low %v760_v62, %v764_v63 }
 0x1a6   :  { %v14376_v11 = vcombine.high %v768_v6, %v772_v7  ;;  %v14375_v21 = vcombine.low %v768_v6, %v772_v7 }
 0x1a8   :  { %9652 = vmatpush1.bf16.msra.mxu0 %v14317_v16  ;;  %10144 = vmatpush1.bf16.msra.mxu1 %v14319_v17  ;;  %v16659_v16 = vcombine.low %v16647_v59, %v16647_v59  ;;  %v776_v17 = vld [vmem:[#allocation5 + $0x1448] sm:$0xff] }
 0x1a9   :  { %9653 = vmatprep.subr.bf16.mxu0 %v14326_v18  ;;  %10145 = vmatprep.subr.bf16.mxu1 %v14328_v19  ;;  %v780_v18 = vld [vmem:[#allocation5 + $0x1468] sm:$0xff] }
 0x1aa   :  { %v16661_v19 = vld [vmem:[#allocation2 + $0x28] sm:$0xff]  ;;  %v14384_v23 = vcombine.high %v776_v17, %v780_v18  ;;  %v14383_v31 = vcombine.low %v776_v17, %v780_v18 }
 0x1ab   :  { %v784_v59 = vld [vmem:[#allocation5 + $0x1488] sm:$0xff] }
 0x1ac   :  { %9654 = vmatpush1.bf16.msra.mxu0 %v14325_v26  ;;  %10146 = vmatpush1.bf16.msra.mxu1 %v14327_v27  ;;  %v783_v26 = vld [vmem:[#allocation5 + $0x1480] sm:$0xff] }
 0x1ad   :  { %9655 = vmatprep.subr.bf16.mxu0 %v14334_v28  ;;  %10147 = vmatprep.subr.bf16.mxu1 %v14336_v29  ;;  %v787_v27 = vld [vmem:[#allocation5 + $0x14a0] sm:$0xff]  ;;  %v16665_v28 = vcombine.high %v16661_v19, %v16661_v19  ;;  %v788_v29 = vld [vmem:[#allocation5 + $0x14a8] sm:$0xff] }
 0x1ae   :  { %v14390_v32 = vcombine.high %v783_v26, %v787_v27  ;;  %v14392_v33 = vcombine.high %v784_v59, %v788_v29  ;;  %v14389_v40 = vcombine.low %v783_v26, %v787_v27  ;;  %v14391_v41 = vcombine.low %v784_v59, %v788_v29 }
 0x1b0   :  { %9656 = vmatpush1.bf16.msra.mxu0 %v14333_v15  ;;  %10148 = vmatpush1.bf16.msra.mxu1 %v14335_v35  ;;  %v791_v15 = vld [vmem:[#allocation5 + $0x14c0] sm:$0xff] }
 0x1b1   :  { %9657 = vmatprep.subr.bf16.mxu0 %v14342_v36  ;;  %10149 = vmatprep.subr.bf16.mxu1 %v14344_v37  ;;  %v795_v35 = vld [vmem:[#allocation5 + $0x14e0] sm:$0xff]  ;;  %v792_v36 = vld [vmem:[#allocation5 + $0x14c8] sm:$0xff] }
 0x1b2   :  { %v796_v37 = vld [vmem:[#allocation5 + $0x14e8] sm:$0xff]  ;;  %v14398_v42 = vcombine.high %v791_v15, %v795_v35  ;;  %v14397_v24 = vcombine.low %v791_v15, %v795_v35 }
 0x1b3   :  { %v14400_v43 = vcombine.high %v792_v36, %v796_v37  ;;  %v14399_v49 = vcombine.low %v792_v36, %v796_v37 }
 0x1b4   :  { %9658 = vmatpush1.bf16.msra.mxu0 %v14341_v44  ;;  %10150 = vmatpush1.bf16.msra.mxu1 %v14343_v45  ;;  %v799_v44 = vld [vmem:[#allocation5 + $0x1500] sm:$0xff] }
 0x1b5   :  { %9659 = vmatprep.subr.bf16.mxu0 %v14350_v46  ;;  %10151 = vmatprep.subr.bf16.mxu1 %v14352_v47  ;;  %v803_v45 = vld [vmem:[#allocation5 + $0x1520] sm:$0xff]  ;;  %v800_v46 = vld [vmem:[#allocation5 + $0x1508] sm:$0xff] }
 0x1b6   :  { %v804_v47 = vld [vmem:[#allocation5 + $0x1528] sm:$0xff]  ;;  %v14406_v50 = vcombine.high %v799_v44, %v803_v45  ;;  %v14405_v60 = vcombine.low %v799_v44, %v803_v45 }
 0x1b7   :  { %v14408_v51 = vcombine.high %v800_v46, %v804_v47  ;;  %v14407_v61 = vcombine.low %v800_v46, %v804_v47 }
 0x1b8   :  { %9660 = vmatpush1.bf16.msra.mxu0 %v14349_v52  ;;  %10152 = vmatpush1.bf16.msra.mxu1 %v14351_v54  ;;  %v807_v52 = vld [vmem:[#allocation5 + $0x1540] sm:$0xff] }
 0x1b9   :  { %9661 = vmatprep.subr.bf16.mxu0 %v14358_v56  ;;  %10153 = vmatprep.subr.bf16.mxu1 %v14360_v58  ;;  %v811_v54 = vld [vmem:[#allocation5 + $0x1560] sm:$0xff]  ;;  %v808_v56 = vld [vmem:[#allocation5 + $0x1548] sm:$0xff] }
 0x1ba   :  { %v812_v58 = vld [vmem:[#allocation5 + $0x1568] sm:$0xff]  ;;  %v14414_v62 = vcombine.high %v807_v52, %v811_v54  ;;  %v14413_v4 = vcombine.low %v807_v52, %v811_v54 }
 0x1bb   :  { %v14416_v63 = vcombine.high %v808_v56, %v812_v58  ;;  %v14415_v5 = vcombine.low %v808_v56, %v812_v58 }
 0x1bc   :  { %9662 = vmatpush1.bf16.msra.mxu0 %v14357_v0  ;;  %10154 = vmatpush1.bf16.msra.mxu1 %v14359_v1  ;;  %v815_v0 = vld [vmem:[#allocation5 + $0x1580] sm:$0xff] }
 0x1bd   :  { %9663 = vmatprep.subr.bf16.mxu0 %v14366_v38  ;;  %10155 = vmatprep.subr.bf16.mxu1 %v14368_v3  ;;  %v819_v1 = vld [vmem:[#allocation5 + $0x15a0] sm:$0xff]  ;;  %v816_v38 = vld [vmem:[#allocation5 + $0x1588] sm:$0xff] }
 0x1be   :  { %v820_v3 = vld [vmem:[#allocation5 + $0x15a8] sm:$0xff]  ;;  %v14422_v6 = vcombine.high %v815_v0, %v819_v1  ;;  %v14421_v13 = vcombine.low %v815_v0, %v819_v1 }
 0x1bf   :  { %v14424_v7 = vcombine.high %v816_v38, %v820_v3  ;;  %v14423_v14 = vcombine.low %v816_v38, %v820_v3 }
 0x1c0   :  { %9664 = vmatpush1.bf16.msra.mxu0 %v14365_v8  ;;  %10156 = vmatpush1.bf16.msra.mxu1 %v14367_v9  ;;  %v823_v8 = vld [vmem:[#allocation5 + $0x15c0] sm:$0xff] }
 0x1c1   :  { %9674 = vmatprep.subr.bf16.mxu0 %v14374_v10  ;;  %10166 = vmatprep.subr.bf16.mxu1 %v14376_v11  ;;  %v827_v9 = vld [vmem:[#allocation5 + $0x15e0] sm:$0xff]  ;;  %v824_v10 = vld [vmem:[#allocation5 + $0x15c8] sm:$0xff] }
 0x1c2   :  { %v828_v11 = vld [vmem:[#allocation5 + $0x15e8] sm:$0xff]  ;;  %v14430_v17 = vcombine.high %v823_v8, %v827_v9  ;;  %v14429_v26 = vcombine.low %v823_v8, %v827_v9 }
 0x1c3   :  { %9666 = vmatmul.mubr.bf16.vlgmr.msra.gmra.mrb[0].mxu0 %v16659_v16  ;;  %10158 = vmatmul.mubr.bf16.vlgmr.msra.gmra.mrb[0].mxu1 %v16659_v16  ;;  %v14432_v18 = vcombine.high %v824_v10, %v828_v11  ;;  %v14431_v27 = vcombine.low %v824_v10, %v828_v11 }
 0x1c4   :  { %9675 = vmatpush1.bf16.msra.mxu0 %v14373_v20  ;;  %10167 = vmatpush1.bf16.msra.mxu1 %v14375_v21  ;;  %v831_v20 = vld [vmem:[#allocation5 + $0x1600] sm:$0xff] }
 0x1c5   :  { %9676 = vmatprep.subr.bf16.mxu0 %v14382_v22  ;;  %10168 = vmatprep.subr.bf16.mxu1 %v14384_v23  ;;  %v835_v21 = vld [vmem:[#allocation5 + $0x1620] sm:$0xff]  ;;  %v832_v22 = vld [vmem:[#allocation5 + $0x1608] sm:$0xff] }
 0x1c6   :  { %9706 = vmatprep.mubr.bf16.mxu0 %v16665_v28  ;;  %10198 = vmatprep.mubr.bf16.mxu1 %v16665_v28  ;;  %v836_v23 = vld [vmem:[#allocation5 + $0x1628] sm:$0xff]  ;;  %v14438_v59 = vcombine.high %v831_v20, %v835_v21  ;;  %v14437_v15 = vcombine.low %v831_v20, %v835_v21 }
 0x1c7   :  { %v14440_v29 = vcombine.high %v832_v22, %v836_v23  ;;  %v14439_v35 = vcombine.low %v832_v22, %v836_v23 }
 0x1c8   :  { %9677 = vmatpush1.bf16.msra.mxu0 %v14381_v30  ;;  %10169 = vmatpush1.bf16.msra.mxu1 %v14383_v31  ;;  %v839_v30 = vld [vmem:[#allocation5 + $0x1640] sm:$0xff] }
 0x1c9   :  { %9678 = vmatprep.subr.bf16.mxu0 %v14390_v32  ;;  %10170 = vmatprep.subr.bf16.mxu1 %v14392_v33  ;;  %v843_v31 = vld [vmem:[#allocation5 + $0x1660] sm:$0xff]  ;;  %v840_v32 = vld [vmem:[#allocation5 + $0x1648] sm:$0xff] }
 0x1ca   :  { %v844_v33 = vld [vmem:[#allocation5 + $0x1668] sm:$0xff]  ;;  %v14446_v36 = vcombine.high %v839_v30, %v843_v31  ;;  %v14445_v44 = vcombine.low %v839_v30, %v843_v31 }
 0x1cb   :  { %v14448_v37 = vcombine.high %v840_v32, %v844_v33  ;;  %v14447_v45 = vcombine.low %v840_v32, %v844_v33 }
 0x1cc   :  { %9679 = vmatpush1.bf16.msra.mxu0 %v14389_v40  ;;  %10171 = vmatpush1.bf16.msra.mxu1 %v14391_v41  ;;  %v847_v40 = vld [vmem:[#allocation5 + $0x1680] sm:$0xff] }
 0x1cd   :  { %9680 = vmatprep.subr.bf16.mxu0 %v14398_v42  ;;  %10172 = vmatprep.subr.bf16.mxu1 %v14400_v43  ;;  %v851_v41 = vld [vmem:[#allocation5 + $0x16a0] sm:$0xff]  ;;  %v848_v42 = vld [vmem:[#allocation5 + $0x1688] sm:$0xff] }
 0x1ce   :  { %v852_v43 = vld [vmem:[#allocation5 + $0x16a8] sm:$0xff]  ;;  %v14454_v46 = vcombine.high %v847_v40, %v851_v41  ;;  %v14453_v52 = vcombine.low %v847_v40, %v851_v41 }
 0x1cf   :  { %v14456_v47 = vcombine.high %v848_v42, %v852_v43  ;;  %v14455_v54 = vcombine.low %v848_v42, %v852_v43 }
 0x1d0   :  { %9681 = vmatpush1.bf16.msra.mxu0 %v14397_v24  ;;  %10173 = vmatpush1.bf16.msra.mxu1 %v14399_v49  ;;  %v855_v24 = vld [vmem:[#allocation5 + $0x16c0] sm:$0xff] }
 0x1d1   :  { %9682 = vmatprep.subr.bf16.mxu0 %v14406_v50  ;;  %10174 = vmatprep.subr.bf16.mxu1 %v14408_v51  ;;  %v859_v49 = vld [vmem:[#allocation5 + $0x16e0] sm:$0xff]  ;;  %v856_v50 = vld [vmem:[#allocation5 + $0x16c8] sm:$0xff] }
 0x1d2   :  { %v860_v51 = vld [vmem:[#allocation5 + $0x16e8] sm:$0xff]  ;;  %v14462_v56 = vcombine.high %v855_v24, %v859_v49  ;;  %v14461_v0 = vcombine.low %v855_v24, %v859_v49  ;;  %v16675_v49 = vld [vmem:[#allocation2 + $0x30] sm:$0xff] }
 0x1d3   :  { %v14464_v58 = vcombine.high %v856_v50, %v860_v51  ;;  %v14463_v1 = vcombine.low %v856_v50, %v860_v51  ;;  %v908_v24 = vld [vmem:[#allocation5 + $0x1868] sm:$0xff] }
 0x1d4   :  { %9683 = vmatpush1.bf16.msra.mxu0 %v14405_v60  ;;  %10175 = vmatpush1.bf16.msra.mxu1 %v14407_v61  ;;  %v863_v60 = vld [vmem:[#allocation5 + $0x1700] sm:$0xff] }
 0x1d5   :  { %9684 = vmatprep.subr.bf16.mxu0 %v14414_v62  ;;  %10176 = vmatprep.subr.bf16.mxu1 %v14416_v63  ;;  %v867_v61 = vld [vmem:[#allocation5 + $0x1720] sm:$0xff]  ;;  %v864_v62 = vld [vmem:[#allocation5 + $0x1708] sm:$0xff] }
 0x1d6   :  { %v868_v63 = vld [vmem:[#allocation5 + $0x1728] sm:$0xff]  ;;  %v14470_v38 = vcombine.high %v863_v60, %v867_v61  ;;  %v14469_v8 = vcombine.low %v863_v60, %v867_v61  ;;  %v16679_v60 = vcombine.high %v16675_v49, %v16675_v49 }
 0x1d7   :  { %v14472_v3 = vcombine.high %v864_v62, %v868_v63  ;;  %v14471_v9 = vcombine.low %v864_v62, %v868_v63  ;;  %v916_v61 = vld [vmem:[#allocation5 + $0x18a8] sm:$0xff] }
 0x1d8   :  { %9685 = vmatpush1.bf16.msra.mxu0 %v14413_v4  ;;  %10177 = vmatpush1.bf16.msra.mxu1 %v14415_v5  ;;  %v871_v4 = vld [vmem:[#allocation5 + $0x1740] sm:$0xff] }
 0x1d9   :  { %9686 = vmatprep.subr.bf16.mxu0 %v14422_v6  ;;  %10178 = vmatprep.subr.bf16.mxu1 %v14424_v7  ;;  %v875_v5 = vld [vmem:[#allocation5 + $0x1760] sm:$0xff]  ;;  %v872_v6 = vld [vmem:[#allocation5 + $0x1748] sm:$0xff] }
 0x1da   :  { %v876_v7 = vld [vmem:[#allocation5 + $0x1768] sm:$0xff]  ;;  %v14478_v10 = vcombine.high %v871_v4, %v875_v5  ;;  %v14477_v20 = vcombine.low %v871_v4, %v875_v5 }
 0x1db   :  { %v14480_v11 = vcombine.high %v872_v6, %v876_v7  ;;  %v14479_v21 = vcombine.low %v872_v6, %v876_v7  ;;  %v920_v4 = vld [vmem:[#allocation5 + $0x18c8] sm:$0xff] }
 0x1dc   :  { %9687 = vmatpush1.bf16.msra.mxu0 %v14421_v13  ;;  %10179 = vmatpush1.bf16.msra.mxu1 %v14423_v14  ;;  %v879_v13 = vld [vmem:[#allocation5 + $0x1780] sm:$0xff]  ;;  %v924_v5 = vld [vmem:[#allocation5 + $0x18e8] sm:$0xff] }
 0x1dd   :  { %9688 = vmatprep.subr.bf16.mxu0 %v14430_v17  ;;  %10180 = vmatprep.subr.bf16.mxu1 %v14432_v18  ;;  %v883_v14 = vld [vmem:[#allocation5 + $0x17a0] sm:$0xff]  ;;  %v880_v17 = vld [vmem:[#allocation5 + $0x1788] sm:$0xff] }
 0x1de   :  { %v884_v18 = vld [vmem:[#allocation5 + $0x17a8] sm:$0xff]  ;;  %v14486_v22 = vcombine.high %v879_v13, %v883_v14  ;;  %v14485_v30 = vcombine.low %v879_v13, %v883_v14 }
 0x1df   :  { %v14488_v23 = vcombine.high %v880_v17, %v884_v18  ;;  %v14487_v31 = vcombine.low %v880_v17, %v884_v18  ;;  %v928_v13 = vld [vmem:[#allocation5 + $0x1908] sm:$0xff]  ;;  %v14527_v18 = vcombine.low %v920_v4, %v924_v5 }
 0x1e0   :  { %9689 = vmatpush1.bf16.msra.mxu0 %v14429_v26  ;;  %10181 = vmatpush1.bf16.msra.mxu1 %v14431_v27  ;;  %v887_v26 = vld [vmem:[#allocation5 + $0x17c0] sm:$0xff]  ;;  %v932_v14 = vld [vmem:[#allocation5 + $0x1928] sm:$0xff] }
 0x1e1   :  { %9690 = vmatprep.subr.bf16.mxu0 %v14438_v59  ;;  %10182 = vmatprep.subr.bf16.mxu1 %v14440_v29  ;;  %v891_v27 = vld [vmem:[#allocation5 + $0x17e0] sm:$0xff]  ;;  %v888_v59 = vld [vmem:[#allocation5 + $0x17c8] sm:$0xff] }
 0x1e2   :  { %v892_v29 = vld [vmem:[#allocation5 + $0x17e8] sm:$0xff]  ;;  %v14494_v32 = vcombine.high %v887_v26, %v891_v27  ;;  %v14493_v40 = vcombine.low %v887_v26, %v891_v27 }
 0x1e3   :  { %v14496_v33 = vcombine.high %v888_v59, %v892_v29  ;;  %v14495_v41 = vcombine.low %v888_v59, %v892_v29  ;;  %v936_v26 = vld [vmem:[#allocation5 + $0x1948] sm:$0xff]  ;;  %v14535_v29 = vcombine.low %v928_v13, %v932_v14 }
 0x1e4   :  { %9691 = vmatpush1.bf16.msra.mxu0 %v14437_v15  ;;  %10183 = vmatpush1.bf16.msra.mxu1 %v14439_v35  ;;  %v895_v15 = vld [vmem:[#allocation5 + $0x1800] sm:$0xff]  ;;  %v940_v27 = vld [vmem:[#allocation5 + $0x1968] sm:$0xff] }
 0x1e5   :  { %9692 = vmatprep.subr.bf16.mxu0 %v14446_v36  ;;  %10184 = vmatprep.subr.bf16.mxu1 %v14448_v37  ;;  %v899_v35 = vld [vmem:[#allocation5 + $0x1820] sm:$0xff]  ;;  %v896_v36 = vld [vmem:[#allocation5 + $0x1808] sm:$0xff] }
 0x1e6   :  { %v900_v37 = vld [vmem:[#allocation5 + $0x1828] sm:$0xff]  ;;  %v14502_v42 = vcombine.high %v895_v15, %v899_v35  ;;  %v14501_v50 = vcombine.low %v895_v15, %v899_v35 }
 0x1e7   :  { %v14504_v43 = vcombine.high %v896_v36, %v900_v37  ;;  %v14503_v51 = vcombine.low %v896_v36, %v900_v37  ;;  %v944_v15 = vld [vmem:[#allocation5 + $0x1988] sm:$0xff]  ;;  %v14543_v37 = vcombine.low %v936_v26, %v940_v27 }
 0x1e8   :  { %9693 = vmatpush1.bf16.msra.mxu0 %v14445_v44  ;;  %10185 = vmatpush1.bf16.msra.mxu1 %v14447_v45  ;;  %v903_v44 = vld [vmem:[#allocation5 + $0x1840] sm:$0xff]  ;;  %v948_v35 = vld [vmem:[#allocation5 + $0x19a8] sm:$0xff] }
 0x1e9   :  { %9694 = vmatprep.subr.bf16.mxu0 %v14454_v46  ;;  %10186 = vmatprep.subr.bf16.mxu1 %v14456_v47  ;;  %v907_v45 = vld [vmem:[#allocation5 + $0x1860] sm:$0xff]  ;;  %v16673_v46 = vcombine.low %v16661_v19, %v16661_v19  ;;  %v904_v47 = vld [vmem:[#allocation5 + $0x1848] sm:$0xff] }
 0x1ea   :  { %v912_v19 = vld [vmem:[#allocation5 + $0x1888] sm:$0xff]  ;;  %v14509_v62 = vcombine.low %v903_v44, %v907_v45  ;;  %v14511_v63 = vcombine.low %v904_v47, %v908_v24 }
 0x1eb   :  { %v14519_v7 = vcombine.low %v912_v19, %v916_v61 }
 0x1ec   :  { %9695 = vmatpush1.bf16.msra.mxu0 %v14453_v52  ;;  %10187 = vmatpush1.bf16.msra.mxu1 %v14455_v54  ;;  %v14510_v52 = vcombine.high %v903_v44, %v907_v45  ;;  %v14512_v54 = vcombine.high %v904_v47, %v908_v24  ;;  %v952_v44 = vld [vmem:[#allocation5 + $0x19c8] sm:$0xff]  ;;  %v14551_v24 = vcombine.low %v944_v15, %v948_v35 }
 0x1ed   :  { %9696 = vmatprep.subr.bf16.mxu0 %v14462_v56  ;;  %10188 = vmatprep.subr.bf16.mxu1 %v14464_v58  ;;  %v911_v56 = vld [vmem:[#allocation5 + $0x1880] sm:$0xff]  ;;  %v956_v45 = vld [vmem:[#allocation5 + $0x19e8] sm:$0xff] }
 0x1ee   :  { %v915_v58 = vld [vmem:[#allocation5 + $0x18a0] sm:$0xff] }
 0x1ef   :  { %v14517_v6 = vcombine.low %v911_v56, %v915_v58 }
 0x1f0   :  { %9697 = vmatpush1.bf16.msra.mxu0 %v14461_v0  ;;  %10189 = vmatpush1.bf16.msra.mxu1 %v14463_v1  ;;  %v14518_v0 = vcombine.high %v911_v56, %v915_v58  ;;  %v14520_v1 = vcombine.high %v912_v19, %v916_v61  ;;  %v960_v56 = vld [vmem:[#allocation5 + $0x1a08] sm:$0xff]  ;;  %v14559_v61 = vcombine.low %v952_v44, %v956_v45 }
 0x1f1   :  { %9698 = vmatprep.subr.bf16.mxu0 %v14470_v38  ;;  %10190 = vmatprep.subr.bf16.mxu1 %v14472_v3  ;;  %v919_v38 = vld [vmem:[#allocation5 + $0x18c0] sm:$0xff]  ;;  %v964_v58 = vld [vmem:[#allocation5 + $0x1a28] sm:$0xff] }
 0x1f2   :  { %v923_v3 = vld [vmem:[#allocation5 + $0x18e0] sm:$0xff] }
 0x1f3   :  { %v14525_v17 = vcombine.low %v919_v38, %v923_v3 }
 0x1f4   :  { %9699 = vmatpush1.bf16.msra.mxu0 %v14469_v8  ;;  %10191 = vmatpush1.bf16.msra.mxu1 %v14471_v9  ;;  %v14526_v8 = vcombine.high %v919_v38, %v923_v3  ;;  %v14528_v9 = vcombine.high %v920_v4, %v924_v5  ;;  %v968_v38 = vld [vmem:[#allocation5 + $0x1a48] sm:$0xff]  ;;  %v14567_v5 = vcombine.low %v960_v56, %v964_v58 }
 0x1f5   :  { %9700 = vmatprep.subr.bf16.mxu0 %v14478_v10  ;;  %10192 = vmatprep.subr.bf16.mxu1 %v14480_v11  ;;  %v927_v10 = vld [vmem:[#allocation5 + $0x1900] sm:$0xff]  ;;  %v972_v3 = vld [vmem:[#allocation5 + $0x1a68] sm:$0xff] }
 0x1f6   :  { %v931_v11 = vld [vmem:[#allocation5 + $0x1920] sm:$0xff] }
 0x1f7   :  { %v14533_v59 = vcombine.low %v927_v10, %v931_v11 }
 0x1f8   :  { %9701 = vmatpush1.bf16.msra.mxu0 %v14477_v20  ;;  %10193 = vmatpush1.bf16.msra.mxu1 %v14479_v21  ;;  %v14534_v20 = vcombine.high %v927_v10, %v931_v11  ;;  %v14536_v21 = vcombine.high %v928_v13, %v932_v14  ;;  %v976_v10 = vld [vmem:[#allocation5 + $0x1a88] sm:$0xff]  ;;  %v14575_v14 = vcombine.low %v968_v38, %v972_v3 }
 0x1f9   :  { %9702 = vmatprep.subr.bf16.mxu0 %v14486_v22  ;;  %10194 = vmatprep.subr.bf16.mxu1 %v14488_v23  ;;  %v935_v22 = vld [vmem:[#allocation5 + $0x1940] sm:$0xff]  ;;  %v980_v11 = vld [vmem:[#allocation5 + $0x1aa8] sm:$0xff] }
 0x1fa   :  { %v939_v23 = vld [vmem:[#allocation5 + $0x1960] sm:$0xff] }
 0x1fb   :  { %v14541_v36 = vcombine.low %v935_v22, %v939_v23 }
 0x1fc   :  { %9703 = vmatpush1.bf16.msra.mxu0 %v14485_v30  ;;  %10195 = vmatpush1.bf16.msra.mxu1 %v14487_v31  ;;  %v14542_v30 = vcombine.high %v935_v22, %v939_v23  ;;  %v14544_v31 = vcombine.high %v936_v26, %v940_v27  ;;  %v984_v22 = vld [vmem:[#allocation5 + $0x1ac8] sm:$0xff]  ;;  %v14583_v27 = vcombine.low %v976_v10, %v980_v11 }
 0x1fd   :  { %9704 = vmatprep.subr.bf16.mxu0 %v14494_v32  ;;  %10196 = vmatprep.subr.bf16.mxu1 %v14496_v33  ;;  %v943_v32 = vld [vmem:[#allocation5 + $0x1980] sm:$0xff]  ;;  %v988_v23 = vld [vmem:[#allocation5 + $0x1ae8] sm:$0xff] }
 0x1fe   :  { %v947_v33 = vld [vmem:[#allocation5 + $0x19a0] sm:$0xff] }
 0x1ff   :  { %v14549_v47 = vcombine.low %v943_v32, %v947_v33 }
 0x200   :  { %9705 = vmatpush1.bf16.msra.mxu0 %v14493_v40  ;;  %10197 = vmatpush1.bf16.msra.mxu1 %v14495_v41  ;;  %v14550_v40 = vcombine.high %v943_v32, %v947_v33  ;;  %v14552_v41 = vcombine.high %v944_v15, %v948_v35  ;;  %v992_v32 = vld [vmem:[#allocation5 + $0x1b08] sm:$0xff]  ;;  %v14591_v35 = vcombine.low %v984_v22, %v988_v23 }
 0x201   :  { %9715 = vmatprep.subr.bf16.mxu0 %v14502_v42  ;;  %10207 = vmatprep.subr.bf16.mxu1 %v14504_v43  ;;  %v951_v42 = vld [vmem:[#allocation5 + $0x19c0] sm:$0xff]  ;;  %v996_v33 = vld [vmem:[#allocation5 + $0x1b28] sm:$0xff] }
 0x202   :  { %v955_v43 = vld [vmem:[#allocation5 + $0x19e0] sm:$0xff] }
 0x203   :  { %9707 = vmatmul.mubr.bf16.vlgmr.msra.gmra.mrb[0].mxu0 %v16673_v46  ;;  %10199 = vmatmul.mubr.bf16.vlgmr.msra.gmra.mrb[0].mxu1 %v16673_v46  ;;  %v14557_v19 = vcombine.low %v951_v42, %v955_v43 }
 0x204   :  { %9716 = vmatpush1.bf16.msra.mxu0 %v14501_v50  ;;  %10208 = vmatpush1.bf16.msra.mxu1 %v14503_v51  ;;  %v14558_v50 = vcombine.high %v951_v42, %v955_v43  ;;  %v14560_v51 = vcombine.high %v952_v44, %v956_v45  ;;  %v1000_v42 = vld [vmem:[#allocation5 + $0x1b48] sm:$0xff]  ;;  %v14599_v45 = vcombine.low %v992_v32, %v996_v33 }
 0x205   :  { %9717 = vmatprep.subr.bf16.mxu0 %v14510_v52  ;;  %10209 = vmatprep.subr.bf16.mxu1 %v14512_v54  ;;  %v959_v52 = vld [vmem:[#allocation5 + $0x1a00] sm:$0xff]  ;;  %v1004_v43 = vld [vmem:[#allocation5 + $0x1b68] sm:$0xff] }
 0x206   :  { %9747 = vmatprep.mubr.bf16.mxu0 %v16679_v60  ;;  %10239 = vmatprep.mubr.bf16.mxu1 %v16679_v60  ;;  %v963_v54 = vld [vmem:[#allocation5 + $0x1a20] sm:$0xff] }
 0x207   :  { %v14565_v4 = vcombine.low %v959_v52, %v963_v54 }
 0x208   :  { %9718 = vmatpush1.bf16.msra.mxu0 %v14509_v62  ;;  %10210 = vmatpush1.bf16.msra.mxu1 %v14511_v63  ;;  %v14566_v62 = vcombine.high %v959_v52, %v963_v54  ;;  %v14568_v63 = vcombine.high %v960_v56, %v964_v58  ;;  %v1008_v52 = vld [vmem:[#allocation5 + $0x1b88] sm:$0xff]  ;;  %v14607_v58 = vcombine.low %v1000_v42, %v1004_v43 }
 0x209   :  { %9719 = vmatprep.subr.bf16.mxu0 %v14518_v0  ;;  %10211 = vmatprep.subr.bf16.mxu1 %v14520_v1  ;;  %v967_v0 = vld [vmem:[#allocation5 + $0x1a40] sm:$0xff]  ;;  %v1012_v54 = vld [vmem:[#allocation5 + $0x1ba8] sm:$0xff] }
 0x20a   :  { %v971_v1 = vld [vmem:[#allocation5 + $0x1a60] sm:$0xff] }
 0x20b   :  { %v14573_v13 = vcombine.low %v967_v0, %v971_v1 }
 0x20c   :  { %9720 = vmatpush1.bf16.msra.mxu0 %v14517_v6  ;;  %10212 = vmatpush1.bf16.msra.mxu1 %v14519_v7  ;;  %v14574_v6 = vcombine.high %v967_v0, %v971_v1  ;;  %v14576_v7 = vcombine.high %v968_v38, %v972_v3  ;;  %v1016_v0 = vld [vmem:[#allocation5 + $0x1bc8] sm:$0xff]  ;;  %v14615_v3 = vcombine.low %v1008_v52, %v1012_v54 }
 0x20d   :  { %9721 = vmatprep.subr.bf16.mxu0 %v14526_v8  ;;  %10213 = vmatprep.subr.bf16.mxu1 %v14528_v9  ;;  %v975_v8 = vld [vmem:[#allocation5 + $0x1a80] sm:$0xff]  ;;  %v1020_v1 = vld [vmem:[#allocation5 + $0x1be8] sm:$0xff] }
 0x20e   :  { %v979_v9 = vld [vmem:[#allocation5 + $0x1aa0] sm:$0xff] }
 0x20f   :  { %v14581_v26 = vcombine.low %v975_v8, %v979_v9 }
 0x210   :  { %9722 = vmatpush1.bf16.msra.mxu0 %v14525_v17  ;;  %10214 = vmatpush1.bf16.msra.mxu1 %v14527_v18  ;;  %v14582_v17 = vcombine.high %v975_v8, %v979_v9  ;;  %v14584_v18 = vcombine.high %v976_v10, %v980_v11  ;;  %v1024_v8 = vld [vmem:[#allocation5 + $0x1c08] sm:$0xff]  ;;  %v14623_v11 = vcombine.low %v1016_v0, %v1020_v1 }
 0x211   :  { %9723 = vmatprep.subr.bf16.mxu0 %v14534_v20  ;;  %10215 = vmatprep.subr.bf16.mxu1 %v14536_v21  ;;  %v983_v20 = vld [vmem:[#allocation5 + $0x1ac0] sm:$0xff]  ;;  %v1028_v9 = vld [vmem:[#allocation5 + $0x1c28] sm:$0xff] }
 0x212   :  { %v987_v21 = vld [vmem:[#allocation5 + $0x1ae0] sm:$0xff] }
 0x213   :  { %v14589_v15 = vcombine.low %v983_v20, %v987_v21 }
 0x214   :  { %9724 = vmatpush1.bf16.msra.mxu0 %v14533_v59  ;;  %10216 = vmatpush1.bf16.msra.mxu1 %v14535_v29  ;;  %v14590_v59 = vcombine.high %v983_v20, %v987_v21  ;;  %v14592_v29 = vcombine.high %v984_v22, %v988_v23  ;;  %v16687_v20 = vcombine.low %v16675_v49, %v16675_v49  ;;  %v1032_v21 = vld [vmem:[#allocation5 + $0x1c48] sm:$0xff]  ;;  %v16689_v23 = vld [vmem:[#allocation2 + $0x38] sm:$0xff] }
 0x215   :  { %9725 = vmatprep.subr.bf16.mxu0 %v14542_v30  ;;  %10217 = vmatprep.subr.bf16.mxu1 %v14544_v31  ;;  %v991_v30 = vld [vmem:[#allocation5 + $0x1b00] sm:$0xff]  ;;  %v1036_v22 = vld [vmem:[#allocation5 + $0x1c68] sm:$0xff] }
 0x216   :  { %v995_v31 = vld [vmem:[#allocation5 + $0x1b20] sm:$0xff]  ;;  %v1040_v49 = vld [vmem:[#allocation5 + $0x1c88] sm:$0xff] }
 0x217   :  { %v14597_v44 = vcombine.low %v991_v30, %v995_v31 }
 0x218   :  { %9726 = vmatpush1.bf16.msra.mxu0 %v14541_v36  ;;  %10218 = vmatpush1.bf16.msra.mxu1 %v14543_v37  ;;  %v14598_v36 = vcombine.high %v991_v30, %v995_v31  ;;  %v14600_v37 = vcombine.high %v992_v32, %v996_v33  ;;  %v1039_v30 = vld [vmem:[#allocation5 + $0x1c80] sm:$0xff]  ;;  %v16693_v32 = vcombine.high %v16689_v23, %v16689_v23  ;;  %v1044_v33 = vld [vmem:[#allocation5 + $0x1ca8] sm:$0xff] }
 0x219   :  { %9727 = vmatprep.subr.bf16.mxu0 %v14550_v40  ;;  %10219 = vmatprep.subr.bf16.mxu1 %v14552_v41  ;;  %v999_v40 = vld [vmem:[#allocation5 + $0x1b40] sm:$0xff] }
 0x21a   :  { %v1003_v41 = vld [vmem:[#allocation5 + $0x1b60] sm:$0xff] }
 0x21b   :  { %v14605_v56 = vcombine.low %v999_v40, %v1003_v41  ;;  %v1043_v31 = vld [vmem:[#allocation5 + $0x1ca0] sm:$0xff] }
 0x21c   :  { %9728 = vmatpush1.bf16.msra.mxu0 %v14549_v47  ;;  %10220 = vmatpush1.bf16.msra.mxu1 %v14551_v24  ;;  %v14606_v47 = vcombine.high %v999_v40, %v1003_v41  ;;  %v14608_v24 = vcombine.high %v1000_v42, %v1004_v43  ;;  %v1047_v40 = vld [vmem:[#allocation5 + $0x1cc0] sm:$0xff]  ;;  %v1048_v42 = vld [vmem:[#allocation5 + $0x1cc8] sm:$0xff] }
 0x21d   :  { %9729 = vmatprep.subr.bf16.mxu0 %v14558_v50  ;;  %10221 = vmatprep.subr.bf16.mxu1 %v14560_v51  ;;  %v1007_v50 = vld [vmem:[#allocation5 + $0x1b80] sm:$0xff]  ;;  %v1052_v43 = vld [vmem:[#allocation5 + $0x1ce8] sm:$0xff] }
 0x21e   :  { %v1011_v51 = vld [vmem:[#allocation5 + $0x1ba0] sm:$0xff] }
 0x21f   :  { %v14613_v38 = vcombine.low %v1007_v50, %v1011_v51  ;;  %v1051_v41 = vld [vmem:[#allocation5 + $0x1ce0] sm:$0xff] }
 0x220   :  { %9730 = vmatpush1.bf16.msra.mxu0 %v14557_v19  ;;  %10222 = vmatpush1.bf16.msra.mxu1 %v14559_v61  ;;  %v14614_v19 = vcombine.high %v1007_v50, %v1011_v51  ;;  %v14616_v61 = vcombine.high %v1008_v52, %v1012_v54  ;;  %v1055_v50 = vld [vmem:[#allocation5 + $0x1d00] sm:$0xff]  ;;  %v1056_v52 = vld [vmem:[#allocation5 + $0x1d08] sm:$0xff] }
 0x221   :  { %9731 = vmatprep.subr.bf16.mxu0 %v14566_v62  ;;  %10223 = vmatprep.subr.bf16.mxu1 %v14568_v63  ;;  %v1015_v62 = vld [vmem:[#allocation5 + $0x1bc0] sm:$0xff]  ;;  %v1060_v54 = vld [vmem:[#allocation5 + $0x1d28] sm:$0xff] }
 0x222   :  { %v1019_v63 = vld [vmem:[#allocation5 + $0x1be0] sm:$0xff] }
 0x223   :  { %v14621_v10 = vcombine.low %v1015_v62, %v1019_v63  ;;  %v1059_v51 = vld [vmem:[#allocation5 + $0x1d20] sm:$0xff] }
 0x224   :  { %9732 = vmatpush1.bf16.msra.mxu0 %v14565_v4  ;;  %10224 = vmatpush1.bf16.msra.mxu1 %v14567_v5  ;;  %v14622_v4 = vcombine.high %v1015_v62, %v1019_v63  ;;  %v14624_v5 = vcombine.high %v1016_v0, %v1020_v1  ;;  %v1063_v62 = vld [vmem:[#allocation5 + $0x1d40] sm:$0xff]  ;;  %v1064_v0 = vld [vmem:[#allocation5 + $0x1d48] sm:$0xff] }
 0x225   :  { %9733 = vmatprep.subr.bf16.mxu0 %v14574_v6  ;;  %10225 = vmatprep.subr.bf16.mxu1 %v14576_v7  ;;  %v1023_v6 = vld [vmem:[#allocation5 + $0x1c00] sm:$0xff]  ;;  %v1068_v1 = vld [vmem:[#allocation5 + $0x1d68] sm:$0xff] }
 0x226   :  { %v1027_v7 = vld [vmem:[#allocation5 + $0x1c20] sm:$0xff] }
 0x227   :  { %v1067_v63 = vld [vmem:[#allocation5 + $0x1d60] sm:$0xff] }
 0x228   :  { %9734 = vmatpush1.bf16.msra.mxu0 %v14573_v13  ;;  %10226 = vmatpush1.bf16.msra.mxu1 %v14575_v14  ;;  %v14630_v13 = vcombine.high %v1023_v6, %v1027_v7  ;;  %v14632_v14 = vcombine.high %v1024_v8, %v1028_v9 }
 0x229   :  { %9735 = vmatprep.subr.bf16.mxu0 %v14582_v17  ;;  %10227 = vmatprep.subr.bf16.mxu1 %v14584_v18  ;;  %v1031_v17 = vld [vmem:[#allocation5 + $0x1c40] sm:$0xff] }
 0x22a   :  { %v1035_v18 = vld [vmem:[#allocation5 + $0x1c60] sm:$0xff] }
 0x22c   :  { %9736 = vmatpush1.bf16.msra.mxu0 %v14581_v26  ;;  %10228 = vmatpush1.bf16.msra.mxu1 %v14583_v27  ;;  %v14629_v26 = vcombine.low %v1023_v6, %v1027_v7  ;;  %v14631_v27 = vcombine.low %v1024_v8, %v1028_v9  ;;  %v1071_v6 = vld [vmem:[#allocation5 + $0x1d80] sm:$0xff]  ;;  %v1072_v8 = vld [vmem:[#allocation5 + $0x1d88] sm:$0xff] }
 0x22d   :  { %9737 = vmatprep.subr.bf16.mxu0 %v14590_v59  ;;  %10229 = vmatprep.subr.bf16.mxu1 %v14592_v29  ;;  %v14638_v59 = vcombine.high %v1031_v17, %v1035_v18  ;;  %v14640_v29 = vcombine.high %v1032_v21, %v1036_v22  ;;  %v1075_v7 = vld [vmem:[#allocation5 + $0x1da0] sm:$0xff]  ;;  %v1076_v9 = vld [vmem:[#allocation5 + $0x1da8] sm:$0xff] }
 0x230   :  { %9738 = vmatpush1.bf16.msra.mxu0 %v14589_v15  ;;  %10230 = vmatpush1.bf16.msra.mxu1 %v14591_v35  ;;  %v14637_v15 = vcombine.low %v1031_v17, %v1035_v18  ;;  %v14639_v35 = vcombine.low %v1032_v21, %v1036_v22  ;;  %v1079_v17 = vld [vmem:[#allocation5 + $0x1dc0] sm:$0xff]  ;;  %v1080_v21 = vld [vmem:[#allocation5 + $0x1dc8] sm:$0xff] }
 0x231   :  { %9739 = vmatprep.subr.bf16.mxu0 %v14598_v36  ;;  %10231 = vmatprep.subr.bf16.mxu1 %v14600_v37  ;;  %v14646_v36 = vcombine.high %v1039_v30, %v1043_v31  ;;  %v14648_v37 = vcombine.high %v1040_v49, %v1044_v33  ;;  %v1083_v18 = vld [vmem:[#allocation5 + $0x1de0] sm:$0xff]  ;;  %v1084_v22 = vld [vmem:[#allocation5 + $0x1de8] sm:$0xff] }
 0x234   :  { %9740 = vmatpush1.bf16.msra.mxu0 %v14597_v44  ;;  %10232 = vmatpush1.bf16.msra.mxu1 %v14599_v45  ;;  %v14645_v44 = vcombine.low %v1039_v30, %v1043_v31  ;;  %v14647_v45 = vcombine.low %v1040_v49, %v1044_v33  ;;  %v1087_v30 = vld [vmem:[#allocation5 + $0x1e00] sm:$0xff]  ;;  %v1088_v49 = vld [vmem:[#allocation5 + $0x1e08] sm:$0xff] }
 0x235   :  { %9741 = vmatprep.subr.bf16.mxu0 %v14606_v47  ;;  %10233 = vmatprep.subr.bf16.mxu1 %v14608_v24  ;;  %v14654_v47 = vcombine.high %v1047_v40, %v1051_v41  ;;  %v14656_v24 = vcombine.high %v1048_v42, %v1052_v43  ;;  %v1091_v31 = vld [vmem:[#allocation5 + $0x1e20] sm:$0xff]  ;;  %v1092_v33 = vld [vmem:[#allocation5 + $0x1e28] sm:$0xff] }
 0x238   :  { %9742 = vmatpush1.bf16.msra.mxu0 %v14605_v56  ;;  %10234 = vmatpush1.bf16.msra.mxu1 %v14607_v58  ;;  %v14653_v56 = vcombine.low %v1047_v40, %v1051_v41  ;;  %v14655_v58 = vcombine.low %v1048_v42, %v1052_v43  ;;  %v1095_v40 = vld [vmem:[#allocation5 + $0x1e40] sm:$0xff]  ;;  %v1096_v42 = vld [vmem:[#allocation5 + $0x1e48] sm:$0xff] }
 0x239   :  { %9743 = vmatprep.subr.bf16.mxu0 %v14614_v19  ;;  %10235 = vmatprep.subr.bf16.mxu1 %v14616_v61  ;;  %v14662_v19 = vcombine.high %v1055_v50, %v1059_v51  ;;  %v14664_v61 = vcombine.high %v1056_v52, %v1060_v54  ;;  %v1099_v41 = vld [vmem:[#allocation5 + $0x1e60] sm:$0xff]  ;;  %v1100_v43 = vld [vmem:[#allocation5 + $0x1e68] sm:$0xff] }
 0x23c   :  { %9744 = vmatpush1.bf16.msra.mxu0 %v14613_v38  ;;  %10236 = vmatpush1.bf16.msra.mxu1 %v14615_v3  ;;  %v14661_v38 = vcombine.low %v1055_v50, %v1059_v51  ;;  %v14663_v3 = vcombine.low %v1056_v52, %v1060_v54  ;;  %v1103_v50 = vld [vmem:[#allocation5 + $0x1e80] sm:$0xff]  ;;  %v1104_v52 = vld [vmem:[#allocation5 + $0x1e88] sm:$0xff] }
 0x23d   :  { %9745 = vmatprep.subr.bf16.mxu0 %v14622_v4  ;;  %10237 = vmatprep.subr.bf16.mxu1 %v14624_v5  ;;  %v14670_v4 = vcombine.high %v1063_v62, %v1067_v63  ;;  %v14672_v5 = vcombine.high %v1064_v0, %v1068_v1  ;;  %v1107_v51 = vld [vmem:[#allocation5 + $0x1ea0] sm:$0xff]  ;;  %v1108_v54 = vld [vmem:[#allocation5 + $0x1ea8] sm:$0xff] }
 0x240   :  { %9746 = vmatpush1.bf16.msra.mxu0 %v14621_v10  ;;  %10238 = vmatpush1.bf16.msra.mxu1 %v14623_v11  ;;  %v14669_v10 = vcombine.low %v1063_v62, %v1067_v63  ;;  %v14671_v11 = vcombine.low %v1064_v0, %v1068_v1  ;;  %v1111_v62 = vld [vmem:[#allocation5 + $0x1ec0] sm:$0xff]  ;;  %v1112_v0 = vld [vmem:[#allocation5 + $0x1ec8] sm:$0xff] }
 0x241   :  { %9756 = vmatprep.subr.bf16.mxu0 %v14630_v13  ;;  %10248 = vmatprep.subr.bf16.mxu1 %v14632_v14  ;;  %v14678_v13 = vcombine.high %v1071_v6, %v1075_v7  ;;  %v14680_v14 = vcombine.high %v1072_v8, %v1076_v9  ;;  %v1115_v63 = vld [vmem:[#allocation5 + $0x1ee0] sm:$0xff]  ;;  %v1116_v1 = vld [vmem:[#allocation5 + $0x1ee8] sm:$0xff] }
 0x243   :  { %9748 = vmatmul.mubr.bf16.vlgmr.msra.gmra.mrb[0].mxu0 %v16687_v20  ;;  %10240 = vmatmul.mubr.bf16.vlgmr.msra.gmra.mrb[0].mxu1 %v16687_v20 }
 0x244   :  { %9757 = vmatpush1.bf16.msra.mxu0 %v14629_v26  ;;  %10249 = vmatpush1.bf16.msra.mxu1 %v14631_v27  ;;  %v14677_v26 = vcombine.low %v1071_v6, %v1075_v7  ;;  %v14679_v27 = vcombine.low %v1072_v8, %v1076_v9  ;;  %v1119_v6 = vld [vmem:[#allocation5 + $0x1f00] sm:$0xff]  ;;  %v1120_v8 = vld [vmem:[#allocation5 + $0x1f08] sm:$0xff] }
 0x245   :  { %9758 = vmatprep.subr.bf16.mxu0 %v14638_v59  ;;  %10250 = vmatprep.subr.bf16.mxu1 %v14640_v29  ;;  %v14686_v59 = vcombine.high %v1079_v17, %v1083_v18  ;;  %v14688_v29 = vcombine.high %v1080_v21, %v1084_v22  ;;  %v1123_v7 = vld [vmem:[#allocation5 + $0x1f20] sm:$0xff]  ;;  %v1124_v9 = vld [vmem:[#allocation5 + $0x1f28] sm:$0xff] }
 0x246   :  { %9788 = vmatprep.mubr.bf16.mxu0 %v16693_v32  ;;  %10280 = vmatprep.mubr.bf16.mxu1 %v16693_v32 }
 0x248   :  { %9759 = vmatpush1.bf16.msra.mxu0 %v14637_v15  ;;  %10251 = vmatpush1.bf16.msra.mxu1 %v14639_v35  ;;  %v14685_v15 = vcombine.low %v1079_v17, %v1083_v18  ;;  %v14687_v35 = vcombine.low %v1080_v21, %v1084_v22  ;;  %v1127_v17 = vld [vmem:[#allocation5 + $0x1f40] sm:$0xff]  ;;  %v1128_v21 = vld [vmem:[#allocation5 + $0x1f48] sm:$0xff] }
 0x249   :  { %9760 = vmatprep.subr.bf16.mxu0 %v14646_v36  ;;  %10252 = vmatprep.subr.bf16.mxu1 %v14648_v37  ;;  %v14694_v36 = vcombine.high %v1087_v30, %v1091_v31  ;;  %v14696_v37 = vcombine.high %v1088_v49, %v1092_v33  ;;  %v1131_v18 = vld [vmem:[#allocation5 + $0x1f60] sm:$0xff]  ;;  %v1132_v22 = vld [vmem:[#allocation5 + $0x1f68] sm:$0xff] }
 0x24c   :  { %9761 = vmatpush1.bf16.msra.mxu0 %v14645_v44  ;;  %10253 = vmatpush1.bf16.msra.mxu1 %v14647_v45  ;;  %v14693_v44 = vcombine.low %v1087_v30, %v1091_v31  ;;  %v14695_v45 = vcombine.low %v1088_v49, %v1092_v33  ;;  %v1135_v30 = vld [vmem:[#allocation5 + $0x1f80] sm:$0xff]  ;;  %v1136_v49 = vld [vmem:[#allocation5 + $0x1f88] sm:$0xff] }
 0x24d   :  { %9762 = vmatprep.subr.bf16.mxu0 %v14654_v47  ;;  %10254 = vmatprep.subr.bf16.mxu1 %v14656_v24  ;;  %v14702_v47 = vcombine.high %v1095_v40, %v1099_v41  ;;  %v14704_v24 = vcombine.high %v1096_v42, %v1100_v43  ;;  %v1139_v31 = vld [vmem:[#allocation5 + $0x1fa0] sm:$0xff]  ;;  %v1140_v33 = vld [vmem:[#allocation5 + $0x1fa8] sm:$0xff] }
 0x250   :  { %9763 = vmatpush1.bf16.msra.mxu0 %v14653_v56  ;;  %10255 = vmatpush1.bf16.msra.mxu1 %v14655_v58  ;;  %v14701_v56 = vcombine.low %v1095_v40, %v1099_v41  ;;  %v14703_v58 = vcombine.low %v1096_v42, %v1100_v43  ;;  %v1143_v40 = vld [vmem:[#allocation5 + $0x1fc0] sm:$0xff]  ;;  %v1144_v42 = vld [vmem:[#allocation5 + $0x1fc8] sm:$0xff] }
 0x251   :  { %9764 = vmatprep.subr.bf16.mxu0 %v14662_v19  ;;  %10256 = vmatprep.subr.bf16.mxu1 %v14664_v61  ;;  %v14710_v19 = vcombine.high %v1103_v50, %v1107_v51  ;;  %v14712_v61 = vcombine.high %v1104_v52, %v1108_v54  ;;  %v1147_v41 = vld [vmem:[#allocation5 + $0x1fe0] sm:$0xff]  ;;  %v1148_v43 = vld [vmem:[#allocation5 + $0x1fe8] sm:$0xff] }
 0x254   :  { %9765 = vmatpush1.bf16.msra.mxu0 %v14661_v38  ;;  %10257 = vmatpush1.bf16.msra.mxu1 %v14663_v3  ;;  %v14709_v38 = vcombine.low %v1103_v50, %v1107_v51  ;;  %v14711_v3 = vcombine.low %v1104_v52, %v1108_v54  ;;  %v1151_v50 = vld [vmem:[#allocation5 + $0x2000] sm:$0xff]  ;;  %v1152_v52 = vld [vmem:[#allocation5 + $0x2008] sm:$0xff] }
 0x255   :  { %9766 = vmatprep.subr.bf16.mxu0 %v14670_v4  ;;  %10258 = vmatprep.subr.bf16.mxu1 %v14672_v5  ;;  %v14718_v4 = vcombine.high %v1111_v62, %v1115_v63  ;;  %v14720_v5 = vcombine.high %v1112_v0, %v1116_v1  ;;  %v1155_v51 = vld [vmem:[#allocation5 + $0x2020] sm:$0xff]  ;;  %v1156_v54 = vld [vmem:[#allocation5 + $0x2028] sm:$0xff] }
 0x258   :  { %9767 = vmatpush1.bf16.msra.mxu0 %v14669_v10  ;;  %10259 = vmatpush1.bf16.msra.mxu1 %v14671_v11  ;;  %v14717_v10 = vcombine.low %v1111_v62, %v1115_v63  ;;  %v14719_v11 = vcombine.low %v1112_v0, %v1116_v1  ;;  %v1159_v62 = vld [vmem:[#allocation5 + $0x2040] sm:$0xff]  ;;  %v16701_v0 = vcombine.low %v16689_v23, %v16689_v23  ;;  %v1160_v1 = vld [vmem:[#allocation5 + $0x2048] sm:$0xff] }
 0x259   :  { %9768 = vmatprep.subr.bf16.mxu0 %v14678_v13  ;;  %10260 = vmatprep.subr.bf16.mxu1 %v14680_v14  ;;  %v14726_v13 = vcombine.high %v1119_v6, %v1123_v7  ;;  %v14728_v14 = vcombine.high %v1120_v8, %v1124_v9  ;;  %v1163_v63 = vld [vmem:[#allocation5 + $0x2060] sm:$0xff]  ;;  %v1168_v23 = vld [vmem:[#allocation5 + $0x2088] sm:$0xff] }
 0x25c   :  { %9769 = vmatpush1.bf16.msra.mxu0 %v14677_v26  ;;  %10261 = vmatpush1.bf16.msra.mxu1 %v14679_v27  ;;  %v14725_v26 = vcombine.low %v1119_v6, %v1123_v7  ;;  %v14727_v27 = vcombine.low %v1120_v8, %v1124_v9  ;;  %v14766_v6 = vcombine.high %v1159_v62, %v1163_v63  ;;  %v1167_v8 = vld [vmem:[#allocation5 + $0x2080] sm:$0xff] }
 0x25d   :  { %9770 = vmatprep.subr.bf16.mxu0 %v14686_v59  ;;  %10262 = vmatprep.subr.bf16.mxu1 %v14688_v29  ;;  %v14734_v59 = vcombine.high %v1127_v17, %v1131_v18  ;;  %v14736_v29 = vcombine.high %v1128_v21, %v1132_v22  ;;  %v1171_v9 = vld [vmem:[#allocation5 + $0x20a0] sm:$0xff] }
 0x260   :  { %9771 = vmatpush1.bf16.msra.mxu0 %v14685_v15  ;;  %10263 = vmatpush1.bf16.msra.mxu1 %v14687_v35  ;;  %v14733_v15 = vcombine.low %v1127_v17, %v1131_v18  ;;  %v14735_v35 = vcombine.low %v1128_v21, %v1132_v22  ;;  %v14774_v17 = vcombine.high %v1167_v8, %v1171_v9  ;;  %v1175_v21 = vld [vmem:[#allocation5 + $0x20c0] sm:$0xff] }
 0x261   :  { %9772 = vmatprep.subr.bf16.mxu0 %v14694_v36  ;;  %10264 = vmatprep.subr.bf16.mxu1 %v14696_v37  ;;  %v14742_v36 = vcombine.high %v1135_v30, %v1139_v31  ;;  %v14744_v37 = vcombine.high %v1136_v49, %v1140_v33  ;;  %v1179_v22 = vld [vmem:[#allocation5 + $0x20e0] sm:$0xff] }
 0x264   :  { %9773 = vmatpush1.bf16.msra.mxu0 %v14693_v44  ;;  %10265 = vmatpush1.bf16.msra.mxu1 %v14695_v45  ;;  %v14741_v44 = vcombine.low %v1135_v30, %v1139_v31  ;;  %v14743_v45 = vcombine.low %v1136_v49, %v1140_v33  ;;  %v14782_v30 = vcombine.high %v1175_v21, %v1179_v22  ;;  %v1183_v49 = vld [vmem:[#allocation5 + $0x2100] sm:$0xff] }
 0x265   :  { %9774 = vmatprep.subr.bf16.mxu0 %v14702_v47  ;;  %10266 = vmatprep.subr.bf16.mxu1 %v14704_v24  ;;  %v14750_v47 = vcombine.high %v1143_v40, %v1147_v41  ;;  %v14752_v24 = vcombine.high %v1144_v42, %v1148_v43  ;;  %v1187_v33 = vld [vmem:[#allocation5 + $0x2120] sm:$0xff] }
 0x268   :  { %9775 = vmatpush1.bf16.msra.mxu0 %v14701_v56  ;;  %10267 = vmatpush1.bf16.msra.mxu1 %v14703_v58  ;;  %v14749_v56 = vcombine.low %v1143_v40, %v1147_v41  ;;  %v14751_v58 = vcombine.low %v1144_v42, %v1148_v43  ;;  %v14790_v40 = vcombine.high %v1183_v49, %v1187_v33  ;;  %v1191_v42 = vld [vmem:[#allocation5 + $0x2140] sm:$0xff] }
 0x269   :  { %9776 = vmatprep.subr.bf16.mxu0 %v14710_v19  ;;  %10268 = vmatprep.subr.bf16.mxu1 %v14712_v61  ;;  %v14758_v19 = vcombine.high %v1151_v50, %v1155_v51  ;;  %v14760_v61 = vcombine.high %v1152_v52, %v1156_v54  ;;  %v1195_v43 = vld [vmem:[#allocation5 + $0x2160] sm:$0xff] }
 0x26c   :  { %9777 = vmatpush1.bf16.msra.mxu0 %v14709_v38  ;;  %10269 = vmatpush1.bf16.msra.mxu1 %v14711_v3  ;;  %v1164_v38 = vld [vmem:[#allocation5 + $0x2068] sm:$0xff]  ;;  %v16703_v3 = vld [vmem:[#allocation2 + $0x40] sm:$0xff] }
 0x26d   :  { %9778 = vmatprep.subr.bf16.mxu0 %v14718_v4  ;;  %10270 = vmatprep.subr.bf16.mxu1 %v14720_v5  ;;  %v14757_v4 = vcombine.low %v1151_v50, %v1155_v51  ;;  %v14759_v5 = vcombine.low %v1152_v52, %v1156_v54  ;;  %v14768_v7 = vcombine.high %v1160_v1, %v1164_v38  ;;  %v1199_v52 = vld [vmem:[#allocation5 + $0x2180] sm:$0xff] }
 0x26e   :  { %v14798_v50 = vcombine.high %v1191_v42, %v1195_v43  ;;  %v1203_v54 = vld [vmem:[#allocation5 + $0x21a0] sm:$0xff] }
 0x270   :  { %9779 = vmatpush1.bf16.msra.mxu0 %v14717_v10  ;;  %10271 = vmatpush1.bf16.msra.mxu1 %v14719_v11  ;;  %v16707_v10 = vcombine.high %v16703_v3, %v16703_v3  ;;  %v1172_v11 = vld [vmem:[#allocation5 + $0x20a8] sm:$0xff] }
 0x271   :  { %9780 = vmatprep.subr.bf16.mxu0 %v14726_v13  ;;  %10272 = vmatprep.subr.bf16.mxu1 %v14728_v14  ;;  %v14765_v13 = vcombine.low %v1159_v62, %v1163_v63  ;;  %v14767_v14 = vcombine.low %v1160_v1, %v1164_v38  ;;  %v14776_v18 = vcombine.high %v1168_v23, %v1172_v11  ;;  %v1207_v1 = vld [vmem:[#allocation5 + $0x21c0] sm:$0xff] }
 0x272   :  { %v14806_v62 = vcombine.high %v1199_v52, %v1203_v54  ;;  %v1211_v38 = vld [vmem:[#allocation5 + $0x21e0] sm:$0xff] }
 0x274   :  { %9781 = vmatpush1.bf16.msra.mxu0 %v14725_v26  ;;  %10273 = vmatpush1.bf16.msra.mxu1 %v14727_v27  ;;  %v1176_v26 = vld [vmem:[#allocation5 + $0x20c8] sm:$0xff] }
 0x275   :  { %9782 = vmatprep.subr.bf16.mxu0 %v14734_v59  ;;  %10274 = vmatprep.subr.bf16.mxu1 %v14736_v29  ;;  %v1180_v27 = vld [vmem:[#allocation5 + $0x20e8] sm:$0xff]  ;;  %v14773_v59 = vcombine.low %v1167_v8, %v1171_v9  ;;  %v14775_v29 = vcombine.low %v1168_v23, %v1172_v11  ;;  %v14814_v8 = vcombine.high %v1207_v1, %v1211_v38  ;;  %v1215_v23 = vld [vmem:[#allocation5 + $0x2200] sm:$0xff] }
 0x276   :  { %v14784_v31 = vcombine.high %v1176_v26, %v1180_v27  ;;  %v1219_v11 = vld [vmem:[#allocation5 + $0x2220] sm:$0xff] }
 0x278   :  { %9783 = vmatpush1.bf16.msra.mxu0 %v14733_v15  ;;  %10275 = vmatpush1.bf16.msra.mxu1 %v14735_v35  ;;  %v1184_v15 = vld [vmem:[#allocation5 + $0x2108] sm:$0xff] }
 0x279   :  { %9784 = vmatprep.subr.bf16.mxu0 %v14742_v36  ;;  %10276 = vmatprep.subr.bf16.mxu1 %v14744_v37  ;;  %v1188_v35 = vld [vmem:[#allocation5 + $0x2128] sm:$0xff]  ;;  %v14781_v36 = vcombine.low %v1175_v21, %v1179_v22  ;;  %v14783_v37 = vcombine.low %v1176_v26, %v1180_v27  ;;  %v14822_v21 = vcombine.high %v1215_v23, %v1219_v11  ;;  %v1223_v26 = vld [vmem:[#allocation5 + $0x2240] sm:$0xff] }
 0x27a   :  { %v14792_v41 = vcombine.high %v1184_v15, %v1188_v35  ;;  %v1227_v27 = vld [vmem:[#allocation5 + $0x2260] sm:$0xff] }
 0x27c   :  { %9785 = vmatpush1.bf16.msra.mxu0 %v14741_v44  ;;  %10277 = vmatpush1.bf16.msra.mxu1 %v14743_v45  ;;  %v1192_v44 = vld [vmem:[#allocation5 + $0x2148] sm:$0xff] }
 0x27d   :  { %9786 = vmatprep.subr.bf16.mxu0 %v14750_v47  ;;  %10278 = vmatprep.subr.bf16.mxu1 %v14752_v24  ;;  %v1196_v45 = vld [vmem:[#allocation5 + $0x2168] sm:$0xff]  ;;  %v14789_v47 = vcombine.low %v1183_v49, %v1187_v33  ;;  %v14791_v24 = vcombine.low %v1184_v15, %v1188_v35  ;;  %v14830_v49 = vcombine.high %v1223_v26, %v1227_v27  ;;  %v1231_v15 = vld [vmem:[#allocation5 + $0x2280] sm:$0xff] }
 0x27e   :  { %v14800_v51 = vcombine.high %v1192_v44, %v1196_v45  ;;  %v1235_v35 = vld [vmem:[#allocation5 + $0x22a0] sm:$0xff] }
 0x280   :  { %9787 = vmatpush1.bf16.msra.mxu0 %v14749_v56  ;;  %10279 = vmatpush1.bf16.msra.mxu1 %v14751_v58  ;;  %v1200_v56 = vld [vmem:[#allocation5 + $0x2188] sm:$0xff] }
 0x281   :  { %9797 = vmatprep.subr.bf16.mxu0 %v14758_v19  ;;  %10289 = vmatprep.subr.bf16.mxu1 %v14760_v61  ;;  %v1204_v58 = vld [vmem:[#allocation5 + $0x21a8] sm:$0xff]  ;;  %v14797_v19 = vcombine.low %v1191_v42, %v1195_v43  ;;  %v14799_v61 = vcombine.low %v1192_v44, %v1196_v45  ;;  %v14838_v42 = vcombine.high %v1231_v15, %v1235_v35  ;;  %v1239_v44 = vld [vmem:[#allocation5 + $0x22c0] sm:$0xff] }
 0x282   :  { %v14808_v63 = vcombine.high %v1200_v56, %v1204_v58  ;;  %v1243_v45 = vld [vmem:[#allocation5 + $0x22e0] sm:$0xff] }
 0x283   :  { %9789 = vmatmul.mubr.bf16.vlgmr.msra.gmra.mrb[0].mxu0 %v16701_v0  ;;  %10281 = vmatmul.mubr.bf16.vlgmr.msra.gmra.mrb[0].mxu1 %v16701_v0 }
 0x284   :  { %9798 = vmatpush1.bf16.msra.mxu0 %v14757_v4  ;;  %10290 = vmatpush1.bf16.msra.mxu1 %v14759_v5  ;;  %v1208_v4 = vld [vmem:[#allocation5 + $0x21c8] sm:$0xff] }
 0x285   :  { %9799 = vmatprep.subr.bf16.mxu0 %v14766_v6  ;;  %10291 = vmatprep.subr.bf16.mxu1 %v14768_v7  ;;  %v1212_v5 = vld [vmem:[#allocation5 + $0x21e8] sm:$0xff]  ;;  %v14805_v6 = vcombine.low %v1199_v52, %v1203_v54  ;;  %v14807_v7 = vcombine.low %v1200_v56, %v1204_v58  ;;  %v14846_v52 = vcombine.high %v1239_v44, %v1243_v45  ;;  %v1247_v56 = vld [vmem:[#allocation5 + $0x2300] sm:$0xff] }
 0x286   :  { %9829 = vmatprep.mubr.bf16.mxu0 %v16707_v10  ;;  %10321 = vmatprep.mubr.bf16.mxu1 %v16707_v10  ;;  %v14816_v9 = vcombine.high %v1208_v4, %v1212_v5  ;;  %v1251_v58 = vld [vmem:[#allocation5 + $0x2320] sm:$0xff] }
 0x288   :  { %9800 = vmatpush1.bf16.msra.mxu0 %v14765_v13  ;;  %10292 = vmatpush1.bf16.msra.mxu1 %v14767_v14  ;;  %v1216_v13 = vld [vmem:[#allocation5 + $0x2208] sm:$0xff] }
 0x289   :  { %9801 = vmatprep.subr.bf16.mxu0 %v14774_v17  ;;  %10293 = vmatprep.subr.bf16.mxu1 %v14776_v18  ;;  %v1220_v14 = vld [vmem:[#allocation5 + $0x2228] sm:$0xff]  ;;  %v14813_v17 = vcombine.low %v1207_v1, %v1211_v38  ;;  %v14815_v18 = vcombine.low %v1208_v4, %v1212_v5  ;;  %v14854_v1 = vcombine.high %v1247_v56, %v1251_v58  ;;  %v1255_v4 = vld [vmem:[#allocation5 + $0x2340] sm:$0xff] }
 0x28a   :  { %v14824_v22 = vcombine.high %v1216_v13, %v1220_v14  ;;  %v1259_v5 = vld [vmem:[#allocation5 + $0x2360] sm:$0xff] }
 0x28c   :  { %9802 = vmatpush1.bf16.msra.mxu0 %v14773_v59  ;;  %10294 = vmatpush1.bf16.msra.mxu1 %v14775_v29  ;;  %v1224_v59 = vld [vmem:[#allocation5 + $0x2248] sm:$0xff] }
 0x28d   :  { %9803 = vmatprep.subr.bf16.mxu0 %v14782_v30  ;;  %10295 = vmatprep.subr.bf16.mxu1 %v14784_v31  ;;  %v1228_v29 = vld [vmem:[#allocation5 + $0x2268] sm:$0xff]  ;;  %v14821_v30 = vcombine.low %v1215_v23, %v1219_v11  ;;  %v14823_v31 = vcombine.low %v1216_v13, %v1220_v14  ;;  %v14862_v23 = vcombine.high %v1255_v4, %v1259_v5  ;;  %v1263_v13 = vld [vmem:[#allocation5 + $0x2380] sm:$0xff] }
 0x28e   :  { %v14832_v33 = vcombine.high %v1224_v59, %v1228_v29  ;;  %v1267_v14 = vld [vmem:[#allocation5 + $0x23a0] sm:$0xff] }
 0x290   :  { %9804 = vmatpush1.bf16.msra.mxu0 %v14781_v36  ;;  %10296 = vmatpush1.bf16.msra.mxu1 %v14783_v37  ;;  %v1232_v36 = vld [vmem:[#allocation5 + $0x2288] sm:$0xff] }
 0x291   :  { %9805 = vmatprep.subr.bf16.mxu0 %v14790_v40  ;;  %10297 = vmatprep.subr.bf16.mxu1 %v14792_v41  ;;  %v1236_v37 = vld [vmem:[#allocation5 + $0x22a8] sm:$0xff]  ;;  %v14829_v40 = vcombine.low %v1223_v26, %v1227_v27  ;;  %v14831_v41 = vcombine.low %v1224_v59, %v1228_v29  ;;  %v14870_v26 = vcombine.high %v1263_v13, %v1267_v14  ;;  %v1271_v59 = vld [vmem:[#allocation5 + $0x23c0] sm:$0xff] }
 0x292   :  { %v14840_v43 = vcombine.high %v1232_v36, %v1236_v37  ;;  %v1275_v29 = vld [vmem:[#allocation5 + $0x23e0] sm:$0xff] }
 0x294   :  { %9806 = vmatpush1.bf16.msra.mxu0 %v14789_v47  ;;  %10298 = vmatpush1.bf16.msra.mxu1 %v14791_v24  ;;  %v1240_v47 = vld [vmem:[#allocation5 + $0x22c8] sm:$0xff] }
 0x295   :  { %9807 = vmatprep.subr.bf16.mxu0 %v14798_v50  ;;  %10299 = vmatprep.subr.bf16.mxu1 %v14800_v51  ;;  %v1244_v24 = vld [vmem:[#allocation5 + $0x22e8] sm:$0xff]  ;;  %v14837_v50 = vcombine.low %v1231_v15, %v1235_v35  ;;  %v14839_v51 = vcombine.low %v1232_v36, %v1236_v37  ;;  %v14878_v15 = vcombine.high %v1271_v59, %v1275_v29  ;;  %v1279_v36 = vld [vmem:[#allocation5 + $0x2400] sm:$0xff] }
 0x296   :  { %v14848_v54 = vcombine.high %v1240_v47, %v1244_v24  ;;  %v1283_v37 = vld [vmem:[#allocation5 + $0x2420] sm:$0xff] }
 0x298   :  { %9808 = vmatpush1.bf16.msra.mxu0 %v14797_v19  ;;  %10300 = vmatpush1.bf16.msra.mxu1 %v14799_v61  ;;  %v1248_v19 = vld [vmem:[#allocation5 + $0x2308] sm:$0xff] }
 0x299   :  { %9809 = vmatprep.subr.bf16.mxu0 %v14806_v62  ;;  %10301 = vmatprep.subr.bf16.mxu1 %v14808_v63  ;;  %v1252_v61 = vld [vmem:[#allocation5 + $0x2328] sm:$0xff]  ;;  %v14845_v62 = vcombine.low %v1239_v44, %v1243_v45  ;;  %v14847_v63 = vcombine.low %v1240_v47, %v1244_v24  ;;  %v14886_v44 = vcombine.high %v1279_v36, %v1283_v37  ;;  %v1287_v47 = vld [vmem:[#allocation5 + $0x2440] sm:$0xff] }
 0x29a   :  { %v14856_v38 = vcombine.high %v1248_v19, %v1252_v61  ;;  %v1291_v24 = vld [vmem:[#allocation5 + $0x2460] sm:$0xff] }
 0x29c   :  { %9810 = vmatpush1.bf16.msra.mxu0 %v14805_v6  ;;  %10302 = vmatpush1.bf16.msra.mxu1 %v14807_v7  ;;  %v1256_v6 = vld [vmem:[#allocation5 + $0x2348] sm:$0xff] }
 0x29d   :  { %9811 = vmatprep.subr.bf16.mxu0 %v14814_v8  ;;  %10303 = vmatprep.subr.bf16.mxu1 %v14816_v9  ;;  %v1260_v7 = vld [vmem:[#allocation5 + $0x2368] sm:$0xff]  ;;  %v14853_v8 = vcombine.low %v1247_v56, %v1251_v58  ;;  %v14855_v9 = vcombine.low %v1248_v19, %v1252_v61  ;;  %v14885_v56 = vcombine.low %v1279_v36, %v1283_v37 }
 0x29e   :  { %v14864_v11 = vcombine.high %v1256_v6, %v1260_v7  ;;  %v14894_v19 = vcombine.high %v1287_v47, %v1291_v24 }
 0x2a0   :  { %9812 = vmatpush1.bf16.msra.mxu0 %v14813_v17  ;;  %10304 = vmatpush1.bf16.msra.mxu1 %v14815_v18  ;;  %v1264_v17 = vld [vmem:[#allocation5 + $0x2388] sm:$0xff] }
 0x2a1   :  { %9813 = vmatprep.subr.bf16.mxu0 %v14822_v21  ;;  %10305 = vmatprep.subr.bf16.mxu1 %v14824_v22  ;;  %v1268_v18 = vld [vmem:[#allocation5 + $0x23a8] sm:$0xff]  ;;  %v14861_v21 = vcombine.low %v1255_v4, %v1259_v5  ;;  %v14863_v22 = vcombine.low %v1256_v6, %v1260_v7  ;;  %v14893_v4 = vcombine.low %v1287_v47, %v1291_v24 }
 0x2a2   :  { %v14872_v27 = vcombine.high %v1264_v17, %v1268_v18 }
 0x2a4   :  { %9814 = vmatpush1.bf16.msra.mxu0 %v14821_v30  ;;  %10306 = vmatpush1.bf16.msra.mxu1 %v14823_v31  ;;  %v1272_v30 = vld [vmem:[#allocation5 + $0x23c8] sm:$0xff] }
 0x2a5   :  { %9815 = vmatprep.subr.bf16.mxu0 %v14830_v49  ;;  %10307 = vmatprep.subr.bf16.mxu1 %v14832_v33  ;;  %v1276_v31 = vld [vmem:[#allocation5 + $0x23e8] sm:$0xff]  ;;  %v14869_v49 = vcombine.low %v1263_v13, %v1267_v14  ;;  %v14871_v33 = vcombine.low %v1264_v17, %v1268_v18 }
 0x2a6   :  { %v14880_v35 = vcombine.high %v1272_v30, %v1276_v31 }
 0x2a8   :  { %9816 = vmatpush1.bf16.msra.mxu0 %v14829_v40  ;;  %10308 = vmatpush1.bf16.msra.mxu1 %v14831_v41  ;;  %v1280_v40 = vld [vmem:[#allocation5 + $0x2408] sm:$0xff] }
 0x2a9   :  { %9817 = vmatprep.subr.bf16.mxu0 %v14838_v42  ;;  %10309 = vmatprep.subr.bf16.mxu1 %v14840_v43  ;;  %v1284_v41 = vld [vmem:[#allocation5 + $0x2428] sm:$0xff]  ;;  %v14877_v42 = vcombine.low %v1271_v59, %v1275_v29  ;;  %v14879_v43 = vcombine.low %v1272_v30, %v1276_v31 }
 0x2aa   :  { %v14888_v45 = vcombine.high %v1280_v40, %v1284_v41  ;;  %v14887_v58 = vcombine.low %v1280_v40, %v1284_v41 }
 0x2ac   :  { %9818 = vmatpush1.bf16.msra.mxu0 %v14837_v50  ;;  %10310 = vmatpush1.bf16.msra.mxu1 %v14839_v51  ;;  %v16715_v50 = vcombine.low %v16703_v3, %v16703_v3  ;;  %v1288_v51 = vld [vmem:[#allocation5 + $0x2448] sm:$0xff] }
 0x2ad   :  { %9819 = vmatprep.subr.bf16.mxu0 %v14846_v52  ;;  %10311 = vmatprep.subr.bf16.mxu1 %v14848_v54  ;;  %v1292_v52 = vld [vmem:[#allocation5 + $0x2468] sm:$0xff] }
 0x2ae   :  { %v16717_v54 = vld [vmem:[#allocation2 + $0x48] sm:$0xff]  ;;  %v14896_v61 = vcombine.high %v1288_v51, %v1292_v52  ;;  %v14895_v5 = vcombine.low %v1288_v51, %v1292_v52 }
 0x2af   :  { %v1296_v3 = vld [vmem:[#allocation5 + $0x2488] sm:$0xff] }
 0x2b0   :  { %9820 = vmatpush1.bf16.msra.mxu0 %v14845_v62  ;;  %10312 = vmatpush1.bf16.msra.mxu1 %v14847_v63  ;;  %v1295_v62 = vld [vmem:[#allocation5 + $0x2480] sm:$0xff] }
 0x2b1   :  { %9821 = vmatprep.subr.bf16.mxu0 %v14854_v1  ;;  %10313 = vmatprep.subr.bf16.mxu1 %v14856_v38  ;;  %v1299_v63 = vld [vmem:[#allocation5 + $0x24a0] sm:$0xff]  ;;  %v16721_v1 = vcombine.high %v16717_v54, %v16717_v54  ;;  %v1300_v38 = vld [vmem:[#allocation5 + $0x24a8] sm:$0xff] }
 0x2b2   :  { %v14902_v6 = vcombine.high %v1295_v62, %v1299_v63  ;;  %v14904_v7 = vcombine.high %v1296_v3, %v1300_v38  ;;  %v14901_v13 = vcombine.low %v1295_v62, %v1299_v63  ;;  %v14903_v14 = vcombine.low %v1296_v3, %v1300_v38 }
 0x2b4   :  { %9822 = vmatpush1.bf16.msra.mxu0 %v14853_v8  ;;  %10314 = vmatpush1.bf16.msra.mxu1 %v14855_v9  ;;  %v1303_v8 = vld [vmem:[#allocation5 + $0x24c0] sm:$0xff] }
 0x2b5   :  { %9823 = vmatprep.subr.bf16.mxu0 %v14862_v23  ;;  %10315 = vmatprep.subr.bf16.mxu1 %v14864_v11  ;;  %v1307_v9 = vld [vmem:[#allocation5 + $0x24e0] sm:$0xff]  ;;  %v1304_v23 = vld [vmem:[#allocation5 + $0x24c8] sm:$0xff] }
 0x2b6   :  { %v1308_v11 = vld [vmem:[#allocation5 + $0x24e8] sm:$0xff]  ;;  %v14910_v17 = vcombine.high %v1303_v8, %v1307_v9  ;;  %v14909_v59 = vcombine.low %v1303_v8, %v1307_v9 }
 0x2b7   :  { %v14912_v18 = vcombine.high %v1304_v23, %v1308_v11  ;;  %v14911_v29 = vcombine.low %v1304_v23, %v1308_v11 }
 0x2b8   :  { %9824 = vmatpush1.bf16.msra.mxu0 %v14861_v21  ;;  %10316 = vmatpush1.bf16.msra.mxu1 %v14863_v22  ;;  %v1311_v21 = vld [vmem:[#allocation5 + $0x2500] sm:$0xff] }
 0x2b9   :  { %9825 = vmatprep.subr.bf16.mxu0 %v14870_v26  ;;  %10317 = vmatprep.subr.bf16.mxu1 %v14872_v27  ;;  %v1315_v22 = vld [vmem:[#allocation5 + $0x2520] sm:$0xff]  ;;  %v1312_v26 = vld [vmem:[#allocation5 + $0x2508] sm:$0xff] }
 0x2ba   :  { %v1316_v27 = vld [vmem:[#allocation5 + $0x2528] sm:$0xff]  ;;  %v14918_v30 = vcombine.high %v1311_v21, %v1315_v22  ;;  %v14917_v36 = vcombine.low %v1311_v21, %v1315_v22 }
 0x2bb   :  { %v14920_v31 = vcombine.high %v1312_v26, %v1316_v27  ;;  %v14919_v37 = vcombine.low %v1312_v26, %v1316_v27 }
 0x2bc   :  { %9826 = vmatpush1.bf16.msra.mxu0 %v14869_v49  ;;  %10318 = vmatpush1.bf16.msra.mxu1 %v14871_v33  ;;  %v1319_v49 = vld [vmem:[#allocation5 + $0x2540] sm:$0xff] }
 0x2bd   :  { %9827 = vmatprep.subr.bf16.mxu0 %v14878_v15  ;;  %10319 = vmatprep.subr.bf16.mxu1 %v14880_v35  ;;  %v1323_v33 = vld [vmem:[#allocation5 + $0x2560] sm:$0xff]  ;;  %v1320_v15 = vld [vmem:[#allocation5 + $0x2548] sm:$0xff] }
 0x2be   :  { %v1324_v35 = vld [vmem:[#allocation5 + $0x2568] sm:$0xff]  ;;  %v14926_v40 = vcombine.high %v1319_v49, %v1323_v33  ;;  %v14925_v47 = vcombine.low %v1319_v49, %v1323_v33 }
 0x2bf   :  { %v14928_v41 = vcombine.high %v1320_v15, %v1324_v35  ;;  %v14927_v24 = vcombine.low %v1320_v15, %v1324_v35 }
 0x2c0   :  { %9828 = vmatpush1.bf16.msra.mxu0 %v14877_v42  ;;  %10320 = vmatpush1.bf16.msra.mxu1 %v14879_v43  ;;  %v1327_v42 = vld [vmem:[#allocation5 + $0x2580] sm:$0xff] }
 0x2c1   :  { %9838 = vmatprep.subr.bf16.mxu0 %v14886_v44  ;;  %10330 = vmatprep.subr.bf16.mxu1 %v14888_v45  ;;  %v1331_v43 = vld [vmem:[#allocation5 + $0x25a0] sm:$0xff]  ;;  %v1328_v44 = vld [vmem:[#allocation5 + $0x2588] sm:$0xff] }
 0x2c2   :  { %v1332_v45 = vld [vmem:[#allocation5 + $0x25a8] sm:$0xff]  ;;  %v14934_v51 = vcombine.high %v1327_v42, %v1331_v43  ;;  %v14933_v62 = vcombine.low %v1327_v42, %v1331_v43 }
 0x2c3   :  { %9830 = vmatmul.mubr.bf16.vlgmr.msra.gmra.mrb[0].mxu0 %v16715_v50  ;;  %10322 = vmatmul.mubr.bf16.vlgmr.msra.gmra.mrb[0].mxu1 %v16715_v50  ;;  %v14936_v52 = vcombine.high %v1328_v44, %v1332_v45  ;;  %v14935_v63 = vcombine.low %v1328_v44, %v1332_v45 }
 0x2c4   :  { %9839 = vmatpush1.bf16.msra.mxu0 %v14885_v56  ;;  %10331 = vmatpush1.bf16.msra.mxu1 %v14887_v58  ;;  %v1335_v56 = vld [vmem:[#allocation5 + $0x25c0] sm:$0xff] }
 0x2c5   :  { %9840 = vmatprep.subr.bf16.mxu0 %v14894_v19  ;;  %10332 = vmatprep.subr.bf16.mxu1 %v14896_v61  ;;  %v1339_v58 = vld [vmem:[#allocation5 + $0x25e0] sm:$0xff]  ;;  %v1336_v19 = vld [vmem:[#allocation5 + $0x25c8] sm:$0xff] }
 0x2c6   :  { %9870 = vmatprep.mubr.bf16.mxu0 %v16721_v1  ;;  %10362 = vmatprep.mubr.bf16.mxu1 %v16721_v1  ;;  %v1340_v61 = vld [vmem:[#allocation5 + $0x25e8] sm:$0xff]  ;;  %v14942_v3 = vcombine.high %v1335_v56, %v1339_v58  ;;  %v14941_v8 = vcombine.low %v1335_v56, %v1339_v58 }
 0x2c7   :  { %v14944_v38 = vcombine.high %v1336_v19, %v1340_v61  ;;  %v14943_v9 = vcombine.low %v1336_v19, %v1340_v61 }
 0x2c8   :  { %9841 = vmatpush1.bf16.msra.mxu0 %v14893_v4  ;;  %10333 = vmatpush1.bf16.msra.mxu1 %v14895_v5  ;;  %v1343_v4 = vld [vmem:[#allocation5 + $0x2600] sm:$0xff] }
 0x2c9   :  { %9842 = vmatprep.subr.bf16.mxu0 %v14902_v6  ;;  %10334 = vmatprep.subr.bf16.mxu1 %v14904_v7  ;;  %v1347_v5 = vld [vmem:[#allocation5 + $0x2620] sm:$0xff]  ;;  %v1344_v6 = vld [vmem:[#allocation5 + $0x2608] sm:$0xff] }
 0x2ca   :  { %v1348_v7 = vld [vmem:[#allocation5 + $0x2628] sm:$0xff]  ;;  %v14950_v23 = vcombine.high %v1343_v4, %v1347_v5  ;;  %v14949_v21 = vcombine.low %v1343_v4, %v1347_v5 }
 0x2cb   :  { %v14952_v11 = vcombine.high %v1344_v6, %v1348_v7  ;;  %v14951_v22 = vcombine.low %v1344_v6, %v1348_v7 }
 0x2cc   :  { %9843 = vmatpush1.bf16.msra.mxu0 %v14901_v13  ;;  %10335 = vmatpush1.bf16.msra.mxu1 %v14903_v14  ;;  %v1351_v13 = vld [vmem:[#allocation5 + $0x2640] sm:$0xff] }
 0x2cd   :  { %9844 = vmatprep.subr.bf16.mxu0 %v14910_v17  ;;  %10336 = vmatprep.subr.bf16.mxu1 %v14912_v18  ;;  %v1355_v14 = vld [vmem:[#allocation5 + $0x2660] sm:$0xff]  ;;  %v1352_v17 = vld [vmem:[#allocation5 + $0x2648] sm:$0xff] }
 0x2ce   :  { %v1356_v18 = vld [vmem:[#allocation5 + $0x2668] sm:$0xff]  ;;  %v14958_v26 = vcombine.high %v1351_v13, %v1355_v14  ;;  %v14957_v49 = vcombine.low %v1351_v13, %v1355_v14 }
 0x2cf   :  { %v14960_v27 = vcombine.high %v1352_v17, %v1356_v18  ;;  %v14959_v33 = vcombine.low %v1352_v17, %v1356_v18 }
 0x2d0   :  { %9845 = vmatpush1.bf16.msra.mxu0 %v14909_v59  ;;  %10337 = vmatpush1.bf16.msra.mxu1 %v14911_v29  ;;  %v1359_v59 = vld [vmem:[#allocation5 + $0x2680] sm:$0xff] }
 0x2d1   :  { %9846 = vmatprep.subr.bf16.mxu0 %v14918_v30  ;;  %10338 = vmatprep.subr.bf16.mxu1 %v14920_v31  ;;  %v1363_v29 = vld [vmem:[#allocation5 + $0x26a0] sm:$0xff]  ;;  %v1360_v30 = vld [vmem:[#allocation5 + $0x2688] sm:$0xff] }
 0x2d2   :  { %v1364_v31 = vld [vmem:[#allocation5 + $0x26a8] sm:$0xff]  ;;  %v14966_v15 = vcombine.high %v1359_v59, %v1363_v29  ;;  %v14965_v42 = vcombine.low %v1359_v59, %v1363_v29 }
 0x2d3   :  { %v14968_v35 = vcombine.high %v1360_v30, %v1364_v31  ;;  %v14967_v43 = vcombine.low %v1360_v30, %v1364_v31 }
 0x2d4   :  { %9847 = vmatpush1.bf16.msra.mxu0 %v14917_v36  ;;  %10339 = vmatpush1.bf16.msra.mxu1 %v14919_v37  ;;  %v1367_v36 = vld [vmem:[#allocation5 + $0x26c0] sm:$0xff] }
 0x2d5   :  { %9848 = vmatprep.subr.bf16.mxu0 %v14926_v40  ;;  %10340 = vmatprep.subr.bf16.mxu1 %v14928_v41  ;;  %v1371_v37 = vld [vmem:[#allocation5 + $0x26e0] sm:$0xff]  ;;  %v1368_v40 = vld [vmem:[#allocation5 + $0x26c8] sm:$0xff] }
 0x2d6   :  { %v1372_v41 = vld [vmem:[#allocation5 + $0x26e8] sm:$0xff]  ;;  %v14974_v44 = vcombine.high %v1367_v36, %v1371_v37  ;;  %v14973_v56 = vcombine.low %v1367_v36, %v1371_v37 }
 0x2d7   :  { %v14976_v45 = vcombine.high %v1368_v40, %v1372_v41  ;;  %v14975_v58 = vcombine.low %v1368_v40, %v1372_v41 }
 0x2d8   :  { %9849 = vmatpush1.bf16.msra.mxu0 %v14925_v47  ;;  %10341 = vmatpush1.bf16.msra.mxu1 %v14927_v24  ;;  %v1375_v47 = vld [vmem:[#allocation5 + $0x2700] sm:$0xff] }
 0x2d9   :  { %9850 = vmatprep.subr.bf16.mxu0 %v14934_v51  ;;  %10342 = vmatprep.subr.bf16.mxu1 %v14936_v52  ;;  %v1379_v24 = vld [vmem:[#allocation5 + $0x2720] sm:$0xff]  ;;  %v1376_v51 = vld [vmem:[#allocation5 + $0x2708] sm:$0xff] }
 0x2da   :  { %v1380_v52 = vld [vmem:[#allocation5 + $0x2728] sm:$0xff]  ;;  %v14982_v19 = vcombine.high %v1375_v47, %v1379_v24  ;;  %v14981_v4 = vcombine.low %v1375_v47, %v1379_v24  ;;  %v16731_v24 = vld [vmem:[#allocation2 + $0x50] sm:$0xff] }
 0x2db   :  { %v14984_v61 = vcombine.high %v1376_v51, %v1380_v52  ;;  %v14983_v5 = vcombine.low %v1376_v51, %v1380_v52  ;;  %v1420_v47 = vld [vmem:[#allocation5 + $0x2868] sm:$0xff] }
 0x2dc   :  { %9851 = vmatpush1.bf16.msra.mxu0 %v14933_v62  ;;  %10343 = vmatpush1.bf16.msra.mxu1 %v14935_v63  ;;  %v1383_v62 = vld [vmem:[#allocation5 + $0x2740] sm:$0xff] }
 0x2dd   :  { %9852 = vmatprep.subr.bf16.mxu0 %v14942_v3  ;;  %10344 = vmatprep.subr.bf16.mxu1 %v14944_v38  ;;  %v1387_v63 = vld [vmem:[#allocation5 + $0x2760] sm:$0xff]  ;;  %v1384_v3 = vld [vmem:[#allocation5 + $0x2748] sm:$0xff] }
 0x2de   :  { %v1388_v38 = vld [vmem:[#allocation5 + $0x2768] sm:$0xff]  ;;  %v14990_v6 = vcombine.high %v1383_v62, %v1387_v63  ;;  %v14989_v13 = vcombine.low %v1383_v62, %v1387_v63  ;;  %v16735_v62 = vcombine.high %v16731_v24, %v16731_v24 }
 0x2df   :  { %v14992_v7 = vcombine.high %v1384_v3, %v1388_v38  ;;  %v14991_v14 = vcombine.low %v1384_v3, %v1388_v38  ;;  %v1428_v63 = vld [vmem:[#allocation5 + $0x28a8] sm:$0xff] }
 0x2e0   :  { %9853 = vmatpush1.bf16.msra.mxu0 %v14941_v8  ;;  %10345 = vmatpush1.bf16.msra.mxu1 %v14943_v9  ;;  %v1391_v8 = vld [vmem:[#allocation5 + $0x2780] sm:$0xff] }
 0x2e1   :  { %9854 = vmatprep.subr.bf16.mxu0 %v14950_v23  ;;  %10346 = vmatprep.subr.bf16.mxu1 %v14952_v11  ;;  %v1395_v9 = vld [vmem:[#allocation5 + $0x27a0] sm:$0xff]  ;;  %v1392_v23 = vld [vmem:[#allocation5 + $0x2788] sm:$0xff] }
 0x2e2   :  { %v1396_v11 = vld [vmem:[#allocation5 + $0x27a8] sm:$0xff]  ;;  %v14998_v17 = vcombine.high %v1391_v8, %v1395_v9  ;;  %v14997_v59 = vcombine.low %v1391_v8, %v1395_v9 }
 0x2e3   :  { %v15000_v18 = vcombine.high %v1392_v23, %v1396_v11  ;;  %v14999_v29 = vcombine.low %v1392_v23, %v1396_v11  ;;  %v1432_v8 = vld [vmem:[#allocation5 + $0x28c8] sm:$0xff] }
 0x2e4   :  { %9855 = vmatpush1.bf16.msra.mxu0 %v14949_v21  ;;  %10347 = vmatpush1.bf16.msra.mxu1 %v14951_v22  ;;  %v1399_v21 = vld [vmem:[#allocation5 + $0x27c0] sm:$0xff]  ;;  %v1436_v9 = vld [vmem:[#allocation5 + $0x28e8] sm:$0xff] }
 0x2e5   :  { %9856 = vmatprep.subr.bf16.mxu0 %v14958_v26  ;;  %10348 = vmatprep.subr.bf16.mxu1 %v14960_v27  ;;  %v1403_v22 = vld [vmem:[#allocation5 + $0x27e0] sm:$0xff]  ;;  %v1400_v26 = vld [vmem:[#allocation5 + $0x27c8] sm:$0xff] }
 0x2e6   :  { %v1404_v27 = vld [vmem:[#allocation5 + $0x27e8] sm:$0xff]  ;;  %v15006_v30 = vcombine.high %v1399_v21, %v1403_v22  ;;  %v15005_v36 = vcombine.low %v1399_v21, %v1403_v22 }
 0x2e7   :  { %v15008_v31 = vcombine.high %v1400_v26, %v1404_v27  ;;  %v15007_v37 = vcombine.low %v1400_v26, %v1404_v27  ;;  %v1440_v21 = vld [vmem:[#allocation5 + $0x2908] sm:$0xff]  ;;  %v15039_v27 = vcombine.low %v1432_v8, %v1436_v9 }
 0x2e8   :  { %9857 = vmatpush1.bf16.msra.mxu0 %v14957_v49  ;;  %10349 = vmatpush1.bf16.msra.mxu1 %v14959_v33  ;;  %v1407_v49 = vld [vmem:[#allocation5 + $0x2800] sm:$0xff]  ;;  %v1444_v22 = vld [vmem:[#allocation5 + $0x2928] sm:$0xff] }
 0x2e9   :  { %9858 = vmatprep.subr.bf16.mxu0 %v14966_v15  ;;  %10350 = vmatprep.subr.bf16.mxu1 %v14968_v35  ;;  %v1411_v33 = vld [vmem:[#allocation5 + $0x2820] sm:$0xff]  ;;  %v1408_v15 = vld [vmem:[#allocation5 + $0x2808] sm:$0xff] }
 0x2ea   :  { %v1412_v35 = vld [vmem:[#allocation5 + $0x2828] sm:$0xff]  ;;  %v15014_v40 = vcombine.high %v1407_v49, %v1411_v33  ;;  %v15013_v51 = vcombine.low %v1407_v49, %v1411_v33 }
 0x2eb   :  { %v15016_v41 = vcombine.high %v1408_v15, %v1412_v35  ;;  %v15015_v52 = vcombine.low %v1408_v15, %v1412_v35  ;;  %v1448_v49 = vld [vmem:[#allocation5 + $0x2948] sm:$0xff]  ;;  %v15047_v35 = vcombine.low %v1440_v21, %v1444_v22 }
 0x2ec   :  { %9859 = vmatpush1.bf16.msra.mxu0 %v14965_v42  ;;  %10351 = vmatpush1.bf16.msra.mxu1 %v14967_v43  ;;  %v1415_v42 = vld [vmem:[#allocation5 + $0x2840] sm:$0xff]  ;;  %v1452_v33 = vld [vmem:[#allocation5 + $0x2968] sm:$0xff] }
 0x2ed   :  { %9860 = vmatprep.subr.bf16.mxu0 %v14974_v44  ;;  %10352 = vmatprep.subr.bf16.mxu1 %v14976_v45  ;;  %v1419_v43 = vld [vmem:[#allocation5 + $0x2860] sm:$0xff]  ;;  %v16729_v44 = vcombine.low %v16717_v54, %v16717_v54  ;;  %v1416_v45 = vld [vmem:[#allocation5 + $0x2848] sm:$0xff] }
 0x2ee   :  { %v1424_v54 = vld [vmem:[#allocation5 + $0x2888] sm:$0xff]  ;;  %v15021_v3 = vcombine.low %v1415_v42, %v1419_v43  ;;  %v15023_v38 = vcombine.low %v1416_v45, %v1420_v47 }
 0x2ef   :  { %v15031_v11 = vcombine.low %v1424_v54, %v1428_v63 }
 0x2f0   :  { %9861 = vmatpush1.bf16.msra.mxu0 %v14973_v56  ;;  %10353 = vmatpush1.bf16.msra.mxu1 %v14975_v58  ;;  %v15022_v56 = vcombine.high %v1415_v42, %v1419_v43  ;;  %v15024_v58 = vcombine.high %v1416_v45, %v1420_v47  ;;  %v1456_v42 = vld [vmem:[#allocation5 + $0x2988] sm:$0xff]  ;;  %v15055_v47 = vcombine.low %v1448_v49, %v1452_v33 }
 0x2f1   :  { %9862 = vmatprep.subr.bf16.mxu0 %v14982_v19  ;;  %10354 = vmatprep.subr.bf16.mxu1 %v14984_v61  ;;  %v1423_v19 = vld [vmem:[#allocation5 + $0x2880] sm:$0xff]  ;;  %v1460_v43 = vld [vmem:[#allocation5 + $0x29a8] sm:$0xff] }
 0x2f2   :  { %v1427_v61 = vld [vmem:[#allocation5 + $0x28a0] sm:$0xff] }
 0x2f3   :  { %v15029_v23 = vcombine.low %v1423_v19, %v1427_v61 }
 0x2f4   :  { %9863 = vmatpush1.bf16.msra.mxu0 %v14981_v4  ;;  %10355 = vmatpush1.bf16.msra.mxu1 %v14983_v5  ;;  %v15030_v4 = vcombine.high %v1423_v19, %v1427_v61  ;;  %v15032_v5 = vcombine.high %v1424_v54, %v1428_v63  ;;  %v1464_v19 = vld [vmem:[#allocation5 + $0x29c8] sm:$0xff]  ;;  %v15063_v63 = vcombine.low %v1456_v42, %v1460_v43 }
 0x2f5   :  { %9864 = vmatprep.subr.bf16.mxu0 %v14990_v6  ;;  %10356 = vmatprep.subr.bf16.mxu1 %v14992_v7  ;;  %v1431_v6 = vld [vmem:[#allocation5 + $0x28c0] sm:$0xff]  ;;  %v1468_v61 = vld [vmem:[#allocation5 + $0x29e8] sm:$0xff] }
 0x2f6   :  { %v1435_v7 = vld [vmem:[#allocation5 + $0x28e0] sm:$0xff] }
 0x2f7   :  { %v15037_v26 = vcombine.low %v1431_v6, %v1435_v7 }
 0x2f8   :  { %9865 = vmatpush1.bf16.msra.mxu0 %v14989_v13  ;;  %10357 = vmatpush1.bf16.msra.mxu1 %v14991_v14  ;;  %v15038_v13 = vcombine.high %v1431_v6, %v1435_v7  ;;  %v15040_v14 = vcombine.high %v1432_v8, %v1436_v9  ;;  %v1472_v6 = vld [vmem:[#allocation5 + $0x2a08] sm:$0xff]  ;;  %v15071_v9 = vcombine.low %v1464_v19, %v1468_v61 }
 0x2f9   :  { %9866 = vmatprep.subr.bf16.mxu0 %v14998_v17  ;;  %10358 = vmatprep.subr.bf16.mxu1 %v15000_v18  ;;  %v1439_v17 = vld [vmem:[#allocation5 + $0x2900] sm:$0xff]  ;;  %v1476_v7 = vld [vmem:[#allocation5 + $0x2a28] sm:$0xff] }
 0x2fa   :  { %v1443_v18 = vld [vmem:[#allocation5 + $0x2920] sm:$0xff] }
 0x2fb   :  { %v15045_v15 = vcombine.low %v1439_v17, %v1443_v18 }
 0x2fc   :  { %9867 = vmatpush1.bf16.msra.mxu0 %v14997_v59  ;;  %10359 = vmatpush1.bf16.msra.mxu1 %v14999_v29  ;;  %v15046_v59 = vcombine.high %v1439_v17, %v1443_v18  ;;  %v15048_v29 = vcombine.high %v1440_v21, %v1444_v22  ;;  %v1480_v17 = vld [vmem:[#allocation5 + $0x2a48] sm:$0xff]  ;;  %v15079_v22 = vcombine.low %v1472_v6, %v1476_v7 }
 0x2fd   :  { %9868 = vmatprep.subr.bf16.mxu0 %v15006_v30  ;;  %10360 = vmatprep.subr.bf16.mxu1 %v15008_v31  ;;  %v1447_v30 = vld [vmem:[#allocation5 + $0x2940] sm:$0xff]  ;;  %v1484_v18 = vld [vmem:[#allocation5 + $0x2a68] sm:$0xff] }
 0x2fe   :  { %v1451_v31 = vld [vmem:[#allocation5 + $0x2960] sm:$0xff] }
 0x2ff   :  { %v15053_v45 = vcombine.low %v1447_v30, %v1451_v31 }
 0x300   :  { %9869 = vmatpush1.bf16.msra.mxu0 %v15005_v36  ;;  %10361 = vmatpush1.bf16.msra.mxu1 %v15007_v37  ;;  %v15054_v36 = vcombine.high %v1447_v30, %v1451_v31  ;;  %v15056_v37 = vcombine.high %v1448_v49, %v1452_v33  ;;  %v1488_v30 = vld [vmem:[#allocation5 + $0x2a88] sm:$0xff]  ;;  %v15087_v33 = vcombine.low %v1480_v17, %v1484_v18 }
 0x301   :  { %9879 = vmatprep.subr.bf16.mxu0 %v15014_v40  ;;  %10371 = vmatprep.subr.bf16.mxu1 %v15016_v41  ;;  %v1455_v40 = vld [vmem:[#allocation5 + $0x2980] sm:$0xff]  ;;  %v1492_v31 = vld [vmem:[#allocation5 + $0x2aa8] sm:$0xff] }
 0x302   :  { %v1459_v41 = vld [vmem:[#allocation5 + $0x29a0] sm:$0xff] }
 0x303   :  { %9871 = vmatmul.mubr.bf16.vlgmr.msra.gmra.mrb[0].mxu0 %v16729_v44  ;;  %10363 = vmatmul.mubr.bf16.vlgmr.msra.gmra.mrb[0].mxu1 %v16729_v44  ;;  %v15061_v54 = vcombine.low %v1455_v40, %v1459_v41 }
 0x304   :  { %9880 = vmatpush1.bf16.msra.mxu0 %v15013_v51  ;;  %10372 = vmatpush1.bf16.msra.mxu1 %v15015_v52  ;;  %v15062_v51 = vcombine.high %v1455_v40, %v1459_v41  ;;  %v15064_v52 = vcombine.high %v1456_v42, %v1460_v43  ;;  %v1496_v40 = vld [vmem:[#allocation5 + $0x2ac8] sm:$0xff]  ;;  %v15095_v43 = vcombine.low %v1488_v30, %v1492_v31 }
 0x305   :  { %9881 = vmatprep.subr.bf16.mxu0 %v15022_v56  ;;  %10373 = vmatprep.subr.bf16.mxu1 %v15024_v58  ;;  %v1463_v56 = vld [vmem:[#allocation5 + $0x29c0] sm:$0xff]  ;;  %v1500_v41 = vld [vmem:[#allocation5 + $0x2ae8] sm:$0xff] }
 0x306   :  { %9911 = vmatprep.mubr.bf16.mxu0 %v16735_v62  ;;  %10403 = vmatprep.mubr.bf16.mxu1 %v16735_v62  ;;  %v1467_v58 = vld [vmem:[#allocation5 + $0x29e0] sm:$0xff] }
 0x307   :  { %v15069_v8 = vcombine.low %v1463_v56, %v1467_v58 }
 0x308   :  { %9882 = vmatpush1.bf16.msra.mxu0 %v15021_v3  ;;  %10374 = vmatpush1.bf16.msra.mxu1 %v15023_v38  ;;  %v15070_v3 = vcombine.high %v1463_v56, %v1467_v58  ;;  %v15072_v38 = vcombine.high %v1464_v19, %v1468_v61  ;;  %v1504_v56 = vld [vmem:[#allocation5 + $0x2b08] sm:$0xff]  ;;  %v15103_v61 = vcombine.low %v1496_v40, %v1500_v41 }
 0x309   :  { %9883 = vmatprep.subr.bf16.mxu0 %v15030_v4  ;;  %10375 = vmatprep.subr.bf16.mxu1 %v15032_v5  ;;  %v1471_v4 = vld [vmem:[#allocation5 + $0x2a00] sm:$0xff]  ;;  %v1508_v58 = vld [vmem:[#allocation5 + $0x2b28] sm:$0xff] }
 0x30a   :  { %v1475_v5 = vld [vmem:[#allocation5 + $0x2a20] sm:$0xff] }
 0x30b   :  { %v15077_v21 = vcombine.low %v1471_v4, %v1475_v5 }
 0x30c   :  { %9884 = vmatpush1.bf16.msra.mxu0 %v15029_v23  ;;  %10376 = vmatpush1.bf16.msra.mxu1 %v15031_v11  ;;  %v15078_v23 = vcombine.high %v1471_v4, %v1475_v5  ;;  %v15080_v11 = vcombine.high %v1472_v6, %v1476_v7  ;;  %v1512_v4 = vld [vmem:[#allocation5 + $0x2b48] sm:$0xff]  ;;  %v15111_v7 = vcombine.low %v1504_v56, %v1508_v58 }
 0x30d   :  { %9885 = vmatprep.subr.bf16.mxu0 %v15038_v13  ;;  %10377 = vmatprep.subr.bf16.mxu1 %v15040_v14  ;;  %v1479_v13 = vld [vmem:[#allocation5 + $0x2a40] sm:$0xff]  ;;  %v1516_v5 = vld [vmem:[#allocation5 + $0x2b68] sm:$0xff] }
 0x30e   :  { %v1483_v14 = vld [vmem:[#allocation5 + $0x2a60] sm:$0xff] }
 0x30f   :  { %v15085_v49 = vcombine.low %v1479_v13, %v1483_v14 }
 0x310   :  { %9886 = vmatpush1.bf16.msra.mxu0 %v15037_v26  ;;  %10378 = vmatpush1.bf16.msra.mxu1 %v15039_v27  ;;  %v15086_v26 = vcombine.high %v1479_v13, %v1483_v14  ;;  %v15088_v27 = vcombine.high %v1480_v17, %v1484_v18  ;;  %v1520_v13 = vld [vmem:[#allocation5 + $0x2b88] sm:$0xff]  ;;  %v15119_v18 = vcombine.low %v1512_v4, %v1516_v5 }
 0x311   :  { %9887 = vmatprep.subr.bf16.mxu0 %v15046_v59  ;;  %10379 = vmatprep.subr.bf16.mxu1 %v15048_v29  ;;  %v1487_v59 = vld [vmem:[#allocation5 + $0x2a80] sm:$0xff]  ;;  %v1524_v14 = vld [vmem:[#allocation5 + $0x2ba8] sm:$0xff] }
 0x312   :  { %v1491_v29 = vld [vmem:[#allocation5 + $0x2aa0] sm:$0xff] }
 0x313   :  { %v15093_v42 = vcombine.low %v1487_v59, %v1491_v29 }
 0x314   :  { %9888 = vmatpush1.bf16.msra.mxu0 %v15045_v15  ;;  %10380 = vmatpush1.bf16.msra.mxu1 %v15047_v35  ;;  %v15094_v15 = vcombine.high %v1487_v59, %v1491_v29  ;;  %v15096_v35 = vcombine.high %v1488_v30, %v1492_v31  ;;  %v1528_v59 = vld [vmem:[#allocation5 + $0x2bc8] sm:$0xff]  ;;  %v15127_v31 = vcombine.low %v1520_v13, %v1524_v14 }
 0x315   :  { %9889 = vmatprep.subr.bf16.mxu0 %v15054_v36  ;;  %10381 = vmatprep.subr.bf16.mxu1 %v15056_v37  ;;  %v1495_v36 = vld [vmem:[#allocation5 + $0x2ac0] sm:$0xff]  ;;  %v1532_v29 = vld [vmem:[#allocation5 + $0x2be8] sm:$0xff] }
 0x316   :  { %v1499_v37 = vld [vmem:[#allocation5 + $0x2ae0] sm:$0xff] }
 0x317   :  { %v15101_v19 = vcombine.low %v1495_v36, %v1499_v37 }
 0x318   :  { %9890 = vmatpush1.bf16.msra.mxu0 %v15053_v45  ;;  %10382 = vmatpush1.bf16.msra.mxu1 %v15055_v47  ;;  %v15102_v45 = vcombine.high %v1495_v36, %v1499_v37  ;;  %v15104_v47 = vcombine.high %v1496_v40, %v1500_v41  ;;  %v1536_v36 = vld [vmem:[#allocation5 + $0x2c08] sm:$0xff]  ;;  %v15135_v41 = vcombine.low %v1528_v59, %v1532_v29 }
 0x319   :  { %9891 = vmatprep.subr.bf16.mxu0 %v15062_v51  ;;  %10383 = vmatprep.subr.bf16.mxu1 %v15064_v52  ;;  %v1503_v51 = vld [vmem:[#allocation5 + $0x2b00] sm:$0xff]  ;;  %v1540_v37 = vld [vmem:[#allocation5 + $0x2c28] sm:$0xff] }
 0x31a   :  { %v1507_v52 = vld [vmem:[#allocation5 + $0x2b20] sm:$0xff] }
 0x31b   :  { %v15109_v6 = vcombine.low %v1503_v51, %v1507_v52 }
 0x31c   :  { %9892 = vmatpush1.bf16.msra.mxu0 %v15061_v54  ;;  %10384 = vmatpush1.bf16.msra.mxu1 %v15063_v63  ;;  %v15110_v54 = vcombine.high %v1503_v51, %v1507_v52  ;;  %v15112_v63 = vcombine.high %v1504_v56, %v1508_v58  ;;  %v16743_v51 = vcombine.low %v16731_v24, %v16731_v24  ;;  %v1544_v52 = vld [vmem:[#allocation5 + $0x2c48] sm:$0xff]  ;;  %v16745_v58 = vld [vmem:[#allocation2 + $0x58] sm:$0xff] }
 0x31d   :  { %9893 = vmatprep.subr.bf16.mxu0 %v15070_v3  ;;  %10385 = vmatprep.subr.bf16.mxu1 %v15072_v38  ;;  %v1511_v3 = vld [vmem:[#allocation5 + $0x2b40] sm:$0xff]  ;;  %v1548_v56 = vld [vmem:[#allocation5 + $0x2c68] sm:$0xff] }
 0x31e   :  { %v1515_v38 = vld [vmem:[#allocation5 + $0x2b60] sm:$0xff]  ;;  %v1552_v24 = vld [vmem:[#allocation5 + $0x2c88] sm:$0xff] }
 0x31f   :  { %v15117_v17 = vcombine.low %v1511_v3, %v1515_v38 }
 0x320   :  { %9894 = vmatpush1.bf16.msra.mxu0 %v15069_v8  ;;  %10386 = vmatpush1.bf16.msra.mxu1 %v15071_v9  ;;  %v15118_v8 = vcombine.high %v1511_v3, %v1515_v38  ;;  %v15120_v9 = vcombine.high %v1512_v4, %v1516_v5  ;;  %v1551_v3 = vld [vmem:[#allocation5 + $0x2c80] sm:$0xff]  ;;  %v16749_v4 = vcombine.high %v16745_v58, %v16745_v58  ;;  %v1556_v5 = vld [vmem:[#allocation5 + $0x2ca8] sm:$0xff] }
 0x321   :  { %9895 = vmatprep.subr.bf16.mxu0 %v15078_v23  ;;  %10387 = vmatprep.subr.bf16.mxu1 %v15080_v11  ;;  %v1519_v23 = vld [vmem:[#allocation5 + $0x2b80] sm:$0xff] }
 0x322   :  { %v1523_v11 = vld [vmem:[#allocation5 + $0x2ba0] sm:$0xff] }
 0x323   :  { %v15125_v30 = vcombine.low %v1519_v23, %v1523_v11  ;;  %v1555_v38 = vld [vmem:[#allocation5 + $0x2ca0] sm:$0xff] }
 0x324   :  { %9896 = vmatpush1.bf16.msra.mxu0 %v15077_v21  ;;  %10388 = vmatpush1.bf16.msra.mxu1 %v15079_v22  ;;  %v15126_v21 = vcombine.high %v1519_v23, %v1523_v11  ;;  %v15128_v22 = vcombine.high %v1520_v13, %v1524_v14  ;;  %v1559_v23 = vld [vmem:[#allocation5 + $0x2cc0] sm:$0xff]  ;;  %v1560_v13 = vld [vmem:[#allocation5 + $0x2cc8] sm:$0xff] }
 0x325   :  { %9897 = vmatprep.subr.bf16.mxu0 %v15086_v26  ;;  %10389 = vmatprep.subr.bf16.mxu1 %v15088_v27  ;;  %v1527_v26 = vld [vmem:[#allocation5 + $0x2bc0] sm:$0xff]  ;;  %v1564_v14 = vld [vmem:[#allocation5 + $0x2ce8] sm:$0xff] }
 0x326   :  { %v1531_v27 = vld [vmem:[#allocation5 + $0x2be0] sm:$0xff] }
 0x327   :  { %v15133_v40 = vcombine.low %v1527_v26, %v1531_v27  ;;  %v1563_v11 = vld [vmem:[#allocation5 + $0x2ce0] sm:$0xff] }
 0x328   :  { %9898 = vmatpush1.bf16.msra.mxu0 %v15085_v49  ;;  %10390 = vmatpush1.bf16.msra.mxu1 %v15087_v33  ;;  %v15134_v49 = vcombine.high %v1527_v26, %v1531_v27  ;;  %v15136_v33 = vcombine.high %v1528_v59, %v1532_v29  ;;  %v1567_v26 = vld [vmem:[#allocation5 + $0x2d00] sm:$0xff]  ;;  %v1568_v59 = vld [vmem:[#allocation5 + $0x2d08] sm:$0xff] }
 0x329   :  { %9899 = vmatprep.subr.bf16.mxu0 %v15094_v15  ;;  %10391 = vmatprep.subr.bf16.mxu1 %v15096_v35  ;;  %v1535_v15 = vld [vmem:[#allocation5 + $0x2c00] sm:$0xff]  ;;  %v1572_v29 = vld [vmem:[#allocation5 + $0x2d28] sm:$0xff] }
 0x32a   :  { %v1539_v35 = vld [vmem:[#allocation5 + $0x2c20] sm:$0xff] }
 0x32b   :  { %v1571_v27 = vld [vmem:[#allocation5 + $0x2d20] sm:$0xff] }
 0x32c   :  { %9900 = vmatpush1.bf16.msra.mxu0 %v15093_v42  ;;  %10392 = vmatpush1.bf16.msra.mxu1 %v15095_v43  ;;  %v15142_v42 = vcombine.high %v1535_v15, %v1539_v35  ;;  %v15144_v43 = vcombine.high %v1536_v36, %v1540_v37 }
 0x32d   :  { %9901 = vmatprep.subr.bf16.mxu0 %v15102_v45  ;;  %10393 = vmatprep.subr.bf16.mxu1 %v15104_v47  ;;  %v1543_v45 = vld [vmem:[#allocation5 + $0x2c40] sm:$0xff] }
 0x32e   :  { %v1547_v47 = vld [vmem:[#allocation5 + $0x2c60] sm:$0xff] }
 0x330   :  { %9902 = vmatpush1.bf16.msra.mxu0 %v15101_v19  ;;  %10394 = vmatpush1.bf16.msra.mxu1 %v15103_v61  ;;  %v15141_v19 = vcombine.low %v1535_v15, %v1539_v35  ;;  %v15143_v61 = vcombine.low %v1536_v36, %v1540_v37  ;;  %v1575_v15 = vld [vmem:[#allocation5 + $0x2d40] sm:$0xff]  ;;  %v1576_v36 = vld [vmem:[#allocation5 + $0x2d48] sm:$0xff] }
 0x331   :  { %9903 = vmatprep.subr.bf16.mxu0 %v15110_v54  ;;  %10395 = vmatprep.subr.bf16.mxu1 %v15112_v63  ;;  %v15150_v54 = vcombine.high %v1543_v45, %v1547_v47  ;;  %v15152_v63 = vcombine.high %v1544_v52, %v1548_v56  ;;  %v1579_v35 = vld [vmem:[#allocation5 + $0x2d60] sm:$0xff]  ;;  %v1580_v37 = vld [vmem:[#allocation5 + $0x2d68] sm:$0xff] }
 0x334   :  { %9904 = vmatpush1.bf16.msra.mxu0 %v15109_v6  ;;  %10396 = vmatpush1.bf16.msra.mxu1 %v15111_v7  ;;  %v15149_v6 = vcombine.low %v1543_v45, %v1547_v47  ;;  %v15151_v7 = vcombine.low %v1544_v52, %v1548_v56  ;;  %v1583_v45 = vld [vmem:[#allocation5 + $0x2d80] sm:$0xff]  ;;  %v1584_v52 = vld [vmem:[#allocation5 + $0x2d88] sm:$0xff] }
 0x335   :  { %9905 = vmatprep.subr.bf16.mxu0 %v15118_v8  ;;  %10397 = vmatprep.subr.bf16.mxu1 %v15120_v9  ;;  %v15158_v8 = vcombine.high %v1551_v3, %v1555_v38  ;;  %v15160_v9 = vcombine.high %v1552_v24, %v1556_v5  ;;  %v1587_v47 = vld [vmem:[#allocation5 + $0x2da0] sm:$0xff]  ;;  %v1588_v56 = vld [vmem:[#allocation5 + $0x2da8] sm:$0xff] }
 0x338   :  { %9906 = vmatpush1.bf16.msra.mxu0 %v15117_v17  ;;  %10398 = vmatpush1.bf16.msra.mxu1 %v15119_v18  ;;  %v15157_v17 = vcombine.low %v1551_v3, %v1555_v38  ;;  %v15159_v18 = vcombine.low %v1552_v24, %v1556_v5  ;;  %v1591_v3 = vld [vmem:[#allocation5 + $0x2dc0] sm:$0xff]  ;;  %v1592_v24 = vld [vmem:[#allocation5 + $0x2dc8] sm:$0xff] }
 0x339   :  { %9907 = vmatprep.subr.bf16.mxu0 %v15126_v21  ;;  %10399 = vmatprep.subr.bf16.mxu1 %v15128_v22  ;;  %v15166_v21 = vcombine.high %v1559_v23, %v1563_v11  ;;  %v15168_v22 = vcombine.high %v1560_v13, %v1564_v14  ;;  %v1595_v38 = vld [vmem:[#allocation5 + $0x2de0] sm:$0xff]  ;;  %v1596_v5 = vld [vmem:[#allocation5 + $0x2de8] sm:$0xff] }
 0x33c   :  { %9908 = vmatpush1.bf16.msra.mxu0 %v15125_v30  ;;  %10400 = vmatpush1.bf16.msra.mxu1 %v15127_v31  ;;  %v15165_v30 = vcombine.low %v1559_v23, %v1563_v11  ;;  %v15167_v31 = vcombine.low %v1560_v13, %v1564_v14  ;;  %v1599_v23 = vld [vmem:[#allocation5 + $0x2e00] sm:$0xff]  ;;  %v1600_v13 = vld [vmem:[#allocation5 + $0x2e08] sm:$0xff] }
 0x33d   :  { %9909 = vmatprep.subr.bf16.mxu0 %v15134_v49  ;;  %10401 = vmatprep.subr.bf16.mxu1 %v15136_v33  ;;  %v15174_v49 = vcombine.high %v1567_v26, %v1571_v27  ;;  %v15176_v33 = vcombine.high %v1568_v59, %v1572_v29  ;;  %v1603_v11 = vld [vmem:[#allocation5 + $0x2e20] sm:$0xff]  ;;  %v1604_v14 = vld [vmem:[#allocation5 + $0x2e28] sm:$0xff] }
 0x340   :  { %9910 = vmatpush1.bf16.msra.mxu0 %v15133_v40  ;;  %10402 = vmatpush1.bf16.msra.mxu1 %v15135_v41  ;;  %v15173_v40 = vcombine.low %v1567_v26, %v1571_v27  ;;  %v15175_v41 = vcombine.low %v1568_v59, %v1572_v29  ;;  %v1607_v26 = vld [vmem:[#allocation5 + $0x2e40] sm:$0xff]  ;;  %v1608_v59 = vld [vmem:[#allocation5 + $0x2e48] sm:$0xff] }
 0x341   :  { %9920 = vmatprep.subr.bf16.mxu0 %v15142_v42  ;;  %10412 = vmatprep.subr.bf16.mxu1 %v15144_v43  ;;  %v15182_v42 = vcombine.high %v1575_v15, %v1579_v35  ;;  %v15184_v43 = vcombine.high %v1576_v36, %v1580_v37  ;;  %v1611_v27 = vld [vmem:[#allocation5 + $0x2e60] sm:$0xff]  ;;  %v1612_v29 = vld [vmem:[#allocation5 + $0x2e68] sm:$0xff] }
 0x343   :  { %9912 = vmatmul.mubr.bf16.vlgmr.msra.gmra.mrb[0].mxu0 %v16743_v51  ;;  %10404 = vmatmul.mubr.bf16.vlgmr.msra.gmra.mrb[0].mxu1 %v16743_v51 }
 0x344   :  { %9921 = vmatpush1.bf16.msra.mxu0 %v15141_v19  ;;  %10413 = vmatpush1.bf16.msra.mxu1 %v15143_v61  ;;  %v15181_v19 = vcombine.low %v1575_v15, %v1579_v35  ;;  %v15183_v61 = vcombine.low %v1576_v36, %v1580_v37  ;;  %v1615_v15 = vld [vmem:[#allocation5 + $0x2e80] sm:$0xff]  ;;  %v1616_v36 = vld [vmem:[#allocation5 + $0x2e88] sm:$0xff] }
 0x345   :  { %9922 = vmatprep.subr.bf16.mxu0 %v15150_v54  ;;  %10414 = vmatprep.subr.bf16.mxu1 %v15152_v63  ;;  %v15190_v54 = vcombine.high %v1583_v45, %v1587_v47  ;;  %v15192_v63 = vcombine.high %v1584_v52, %v1588_v56  ;;  %v1619_v35 = vld [vmem:[#allocation5 + $0x2ea0] sm:$0xff]  ;;  %v1620_v37 = vld [vmem:[#allocation5 + $0x2ea8] sm:$0xff] }
 0x346   :  { %9952 = vmatprep.mubr.bf16.mxu0 %v16749_v4  ;;  %10444 = vmatprep.mubr.bf16.mxu1 %v16749_v4 }
 0x348   :  { %9923 = vmatpush1.bf16.msra.mxu0 %v15149_v6  ;;  %10415 = vmatpush1.bf16.msra.mxu1 %v15151_v7  ;;  %v15189_v6 = vcombine.low %v1583_v45, %v1587_v47  ;;  %v15191_v7 = vcombine.low %v1584_v52, %v1588_v56  ;;  %v1623_v45 = vld [vmem:[#allocation5 + $0x2ec0] sm:$0xff]  ;;  %v1624_v52 = vld [vmem:[#allocation5 + $0x2ec8] sm:$0xff] }
 0x349   :  { %9924 = vmatprep.subr.bf16.mxu0 %v15158_v8  ;;  %10416 = vmatprep.subr.bf16.mxu1 %v15160_v9  ;;  %v15198_v8 = vcombine.high %v1591_v3, %v1595_v38  ;;  %v15200_v9 = vcombine.high %v1592_v24, %v1596_v5  ;;  %v1627_v47 = vld [vmem:[#allocation5 + $0x2ee0] sm:$0xff]  ;;  %v1628_v56 = vld [vmem:[#allocation5 + $0x2ee8] sm:$0xff] }
 0x34c   :  { %9925 = vmatpush1.bf16.msra.mxu0 %v15157_v17  ;;  %10417 = vmatpush1.bf16.msra.mxu1 %v15159_v18  ;;  %v15197_v17 = vcombine.low %v1591_v3, %v1595_v38  ;;  %v15199_v18 = vcombine.low %v1592_v24, %v1596_v5  ;;  %v1631_v3 = vld [vmem:[#allocation5 + $0x2f00] sm:$0xff]  ;;  %v1632_v24 = vld [vmem:[#allocation5 + $0x2f08] sm:$0xff] }
 0x34d   :  { %9926 = vmatprep.subr.bf16.mxu0 %v15166_v21  ;;  %10418 = vmatprep.subr.bf16.mxu1 %v15168_v22  ;;  %v15206_v21 = vcombine.high %v1599_v23, %v1603_v11  ;;  %v15208_v22 = vcombine.high %v1600_v13, %v1604_v14  ;;  %v1635_v38 = vld [vmem:[#allocation5 + $0x2f20] sm:$0xff]  ;;  %v1636_v5 = vld [vmem:[#allocation5 + $0x2f28] sm:$0xff] }
 0x350   :  { %9927 = vmatpush1.bf16.msra.mxu0 %v15165_v30  ;;  %10419 = vmatpush1.bf16.msra.mxu1 %v15167_v31  ;;  %v15205_v30 = vcombine.low %v1599_v23, %v1603_v11  ;;  %v15207_v31 = vcombine.low %v1600_v13, %v1604_v14  ;;  %v1639_v23 = vld [vmem:[#allocation5 + $0x2f40] sm:$0xff]  ;;  %v1640_v13 = vld [vmem:[#allocation5 + $0x2f48] sm:$0xff] }
 0x351   :  { %9928 = vmatprep.subr.bf16.mxu0 %v15174_v49  ;;  %10420 = vmatprep.subr.bf16.mxu1 %v15176_v33  ;;  %v15214_v49 = vcombine.high %v1607_v26, %v1611_v27  ;;  %v15216_v33 = vcombine.high %v1608_v59, %v1612_v29  ;;  %v1643_v11 = vld [vmem:[#allocation5 + $0x2f60] sm:$0xff]  ;;  %v1644_v14 = vld [vmem:[#allocation5 + $0x2f68] sm:$0xff] }
 0x354   :  { %9929 = vmatpush1.bf16.msra.mxu0 %v15173_v40  ;;  %10421 = vmatpush1.bf16.msra.mxu1 %v15175_v41  ;;  %v15213_v40 = vcombine.low %v1607_v26, %v1611_v27  ;;  %v15215_v41 = vcombine.low %v1608_v59, %v1612_v29  ;;  %v1647_v26 = vld [vmem:[#allocation5 + $0x2f80] sm:$0xff]  ;;  %v1648_v59 = vld [vmem:[#allocation5 + $0x2f88] sm:$0xff] }
 0x355   :  { %9930 = vmatprep.subr.bf16.mxu0 %v15182_v42  ;;  %10422 = vmatprep.subr.bf16.mxu1 %v15184_v43  ;;  %v15222_v42 = vcombine.high %v1615_v15, %v1619_v35  ;;  %v15224_v43 = vcombine.high %v1616_v36, %v1620_v37  ;;  %v1651_v27 = vld [vmem:[#allocation5 + $0x2fa0] sm:$0xff]  ;;  %v1652_v29 = vld [vmem:[#allocation5 + $0x2fa8] sm:$0xff] }
 0x358   :  { %9931 = vmatpush1.bf16.msra.mxu0 %v15181_v19  ;;  %10423 = vmatpush1.bf16.msra.mxu1 %v15183_v61  ;;  %v15221_v19 = vcombine.low %v1615_v15, %v1619_v35  ;;  %v15223_v61 = vcombine.low %v1616_v36, %v1620_v37  ;;  %v1655_v15 = vld [vmem:[#allocation5 + $0x2fc0] sm:$0xff]  ;;  %v1656_v36 = vld [vmem:[#allocation5 + $0x2fc8] sm:$0xff] }
 0x359   :  { %9932 = vmatprep.subr.bf16.mxu0 %v15190_v54  ;;  %10424 = vmatprep.subr.bf16.mxu1 %v15192_v63  ;;  %v15230_v54 = vcombine.high %v1623_v45, %v1627_v47  ;;  %v15232_v63 = vcombine.high %v1624_v52, %v1628_v56  ;;  %v1659_v35 = vld [vmem:[#allocation5 + $0x2fe0] sm:$0xff]  ;;  %v1660_v37 = vld [vmem:[#allocation5 + $0x2fe8] sm:$0xff] }
 0x35c   :  { %9933 = vmatpush1.bf16.msra.mxu0 %v15189_v6  ;;  %10425 = vmatpush1.bf16.msra.mxu1 %v15191_v7  ;;  %v15229_v6 = vcombine.low %v1623_v45, %v1627_v47  ;;  %v15231_v7 = vcombine.low %v1624_v52, %v1628_v56  ;;  %v129_v45 = vld [vmem:[#allocation5 + $0x10] sm:$0xff]  ;;  %v130_v52 = vld [vmem:[#allocation5 + $0x18] sm:$0xff] }
 0x35d   :  { %9934 = vmatprep.subr.bf16.mxu0 %v15198_v8  ;;  %10426 = vmatprep.subr.bf16.mxu1 %v15200_v9  ;;  %v15238_v8 = vcombine.high %v1631_v3, %v1635_v38  ;;  %v15240_v9 = vcombine.high %v1632_v24, %v1636_v5  ;;  %v133_v47 = vld [vmem:[#allocation5 + $0x30] sm:$0xff]  ;;  %v134_v56 = vld [vmem:[#allocation5 + $0x38] sm:$0xff] }
 0x360   :  { %9935 = vmatpush1.bf16.msra.mxu0 %v15197_v17  ;;  %10427 = vmatpush1.bf16.msra.mxu1 %v15199_v18  ;;  %v15237_v17 = vcombine.low %v1631_v3, %v1635_v38  ;;  %v15239_v18 = vcombine.low %v1632_v24, %v1636_v5  ;;  %v137_v3 = vld [vmem:[#allocation5 + $0x50] sm:$0xff]  ;;  %v16757_v24 = vcombine.low %v16745_v58, %v16745_v58  ;;  %v138_v5 = vld [vmem:[#allocation5 + $0x58] sm:$0xff] }
 0x361   :  { %9936 = vmatprep.subr.bf16.mxu0 %v15206_v21  ;;  %10428 = vmatprep.subr.bf16.mxu1 %v15208_v22  ;;  %v15246_v21 = vcombine.high %v1639_v23, %v1643_v11  ;;  %v15248_v22 = vcombine.high %v1640_v13, %v1644_v14  ;;  %v141_v38 = vld [vmem:[#allocation5 + $0x70] sm:$0xff] }
 0x362   :  { %v13745_v58 = vcombine.low %v137_v3, %v141_v38 }
 0x364   :  { %9937 = vmatpush1.bf16.msra.mxu0 %v15205_v30  ;;  %10429 = vmatpush1.bf16.msra.mxu1 %v15207_v31  ;;  %v15245_v30 = vcombine.low %v1639_v23, %v1643_v11  ;;  %v15247_v31 = vcombine.low %v1640_v13, %v1644_v14  ;;  %v145_v11 = vld [vmem:[#allocation5 + $0x90] sm:$0xff]  ;;  %v146_v14 = vld [vmem:[#allocation5 + $0x98] sm:$0xff] }
 0x365   :  { %9938 = vmatprep.subr.bf16.mxu0 %v15214_v49  ;;  %10430 = vmatprep.subr.bf16.mxu1 %v15216_v33  ;;  %v15254_v49 = vcombine.high %v1647_v26, %v1651_v27  ;;  %v15256_v33 = vcombine.high %v1648_v59, %v1652_v29  ;;  %v149_v13 = vld [vmem:[#allocation5 + $0xb0] sm:$0xff] }
 0x368   :  { %9939 = vmatpush1.bf16.msra.mxu0 %v15213_v40  ;;  %10431 = vmatpush1.bf16.msra.mxu1 %v15215_v41  ;;  %v15253_v40 = vcombine.low %v1647_v26, %v1651_v27  ;;  %v15255_v41 = vcombine.low %v1648_v59, %v1652_v29  ;;  %v153_v26 = vld [vmem:[#allocation5 + $0xd0] sm:$0xff]  ;;  %v154_v59 = vld [vmem:[#allocation5 + $0xd8] sm:$0xff] }
 0x369   :  { %9940 = vmatprep.subr.bf16.mxu0 %v15222_v42  ;;  %10432 = vmatprep.subr.bf16.mxu1 %v15224_v43  ;;  %v15262_v42 = vcombine.high %v1655_v15, %v1659_v35  ;;  %v15264_v43 = vcombine.high %v1656_v36, %v1660_v37  ;;  %v157_v27 = vld [vmem:[#allocation5 + $0xf0] sm:$0xff]  ;;  %v158_v29 = vld [vmem:[#allocation5 + $0xf8] sm:$0xff] }
 0x36c   :  { %9941 = vmatpush1.bf16.msra.mxu0 %v15221_v19  ;;  %10433 = vmatpush1.bf16.msra.mxu1 %v15223_v61  ;;  %v15261_v19 = vcombine.low %v1655_v15, %v1659_v35  ;;  %v15263_v61 = vcombine.low %v1656_v36, %v1660_v37  ;;  %v161_v15 = vld [vmem:[#allocation5 + $0x110] sm:$0xff]  ;;  %v162_v36 = vld [vmem:[#allocation5 + $0x118] sm:$0xff] }
 0x36d   :  { %9942 = vmatprep.subr.bf16.mxu0 %v15230_v54  ;;  %10434 = vmatprep.subr.bf16.mxu1 %v15232_v63  ;;  %v13738_v54 = vcombine.high %v129_v45, %v133_v47  ;;  %v13740_v63 = vcombine.high %v130_v52, %v134_v56  ;;  %v165_v35 = vld [vmem:[#allocation5 + $0x130] sm:$0xff]  ;;  %v166_v37 = vld [vmem:[#allocation5 + $0x138] sm:$0xff] }
 0x370   :  { %9943 = vmatpush1.bf16.msra.mxu0 %v15229_v6  ;;  %10435 = vmatpush1.bf16.msra.mxu1 %v15231_v7  ;;  %v142_v6 = vld [vmem:[#allocation5 + $0x78] sm:$0xff]  ;;  %v13737_v7 = vcombine.low %v129_v45, %v133_v47  ;;  %v173_v45 = vld [vmem:[#allocation5 + $0x170] sm:$0xff] }
 0x371   :  { %9944 = vmatprep.subr.bf16.mxu0 %v15238_v8  ;;  %10436 = vmatprep.subr.bf16.mxu1 %v15240_v9  ;;  %v13739_v8 = vcombine.low %v130_v52, %v134_v56  ;;  %v13746_v9 = vcombine.high %v137_v3, %v141_v38  ;;  %v13748_v23 = vcombine.high %v138_v5, %v142_v6  ;;  %v170_v47 = vld [vmem:[#allocation5 + $0x158] sm:$0xff]  ;;  %v181_v3 = vld [vmem:[#allocation5 + $0x1b0] sm:$0xff] }
 0x372   :  { %v174_v52 = vld [vmem:[#allocation5 + $0x178] sm:$0xff]  ;;  %v13769_v56 = vcombine.low %v161_v15, %v165_v35 }
 0x373   :  { %v178_v38 = vld [vmem:[#allocation5 + $0x198] sm:$0xff] }
 0x374   :  { %9945 = vmatpush1.bf16.msra.mxu0 %v15237_v17  ;;  %10437 = vmatpush1.bf16.msra.mxu1 %v15239_v18  ;;  %v150_v17 = vld [vmem:[#allocation5 + $0xb8] sm:$0xff]  ;;  %v13747_v18 = vcombine.low %v138_v5, %v142_v6 }
 0x375   :  { %9946 = vmatprep.subr.bf16.mxu0 %v15246_v21  ;;  %10438 = vmatprep.subr.bf16.mxu1 %v15248_v22  ;;  %v13754_v21 = vcombine.high %v145_v11, %v149_v13  ;;  %v13756_v22 = vcombine.high %v146_v14, %v150_v17  ;;  %v182_v5 = vld [vmem:[#allocation5 + $0x1b8] sm:$0xff] }
 0x378   :  { %9947 = vmatpush1.bf16.msra.mxu0 %v15245_v30  ;;  %10439 = vmatpush1.bf16.msra.mxu1 %v15247_v31  ;;  %v13753_v30 = vcombine.low %v145_v11, %v149_v13  ;;  %v13755_v31 = vcombine.low %v146_v14, %v150_v17  ;;  %v189_v11 = vld [vmem:[#allocation5 + $0x1f0] sm:$0xff]  ;;  %v186_v13 = vld [vmem:[#allocation5 + $0x1d8] sm:$0xff] }
 0x379   :  { %9948 = vmatprep.subr.bf16.mxu0 %v15254_v49  ;;  %10440 = vmatprep.subr.bf16.mxu1 %v15256_v33  ;;  %v13762_v49 = vcombine.high %v153_v26, %v157_v27  ;;  %v13764_v33 = vcombine.high %v154_v59, %v158_v29  ;;  %v190_v14 = vld [vmem:[#allocation5 + $0x1f8] sm:$0xff] }
 0x37c   :  { %9949 = vmatpush1.bf16.msra.mxu0 %v15253_v40  ;;  %10441 = vmatpush1.bf16.msra.mxu1 %v15255_v41  ;;  %v13761_v40 = vcombine.low %v153_v26, %v157_v27  ;;  %v13763_v41 = vcombine.low %v154_v59, %v158_v29  ;;  %v197_v26 = vld [vmem:[#allocation5 + $0x230] sm:$0xff]  ;;  %v194_v27 = vld [vmem:[#allocation5 + $0x218] sm:$0xff] }
 0x37d   :  { %9950 = vmatprep.subr.bf16.mxu0 %v15262_v42  ;;  %10442 = vmatprep.subr.bf16.mxu1 %v15264_v43  ;;  %v13770_v42 = vcombine.high %v161_v15, %v165_v35  ;;  %v169_v43 = vld [vmem:[#allocation5 + $0x150] sm:$0xff]  ;;  %v198_v59 = vld [vmem:[#allocation5 + $0x238] sm:$0xff] }
 0x37e   :  { %v13777_v6 = vcombine.low %v169_v43, %v173_v45  ;;  %v205_v15 = vld [vmem:[#allocation5 + $0x270] sm:$0xff]  ;;  %v202_v35 = vld [vmem:[#allocation5 + $0x258] sm:$0xff] }
 0x380   :  { %9951 = vmatpush1.bf16.msra.mxu0 %v15261_v19  ;;  %10443 = vmatpush1.bf16.msra.mxu1 %v15263_v61  ;;  %v13771_v19 = vcombine.low %v162_v36, %v166_v37  ;;  %v13778_v61 = vcombine.high %v169_v43, %v173_v45  ;;  %v213_v43 = vld [vmem:[#allocation5 + $0x2b0] sm:$0xff]  ;;  %v210_v45 = vld [vmem:[#allocation5 + $0x298] sm:$0xff] }
 0x381   :  { %10453 = vmatprep.subr.bf16.mxu0 %v13738_v54  ;;  %10945 = vmatprep.subr.bf16.mxu1 %v13740_v63  ;;  %v13780_v54 = vcombine.high %v170_v47, %v174_v52  ;;  %v177_v63 = vld [vmem:[#allocation5 + $0x190] sm:$0xff] }
 0x382   :  { %v13785_v17 = vcombine.low %v177_v63, %v181_v3 }
 0x383   :  { %9953 = vmatmul.mubr.bf16.vlgmr.msra.gmra.mrb[0].mxu0 %v16757_v24  ;;  %10445 = vmatmul.mubr.bf16.vlgmr.msra.gmra.mrb[0].mxu1 %v16757_v24 }
 0x384   :  { %10454 = vmatpush1.bf16.msra.mxu0 %v13737_v7  ;;  %10946 = vmatpush1.bf16.msra.mxu1 %v13739_v8  ;;  %v13779_v7 = vcombine.low %v170_v47, %v174_v52  ;;  %v13786_v8 = vcombine.high %v177_v63, %v181_v3  ;;  %v214_v47 = vld [vmem:[#allocation5 + $0x2b8] sm:$0xff]  ;;  %v221_v63 = vld [vmem:[#allocation5 + $0x2f0] sm:$0xff] }
 0x385   :  { %10455 = vmatprep.subr.bf16.mxu0 %v13746_v9  ;;  %10947 = vmatprep.subr.bf16.mxu1 %v13748_v23  ;;  %v13788_v9 = vcombine.high %v178_v38, %v182_v5  ;;  %v185_v23 = vld [vmem:[#allocation5 + $0x1d0] sm:$0xff]  ;;  %v218_v3 = vld [vmem:[#allocation5 + $0x2d8] sm:$0xff] }
 0x386   :  { %10485 = vmatprep.mubr.bf16.mxu0 %v16597_v57  ;;  %10977 = vmatprep.mubr.bf16.mxu1 %v16597_v57  ;;  %v13772_v57 = vcombine.high %v162_v36, %v166_v37  ;;  %v13793_v29 = vcombine.low %v185_v23, %v189_v11  ;;  %v206_v36 = vld [vmem:[#allocation5 + $0x278] sm:$0xff] }
 0x388   :  { %10456 = vmatpush1.bf16.msra.mxu0 %v13745_v58  ;;  %10948 = vmatpush1.bf16.msra.mxu1 %v13747_v18  ;;  %v13787_v58 = vcombine.low %v178_v38, %v182_v5  ;;  %v13794_v18 = vcombine.high %v185_v23, %v189_v11  ;;  %v222_v38 = vld [vmem:[#allocation5 + $0x2f8] sm:$0xff]  ;;  %v229_v23 = vld [vmem:[#allocation5 + $0x330] sm:$0xff] }
 0x389   :  { %10457 = vmatprep.subr.bf16.mxu0 %v13754_v21  ;;  %10949 = vmatprep.subr.bf16.mxu1 %v13756_v22  ;;  %v13796_v21 = vcombine.high %v186_v13, %v190_v14  ;;  %v193_v22 = vld [vmem:[#allocation5 + $0x210] sm:$0xff]  ;;  %v226_v11 = vld [vmem:[#allocation5 + $0x318] sm:$0xff] }
 0x38a   :  { %v13801_v37 = vcombine.low %v193_v22, %v197_v26 }
 0x38c   :  { %10458 = vmatpush1.bf16.msra.mxu0 %v13753_v30  ;;  %10950 = vmatpush1.bf16.msra.mxu1 %v13755_v31  ;;  %v13795_v30 = vcombine.low %v186_v13, %v190_v14  ;;  %v13802_v31 = vcombine.high %v193_v22, %v197_v26  ;;  %v230_v13 = vld [vmem:[#allocation5 + $0x338] sm:$0xff]  ;;  %v237_v22 = vld [vmem:[#allocation5 + $0x370] sm:$0xff] }
 0x38d   :  { %10459 = vmatprep.subr.bf16.mxu0 %v13762_v49  ;;  %10951 = vmatprep.subr.bf16.mxu1 %v13764_v33  ;;  %v13804_v49 = vcombine.high %v194_v27, %v198_v59  ;;  %v201_v33 = vld [vmem:[#allocation5 + $0x250] sm:$0xff]  ;;  %v234_v26 = vld [vmem:[#allocation5 + $0x358] sm:$0xff] }
 0x38e   :  { %v13809_v52 = vcombine.low %v201_v33, %v205_v15 }
 0x390   :  { %10460 = vmatpush1.bf16.msra.mxu0 %v13761_v40  ;;  %10952 = vmatpush1.bf16.msra.mxu1 %v13763_v41  ;;  %v13803_v40 = vcombine.low %v194_v27, %v198_v59  ;;  %v13810_v41 = vcombine.high %v201_v33, %v205_v15  ;;  %v238_v27 = vld [vmem:[#allocation5 + $0x378] sm:$0xff]  ;;  %v245_v33 = vld [vmem:[#allocation5 + $0x3b0] sm:$0xff] }
 0x391   :  { %10461 = vmatprep.subr.bf16.mxu0 %v13770_v42  ;;  %10953 = vmatprep.subr.bf16.mxu1 %v13772_v57  ;;  %v13812_v42 = vcombine.high %v202_v35, %v206_v36  ;;  %v209_v57 = vld [vmem:[#allocation5 + $0x290] sm:$0xff]  ;;  %v242_v15 = vld [vmem:[#allocation5 + $0x398] sm:$0xff] }
 0x392   :  { %v13817_v5 = vcombine.low %v209_v57, %v213_v43 }
 0x394   :  { %10462 = vmatpush1.bf16.msra.mxu0 %v13769_v56  ;;  %10954 = vmatpush1.bf16.msra.mxu1 %v13771_v19  ;;  %v13811_v56 = vcombine.low %v202_v35, %v206_v36  ;;  %v13818_v19 = vcombine.high %v209_v57, %v213_v43  ;;  %v246_v35 = vld [vmem:[#allocation5 + $0x3b8] sm:$0xff]  ;;  %v253_v57 = vld [vmem:[#allocation5 + $0x3f0] sm:$0xff] }
 0x395   :  { %10463 = vmatprep.subr.bf16.mxu0 %v13778_v61  ;;  %10955 = vmatprep.subr.bf16.mxu1 %v13780_v54  ;;  %v13820_v61 = vcombine.high %v210_v45, %v214_v47  ;;  %v217_v54 = vld [vmem:[#allocation5 + $0x2d0] sm:$0xff]  ;;  %v250_v43 = vld [vmem:[#allocation5 + $0x3d8] sm:$0xff] }
 0x396   :  { %v13825_v14 = vcombine.low %v217_v54, %v221_v63 }
 0x398   :  { %10464 = vmatpush1.bf16.msra.mxu0 %v13777_v6  ;;  %10956 = vmatpush1.bf16.msra.mxu1 %v13779_v7  ;;  %v13819_v6 = vcombine.low %v210_v45, %v214_v47  ;;  %v13826_v7 = vcombine.high %v217_v54, %v221_v63  ;;  %v254_v45 = vld [vmem:[#allocation5 + $0x3f8] sm:$0xff]  ;;  %v261_v54 = vld [vmem:[#allocation5 + $0x430] sm:$0xff] }
 0x399   :  { %10465 = vmatprep.subr.bf16.mxu0 %v13786_v8  ;;  %10957 = vmatprep.subr.bf16.mxu1 %v13788_v9  ;;  %v13828_v8 = vcombine.high %v218_v3, %v222_v38  ;;  %v225_v9 = vld [vmem:[#allocation5 + $0x310] sm:$0xff]  ;;  %v258_v63 = vld [vmem:[#allocation5 + $0x418] sm:$0xff] }
 0x39a   :  { %v13833_v59 = vcombine.low %v225_v9, %v229_v23 }
 0x39c   :  { %10466 = vmatpush1.bf16.msra.mxu0 %v13785_v17  ;;  %10958 = vmatpush1.bf16.msra.mxu1 %v13787_v58  ;;  %v13827_v17 = vcombine.low %v218_v3, %v222_v38  ;;  %v13834_v58 = vcombine.high %v225_v9, %v229_v23  ;;  %v262_v3 = vld [vmem:[#allocation5 + $0x438] sm:$0xff]  ;;  %v269_v9 = vld [vmem:[#allocation5 + $0x470] sm:$0xff] }
 0x39d   :  { %10467 = vmatprep.subr.bf16.mxu0 %v13794_v18  ;;  %10959 = vmatprep.subr.bf16.mxu1 %v13796_v21  ;;  %v13836_v18 = vcombine.high %v226_v11, %v230_v13  ;;  %v233_v21 = vld [vmem:[#allocation5 + $0x350] sm:$0xff]  ;;  %v266_v23 = vld [vmem:[#allocation5 + $0x458] sm:$0xff] }
 0x39e   :  { %v13841_v36 = vcombine.low %v233_v21, %v237_v22 }
 0x3a0   :  { %10468 = vmatpush1.bf16.msra.mxu0 %v13793_v29  ;;  %10960 = vmatpush1.bf16.msra.mxu1 %v13795_v30  ;;  %v13835_v29 = vcombine.low %v226_v11, %v230_v13  ;;  %v13842_v30 = vcombine.high %v233_v21, %v237_v22  ;;  %v270_v11 = vld [vmem:[#allocation5 + $0x478] sm:$0xff]  ;;  %v277_v21 = vld [vmem:[#allocation5 + $0x4b0] sm:$0xff] }
 0x3a1   :  { %10469 = vmatprep.subr.bf16.mxu0 %v13802_v31  ;;  %10961 = vmatprep.subr.bf16.mxu1 %v13804_v49  ;;  %v13844_v31 = vcombine.high %v234_v26, %v238_v27  ;;  %v241_v49 = vld [vmem:[#allocation5 + $0x390] sm:$0xff]  ;;  %v274_v22 = vld [vmem:[#allocation5 + $0x498] sm:$0xff] }
 0x3a2   :  { %v13849_v47 = vcombine.low %v241_v49, %v245_v33 }
 0x3a4   :  { %10470 = vmatpush1.bf16.msra.mxu0 %v13801_v37  ;;  %10962 = vmatpush1.bf16.msra.mxu1 %v13803_v40  ;;  %v13843_v37 = vcombine.low %v234_v26, %v238_v27  ;;  %v13850_v40 = vcombine.high %v241_v49, %v245_v33  ;;  %v278_v26 = vld [vmem:[#allocation5 + $0x4b8] sm:$0xff]  ;;  %v285_v49 = vld [vmem:[#allocation5 + $0x4f0] sm:$0xff] }
 0x3a5   :  { %10471 = vmatprep.subr.bf16.mxu0 %v13810_v41  ;;  %10963 = vmatprep.subr.bf16.mxu1 %v13812_v42  ;;  %v13852_v41 = vcombine.high %v242_v15, %v246_v35  ;;  %v249_v42 = vld [vmem:[#allocation5 + $0x3d0] sm:$0xff]  ;;  %v282_v33 = vld [vmem:[#allocation5 + $0x4d8] sm:$0xff] }
 0x3a6   :  { %v13857_v38 = vcombine.low %v249_v42, %v253_v57 }
 0x3a8   :  { %10472 = vmatpush1.bf16.msra.mxu0 %v13809_v52  ;;  %10964 = vmatpush1.bf16.msra.mxu1 %v13811_v56  ;;  %v13851_v52 = vcombine.low %v242_v15, %v246_v35  ;;  %v13858_v56 = vcombine.high %v249_v42, %v253_v57  ;;  %v286_v15 = vld [vmem:[#allocation5 + $0x4f8] sm:$0xff] }
 0x3a9   :  { %10473 = vmatprep.subr.bf16.mxu0 %v13818_v19  ;;  %10965 = vmatprep.subr.bf16.mxu1 %v13820_v61  ;;  %v13860_v19 = vcombine.high %v250_v43, %v254_v45  ;;  %v257_v61 = vld [vmem:[#allocation5 + $0x410] sm:$0xff]  ;;  %v290_v42 = vld [vmem:[#allocation5 + $0x518] sm:$0xff] }
 0x3aa   :  { %v13865_v13 = vcombine.low %v257_v61, %v261_v54  ;;  %v294_v57 = vld [vmem:[#allocation5 + $0x538] sm:$0xff] }
 0x3ac   :  { %10474 = vmatpush1.bf16.msra.mxu0 %v13817_v5  ;;  %10966 = vmatpush1.bf16.msra.mxu1 %v13819_v6  ;;  %v13859_v5 = vcombine.low %v250_v43, %v254_v45  ;;  %v13866_v6 = vcombine.high %v257_v61, %v261_v54  ;;  %v13891_v45 = vcombine.low %v282_v33, %v286_v15  ;;  %v302_v61 = vld [vmem:[#allocation5 + $0x578] sm:$0xff] }
 0x3ad   :  { %10475 = vmatprep.subr.bf16.mxu0 %v13826_v7  ;;  %10967 = vmatprep.subr.bf16.mxu1 %v13828_v8  ;;  %v13868_v7 = vcombine.high %v258_v63, %v262_v3  ;;  %v265_v8 = vld [vmem:[#allocation5 + $0x450] sm:$0xff] }
 0x3ae   :  { %v13873_v27 = vcombine.low %v265_v8, %v269_v9 }
 0x3b0   :  { %10476 = vmatpush1.bf16.msra.mxu0 %v13825_v14  ;;  %10968 = vmatpush1.bf16.msra.mxu1 %v13827_v17  ;;  %v13867_v14 = vcombine.low %v258_v63, %v262_v3  ;;  %v13874_v17 = vcombine.high %v265_v8, %v269_v9  ;;  %v13899_v63 = vcombine.low %v290_v42, %v294_v57  ;;  %v310_v8 = vld [vmem:[#allocation5 + $0x5b8] sm:$0xff] }
 0x3b1   :  { %10477 = vmatprep.subr.bf16.mxu0 %v13834_v58  ;;  %10969 = vmatprep.subr.bf16.mxu1 %v13836_v18  ;;  %v13876_v58 = vcombine.high %v266_v23, %v270_v11  ;;  %v273_v18 = vld [vmem:[#allocation5 + $0x490] sm:$0xff] }
 0x3b2   :  { %v13881_v35 = vcombine.low %v273_v18, %v277_v21 }
 0x3b4   :  { %10478 = vmatpush1.bf16.msra.mxu0 %v13833_v59  ;;  %10970 = vmatpush1.bf16.msra.mxu1 %v13835_v29  ;;  %v13875_v59 = vcombine.low %v266_v23, %v270_v11  ;;  %v13882_v29 = vcombine.high %v273_v18, %v277_v21  ;;  %v318_v18 = vld [vmem:[#allocation5 + $0x5f8] sm:$0xff] }
 0x3b5   :  { %10479 = vmatprep.subr.bf16.mxu0 %v13842_v30  ;;  %10971 = vmatprep.subr.bf16.mxu1 %v13844_v31  ;;  %v13884_v30 = vcombine.high %v274_v22, %v278_v26  ;;  %v281_v31 = vld [vmem:[#allocation5 + $0x4d0] sm:$0xff] }
 0x3b6   :  { %v13889_v43 = vcombine.low %v281_v31, %v285_v49 }
 0x3b8   :  { %10480 = vmatpush1.bf16.msra.mxu0 %v13841_v36  ;;  %10972 = vmatpush1.bf16.msra.mxu1 %v13843_v37  ;;  %v13890_v36 = vcombine.high %v281_v31, %v285_v49  ;;  %v13892_v37 = vcombine.high %v282_v33, %v286_v15  ;;  %v326_v31 = vld [vmem:[#allocation5 + $0x638] sm:$0xff] }
 0x3b9   :  { %10481 = vmatprep.subr.bf16.mxu0 %v13850_v40  ;;  %10973 = vmatprep.subr.bf16.mxu1 %v13852_v41  ;;  %v289_v40 = vld [vmem:[#allocation5 + $0x510] sm:$0xff] }
 0x3ba   :  { %v293_v41 = vld [vmem:[#allocation5 + $0x530] sm:$0xff] }
 0x3bb   :  { %v13897_v54 = vcombine.low %v289_v40, %v293_v41 }
 0x3bc   :  { %10482 = vmatpush1.bf16.msra.mxu0 %v13849_v47  ;;  %10974 = vmatpush1.bf16.msra.mxu1 %v13851_v52  ;;  %v13898_v47 = vcombine.high %v289_v40, %v293_v41  ;;  %v297_v52 = vld [vmem:[#allocation5 + $0x550] sm:$0xff]  ;;  %v334_v40 = vld [vmem:[#allocation5 + $0x678] sm:$0xff] }
 0x3bd   :  { %10483 = vmatprep.subr.bf16.mxu0 %v13858_v56  ;;  %10975 = vmatprep.subr.bf16.mxu1 %v13860_v19  ;;  %v301_v56 = vld [vmem:[#allocation5 + $0x570] sm:$0xff]  ;;  %v298_v19 = vld [vmem:[#allocation5 + $0x558] sm:$0xff] }
 0x3be   :  { %v13906_v3 = vcombine.high %v297_v52, %v301_v56  ;;  %v13905_v9 = vcombine.low %v297_v52, %v301_v56  ;;  %v13907_v23 = vcombine.low %v298_v19, %v302_v61  ;;  %v342_v52 = vld [vmem:[#allocation5 + $0x6b8] sm:$0xff] }
 0x3c0   :  { %10484 = vmatpush1.bf16.msra.mxu0 %v13857_v38  ;;  %10976 = vmatpush1.bf16.msra.mxu1 %v13859_v5  ;;  %v13908_v38 = vcombine.high %v298_v19, %v302_v61  ;;  %v305_v5 = vld [vmem:[#allocation5 + $0x590] sm:$0xff] }
 0x3c1   :  { %10494 = vmatprep.subr.bf16.mxu0 %v13866_v6  ;;  %10986 = vmatprep.subr.bf16.mxu1 %v13868_v7  ;;  %v309_v6 = vld [vmem:[#allocation5 + $0x5b0] sm:$0xff]  ;;  %v306_v7 = vld [vmem:[#allocation5 + $0x598] sm:$0xff] }
 0x3c2   :  { %v13914_v11 = vcombine.high %v305_v5, %v309_v6  ;;  %v13913_v21 = vcombine.low %v305_v5, %v309_v6  ;;  %v350_v5 = vld [vmem:[#allocation5 + $0x6f8] sm:$0xff] }
 0x3c3   :  { %10486 = vmatmul.mubr.bf16.vlgmr.msra.gmra.mrb[4].mxu0 %v16603_v12  ;;  %10978 = vmatmul.mubr.bf16.vlgmr.msra.gmra.mrb[4].mxu1 %v16603_v12  ;;  %v13883_v12 = vcombine.low %v274_v22, %v278_v26  ;;  %v13915_v22 = vcombine.low %v306_v7, %v310_v8 }
 0x3c4   :  { %10495 = vmatpush1.bf16.msra.mxu0 %v13865_v13  ;;  %10987 = vmatpush1.bf16.msra.mxu1 %v13867_v14  ;;  %v13916_v13 = vcombine.high %v306_v7, %v310_v8  ;;  %v313_v14 = vld [vmem:[#allocation5 + $0x5d0] sm:$0xff] }
 0x3c5   :  { %10496 = vmatprep.subr.bf16.mxu0 %v13874_v17  ;;  %10988 = vmatprep.subr.bf16.mxu1 %v13876_v58  ;;  %v317_v17 = vld [vmem:[#allocation5 + $0x5f0] sm:$0xff]  ;;  %v314_v58 = vld [vmem:[#allocation5 + $0x5d8] sm:$0xff] }
 0x3c6   :  { %10526 = vmatprep.mubr.bf16.mxu0 %v16609_v53  ;;  %11018 = vmatprep.mubr.bf16.mxu1 %v16609_v53  ;;  %v13900_v53 = vcombine.high %v290_v42, %v294_v57  ;;  %v13922_v26 = vcombine.high %v313_v14, %v317_v17  ;;  %v13921_v49 = vcombine.low %v313_v14, %v317_v17  ;;  %v358_v14 = vld [vmem:[#allocation5 + $0x738] sm:$0xff] }
 0x3c7   :  { %v13923_v33 = vcombine.low %v314_v58, %v318_v18 }
 0x3c8   :  { %10497 = vmatpush1.bf16.msra.mxu0 %v13873_v27  ;;  %10989 = vmatpush1.bf16.msra.mxu1 %v13875_v59  ;;  %v13924_v27 = vcombine.high %v314_v58, %v318_v18  ;;  %v321_v59 = vld [vmem:[#allocation5 + $0x610] sm:$0xff] }
 0x3c9   :  { %10498 = vmatprep.subr.bf16.mxu0 %v13882_v29  ;;  %10990 = vmatprep.subr.bf16.mxu1 %v13884_v30  ;;  %v325_v29 = vld [vmem:[#allocation5 + $0x630] sm:$0xff]  ;;  %v322_v30 = vld [vmem:[#allocation5 + $0x618] sm:$0xff] }
 0x3ca   :  { %v13930_v15 = vcombine.high %v321_v59, %v325_v29  ;;  %v13929_v41 = vcombine.low %v321_v59, %v325_v29  ;;  %v13931_v42 = vcombine.low %v322_v30, %v326_v31  ;;  %v366_v59 = vld [vmem:[#allocation5 + $0x778] sm:$0xff] }
 0x3cc   :  { %10499 = vmatpush1.bf16.msra.mxu0 %v13881_v35  ;;  %10991 = vmatpush1.bf16.msra.mxu1 %v13883_v12  ;;  %v13932_v35 = vcombine.high %v322_v30, %v326_v31  ;;  %v329_v12 = vld [vmem:[#allocation5 + $0x650] sm:$0xff] }
 0x3cd   :  { %10500 = vmatprep.subr.bf16.mxu0 %v13890_v36  ;;  %10992 = vmatprep.subr.bf16.mxu1 %v13892_v37  ;;  %v333_v36 = vld [vmem:[#allocation5 + $0x670] sm:$0xff]  ;;  %v330_v37 = vld [vmem:[#allocation5 + $0x658] sm:$0xff] }
 0x3ce   :  { %v13938_v57 = vcombine.high %v329_v12, %v333_v36  ;;  %v13937_v56 = vcombine.low %v329_v12, %v333_v36  ;;  %v13939_v19 = vcombine.low %v330_v37, %v334_v40  ;;  %v374_v12 = vld [vmem:[#allocation5 + $0x7b8] sm:$0xff] }
 0x3d0   :  { %10501 = vmatpush1.bf16.msra.mxu0 %v13889_v43  ;;  %10993 = vmatpush1.bf16.msra.mxu1 %v13891_v45  ;;  %v13940_v43 = vcombine.high %v330_v37, %v334_v40  ;;  %v337_v45 = vld [vmem:[#allocation5 + $0x690] sm:$0xff] }
 0x3d1   :  { %10502 = vmatprep.subr.bf16.mxu0 %v13898_v47  ;;  %10994 = vmatprep.subr.bf16.mxu1 %v13900_v53  ;;  %v341_v47 = vld [vmem:[#allocation5 + $0x6b0] sm:$0xff]  ;;  %v338_v53 = vld [vmem:[#allocation5 + $0x698] sm:$0xff] }
 0x3d2   :  { %v13946_v61 = vcombine.high %v337_v45, %v341_v47  ;;  %v13945_v6 = vcombine.low %v337_v45, %v341_v47  ;;  %v13947_v7 = vcombine.low %v338_v53, %v342_v52  ;;  %v382_v45 = vld [vmem:[#allocation5 + $0x7f8] sm:$0xff] }
 0x3d4   :  { %10503 = vmatpush1.bf16.msra.mxu0 %v13897_v54  ;;  %10995 = vmatpush1.bf16.msra.mxu1 %v13899_v63  ;;  %v13948_v54 = vcombine.high %v338_v53, %v342_v52  ;;  %v345_v63 = vld [vmem:[#allocation5 + $0x6d0] sm:$0xff] }
 0x3d5   :  { %10504 = vmatprep.subr.bf16.mxu0 %v13906_v3  ;;  %10996 = vmatprep.subr.bf16.mxu1 %v13908_v38  ;;  %v349_v3 = vld [vmem:[#allocation5 + $0x6f0] sm:$0xff]  ;;  %v346_v38 = vld [vmem:[#allocation5 + $0x6d8] sm:$0xff] }
 0x3d6   :  { %v13954_v8 = vcombine.high %v345_v63, %v349_v3  ;;  %v13953_v17 = vcombine.low %v345_v63, %v349_v3  ;;  %v13955_v58 = vcombine.low %v346_v38, %v350_v5  ;;  %v390_v63 = vld [vmem:[#allocation5 + $0x838] sm:$0xff] }
 0x3d8   :  { %10505 = vmatpush1.bf16.msra.mxu0 %v13905_v9  ;;  %10997 = vmatpush1.bf16.msra.mxu1 %v13907_v23  ;;  %v13956_v9 = vcombine.high %v346_v38, %v350_v5  ;;  %v353_v23 = vld [vmem:[#allocation5 + $0x710] sm:$0xff] }
 0x3d9   :  { %10506 = vmatprep.subr.bf16.mxu0 %v13914_v11  ;;  %10998 = vmatprep.subr.bf16.mxu1 %v13916_v13  ;;  %v357_v11 = vld [vmem:[#allocation5 + $0x730] sm:$0xff]  ;;  %v354_v13 = vld [vmem:[#allocation5 + $0x718] sm:$0xff] }
 0x3da   :  { %v13962_v18 = vcombine.high %v353_v23, %v357_v11  ;;  %v13961_v29 = vcombine.low %v353_v23, %v357_v11  ;;  %v13963_v30 = vcombine.low %v354_v13, %v358_v14  ;;  %v398_v23 = vld [vmem:[#allocation5 + $0x878] sm:$0xff] }
 0x3dc   :  { %10507 = vmatpush1.bf16.msra.mxu0 %v13913_v21  ;;  %10999 = vmatpush1.bf16.msra.mxu1 %v13915_v22  ;;  %v13964_v21 = vcombine.high %v354_v13, %v358_v14  ;;  %v361_v22 = vld [vmem:[#allocation5 + $0x750] sm:$0xff] }
 0x3dd   :  { %10508 = vmatprep.subr.bf16.mxu0 %v13922_v26  ;;  %11000 = vmatprep.subr.bf16.mxu1 %v13924_v27  ;;  %v365_v26 = vld [vmem:[#allocation5 + $0x770] sm:$0xff]  ;;  %v362_v27 = vld [vmem:[#allocation5 + $0x758] sm:$0xff] }
 0x3de   :  { %v13970_v31 = vcombine.high %v361_v22, %v365_v26  ;;  %v13969_v36 = vcombine.low %v361_v22, %v365_v26  ;;  %v13971_v37 = vcombine.low %v362_v27, %v366_v59  ;;  %v406_v22 = vld [vmem:[#allocation5 + $0x8b8] sm:$0xff] }
 0x3e0   :  { %10509 = vmatpush1.bf16.msra.mxu0 %v13921_v49  ;;  %11001 = vmatpush1.bf16.msra.mxu1 %v13923_v33  ;;  %v13972_v49 = vcombine.high %v362_v27, %v366_v59  ;;  %v369_v33 = vld [vmem:[#allocation5 + $0x790] sm:$0xff] }
 0x3e1   :  { %10510 = vmatprep.subr.bf16.mxu0 %v13930_v15  ;;  %11002 = vmatprep.subr.bf16.mxu1 %v13932_v35  ;;  %v373_v15 = vld [vmem:[#allocation5 + $0x7b0] sm:$0xff]  ;;  %v370_v35 = vld [vmem:[#allocation5 + $0x798] sm:$0xff] }
 0x3e2   :  { %v13978_v40 = vcombine.high %v369_v33, %v373_v15  ;;  %v13977_v47 = vcombine.low %v369_v33, %v373_v15  ;;  %v13979_v53 = vcombine.low %v370_v35, %v374_v12  ;;  %v414_v33 = vld [vmem:[#allocation5 + $0x8f8] sm:$0xff] }
 0x3e4   :  { %10511 = vmatpush1.bf16.msra.mxu0 %v13929_v41  ;;  %11003 = vmatpush1.bf16.msra.mxu1 %v13931_v42  ;;  %v13980_v41 = vcombine.high %v370_v35, %v374_v12  ;;  %v377_v42 = vld [vmem:[#allocation5 + $0x7d0] sm:$0xff] }
 0x3e5   :  { %10512 = vmatprep.subr.bf16.mxu0 %v13938_v57  ;;  %11004 = vmatprep.subr.bf16.mxu1 %v13940_v43  ;;  %v381_v57 = vld [vmem:[#allocation5 + $0x7f0] sm:$0xff]  ;;  %v378_v43 = vld [vmem:[#allocation5 + $0x7d8] sm:$0xff] }
 0x3e6   :  { %v13986_v52 = vcombine.high %v377_v42, %v381_v57  ;;  %v13985_v3 = vcombine.low %v377_v42, %v381_v57  ;;  %v13987_v38 = vcombine.low %v378_v43, %v382_v45 }
 0x3e8   :  { %10513 = vmatpush1.bf16.msra.mxu0 %v13937_v56  ;;  %11005 = vmatpush1.bf16.msra.mxu1 %v13939_v19  ;;  %v13988_v56 = vcombine.high %v378_v43, %v382_v45  ;;  %v385_v19 = vld [vmem:[#allocation5 + $0x810] sm:$0xff] }
 0x3e9   :  { %10514 = vmatprep.subr.bf16.mxu0 %v13946_v61  ;;  %11006 = vmatprep.subr.bf16.mxu1 %v13948_v54  ;;  %v389_v61 = vld [vmem:[#allocation5 + $0x830] sm:$0xff]  ;;  %v386_v54 = vld [vmem:[#allocation5 + $0x818] sm:$0xff] }
 0x3ea   :  { %v13994_v5 = vcombine.high %v385_v19, %v389_v61  ;;  %v13993_v11 = vcombine.low %v385_v19, %v389_v61  ;;  %v13995_v13 = vcombine.low %v386_v54, %v390_v63  ;;  %v425_v45 = vld [vmem:[#allocation5 + $0x950] sm:$0xff] }
 0x3ec   :  { %10515 = vmatpush1.bf16.msra.mxu0 %v13945_v6  ;;  %11007 = vmatpush1.bf16.msra.mxu1 %v13947_v7  ;;  %v13996_v6 = vcombine.high %v386_v54, %v390_v63  ;;  %v393_v7 = vld [vmem:[#allocation5 + $0x850] sm:$0xff] }
 0x3ed   :  { %10516 = vmatprep.subr.bf16.mxu0 %v13954_v8  ;;  %11008 = vmatprep.subr.bf16.mxu1 %v13956_v9  ;;  %v397_v8 = vld [vmem:[#allocation5 + $0x870] sm:$0xff]  ;;  %v394_v9 = vld [vmem:[#allocation5 + $0x858] sm:$0xff] }
 0x3ee   :  { %v14002_v14 = vcombine.high %v393_v7, %v397_v8  ;;  %v14001_v26 = vcombine.low %v393_v7, %v397_v8  ;;  %v14003_v27 = vcombine.low %v394_v9, %v398_v23  ;;  %v433_v63 = vld [vmem:[#allocation5 + $0x990] sm:$0xff] }
 0x3f0   :  { %10517 = vmatpush1.bf16.msra.mxu0 %v13953_v17  ;;  %11009 = vmatpush1.bf16.msra.mxu1 %v13955_v58  ;;  %v14004_v17 = vcombine.high %v394_v9, %v398_v23  ;;  %v401_v58 = vld [vmem:[#allocation5 + $0x890] sm:$0xff] }
 0x3f1   :  { %10518 = vmatprep.subr.bf16.mxu0 %v13962_v18  ;;  %11010 = vmatprep.subr.bf16.mxu1 %v13964_v21  ;;  %v405_v18 = vld [vmem:[#allocation5 + $0x8b0] sm:$0xff]  ;;  %v402_v21 = vld [vmem:[#allocation5 + $0x898] sm:$0xff] }
 0x3f2   :  { %v14010_v59 = vcombine.high %v401_v58, %v405_v18  ;;  %v14009_v15 = vcombine.low %v401_v58, %v405_v18  ;;  %v441_v23 = vld [vmem:[#allocation5 + $0x9d0] sm:$0xff] }
 0x3f4   :  { %10519 = vmatpush1.bf16.msra.mxu0 %v13961_v29  ;;  %11011 = vmatpush1.bf16.msra.mxu1 %v13963_v30  ;;  %v14012_v29 = vcombine.high %v402_v21, %v406_v22  ;;  %v409_v30 = vld [vmem:[#allocation5 + $0x8d0] sm:$0xff] }
 0x3f5   :  { %10520 = vmatprep.subr.bf16.mxu0 %v13970_v31  ;;  %11012 = vmatprep.subr.bf16.mxu1 %v13972_v49  ;;  %v413_v31 = vld [vmem:[#allocation5 + $0x8f0] sm:$0xff]  ;;  %v410_v49 = vld [vmem:[#allocation5 + $0x8d8] sm:$0xff] }
 0x3f6   :  { %v14018_v35 = vcombine.high %v409_v30, %v413_v31  ;;  %v14020_v12 = vcombine.high %v410_v49, %v414_v33  ;;  %v14017_v42 = vcombine.low %v409_v30, %v413_v31  ;;  %v14019_v57 = vcombine.low %v410_v49, %v414_v33  ;;  %v457_v33 = vld [vmem:[#allocation5 + $0xa50] sm:$0xff] }
 0x3f8   :  { %10521 = vmatpush1.bf16.msra.mxu0 %v13969_v36  ;;  %11013 = vmatpush1.bf16.msra.mxu1 %v13971_v37  ;;  %v417_v36 = vld [vmem:[#allocation5 + $0x910] sm:$0xff] }
 0x3f9   :  { %10522 = vmatprep.subr.bf16.mxu0 %v13978_v40  ;;  %11014 = vmatprep.subr.bf16.mxu1 %v13980_v41  ;;  %v421_v37 = vld [vmem:[#allocation5 + $0x930] sm:$0xff]  ;;  %v418_v40 = vld [vmem:[#allocation5 + $0x918] sm:$0xff] }
 0x3fa   :  { %v422_v41 = vld [vmem:[#allocation5 + $0x938] sm:$0xff]  ;;  %v14026_v43 = vcombine.high %v417_v36, %v421_v37 }
 0x3fb   :  { %v14027_v19 = vcombine.low %v418_v40, %v422_v41 }
 0x3fc   :  { %10523 = vmatpush1.bf16.msra.mxu0 %v13977_v47  ;;  %11015 = vmatpush1.bf16.msra.mxu1 %v13979_v53  ;;  %v429_v47 = vld [vmem:[#allocation5 + $0x970] sm:$0xff]  ;;  %v426_v53 = vld [vmem:[#allocation5 + $0x958] sm:$0xff] }
 0x3fd   :  { %10524 = vmatprep.subr.bf16.mxu0 %v13986_v52  ;;  %11016 = vmatprep.subr.bf16.mxu1 %v13988_v56  ;;  %v430_v52 = vld [vmem:[#allocation5 + $0x978] sm:$0xff]  ;;  %v14025_v56 = vcombine.low %v417_v36, %v421_v37  ;;  %v14034_v61 = vcombine.high %v425_v45, %v429_v47 }
 0x3fe   :  { %v14036_v54 = vcombine.high %v426_v53, %v430_v52  ;;  %v14035_v7 = vcombine.low %v426_v53, %v430_v52  ;;  %v473_v52 = vld [vmem:[#allocation5 + $0xad0] sm:$0xff] }
 0x400   :  { %10525 = vmatpush1.bf16.msra.mxu0 %v13985_v3  ;;  %11017 = vmatpush1.bf16.msra.mxu1 %v13987_v38  ;;  %v437_v3 = vld [vmem:[#allocation5 + $0x9b0] sm:$0xff]  ;;  %v434_v38 = vld [vmem:[#allocation5 + $0x998] sm:$0xff] }
 0x401   :  { %10535 = vmatprep.subr.bf16.mxu0 %v13994_v5  ;;  %11027 = vmatprep.subr.bf16.mxu1 %v13996_v6  ;;  %v438_v5 = vld [vmem:[#allocation5 + $0x9b8] sm:$0xff]  ;;  %v14033_v6 = vcombine.low %v425_v45, %v429_v47  ;;  %v14042_v8 = vcombine.high %v433_v63, %v437_v3 }
 0x402   :  { %v14044_v9 = vcombine.high %v434_v38, %v438_v5  ;;  %v14043_v58 = vcombine.low %v434_v38, %v438_v5  ;;  %v481_v5 = vld [vmem:[#allocation5 + $0xb10] sm:$0xff] }
 0x403   :  { %10527 = vmatmul.mubr.bf16.vlgmr.msra.gmra.mrb[4].mxu0 %v16619_v25  ;;  %11019 = vmatmul.mubr.bf16.vlgmr.msra.gmra.mrb[4].mxu1 %v16619_v25  ;;  %v14011_v25 = vcombine.low %v402_v21, %v406_v22  ;;  %v449_v22 = vld [vmem:[#allocation5 + $0xa10] sm:$0xff] }
 0x404   :  { %10536 = vmatpush1.bf16.msra.mxu0 %v13993_v11  ;;  %11028 = vmatpush1.bf16.msra.mxu1 %v13995_v13  ;;  %v445_v11 = vld [vmem:[#allocation5 + $0x9f0] sm:$0xff]  ;;  %v442_v13 = vld [vmem:[#allocation5 + $0x9d8] sm:$0xff] }
 0x405   :  { %10537 = vmatprep.subr.bf16.mxu0 %v14002_v14  ;;  %11029 = vmatprep.subr.bf16.mxu1 %v14004_v17  ;;  %v446_v14 = vld [vmem:[#allocation5 + $0x9f8] sm:$0xff]  ;;  %v14041_v17 = vcombine.low %v433_v63, %v437_v3  ;;  %v14050_v18 = vcombine.high %v441_v23, %v445_v11 }
 0x406   :  { %10567 = vmatprep.mubr.bf16.mxu0 %v16623_v34  ;;  %11059 = vmatprep.mubr.bf16.mxu1 %v16623_v34  ;;  %v14028_v34 = vcombine.high %v418_v40, %v422_v41  ;;  %v14052_v21 = vcombine.high %v442_v13, %v446_v14  ;;  %v14051_v30 = vcombine.low %v442_v13, %v446_v14  ;;  %v465_v41 = vld [vmem:[#allocation5 + $0xa90] sm:$0xff] }
 0x407   :  { %v489_v14 = vld [vmem:[#allocation5 + $0xb50] sm:$0xff] }
 0x408   :  { %10538 = vmatpush1.bf16.msra.mxu0 %v14001_v26  ;;  %11030 = vmatpush1.bf16.msra.mxu1 %v14003_v27  ;;  %v453_v26 = vld [vmem:[#allocation5 + $0xa30] sm:$0xff]  ;;  %v450_v27 = vld [vmem:[#allocation5 + $0xa18] sm:$0xff] }
 0x409   :  { %10539 = vmatprep.subr.bf16.mxu0 %v14010_v59  ;;  %11031 = vmatprep.subr.bf16.mxu1 %v14012_v29  ;;  %v454_v59 = vld [vmem:[#allocation5 + $0xa38] sm:$0xff]  ;;  %v14049_v29 = vcombine.low %v441_v23, %v445_v11  ;;  %v14058_v31 = vcombine.high %v449_v22, %v453_v26 }
 0x40a   :  { %v14060_v49 = vcombine.high %v450_v27, %v454_v59  ;;  %v14059_v36 = vcombine.low %v450_v27, %v454_v59  ;;  %v497_v59 = vld [vmem:[#allocation5 + $0xb90] sm:$0xff] }
 0x40c   :  { %10540 = vmatpush1.bf16.msra.mxu0 %v14009_v15  ;;  %11032 = vmatpush1.bf16.msra.mxu1 %v14011_v25  ;;  %v461_v15 = vld [vmem:[#allocation5 + $0xa70] sm:$0xff]  ;;  %v458_v25 = vld [vmem:[#allocation5 + $0xa58] sm:$0xff] }
 0x40d   :  { %10541 = vmatprep.subr.bf16.mxu0 %v14018_v35  ;;  %11033 = vmatprep.subr.bf16.mxu1 %v14020_v12  ;;  %v462_v35 = vld [vmem:[#allocation5 + $0xa78] sm:$0xff]  ;;  %v14057_v12 = vcombine.low %v449_v22, %v453_v26  ;;  %v14066_v37 = vcombine.high %v457_v33, %v461_v15 }
 0x40e   :  { %v14068_v40 = vcombine.high %v458_v25, %v462_v35  ;;  %v14067_v45 = vcombine.low %v458_v25, %v462_v35  ;;  %v505_v35 = vld [vmem:[#allocation5 + $0xbd0] sm:$0xff] }
 0x410   :  { %10542 = vmatpush1.bf16.msra.mxu0 %v14017_v42  ;;  %11034 = vmatpush1.bf16.msra.mxu1 %v14019_v57  ;;  %v469_v42 = vld [vmem:[#allocation5 + $0xab0] sm:$0xff]  ;;  %v466_v57 = vld [vmem:[#allocation5 + $0xa98] sm:$0xff] }
 0x411   :  { %10543 = vmatprep.subr.bf16.mxu0 %v14026_v43  ;;  %11035 = vmatprep.subr.bf16.mxu1 %v14028_v34  ;;  %v470_v43 = vld [vmem:[#allocation5 + $0xab8] sm:$0xff]  ;;  %v14065_v34 = vcombine.low %v457_v33, %v461_v15  ;;  %v14074_v47 = vcombine.high %v465_v41, %v469_v42 }
 0x412   :  { %v14076_v53 = vcombine.high %v466_v57, %v470_v43  ;;  %v14075_v63 = vcombine.low %v466_v57, %v470_v43  ;;  %v513_v43 = vld [vmem:[#allocation5 + $0xc10] sm:$0xff] }
 0x414   :  { %10544 = vmatpush1.bf16.msra.mxu0 %v14025_v56  ;;  %11036 = vmatpush1.bf16.msra.mxu1 %v14027_v19  ;;  %v477_v56 = vld [vmem:[#allocation5 + $0xaf0] sm:$0xff]  ;;  %v474_v19 = vld [vmem:[#allocation5 + $0xad8] sm:$0xff] }
 0x415   :  { %10545 = vmatprep.subr.bf16.mxu0 %v14034_v61  ;;  %11037 = vmatprep.subr.bf16.mxu1 %v14036_v54  ;;  %v478_v61 = vld [vmem:[#allocation5 + $0xaf8] sm:$0xff]  ;;  %v14073_v54 = vcombine.low %v465_v41, %v469_v42  ;;  %v14082_v3 = vcombine.high %v473_v52, %v477_v56 }
 0x416   :  { %v14084_v38 = vcombine.high %v474_v19, %v478_v61  ;;  %v14083_v23 = vcombine.low %v474_v19, %v478_v61  ;;  %v521_v61 = vld [vmem:[#allocation5 + $0xc50] sm:$0xff] }
 0x418   :  { %10546 = vmatpush1.bf16.msra.mxu0 %v14033_v6  ;;  %11038 = vmatpush1.bf16.msra.mxu1 %v14035_v7  ;;  %v485_v6 = vld [vmem:[#allocation5 + $0xb30] sm:$0xff]  ;;  %v482_v7 = vld [vmem:[#allocation5 + $0xb18] sm:$0xff] }
 0x419   :  { %10547 = vmatprep.subr.bf16.mxu0 %v14042_v8  ;;  %11039 = vmatprep.subr.bf16.mxu1 %v14044_v9  ;;  %v486_v8 = vld [vmem:[#allocation5 + $0xb38] sm:$0xff]  ;;  %v14081_v9 = vcombine.low %v473_v52, %v477_v56  ;;  %v14090_v11 = vcombine.high %v481_v5, %v485_v6 }
 0x41a   :  { %v14092_v13 = vcombine.high %v482_v7, %v486_v8  ;;  %v14091_v22 = vcombine.low %v482_v7, %v486_v8  ;;  %v529_v8 = vld [vmem:[#allocation5 + $0xc90] sm:$0xff] }
 0x41c   :  { %10548 = vmatpush1.bf16.msra.mxu0 %v14041_v17  ;;  %11040 = vmatpush1.bf16.msra.mxu1 %v14043_v58  ;;  %v493_v17 = vld [vmem:[#allocation5 + $0xb70] sm:$0xff]  ;;  %v490_v58 = vld [vmem:[#allocation5 + $0xb58] sm:$0xff] }
 0x41d   :  { %10549 = vmatprep.subr.bf16.mxu0 %v14050_v18  ;;  %11041 = vmatprep.subr.bf16.mxu1 %v14052_v21  ;;  %v494_v18 = vld [vmem:[#allocation5 + $0xb78] sm:$0xff]  ;;  %v14089_v21 = vcombine.low %v481_v5, %v485_v6  ;;  %v14098_v26 = vcombine.high %v489_v14, %v493_v17 }
 0x41e   :  { %v14100_v27 = vcombine.high %v490_v58, %v494_v18  ;;  %v14099_v33 = vcombine.low %v490_v58, %v494_v18  ;;  %v537_v18 = vld [vmem:[#allocation5 + $0xcd0] sm:$0xff] }
 0x420   :  { %10550 = vmatpush1.bf16.msra.mxu0 %v14049_v29  ;;  %11042 = vmatpush1.bf16.msra.mxu1 %v14051_v30  ;;  %v501_v29 = vld [vmem:[#allocation5 + $0xbb0] sm:$0xff]  ;;  %v498_v30 = vld [vmem:[#allocation5 + $0xb98] sm:$0xff] }
 0x421   :  { %10551 = vmatprep.subr.bf16.mxu0 %v14058_v31  ;;  %11043 = vmatprep.subr.bf16.mxu1 %v14060_v49  ;;  %v502_v31 = vld [vmem:[#allocation5 + $0xbb8] sm:$0xff]  ;;  %v14097_v49 = vcombine.low %v489_v14, %v493_v17  ;;  %v14106_v15 = vcombine.high %v497_v59, %v501_v29 }
 0x422   :  { %v14108_v25 = vcombine.high %v498_v30, %v502_v31  ;;  %v14107_v41 = vcombine.low %v498_v30, %v502_v31  ;;  %v545_v30 = vld [vmem:[#allocation5 + $0xd10] sm:$0xff] }
 0x423   :  { %v549_v31 = vld [vmem:[#allocation5 + $0xd30] sm:$0xff] }
 0x424   :  { %10552 = vmatpush1.bf16.msra.mxu0 %v14057_v12  ;;  %11044 = vmatpush1.bf16.msra.mxu1 %v14059_v36  ;;  %v509_v12 = vld [vmem:[#allocation5 + $0xbf0] sm:$0xff]  ;;  %v506_v36 = vld [vmem:[#allocation5 + $0xbd8] sm:$0xff] }
 0x425   :  { %10553 = vmatprep.subr.bf16.mxu0 %v14066_v37  ;;  %11045 = vmatprep.subr.bf16.mxu1 %v14068_v40  ;;  %v510_v37 = vld [vmem:[#allocation5 + $0xbf8] sm:$0xff]  ;;  %v14105_v40 = vcombine.low %v497_v59, %v501_v29  ;;  %v14114_v42 = vcombine.high %v505_v35, %v509_v12 }
 0x426   :  { %v14116_v57 = vcombine.high %v506_v36, %v510_v37  ;;  %v14115_v52 = vcombine.low %v506_v36, %v510_v37  ;;  %v557_v36 = vld [vmem:[#allocation5 + $0xd70] sm:$0xff]  ;;  %v554_v37 = vld [vmem:[#allocation5 + $0xd58] sm:$0xff] }
 0x428   :  { %10554 = vmatpush1.bf16.msra.mxu0 %v14065_v34  ;;  %11046 = vmatpush1.bf16.msra.mxu1 %v14067_v45  ;;  %v517_v34 = vld [vmem:[#allocation5 + $0xc30] sm:$0xff]  ;;  %v514_v45 = vld [vmem:[#allocation5 + $0xc18] sm:$0xff] }
 0x429   :  { %10555 = vmatprep.subr.bf16.mxu0 %v14074_v47  ;;  %11047 = vmatprep.subr.bf16.mxu1 %v14076_v53  ;;  %v518_v47 = vld [vmem:[#allocation5 + $0xc38] sm:$0xff]  ;;  %v14113_v53 = vcombine.low %v505_v35, %v509_v12  ;;  %v14122_v56 = vcombine.high %v513_v43, %v517_v34  ;;  %v14154_v35 = vcombine.high %v545_v30, %v549_v31  ;;  %v553_v12 = vld [vmem:[#allocation5 + $0xd50] sm:$0xff] }
 0x42a   :  { %v14124_v19 = vcombine.high %v514_v45, %v518_v47  ;;  %v14123_v5 = vcombine.low %v514_v45, %v518_v47  ;;  %v565_v45 = vld [vmem:[#allocation5 + $0xdb0] sm:$0xff]  ;;  %v562_v47 = vld [vmem:[#allocation5 + $0xd98] sm:$0xff] }
 0x42c   :  { %10556 = vmatpush1.bf16.msra.mxu0 %v14073_v54  ;;  %11048 = vmatpush1.bf16.msra.mxu1 %v14075_v63  ;;  %v525_v54 = vld [vmem:[#allocation5 + $0xc70] sm:$0xff]  ;;  %v522_v63 = vld [vmem:[#allocation5 + $0xc58] sm:$0xff] }
 0x42d   :  { %10557 = vmatprep.subr.bf16.mxu0 %v14082_v3  ;;  %11049 = vmatprep.subr.bf16.mxu1 %v14084_v38  ;;  %v526_v3 = vld [vmem:[#allocation5 + $0xc78] sm:$0xff]  ;;  %v14121_v38 = vcombine.low %v513_v43, %v517_v34  ;;  %v14130_v6 = vcombine.high %v521_v61, %v525_v54  ;;  %v561_v34 = vld [vmem:[#allocation5 + $0xd90] sm:$0xff] }
 0x42e   :  { %v14132_v7 = vcombine.high %v522_v63, %v526_v3  ;;  %v14131_v14 = vcombine.low %v522_v63, %v526_v3  ;;  %v569_v63 = vld [vmem:[#allocation5 + $0xdd0] sm:$0xff] }
 0x42f   :  { %v573_v3 = vld [vmem:[#allocation5 + $0xdf0] sm:$0xff] }
 0x430   :  { %10558 = vmatpush1.bf16.msra.mxu0 %v14081_v9  ;;  %11050 = vmatpush1.bf16.msra.mxu1 %v14083_v23  ;;  %v533_v9 = vld [vmem:[#allocation5 + $0xcb0] sm:$0xff]  ;;  %v530_v23 = vld [vmem:[#allocation5 + $0xc98] sm:$0xff] }
 0x431   :  { %10559 = vmatprep.subr.bf16.mxu0 %v14090_v11  ;;  %11051 = vmatprep.subr.bf16.mxu1 %v14092_v13  ;;  %v534_v11 = vld [vmem:[#allocation5 + $0xcb8] sm:$0xff]  ;;  %v14129_v13 = vcombine.low %v521_v61, %v525_v54  ;;  %v14138_v17 = vcombine.high %v529_v8, %v533_v9 }
 0x432   :  { %v14140_v58 = vcombine.high %v530_v23, %v534_v11 }
 0x434   :  { %10560 = vmatpush1.bf16.msra.mxu0 %v14089_v21  ;;  %11052 = vmatpush1.bf16.msra.mxu1 %v14091_v22  ;;  %v541_v21 = vld [vmem:[#allocation5 + $0xcf0] sm:$0xff]  ;;  %v538_v22 = vld [vmem:[#allocation5 + $0xcd8] sm:$0xff] }
 0x435   :  { %10561 = vmatprep.subr.bf16.mxu0 %v14098_v26  ;;  %11053 = vmatprep.subr.bf16.mxu1 %v14100_v27  ;;  %v542_v26 = vld [vmem:[#allocation5 + $0xcf8] sm:$0xff]  ;;  %v14137_v27 = vcombine.low %v529_v8, %v533_v9  ;;  %v14146_v59 = vcombine.high %v537_v18, %v541_v21 }
 0x436   :  { %v14148_v29 = vcombine.high %v538_v22, %v542_v26 }
 0x438   :  { %10562 = vmatpush1.bf16.msra.mxu0 %v14097_v49  ;;  %11054 = vmatpush1.bf16.msra.mxu1 %v14099_v33  ;;  %v546_v49 = vld [vmem:[#allocation5 + $0xd18] sm:$0xff] }
 0x439   :  { %10563 = vmatprep.subr.bf16.mxu0 %v14106_v15  ;;  %11055 = vmatprep.subr.bf16.mxu1 %v14108_v25  ;;  %v550_v33 = vld [vmem:[#allocation5 + $0xd38] sm:$0xff]  ;;  %v14145_v15 = vcombine.low %v537_v18, %v541_v21  ;;  %v14147_v25 = vcombine.low %v538_v22, %v542_v26  ;;  %v577_v21 = vld [vmem:[#allocation5 + $0xe10] sm:$0xff] }
 0x43a   :  { %v581_v22 = vld [vmem:[#allocation5 + $0xe30] sm:$0xff]  ;;  %v578_v26 = vld [vmem:[#allocation5 + $0xe18] sm:$0xff] }
 0x43c   :  { %10564 = vmatpush1.bf16.msra.mxu0 %v14105_v40  ;;  %11056 = vmatpush1.bf16.msra.mxu1 %v14107_v41  ;;  %v558_v40 = vld [vmem:[#allocation5 + $0xd78] sm:$0xff]  ;;  %v14153_v41 = vcombine.low %v545_v30, %v549_v31  ;;  %v585_v31 = vld [vmem:[#allocation5 + $0xe50] sm:$0xff] }
 0x43d   :  { %10565 = vmatprep.subr.bf16.mxu0 %v14114_v42  ;;  %11057 = vmatprep.subr.bf16.mxu1 %v14116_v57  ;;  %v14155_v42 = vcombine.low %v546_v49, %v550_v33  ;;  %v14162_v57 = vcombine.high %v553_v12, %v557_v36  ;;  %v14164_v43 = vcombine.high %v554_v37, %v558_v40 }
 0x440   :  { %10566 = vmatpush1.bf16.msra.mxu0 %v14113_v53  ;;  %11058 = vmatpush1.bf16.msra.mxu1 %v14115_v52  ;;  %v566_v53 = vld [vmem:[#allocation5 + $0xdb8] sm:$0xff]  ;;  %v14161_v52 = vcombine.low %v553_v12, %v557_v36  ;;  %v593_v36 = vld [vmem:[#allocation5 + $0xe90] sm:$0xff] }
 0x441   :  { %10576 = vmatprep.subr.bf16.mxu0 %v14122_v56  ;;  %11068 = vmatprep.subr.bf16.mxu1 %v14124_v19  ;;  %v14163_v56 = vcombine.low %v554_v37, %v558_v40  ;;  %v14170_v19 = vcombine.high %v561_v34, %v565_v45  ;;  %v14172_v54 = vcombine.high %v562_v47, %v566_v53  ;;  %v597_v37 = vld [vmem:[#allocation5 + $0xeb0] sm:$0xff]  ;;  %v594_v40 = vld [vmem:[#allocation5 + $0xe98] sm:$0xff] }
 0x443   :  { %10568 = vmatmul.mubr.bf16.vlgmr.msra.gmra.mrb[4].mxu0 %v16633_v39  ;;  %11060 = vmatmul.mubr.bf16.vlgmr.msra.gmra.mrb[4].mxu1 %v16633_v39  ;;  %v14139_v39 = vcombine.low %v530_v23, %v534_v11  ;;  %v14169_v23 = vcombine.low %v561_v34, %v565_v45  ;;  %v601_v45 = vld [vmem:[#allocation5 + $0xed0] sm:$0xff] }
 0x444   :  { %10577 = vmatpush1.bf16.msra.mxu0 %v14121_v38  ;;  %11069 = vmatpush1.bf16.msra.mxu1 %v14123_v5 }
 0x445   :  { %10578 = vmatprep.subr.bf16.mxu0 %v14130_v6  ;;  %11070 = vmatprep.subr.bf16.mxu1 %v14132_v7  ;;  %v570_v6 = vld [vmem:[#allocation5 + $0xdd8] sm:$0xff] }
 0x446   :  { %10608 = vmatprep.mubr.bf16.mxu0 %v16637_v48  ;;  %11100 = vmatprep.mubr.bf16.mxu1 %v16637_v48  ;;  %v14156_v48 = vcombine.high %v546_v49, %v550_v33  ;;  %v574_v7 = vld [vmem:[#allocation5 + $0xdf8] sm:$0xff]  ;;  %v589_v49 = vld [vmem:[#allocation5 + $0xe70] sm:$0xff] }
 0x447   :  { %v14180_v18 = vcombine.high %v570_v6, %v574_v7  ;;  %v586_v33 = vld [vmem:[#allocation5 + $0xe58] sm:$0xff] }
 0x448   :  { %10579 = vmatpush1.bf16.msra.mxu0 %v14129_v13  ;;  %11071 = vmatpush1.bf16.msra.mxu1 %v14131_v14  ;;  %v14171_v14 = vcombine.low %v562_v47, %v566_v53  ;;  %v605_v47 = vld [vmem:[#allocation5 + $0xef0] sm:$0xff]  ;;  %v602_v53 = vld [vmem:[#allocation5 + $0xed8] sm:$0xff] }
 0x449   :  { %10580 = vmatprep.subr.bf16.mxu0 %v14138_v17  ;;  %11072 = vmatprep.subr.bf16.mxu1 %v14140_v58  ;;  %v14178_v17 = vcombine.high %v569_v63, %v573_v3 }
 0x44c   :  { %10581 = vmatpush1.bf16.msra.mxu0 %v14137_v27  ;;  %11073 = vmatpush1.bf16.msra.mxu1 %v14139_v39  ;;  %v582_v27 = vld [vmem:[#allocation5 + $0xe38] sm:$0xff]  ;;  %v14177_v39 = vcombine.low %v569_v63, %v573_v3  ;;  %v609_v3 = vld [vmem:[#allocation5 + $0xf10] sm:$0xff] }
 0x44d   :  { %10582 = vmatprep.subr.bf16.mxu0 %v14146_v59  ;;  %11074 = vmatprep.subr.bf16.mxu1 %v14148_v29  ;;  %v14179_v59 = vcombine.low %v570_v6, %v574_v7  ;;  %v14186_v29 = vcombine.high %v577_v21, %v581_v22  ;;  %v14188_v30 = vcombine.high %v578_v26, %v582_v27  ;;  %v613_v6 = vld [vmem:[#allocation5 + $0xf30] sm:$0xff]  ;;  %v610_v7 = vld [vmem:[#allocation5 + $0xf18] sm:$0xff] }
 0x450   :  { %10583 = vmatpush1.bf16.msra.mxu0 %v14145_v15  ;;  %11075 = vmatpush1.bf16.msra.mxu1 %v14147_v25  ;;  %v590_v15 = vld [vmem:[#allocation5 + $0xe78] sm:$0xff]  ;;  %v14185_v25 = vcombine.low %v577_v21, %v581_v22  ;;  %v14217_v22 = vcombine.low %v609_v3, %v613_v6 }
 0x451   :  { %10584 = vmatprep.subr.bf16.mxu0 %v14154_v35  ;;  %11076 = vmatprep.subr.bf16.mxu1 %v14156_v48  ;;  %v14187_v35 = vcombine.low %v578_v26, %v582_v27  ;;  %v14194_v48 = vcombine.high %v585_v31, %v589_v49  ;;  %v14196_v12 = vcombine.high %v586_v33, %v590_v15  ;;  %v622_v21 = vld [vmem:[#allocation5 + $0xf78] sm:$0xff] }
 0x454   :  { %10585 = vmatpush1.bf16.msra.mxu0 %v14153_v41  ;;  %11077 = vmatpush1.bf16.msra.mxu1 %v14155_v42  ;;  %v598_v41 = vld [vmem:[#allocation5 + $0xeb8] sm:$0xff]  ;;  %v14193_v42 = vcombine.low %v585_v31, %v589_v49 }
 0x455   :  { %10586 = vmatprep.subr.bf16.mxu0 %v14162_v57  ;;  %11078 = vmatprep.subr.bf16.mxu1 %v14164_v43  ;;  %v14195_v57 = vcombine.low %v586_v33, %v590_v15  ;;  %v14202_v43 = vcombine.high %v593_v36, %v597_v37  ;;  %v14204_v34 = vcombine.high %v594_v40, %v598_v41  ;;  %v630_v31 = vld [vmem:[#allocation5 + $0xfb8] sm:$0xff] }
 0x456   :  { %v16775_v61 = vpop.f32.mrb[0].mxu0  ;;  %v16777_v38 = vpop.f32.mrb[0].mxu1 }
 0x457   :  { %v16779_v5 = vpop.f32.mrb[1].mxu0  ;;  %v16781_v8 = vpop.f32.mrb[1].mxu1 }
 0x458   :  { %v9958_v9 = vpop.f32.mrb[2].mxu0  ;;  %10587 = vmatpush1.bf16.msra.mxu0 %v14161_v52  ;;  %v10450_v11 = vpop.f32.mrb[2].mxu1  ;;  %11079 = vmatpush1.bf16.msra.mxu1 %v14163_v56  ;;  %v606_v52 = vld [vmem:[#allocation5 + $0xef8] sm:$0xff]  ;;  %v14201_v56 = vcombine.low %v593_v36, %v597_v37 }
 0x459   :  { %v9959_v13 = vpop.f32.mrb[3].mxu0  ;;  %10588 = vmatprep.subr.bf16.mxu0 %v14170_v19  ;;  %v10451_v58 = vpop.f32.mrb[3].mxu1  ;;  %11080 = vmatprep.subr.bf16.mxu1 %v14172_v54  ;;  %v14203_v19 = vcombine.low %v594_v40, %v598_v41  ;;  %v14210_v54 = vcombine.high %v601_v45, %v605_v47  ;;  %v14212_v63 = vcombine.high %v602_v53, %v606_v52  ;;  %v614_v9 = vld [vmem:[#allocation5 + $0xf38] sm:$0xff] }
 0x45a   :  { %v14211_v11 = vcombine.low %v602_v53, %v606_v52  ;;  %v14218_v13 = vcombine.high %v609_v3, %v613_v6  ;;  %v621_v58 = vld [vmem:[#allocation5 + $0xf70] sm:$0xff]  ;;  %v14219_v26 = vcombine.low %v610_v7, %v614_v9  ;;  %v638_v36 = vld [vmem:[#allocation5 + $0xff8] sm:$0xff] }
 0x45b   :  { %v654_v3 = vld [vmem:[#allocation5 + $0x1078] sm:$0xff] }
 0x45c   :  { %10589 = vmatpush1.bf16.msra.mxu0 %v14169_v23  ;;  %11081 = vmatpush1.bf16.msra.mxu1 %v14171_v14  ;;  %v14209_v23 = vcombine.low %v601_v45, %v605_v47  ;;  %v14220_v14 = vcombine.high %v610_v7, %v614_v9  ;;  %v646_v45 = vld [vmem:[#allocation5 + $0x1038] sm:$0xff] }
 0x45d   :  { %10590 = vmatprep.subr.bf16.mxu0 %v14178_v17  ;;  %11082 = vmatprep.subr.bf16.mxu1 %v14180_v18  ;;  %v617_v17 = vld [vmem:[#allocation5 + $0xf50] sm:$0xff]  ;;  %v618_v18 = vld [vmem:[#allocation5 + $0xf58] sm:$0xff] }
 0x45e   :  { %v14226_v27 = vcombine.high %v617_v17, %v621_v58  ;;  %v14225_v49 = vcombine.low %v617_v17, %v621_v58  ;;  %v14227_v33 = vcombine.low %v618_v18, %v622_v21  ;;  %v662_v17 = vld [vmem:[#allocation5 + $0x10b8] sm:$0xff] }
 0x460   :  { %10591 = vmatpush1.bf16.msra.mxu0 %v14177_v39  ;;  %11083 = vmatpush1.bf16.msra.mxu1 %v14179_v59  ;;  %v14228_v39 = vcombine.high %v618_v18, %v622_v21  ;;  %v625_v59 = vld [vmem:[#allocation5 + $0xf90] sm:$0xff] }
 0x461   :  { %10592 = vmatprep.subr.bf16.mxu0 %v14186_v29  ;;  %11084 = vmatprep.subr.bf16.mxu1 %v14188_v30  ;;  %v629_v29 = vld [vmem:[#allocation5 + $0xfb0] sm:$0xff]  ;;  %v626_v30 = vld [vmem:[#allocation5 + $0xf98] sm:$0xff] }
 0x462   :  { %v14234_v15 = vcombine.high %v625_v59, %v629_v29  ;;  %v14233_v37 = vcombine.low %v625_v59, %v629_v29  ;;  %v14235_v40 = vcombine.low %v626_v30, %v630_v31  ;;  %v670_v59 = vld [vmem:[#allocation5 + $0x10f8] sm:$0xff] }
 0x464   :  { %10593 = vmatpush1.bf16.msra.mxu0 %v14185_v25  ;;  %11085 = vmatpush1.bf16.msra.mxu1 %v14187_v35  ;;  %v14236_v25 = vcombine.high %v626_v30, %v630_v31  ;;  %v633_v35 = vld [vmem:[#allocation5 + $0xfd0] sm:$0xff] }
 0x465   :  { %10594 = vmatprep.subr.bf16.mxu0 %v14194_v48  ;;  %11086 = vmatprep.subr.bf16.mxu1 %v14196_v12  ;;  %v637_v48 = vld [vmem:[#allocation5 + $0xff0] sm:$0xff]  ;;  %v634_v12 = vld [vmem:[#allocation5 + $0xfd8] sm:$0xff] }
 0x466   :  { %v14242_v41 = vcombine.high %v633_v35, %v637_v48  ;;  %v14241_v47 = vcombine.low %v633_v35, %v637_v48  ;;  %v14243_v53 = vcombine.low %v634_v12, %v638_v36 }
 0x468   :  { %10595 = vmatpush1.bf16.msra.mxu0 %v14193_v42  ;;  %11087 = vmatpush1.bf16.msra.mxu1 %v14195_v57  ;;  %v14244_v42 = vcombine.high %v634_v12, %v638_v36  ;;  %v641_v57 = vld [vmem:[#allocation5 + $0x1010] sm:$0xff] }
 0x469   :  { %10596 = vmatprep.subr.bf16.mxu0 %v14202_v43  ;;  %11088 = vmatprep.subr.bf16.mxu1 %v14204_v34  ;;  %v645_v43 = vld [vmem:[#allocation5 + $0x1030] sm:$0xff]  ;;  %v642_v34 = vld [vmem:[#allocation5 + $0x1018] sm:$0xff] }
 0x46a   :  { %v14250_v52 = vcombine.high %v641_v57, %v645_v43  ;;  %v14249_v6 = vcombine.low %v641_v57, %v645_v43  ;;  %v14251_v7 = vcombine.low %v642_v34, %v646_v45  ;;  %v681_v36 = vld [vmem:[#allocation5 + $0x1150] sm:$0xff] }
 0x46c   :  { %10597 = vmatpush1.bf16.msra.mxu0 %v14201_v56  ;;  %11089 = vmatpush1.bf16.msra.mxu1 %v14203_v19  ;;  %v14252_v56 = vcombine.high %v642_v34, %v646_v45  ;;  %v649_v19 = vld [vmem:[#allocation5 + $0x1050] sm:$0xff] }
 0x46d   :  { %10598 = vmatprep.subr.bf16.mxu0 %v14210_v54  ;;  %11090 = vmatprep.subr.bf16.mxu1 %v14212_v63  ;;  %v653_v54 = vld [vmem:[#allocation5 + $0x1070] sm:$0xff]  ;;  %v650_v63 = vld [vmem:[#allocation5 + $0x1058] sm:$0xff] }
 0x46e   :  { %v14258_v9 = vcombine.high %v649_v19, %v653_v54  ;;  %v14257_v58 = vcombine.low %v649_v19, %v653_v54  ;;  %v14259_v18 = vcombine.low %v650_v63, %v654_v3  ;;  %v689_v45 = vld [vmem:[#allocation5 + $0x1190] sm:$0xff] }
 0x470   :  { %10599 = vmatpush1.bf16.msra.mxu0 %v14209_v23  ;;  %11091 = vmatpush1.bf16.msra.mxu1 %v14211_v11  ;;  %v14260_v23 = vcombine.high %v650_v63, %v654_v3  ;;  %v657_v11 = vld [vmem:[#allocation5 + $0x1090] sm:$0xff] }
 0x471   :  { %10600 = vmatprep.subr.bf16.mxu0 %v14218_v13  ;;  %11092 = vmatprep.subr.bf16.mxu1 %v14220_v14  ;;  %v661_v13 = vld [vmem:[#allocation5 + $0x10b0] sm:$0xff]  ;;  %v658_v14 = vld [vmem:[#allocation5 + $0x1098] sm:$0xff] }
 0x472   :  { %v14266_v21 = vcombine.high %v657_v11, %v661_v13  ;;  %v14265_v29 = vcombine.low %v657_v11, %v661_v13  ;;  %v697_v3 = vld [vmem:[#allocation5 + $0x11d0] sm:$0xff] }
 0x474   :  { %10601 = vmatpush1.bf16.msra.mxu0 %v14217_v22  ;;  %11093 = vmatpush1.bf16.msra.mxu1 %v14219_v26  ;;  %v14268_v22 = vcombine.high %v658_v14, %v662_v17  ;;  %v665_v26 = vld [vmem:[#allocation5 + $0x10d0] sm:$0xff] }
 0x475   :  { %10602 = vmatprep.subr.bf16.mxu0 %v14226_v27  ;;  %11094 = vmatprep.subr.bf16.mxu1 %v14228_v39  ;;  %v669_v27 = vld [vmem:[#allocation5 + $0x10f0] sm:$0xff]  ;;  %v666_v39 = vld [vmem:[#allocation5 + $0x10d8] sm:$0xff] }
 0x476   :  { %v14274_v30 = vcombine.high %v665_v26, %v669_v27  ;;  %v14276_v31 = vcombine.high %v666_v39, %v670_v59  ;;  %v14273_v35 = vcombine.low %v665_v26, %v669_v27  ;;  %v14275_v48 = vcombine.low %v666_v39, %v670_v59  ;;  %v713_v59 = vld [vmem:[#allocation5 + $0x1250] sm:$0xff] }
 0x478   :  { %10603 = vmatpush1.bf16.msra.mxu0 %v14225_v49  ;;  %11095 = vmatpush1.bf16.msra.mxu1 %v14227_v33  ;;  %v673_v49 = vld [vmem:[#allocation5 + $0x1110] sm:$0xff] }
 0x479   :  { %10604 = vmatprep.subr.bf16.mxu0 %v14234_v15  ;;  %11096 = vmatprep.subr.bf16.mxu1 %v14236_v25  ;;  %v677_v33 = vld [vmem:[#allocation5 + $0x1130] sm:$0xff]  ;;  %v674_v15 = vld [vmem:[#allocation5 + $0x1118] sm:$0xff] }
 0x47a   :  { %v678_v25 = vld [vmem:[#allocation5 + $0x1138] sm:$0xff]  ;;  %v14282_v12 = vcombine.high %v673_v49, %v677_v33 }
 0x47b   :  { %v14283_v57 = vcombine.low %v674_v15, %v678_v25 }
 0x47c   :  { %10605 = vmatpush1.bf16.msra.mxu0 %v14233_v37  ;;  %11097 = vmatpush1.bf16.msra.mxu1 %v14235_v40  ;;  %v685_v37 = vld [vmem:[#allocation5 + $0x1170] sm:$0xff]  ;;  %v682_v40 = vld [vmem:[#allocation5 + $0x1158] sm:$0xff] }
 0x47d   :  { %10606 = vmatprep.subr.bf16.mxu0 %v14242_v41  ;;  %11098 = vmatprep.subr.bf16.mxu1 %v14244_v42  ;;  %v686_v41 = vld [vmem:[#allocation5 + $0x1178] sm:$0xff]  ;;  %v14281_v42 = vcombine.low %v673_v49, %v677_v33  ;;  %v14290_v43 = vcombine.high %v681_v36, %v685_v37 }
 0x47e   :  { %v14292_v34 = vcombine.high %v682_v40, %v686_v41  ;;  %v14291_v19 = vcombine.low %v682_v40, %v686_v41  ;;  %v729_v41 = vld [vmem:[#allocation5 + $0x12d0] sm:$0xff] }
 0x480   :  { %10607 = vmatpush1.bf16.msra.mxu0 %v14241_v47  ;;  %11099 = vmatpush1.bf16.msra.mxu1 %v14243_v53  ;;  %v693_v47 = vld [vmem:[#allocation5 + $0x11b0] sm:$0xff]  ;;  %v690_v53 = vld [vmem:[#allocation5 + $0x1198] sm:$0xff] }
 0x481   :  { %10617 = vmatprep.subr.bf16.mxu0 %v14250_v52  ;;  %11109 = vmatprep.subr.bf16.mxu1 %v14252_v56  ;;  %v694_v52 = vld [vmem:[#allocation5 + $0x11b8] sm:$0xff]  ;;  %v14289_v56 = vcombine.low %v681_v36, %v685_v37  ;;  %v14298_v54 = vcombine.high %v689_v45, %v693_v47 }
 0x482   :  { %v14300_v63 = vcombine.high %v690_v53, %v694_v52  ;;  %v14299_v11 = vcombine.low %v690_v53, %v694_v52  ;;  %v737_v52 = vld [vmem:[#allocation5 + $0x1310] sm:$0xff] }
 0x483   :  { %10609 = vmatmul.mubr.bf16.vlgmr.msra.gmra.mrb[4].mxu0 %v16645_v55  ;;  %11101 = vmatmul.mubr.bf16.vlgmr.msra.gmra.mrb[4].mxu1 %v16645_v55  ;;  %v14267_v55 = vcombine.low %v658_v14, %v662_v17  ;;  %v705_v17 = vld [vmem:[#allocation5 + $0x1210] sm:$0xff] }
 0x484   :  { %10618 = vmatpush1.bf16.msra.mxu0 %v14249_v6  ;;  %11110 = vmatpush1.bf16.msra.mxu1 %v14251_v7  ;;  %v701_v6 = vld [vmem:[#allocation5 + $0x11f0] sm:$0xff]  ;;  %v698_v7 = vld [vmem:[#allocation5 + $0x11d8] sm:$0xff] }
 0x485   :  { %10619 = vmatprep.subr.bf16.mxu0 %v14258_v9  ;;  %11111 = vmatprep.subr.bf16.mxu1 %v14260_v23  ;;  %v702_v9 = vld [vmem:[#allocation5 + $0x11f8] sm:$0xff]  ;;  %v14297_v23 = vcombine.low %v689_v45, %v693_v47  ;;  %v14306_v13 = vcombine.high %v697_v3, %v701_v6 }
 0x486   :  { %10649 = vmatprep.mubr.bf16.mxu0 %v16651_v2  ;;  %11141 = vmatprep.mubr.bf16.mxu1 %v16651_v2  ;;  %v14284_v2 = vcombine.high %v674_v15, %v678_v25  ;;  %v14308_v14 = vcombine.high %v698_v7, %v702_v9  ;;  %v14307_v26 = vcombine.low %v698_v7, %v702_v9  ;;  %v721_v25 = vld [vmem:[#allocation5 + $0x1290] sm:$0xff] }
 0x487   :  { %v745_v9 = vld [vmem:[#allocation5 + $0x1350] sm:$0xff] }
 0x488   :  { %10620 = vmatpush1.bf16.msra.mxu0 %v14257_v58  ;;  %11112 = vmatpush1.bf16.msra.mxu1 %v14259_v18  ;;  %v709_v58 = vld [vmem:[#allocation5 + $0x1230] sm:$0xff]  ;;  %v706_v18 = vld [vmem:[#allocation5 + $0x1218] sm:$0xff] }
 0x489   :  { %10621 = vmatprep.subr.bf16.mxu0 %v14266_v21  ;;  %11113 = vmatprep.subr.bf16.mxu1 %v14268_v22  ;;  %v710_v21 = vld [vmem:[#allocation5 + $0x1238] sm:$0xff]  ;;  %v14305_v22 = vcombine.low %v697_v3, %v701_v6  ;;  %v14314_v27 = vcombine.high %v705_v17, %v709_v58 }
 0x48a   :  { %v14316_v39 = vcombine.high %v706_v18, %v710_v21  ;;  %v14315_v49 = vcombine.low %v706_v18, %v710_v21  ;;  %v753_v21 = vld [vmem:[#allocation5 + $0x1390] sm:$0xff] }
 0x48c   :  { %10622 = vmatpush1.bf16.msra.mxu0 %v14265_v29  ;;  %11114 = vmatpush1.bf16.msra.mxu1 %v14267_v55  ;;  %v717_v29 = vld [vmem:[#allocation5 + $0x1270] sm:$0xff]  ;;  %v714_v55 = vld [vmem:[#allocation5 + $0x1258] sm:$0xff] }
 0x48d   :  { %10623 = vmatprep.subr.bf16.mxu0 %v14274_v30  ;;  %11115 = vmatprep.subr.bf16.mxu1 %v14276_v31  ;;  %v718_v30 = vld [vmem:[#allocation5 + $0x1278] sm:$0xff]  ;;  %v14313_v31 = vcombine.low %v705_v17, %v709_v58  ;;  %v14322_v33 = vcombine.high %v713_v59, %v717_v29 }
 0x48e   :  { %v14324_v15 = vcombine.high %v714_v55, %v718_v30  ;;  %v14323_v36 = vcombine.low %v714_v55, %v718_v30  ;;  %v761_v30 = vld [vmem:[#allocation5 + $0x13d0] sm:$0xff] }
 0x490   :  { %10624 = vmatpush1.bf16.msra.mxu0 %v14273_v35  ;;  %11116 = vmatpush1.bf16.msra.mxu1 %v14275_v48  ;;  %v725_v35 = vld [vmem:[#allocation5 + $0x12b0] sm:$0xff]  ;;  %v722_v48 = vld [vmem:[#allocation5 + $0x1298] sm:$0xff] }
 0x491   :  { %10625 = vmatprep.subr.bf16.mxu0 %v14282_v12  ;;  %11117 = vmatprep.subr.bf16.mxu1 %v14284_v2  ;;  %v726_v12 = vld [vmem:[#allocation5 + $0x12b8] sm:$0xff]  ;;  %v14321_v2 = vcombine.low %v713_v59, %v717_v29  ;;  %v14330_v37 = vcombine.high %v721_v25, %v725_v35 }
 0x492   :  { %v14332_v40 = vcombine.high %v722_v48, %v726_v12  ;;  %v14331_v45 = vcombine.low %v722_v48, %v726_v12  ;;  %v769_v12 = vld [vmem:[#allocation5 + $0x1410] sm:$0xff] }
 0x494   :  { %10626 = vmatpush1.bf16.msra.mxu0 %v14281_v42  ;;  %11118 = vmatpush1.bf16.msra.mxu1 %v14283_v57  ;;  %v733_v42 = vld [vmem:[#allocation5 + $0x12f0] sm:$0xff]  ;;  %v730_v57 = vld [vmem:[#allocation5 + $0x12d8] sm:$0xff] }
 0x495   :  { %10627 = vmatprep.subr.bf16.mxu0 %v14290_v43  ;;  %11119 = vmatprep.subr.bf16.mxu1 %v14292_v34  ;;  %v734_v43 = vld [vmem:[#allocation5 + $0x12f8] sm:$0xff]  ;;  %v14329_v34 = vcombine.low %v721_v25, %v725_v35  ;;  %v14338_v47 = vcombine.high %v729_v41, %v733_v42 }
 0x496   :  { %v14340_v53 = vcombine.high %v730_v57, %v734_v43  ;;  %v14339_v3 = vcombine.low %v730_v57, %v734_v43  ;;  %v777_v43 = vld [vmem:[#allocation5 + $0x1450] sm:$0xff] }
 0x498   :  { %10628 = vmatpush1.bf16.msra.mxu0 %v14289_v56  ;;  %11120 = vmatpush1.bf16.msra.mxu1 %v14291_v19  ;;  %v741_v56 = vld [vmem:[#allocation5 + $0x1330] sm:$0xff]  ;;  %v738_v19 = vld [vmem:[#allocation5 + $0x1318] sm:$0xff] }
 0x499   :  { %10629 = vmatprep.subr.bf16.mxu0 %v14298_v54  ;;  %11121 = vmatprep.subr.bf16.mxu1 %v14300_v63  ;;  %v742_v54 = vld [vmem:[#allocation5 + $0x1338] sm:$0xff]  ;;  %v14337_v63 = vcombine.low %v729_v41, %v733_v42  ;;  %v14346_v6 = vcombine.high %v737_v52, %v741_v56 }
 0x49a   :  { %v14348_v7 = vcombine.high %v738_v19, %v742_v54  ;;  %v14347_v17 = vcombine.low %v738_v19, %v742_v54  ;;  %v785_v54 = vld [vmem:[#allocation5 + $0x1490] sm:$0xff] }
 0x49c   :  { %10630 = vmatpush1.bf16.msra.mxu0 %v14297_v23  ;;  %11122 = vmatpush1.bf16.msra.mxu1 %v14299_v11  ;;  %v749_v23 = vld [vmem:[#allocation5 + $0x1370] sm:$0xff]  ;;  %v746_v11 = vld [vmem:[#allocation5 + $0x1358] sm:$0xff] }
 0x49d   :  { %10631 = vmatprep.subr.bf16.mxu0 %v14306_v13  ;;  %11123 = vmatprep.subr.bf16.mxu1 %v14308_v14  ;;  %v750_v13 = vld [vmem:[#allocation5 + $0x1378] sm:$0xff]  ;;  %v14345_v14 = vcombine.low %v737_v52, %v741_v56  ;;  %v14354_v58 = vcombine.high %v745_v9, %v749_v23 }
 0x49e   :  { %v14356_v18 = vcombine.high %v746_v11, %v750_v13  ;;  %v14355_v59 = vcombine.low %v746_v11, %v750_v13  ;;  %v793_v13 = vld [vmem:[#allocation5 + $0x14d0] sm:$0xff] }
 0x4a0   :  { %10632 = vmatpush1.bf16.msra.mxu0 %v14305_v22  ;;  %11124 = vmatpush1.bf16.msra.mxu1 %v14307_v26  ;;  %v757_v22 = vld [vmem:[#allocation5 + $0x13b0] sm:$0xff]  ;;  %v754_v26 = vld [vmem:[#allocation5 + $0x1398] sm:$0xff] }
 0x4a1   :  { %10633 = vmatprep.subr.bf16.mxu0 %v14314_v27  ;;  %11125 = vmatprep.subr.bf16.mxu1 %v14316_v39  ;;  %v758_v27 = vld [vmem:[#allocation5 + $0x13b8] sm:$0xff]  ;;  %v14353_v39 = vcombine.low %v745_v9, %v749_v23  ;;  %v14362_v29 = vcombine.high %v753_v21, %v757_v22 }
 0x4a2   :  { %v14364_v55 = vcombine.high %v754_v26, %v758_v27  ;;  %v14363_v25 = vcombine.low %v754_v26, %v758_v27  ;;  %v801_v26 = vld [vmem:[#allocation5 + $0x1510] sm:$0xff] }
 0x4a3   :  { %v805_v27 = vld [vmem:[#allocation5 + $0x1530] sm:$0xff] }
 0x4a4   :  { %10634 = vmatpush1.bf16.msra.mxu0 %v14313_v31  ;;  %11126 = vmatpush1.bf16.msra.mxu1 %v14315_v49  ;;  %v765_v31 = vld [vmem:[#allocation5 + $0x13f0] sm:$0xff]  ;;  %v762_v49 = vld [vmem:[#allocation5 + $0x13d8] sm:$0xff] }
 0x4a5   :  { %10635 = vmatprep.subr.bf16.mxu0 %v14322_v33  ;;  %11127 = vmatprep.subr.bf16.mxu1 %v14324_v15  ;;  %v766_v33 = vld [vmem:[#allocation5 + $0x13f8] sm:$0xff]  ;;  %v14361_v15 = vcombine.low %v753_v21, %v757_v22  ;;  %v14370_v35 = vcombine.high %v761_v30, %v765_v31 }
 0x4a6   :  { %v14372_v48 = vcombine.high %v762_v49, %v766_v33  ;;  %v14371_v41 = vcombine.low %v762_v49, %v766_v33  ;;  %v813_v49 = vld [vmem:[#allocation5 + $0x1570] sm:$0xff]  ;;  %v810_v33 = vld [vmem:[#allocation5 + $0x1558] sm:$0xff] }
 0x4a8   :  { %10636 = vmatpush1.bf16.msra.mxu0 %v14321_v2  ;;  %11128 = vmatpush1.bf16.msra.mxu1 %v14323_v36  ;;  %v773_v2 = vld [vmem:[#allocation5 + $0x1430] sm:$0xff]  ;;  %v770_v36 = vld [vmem:[#allocation5 + $0x1418] sm:$0xff] }
 0x4a9   :  { %10637 = vmatprep.subr.bf16.mxu0 %v14330_v37  ;;  %11129 = vmatprep.subr.bf16.mxu1 %v14332_v40  ;;  %v774_v37 = vld [vmem:[#allocation5 + $0x1438] sm:$0xff]  ;;  %v14369_v40 = vcombine.low %v761_v30, %v765_v31  ;;  %v14378_v42 = vcombine.high %v769_v12, %v773_v2  ;;  %v14410_v30 = vcombine.high %v801_v26, %v805_v27  ;;  %v809_v31 = vld [vmem:[#allocation5 + $0x1550] sm:$0xff] }
 0x4aa   :  { %v14380_v57 = vcombine.high %v770_v36, %v774_v37  ;;  %v14379_v52 = vcombine.low %v770_v36, %v774_v37  ;;  %v821_v36 = vld [vmem:[#allocation5 + $0x15b0] sm:$0xff]  ;;  %v818_v37 = vld [vmem:[#allocation5 + $0x1598] sm:$0xff] }
 0x4ac   :  { %10638 = vmatpush1.bf16.msra.mxu0 %v14329_v34  ;;  %11130 = vmatpush1.bf16.msra.mxu1 %v14331_v45  ;;  %v781_v34 = vld [vmem:[#allocation5 + $0x1470] sm:$0xff]  ;;  %v778_v45 = vld [vmem:[#allocation5 + $0x1458] sm:$0xff] }
 0x4ad   :  { %10639 = vmatprep.subr.bf16.mxu0 %v14338_v47  ;;  %11131 = vmatprep.subr.bf16.mxu1 %v14340_v53  ;;  %v782_v47 = vld [vmem:[#allocation5 + $0x1478] sm:$0xff]  ;;  %v14377_v53 = vcombine.low %v769_v12, %v773_v2  ;;  %v14386_v56 = vcombine.high %v777_v43, %v781_v34  ;;  %v817_v2 = vld [vmem:[#allocation5 + $0x1590] sm:$0xff] }
 0x4ae   :  { %v14388_v19 = vcombine.high %v778_v45, %v782_v47  ;;  %v14387_v9 = vcombine.low %v778_v45, %v782_v47  ;;  %v829_v45 = vld [vmem:[#allocation5 + $0x15f0] sm:$0xff]  ;;  %v826_v47 = vld [vmem:[#allocation5 + $0x15d8] sm:$0xff] }
 0x4b0   :  { %10640 = vmatpush1.bf16.msra.mxu0 %v14337_v63  ;;  %11132 = vmatpush1.bf16.msra.mxu1 %v14339_v3  ;;  %v789_v63 = vld [vmem:[#allocation5 + $0x14b0] sm:$0xff]  ;;  %v786_v3 = vld [vmem:[#allocation5 + $0x1498] sm:$0xff] }
 0x4b1   :  { %10641 = vmatprep.subr.bf16.mxu0 %v14346_v6  ;;  %11133 = vmatprep.subr.bf16.mxu1 %v14348_v7  ;;  %v790_v6 = vld [vmem:[#allocation5 + $0x14b8] sm:$0xff]  ;;  %v14385_v7 = vcombine.low %v777_v43, %v781_v34  ;;  %v14394_v23 = vcombine.high %v785_v54, %v789_v63  ;;  %v825_v34 = vld [vmem:[#allocation5 + $0x15d0] sm:$0xff] }
 0x4b2   :  { %v14396_v11 = vcombine.high %v786_v3, %v790_v6 }
 0x4b4   :  { %10642 = vmatpush1.bf16.msra.mxu0 %v14345_v14  ;;  %11134 = vmatpush1.bf16.msra.mxu1 %v14347_v17  ;;  %v797_v14 = vld [vmem:[#allocation5 + $0x14f0] sm:$0xff]  ;;  %v794_v17 = vld [vmem:[#allocation5 + $0x14d8] sm:$0xff] }
 0x4b5   :  { %10643 = vmatprep.subr.bf16.mxu0 %v14354_v58  ;;  %11135 = vmatprep.subr.bf16.mxu1 %v14356_v18  ;;  %v798_v58 = vld [vmem:[#allocation5 + $0x14f8] sm:$0xff]  ;;  %v14393_v18 = vcombine.low %v785_v54, %v789_v63  ;;  %v14402_v21 = vcombine.high %v793_v13, %v797_v14  ;;  %v833_v63 = vld [vmem:[#allocation5 + $0x1610] sm:$0xff] }
 0x4b6   :  { %v14404_v22 = vcombine.high %v794_v17, %v798_v58 }
 0x4b8   :  { %10644 = vmatpush1.bf16.msra.mxu0 %v14353_v39  ;;  %11136 = vmatpush1.bf16.msra.mxu1 %v14355_v59  ;;  %v802_v39 = vld [vmem:[#allocation5 + $0x1518] sm:$0xff] }
 0x4b9   :  { %10645 = vmatprep.subr.bf16.mxu0 %v14362_v29  ;;  %11137 = vmatprep.subr.bf16.mxu1 %v14364_v55  ;;  %v806_v59 = vld [vmem:[#allocation5 + $0x1538] sm:$0xff]  ;;  %v14401_v29 = vcombine.low %v793_v13, %v797_v14  ;;  %v14403_v55 = vcombine.low %v794_v17, %v798_v58  ;;  %v841_v14 = vld [vmem:[#allocation5 + $0x1650] sm:$0xff] }
 0x4ba   :  { %v845_v17 = vld [vmem:[#allocation5 + $0x1670] sm:$0xff]  ;;  %v842_v58 = vld [vmem:[#allocation5 + $0x1658] sm:$0xff] }
 0x4bc   :  { %10646 = vmatpush1.bf16.msra.mxu0 %v14361_v15  ;;  %11138 = vmatpush1.bf16.msra.mxu1 %v14363_v25  ;;  %v814_v15 = vld [vmem:[#allocation5 + $0x1578] sm:$0xff]  ;;  %v14409_v25 = vcombine.low %v801_v26, %v805_v27  ;;  %v849_v27 = vld [vmem:[#allocation5 + $0x1690] sm:$0xff] }
 0x4bd   :  { %10647 = vmatprep.subr.bf16.mxu0 %v14370_v35  ;;  %11139 = vmatprep.subr.bf16.mxu1 %v14372_v48  ;;  %v14411_v35 = vcombine.low %v802_v39, %v806_v59  ;;  %v14418_v48 = vcombine.high %v809_v31, %v813_v49  ;;  %v14420_v12 = vcombine.high %v810_v33, %v814_v15 }
 0x4c0   :  { %10648 = vmatpush1.bf16.msra.mxu0 %v14369_v40  ;;  %11140 = vmatpush1.bf16.msra.mxu1 %v14371_v41  ;;  %v822_v40 = vld [vmem:[#allocation5 + $0x15b8] sm:$0xff]  ;;  %v14417_v41 = vcombine.low %v809_v31, %v813_v49  ;;  %v857_v49 = vld [vmem:[#allocation5 + $0x16d0] sm:$0xff] }
 0x4c1   :  { %10658 = vmatprep.subr.bf16.mxu0 %v14378_v42  ;;  %11150 = vmatprep.subr.bf16.mxu1 %v14380_v57  ;;  %v14419_v42 = vcombine.low %v810_v33, %v814_v15  ;;  %v14426_v57 = vcombine.high %v817_v2, %v821_v36  ;;  %v14428_v43 = vcombine.high %v818_v37, %v822_v40  ;;  %v861_v33 = vld [vmem:[#allocation5 + $0x16f0] sm:$0xff]  ;;  %v858_v15 = vld [vmem:[#allocation5 + $0x16d8] sm:$0xff] }
 0x4c3   :  { %10650 = vmatmul.mubr.bf16.vlgmr.msra.gmra.mrb[4].mxu0 %v16659_v16  ;;  %11142 = vmatmul.mubr.bf16.vlgmr.msra.gmra.mrb[4].mxu1 %v16659_v16  ;;  %v14395_v16 = vcombine.low %v786_v3, %v790_v6  ;;  %v837_v3 = vld [vmem:[#allocation5 + $0x1630] sm:$0xff]  ;;  %v834_v6 = vld [vmem:[#allocation5 + $0x1618] sm:$0xff] }
 0x4c4   :  { %10659 = vmatpush1.bf16.msra.mxu0 %v14377_v53  ;;  %11151 = vmatpush1.bf16.msra.mxu1 %v14379_v52  ;;  %v830_v53 = vld [vmem:[#allocation5 + $0x15f8] sm:$0xff]  ;;  %v14425_v52 = vcombine.low %v817_v2, %v821_v36  ;;  %v865_v36 = vld [vmem:[#allocation5 + $0x1710] sm:$0xff] }
 0x4c5   :  { %10660 = vmatprep.subr.bf16.mxu0 %v14386_v56  ;;  %11152 = vmatprep.subr.bf16.mxu1 %v14388_v19  ;;  %v14427_v56 = vcombine.low %v818_v37, %v822_v40  ;;  %v14434_v19 = vcombine.high %v825_v34, %v829_v45  ;;  %v14436_v54 = vcombine.high %v826_v47, %v830_v53  ;;  %v869_v37 = vld [vmem:[#allocation5 + $0x1730] sm:$0xff]  ;;  %v866_v40 = vld [vmem:[#allocation5 + $0x1718] sm:$0xff] }
 0x4c6   :  { %10690 = vmatprep.mubr.bf16.mxu0 %v16665_v28  ;;  %11182 = vmatprep.mubr.bf16.mxu1 %v16665_v28  ;;  %v14412_v28 = vcombine.high %v802_v39, %v806_v59  ;;  %v853_v39 = vld [vmem:[#allocation5 + $0x16b0] sm:$0xff]  ;;  %v850_v59 = vld [vmem:[#allocation5 + $0x1698] sm:$0xff] }
 0x4c8   :  { %10661 = vmatpush1.bf16.msra.mxu0 %v14385_v7  ;;  %11153 = vmatpush1.bf16.msra.mxu1 %v14387_v9  ;;  %v838_v7 = vld [vmem:[#allocation5 + $0x1638] sm:$0xff]  ;;  %v14433_v9 = vcombine.low %v825_v34, %v829_v45  ;;  %v873_v45 = vld [vmem:[#allocation5 + $0x1750] sm:$0xff] }
 0x4c9   :  { %10662 = vmatprep.subr.bf16.mxu0 %v14394_v23  ;;  %11154 = vmatprep.subr.bf16.mxu1 %v14396_v11  ;;  %v14435_v23 = vcombine.low %v826_v47, %v830_v53  ;;  %v14442_v11 = vcombine.high %v833_v63, %v837_v3  ;;  %v14444_v13 = vcombine.high %v834_v6, %v838_v7  ;;  %v877_v47 = vld [vmem:[#allocation5 + $0x1770] sm:$0xff]  ;;  %v874_v53 = vld [vmem:[#allocation5 + $0x1758] sm:$0xff] }
 0x4cc   :  { %10663 = vmatpush1.bf16.msra.mxu0 %v14393_v18  ;;  %11155 = vmatpush1.bf16.msra.mxu1 %v14395_v16  ;;  %v846_v18 = vld [vmem:[#allocation5 + $0x1678] sm:$0xff]  ;;  %v14441_v16 = vcombine.low %v833_v63, %v837_v3  ;;  %v881_v3 = vld [vmem:[#allocation5 + $0x1790] sm:$0xff] }
 0x4cd   :  { %10664 = vmatprep.subr.bf16.mxu0 %v14402_v21  ;;  %11156 = vmatprep.subr.bf16.mxu1 %v14404_v22  ;;  %v14443_v21 = vcombine.low %v834_v6, %v838_v7  ;;  %v14450_v22 = vcombine.high %v841_v14, %v845_v17  ;;  %v14452_v26 = vcombine.high %v842_v58, %v846_v18  ;;  %v885_v6 = vld [vmem:[#allocation5 + $0x17b0] sm:$0xff]  ;;  %v882_v7 = vld [vmem:[#allocation5 + $0x1798] sm:$0xff] }
 0x4d0   :  { %10665 = vmatpush1.bf16.msra.mxu0 %v14401_v29  ;;  %11157 = vmatpush1.bf16.msra.mxu1 %v14403_v55  ;;  %v854_v29 = vld [vmem:[#allocation5 + $0x16b8] sm:$0xff]  ;;  %v14449_v55 = vcombine.low %v841_v14, %v845_v17  ;;  %v889_v17 = vld [vmem:[#allocation5 + $0x17d0] sm:$0xff] }
 0x4d1   :  { %10666 = vmatprep.subr.bf16.mxu0 %v14410_v30  ;;  %11158 = vmatprep.subr.bf16.mxu1 %v14412_v28  ;;  %v14451_v30 = vcombine.low %v842_v58, %v846_v18  ;;  %v14458_v28 = vcombine.high %v849_v27, %v853_v39  ;;  %v14460_v31 = vcombine.high %v850_v59, %v854_v29  ;;  %v893_v58 = vld [vmem:[#allocation5 + $0x17f0] sm:$0xff]  ;;  %v890_v18 = vld [vmem:[#allocation5 + $0x17d8] sm:$0xff] }
 0x4d4   :  { %10667 = vmatpush1.bf16.msra.mxu0 %v14409_v25  ;;  %11159 = vmatpush1.bf16.msra.mxu1 %v14411_v35  ;;  %v862_v25 = vld [vmem:[#allocation5 + $0x16f8] sm:$0xff]  ;;  %v14457_v35 = vcombine.low %v849_v27, %v853_v39  ;;  %v897_v39 = vld [vmem:[#allocation5 + $0x1810] sm:$0xff] }
 0x4d5   :  { %10668 = vmatprep.subr.bf16.mxu0 %v14418_v48  ;;  %11160 = vmatprep.subr.bf16.mxu1 %v14420_v12  ;;  %v14459_v48 = vcombine.low %v850_v59, %v854_v29  ;;  %v14466_v12 = vcombine.high %v857_v49, %v861_v33  ;;  %v14468_v2 = vcombine.high %v858_v15, %v862_v25  ;;  %v901_v59 = vld [vmem:[#allocation5 + $0x1830] sm:$0xff]  ;;  %v898_v29 = vld [vmem:[#allocation5 + $0x1818] sm:$0xff] }
 0x4d8   :  { %10669 = vmatpush1.bf16.msra.mxu0 %v14417_v41  ;;  %11161 = vmatpush1.bf16.msra.mxu1 %v14419_v42  ;;  %v870_v41 = vld [vmem:[#allocation5 + $0x1738] sm:$0xff]  ;;  %v14465_v42 = vcombine.low %v857_v49, %v861_v33  ;;  %v905_v33 = vld [vmem:[#allocation5 + $0x1850] sm:$0xff] }
 0x4d9   :  { %10670 = vmatprep.subr.bf16.mxu0 %v14426_v57  ;;  %11162 = vmatprep.subr.bf16.mxu1 %v14428_v43  ;;  %v14467_v57 = vcombine.low %v858_v15, %v862_v25  ;;  %v14474_v43 = vcombine.high %v865_v36, %v869_v37  ;;  %v14476_v34 = vcombine.high %v866_v40, %v870_v41  ;;  %v909_v15 = vld [vmem:[#allocation5 + $0x1870] sm:$0xff]  ;;  %v906_v25 = vld [vmem:[#allocation5 + $0x1858] sm:$0xff] }
 0x4dc   :  { %10671 = vmatpush1.bf16.msra.mxu0 %v14425_v52  ;;  %11163 = vmatpush1.bf16.msra.mxu1 %v14427_v56  ;;  %v878_v52 = vld [vmem:[#allocation5 + $0x1778] sm:$0xff]  ;;  %v14473_v56 = vcombine.low %v865_v36, %v869_v37  ;;  %v913_v37 = vld [vmem:[#allocation5 + $0x1890] sm:$0xff] }
 0x4dd   :  { %10672 = vmatprep.subr.bf16.mxu0 %v14434_v19  ;;  %11164 = vmatprep.subr.bf16.mxu1 %v14436_v54  ;;  %v14475_v19 = vcombine.low %v866_v40, %v870_v41  ;;  %v14482_v54 = vcombine.high %v873_v45, %v877_v47  ;;  %v14484_v63 = vcombine.high %v874_v53, %v878_v52  ;;  %v917_v40 = vld [vmem:[#allocation5 + $0x18b0] sm:$0xff]  ;;  %v914_v41 = vld [vmem:[#allocation5 + $0x1898] sm:$0xff] }
 0x4e0   :  { %10673 = vmatpush1.bf16.msra.mxu0 %v14433_v9  ;;  %11165 = vmatpush1.bf16.msra.mxu1 %v14435_v23  ;;  %v886_v9 = vld [vmem:[#allocation5 + $0x17b8] sm:$0xff]  ;;  %v14481_v23 = vcombine.low %v873_v45, %v877_v47  ;;  %v921_v47 = vld [vmem:[#allocation5 + $0x18d0] sm:$0xff] }
 0x4e1   :  { %10674 = vmatprep.subr.bf16.mxu0 %v14442_v11  ;;  %11166 = vmatprep.subr.bf16.mxu1 %v14444_v13  ;;  %v14483_v11 = vcombine.low %v874_v53, %v878_v52  ;;  %v14490_v13 = vcombine.high %v881_v3, %v885_v6  ;;  %v14492_v14 = vcombine.high %v882_v7, %v886_v9  ;;  %v925_v53 = vld [vmem:[#allocation5 + $0x18f0] sm:$0xff]  ;;  %v922_v52 = vld [vmem:[#allocation5 + $0x18d8] sm:$0xff] }
 0x4e4   :  { %10675 = vmatpush1.bf16.msra.mxu0 %v14441_v16  ;;  %11167 = vmatpush1.bf16.msra.mxu1 %v14443_v21  ;;  %v894_v16 = vld [vmem:[#allocation5 + $0x17f8] sm:$0xff]  ;;  %v14489_v21 = vcombine.low %v881_v3, %v885_v6  ;;  %v929_v3 = vld [vmem:[#allocation5 + $0x1910] sm:$0xff] }
 0x4e5   :  { %10676 = vmatprep.subr.bf16.mxu0 %v14450_v22  ;;  %11168 = vmatprep.subr.bf16.mxu1 %v14452_v26  ;;  %v14491_v22 = vcombine.low %v882_v7, %v886_v9  ;;  %v14498_v26 = vcombine.high %v889_v17, %v893_v58  ;;  %v14500_v27 = vcombine.high %v890_v18, %v894_v16  ;;  %v933_v6 = vld [vmem:[#allocation5 + $0x1930] sm:$0xff]  ;;  %v930_v7 = vld [vmem:[#allocation5 + $0x1918] sm:$0xff] }
 0x4e6   :  { %v934_v9 = vld [vmem:[#allocation5 + $0x1938] sm:$0xff] }
 0x4e8   :  { %10677 = vmatpush1.bf16.msra.mxu0 %v14449_v55  ;;  %11169 = vmatpush1.bf16.msra.mxu1 %v14451_v30  ;;  %v902_v55 = vld [vmem:[#allocation5 + $0x1838] sm:$0xff]  ;;  %v14497_v30 = vcombine.low %v889_v17, %v893_v58  ;;  %v941_v17 = vld [vmem:[#allocation5 + $0x1970] sm:$0xff] }
 0x4e9   :  { %10678 = vmatprep.subr.bf16.mxu0 %v14458_v28  ;;  %11170 = vmatprep.subr.bf16.mxu1 %v14460_v31  ;;  %v14499_v28 = vcombine.low %v890_v18, %v894_v16  ;;  %v14506_v31 = vcombine.high %v897_v39, %v901_v59  ;;  %v14508_v49 = vcombine.high %v898_v29, %v902_v55  ;;  %v938_v58 = vld [vmem:[#allocation5 + $0x1958] sm:$0xff] }
 0x4ea   :  { %v942_v18 = vld [vmem:[#allocation5 + $0x1978] sm:$0xff]  ;;  %v14537_v16 = vcombine.low %v929_v3, %v933_v6 }
 0x4ec   :  { %10679 = vmatpush1.bf16.msra.mxu0 %v14457_v35  ;;  %11171 = vmatpush1.bf16.msra.mxu1 %v14459_v48  ;;  %v910_v35 = vld [vmem:[#allocation5 + $0x1878] sm:$0xff]  ;;  %v14505_v48 = vcombine.low %v897_v39, %v901_v59  ;;  %v949_v39 = vld [vmem:[#allocation5 + $0x19b0] sm:$0xff] }
 0x4ed   :  { %10680 = vmatprep.subr.bf16.mxu0 %v14466_v12  ;;  %11172 = vmatprep.subr.bf16.mxu1 %v14468_v2  ;;  %v14507_v12 = vcombine.low %v898_v29, %v902_v55  ;;  %v14514_v2 = vcombine.high %v905_v33, %v909_v15  ;;  %v14516_v36 = vcombine.high %v906_v25, %v910_v35  ;;  %v946_v59 = vld [vmem:[#allocation5 + $0x1998] sm:$0xff] }
 0x4ee   :  { %v950_v29 = vld [vmem:[#allocation5 + $0x19b8] sm:$0xff] }
 0x4f0   :  { %10681 = vmatpush1.bf16.msra.mxu0 %v14465_v42  ;;  %11173 = vmatpush1.bf16.msra.mxu1 %v14467_v57  ;;  %v918_v42 = vld [vmem:[#allocation5 + $0x18b8] sm:$0xff]  ;;  %v14513_v57 = vcombine.low %v905_v33, %v909_v15  ;;  %v957_v33 = vld [vmem:[#allocation5 + $0x19f0] sm:$0xff] }
 0x4f1   :  { %10682 = vmatprep.subr.bf16.mxu0 %v14474_v43  ;;  %11174 = vmatprep.subr.bf16.mxu1 %v14476_v34  ;;  %v14515_v43 = vcombine.low %v906_v25, %v910_v35  ;;  %v14522_v34 = vcombine.high %v913_v37, %v917_v40  ;;  %v14524_v45 = vcombine.high %v914_v41, %v918_v42  ;;  %v954_v15 = vld [vmem:[#allocation5 + $0x19d8] sm:$0xff] }
 0x4f2   :  { %v958_v25 = vld [vmem:[#allocation5 + $0x19f8] sm:$0xff] }
 0x4f4   :  { %10683 = vmatpush1.bf16.msra.mxu0 %v14473_v56  ;;  %11175 = vmatpush1.bf16.msra.mxu1 %v14475_v19  ;;  %v926_v56 = vld [vmem:[#allocation5 + $0x18f8] sm:$0xff]  ;;  %v14521_v19 = vcombine.low %v913_v37, %v917_v40  ;;  %v965_v37 = vld [vmem:[#allocation5 + $0x1a30] sm:$0xff] }
 0x4f5   :  { %10684 = vmatprep.subr.bf16.mxu0 %v14482_v54  ;;  %11176 = vmatprep.subr.bf16.mxu1 %v14484_v63  ;;  %v14530_v54 = vcombine.high %v921_v47, %v925_v53  ;;  %v14532_v63 = vcombine.high %v922_v52, %v926_v56  ;;  %v962_v40 = vld [vmem:[#allocation5 + $0x1a18] sm:$0xff] }
 0x4f8   :  { %10685 = vmatpush1.bf16.msra.mxu0 %v14481_v23  ;;  %11177 = vmatpush1.bf16.msra.mxu1 %v14483_v11  ;;  %v14529_v23 = vcombine.low %v921_v47, %v925_v53  ;;  %v14531_v11 = vcombine.low %v922_v52, %v926_v56  ;;  %v973_v47 = vld [vmem:[#allocation5 + $0x1a70] sm:$0xff]  ;;  %v970_v53 = vld [vmem:[#allocation5 + $0x1a58] sm:$0xff] }
 0x4f9   :  { %10686 = vmatprep.subr.bf16.mxu0 %v14490_v13  ;;  %11178 = vmatprep.subr.bf16.mxu1 %v14492_v14  ;;  %v14538_v13 = vcombine.high %v929_v3, %v933_v6  ;;  %v937_v14 = vld [vmem:[#allocation5 + $0x1950] sm:$0xff]  ;;  %v974_v52 = vld [vmem:[#allocation5 + $0x1a78] sm:$0xff] }
 0x4fa   :  { %v14545_v55 = vcombine.low %v937_v14, %v941_v17  ;;  %v981_v3 = vld [vmem:[#allocation5 + $0x1ab0] sm:$0xff]  ;;  %v978_v6 = vld [vmem:[#allocation5 + $0x1a98] sm:$0xff] }
 0x4fc   :  { %10687 = vmatpush1.bf16.msra.mxu0 %v14489_v21  ;;  %11179 = vmatpush1.bf16.msra.mxu1 %v14491_v22  ;;  %v14539_v21 = vcombine.low %v930_v7, %v934_v9  ;;  %v14546_v22 = vcombine.high %v937_v14, %v941_v17  ;;  %v989_v14 = vld [vmem:[#allocation5 + $0x1af0] sm:$0xff]  ;;  %v986_v17 = vld [vmem:[#allocation5 + $0x1ad8] sm:$0xff] }
 0x4fd   :  { %10688 = vmatprep.subr.bf16.mxu0 %v14498_v26  ;;  %11180 = vmatprep.subr.bf16.mxu1 %v14500_v27  ;;  %v14548_v26 = vcombine.high %v938_v58, %v942_v18  ;;  %v945_v27 = vld [vmem:[#allocation5 + $0x1990] sm:$0xff] }
 0x4fe   :  { %v14553_v35 = vcombine.low %v945_v27, %v949_v39 }
 0x500   :  { %10689 = vmatpush1.bf16.msra.mxu0 %v14497_v30  ;;  %11181 = vmatpush1.bf16.msra.mxu1 %v14499_v28  ;;  %v14547_v30 = vcombine.low %v938_v58, %v942_v18  ;;  %v14554_v28 = vcombine.high %v945_v27, %v949_v39  ;;  %v990_v58 = vld [vmem:[#allocation5 + $0x1af8] sm:$0xff]  ;;  %v997_v27 = vld [vmem:[#allocation5 + $0x1b30] sm:$0xff] }
 0x501   :  { %10699 = vmatprep.subr.bf16.mxu0 %v14506_v31  ;;  %11191 = vmatprep.subr.bf16.mxu1 %v14508_v49  ;;  %v14556_v31 = vcombine.high %v946_v59, %v950_v29  ;;  %v953_v49 = vld [vmem:[#allocation5 + $0x19d0] sm:$0xff]  ;;  %v994_v39 = vld [vmem:[#allocation5 + $0x1b18] sm:$0xff] }
 0x503   :  { %10691 = vmatmul.mubr.bf16.vlgmr.msra.gmra.mrb[4].mxu0 %v16673_v46  ;;  %11183 = vmatmul.mubr.bf16.vlgmr.msra.gmra.mrb[4].mxu1 %v16673_v46  ;;  %v14523_v46 = vcombine.low %v914_v41, %v918_v42  ;;  %v966_v41 = vld [vmem:[#allocation5 + $0x1a38] sm:$0xff]  ;;  %v14561_v42 = vcombine.low %v953_v49, %v957_v33 }
 0x504   :  { %10700 = vmatpush1.bf16.msra.mxu0 %v14505_v48  ;;  %11192 = vmatpush1.bf16.msra.mxu1 %v14507_v12  ;;  %v14555_v48 = vcombine.low %v946_v59, %v950_v29  ;;  %v14562_v12 = vcombine.high %v953_v49, %v957_v33  ;;  %v998_v59 = vld [vmem:[#allocation5 + $0x1b38] sm:$0xff]  ;;  %v1005_v49 = vld [vmem:[#allocation5 + $0x1b70] sm:$0xff] }
 0x505   :  { %10701 = vmatprep.subr.bf16.mxu0 %v14514_v2  ;;  %11193 = vmatprep.subr.bf16.mxu1 %v14516_v36  ;;  %v14564_v2 = vcombine.high %v954_v15, %v958_v25  ;;  %v961_v36 = vld [vmem:[#allocation5 + $0x1a10] sm:$0xff]  ;;  %v1002_v33 = vld [vmem:[#allocation5 + $0x1b58] sm:$0xff] }
 0x506   :  { %10731 = vmatprep.mubr.bf16.mxu0 %v16679_v60  ;;  %11223 = vmatprep.mubr.bf16.mxu1 %v16679_v60  ;;  %v14540_v60 = vcombine.high %v930_v7, %v934_v9  ;;  %v14569_v56 = vcombine.low %v961_v36, %v965_v37  ;;  %v982_v7 = vld [vmem:[#allocation5 + $0x1ab8] sm:$0xff] }
 0x508   :  { %10702 = vmatpush1.bf16.msra.mxu0 %v14513_v57  ;;  %11194 = vmatpush1.bf16.msra.mxu1 %v14515_v43  ;;  %v14563_v57 = vcombine.low %v954_v15, %v958_v25  ;;  %v14570_v43 = vcombine.high %v961_v36, %v965_v37  ;;  %v1006_v15 = vld [vmem:[#allocation5 + $0x1b78] sm:$0xff]  ;;  %v1013_v36 = vld [vmem:[#allocation5 + $0x1bb0] sm:$0xff] }
 0x509   :  { %10703 = vmatprep.subr.bf16.mxu0 %v14522_v34  ;;  %11195 = vmatprep.subr.bf16.mxu1 %v14524_v45  ;;  %v14572_v34 = vcombine.high %v962_v40, %v966_v41  ;;  %v969_v45 = vld [vmem:[#allocation5 + $0x1a50] sm:$0xff]  ;;  %v1010_v37 = vld [vmem:[#allocation5 + $0x1b98] sm:$0xff] }
 0x50a   :  { %v14577_v9 = vcombine.low %v969_v45, %v973_v47 }
 0x50c   :  { %10704 = vmatpush1.bf16.msra.mxu0 %v14521_v19  ;;  %11196 = vmatpush1.bf16.msra.mxu1 %v14523_v46  ;;  %v14571_v19 = vcombine.low %v962_v40, %v966_v41  ;;  %v14578_v46 = vcombine.high %v969_v45, %v973_v47  ;;  %v1014_v40 = vld [vmem:[#allocation5 + $0x1bb8] sm:$0xff]  ;;  %v1021_v45 = vld [vmem:[#allocation5 + $0x1bf0] sm:$0xff] }
 0x50d   :  { %10705 = vmatprep.subr.bf16.mxu0 %v14530_v54  ;;  %11197 = vmatprep.subr.bf16.mxu1 %v14532_v63  ;;  %v14580_v54 = vcombine.high %v970_v53, %v974_v52  ;;  %v977_v63 = vld [vmem:[#allocation5 + $0x1a90] sm:$0xff]  ;;  %v1018_v47 = vld [vmem:[#allocation5 + $0x1bd8] sm:$0xff] }
 0x50e   :  { %v14585_v18 = vcombine.low %v977_v63, %v981_v3 }
 0x510   :  { %10706 = vmatpush1.bf16.msra.mxu0 %v14529_v23  ;;  %11198 = vmatpush1.bf16.msra.mxu1 %v14531_v11  ;;  %v14579_v23 = vcombine.low %v970_v53, %v974_v52  ;;  %v14586_v11 = vcombine.high %v977_v63, %v981_v3  ;;  %v1022_v53 = vld [vmem:[#allocation5 + $0x1bf8] sm:$0xff]  ;;  %v1029_v63 = vld [vmem:[#allocation5 + $0x1c30] sm:$0xff] }
 0x511   :  { %10707 = vmatprep.subr.bf16.mxu0 %v14538_v13  ;;  %11199 = vmatprep.subr.bf16.mxu1 %v14540_v60  ;;  %v14588_v13 = vcombine.high %v978_v6, %v982_v7  ;;  %v985_v60 = vld [vmem:[#allocation5 + $0x1ad0] sm:$0xff]  ;;  %v1026_v3 = vld [vmem:[#allocation5 + $0x1c18] sm:$0xff] }
 0x512   :  { %v14593_v29 = vcombine.low %v985_v60, %v989_v14 }
 0x514   :  { %10708 = vmatpush1.bf16.msra.mxu0 %v14537_v16  ;;  %11200 = vmatpush1.bf16.msra.mxu1 %v14539_v21  ;;  %v14587_v16 = vcombine.low %v978_v6, %v982_v7  ;;  %v14594_v21 = vcombine.high %v985_v60, %v989_v14  ;;  %v1030_v6 = vld [vmem:[#allocation5 + $0x1c38] sm:$0xff]  ;;  %v1037_v60 = vld [vmem:[#allocation5 + $0x1c70] sm:$0xff] }
 0x515   :  { %10709 = vmatprep.subr.bf16.mxu0 %v14546_v22  ;;  %11201 = vmatprep.subr.bf16.mxu1 %v14548_v26  ;;  %v14596_v22 = vcombine.high %v986_v17, %v990_v58  ;;  %v993_v26 = vld [vmem:[#allocation5 + $0x1b10] sm:$0xff]  ;;  %v1034_v14 = vld [vmem:[#allocation5 + $0x1c58] sm:$0xff] }
 0x516   :  { %v14601_v25 = vcombine.low %v993_v26, %v997_v27 }
 0x518   :  { %10710 = vmatpush1.bf16.msra.mxu0 %v14545_v55  ;;  %11202 = vmatpush1.bf16.msra.mxu1 %v14547_v30  ;;  %v14595_v55 = vcombine.low %v986_v17, %v990_v58  ;;  %v14602_v30 = vcombine.high %v993_v26, %v997_v27  ;;  %v1038_v17 = vld [vmem:[#allocation5 + $0x1c78] sm:$0xff]  ;;  %v1045_v26 = vld [vmem:[#allocation5 + $0x1cb0] sm:$0xff] }
 0x519   :  { %10711 = vmatprep.subr.bf16.mxu0 %v14554_v28  ;;  %11203 = vmatprep.subr.bf16.mxu1 %v14556_v31  ;;  %v14604_v28 = vcombine.high %v994_v39, %v998_v59  ;;  %v1001_v31 = vld [vmem:[#allocation5 + $0x1b50] sm:$0xff]  ;;  %v1042_v27 = vld [vmem:[#allocation5 + $0x1c98] sm:$0xff] }
 0x51a   :  { %v14609_v41 = vcombine.low %v1001_v31, %v1005_v49 }
 0x51c   :  { %10712 = vmatpush1.bf16.msra.mxu0 %v14553_v35  ;;  %11204 = vmatpush1.bf16.msra.mxu1 %v14555_v48  ;;  %v14603_v35 = vcombine.low %v994_v39, %v998_v59  ;;  %v14610_v48 = vcombine.high %v1001_v31, %v1005_v49  ;;  %v1046_v39 = vld [vmem:[#allocation5 + $0x1cb8] sm:$0xff]  ;;  %v1053_v31 = vld [vmem:[#allocation5 + $0x1cf0] sm:$0xff] }
 0x51d   :  { %10713 = vmatprep.subr.bf16.mxu0 %v14562_v12  ;;  %11205 = vmatprep.subr.bf16.mxu1 %v14564_v2  ;;  %v14612_v12 = vcombine.high %v1002_v33, %v1006_v15  ;;  %v1009_v2 = vld [vmem:[#allocation5 + $0x1b90] sm:$0xff]  ;;  %v1050_v49 = vld [vmem:[#allocation5 + $0x1cd8] sm:$0xff] }
 0x51e   :  { %v14617_v52 = vcombine.low %v1009_v2, %v1013_v36 }
 0x520   :  { %10714 = vmatpush1.bf16.msra.mxu0 %v14561_v42  ;;  %11206 = vmatpush1.bf16.msra.mxu1 %v14563_v57  ;;  %v14611_v42 = vcombine.low %v1002_v33, %v1006_v15  ;;  %v14618_v57 = vcombine.high %v1009_v2, %v1013_v36  ;;  %v1054_v33 = vld [vmem:[#allocation5 + $0x1cf8] sm:$0xff] }
 0x521   :  { %10715 = vmatprep.subr.bf16.mxu0 %v14570_v43  ;;  %11207 = vmatprep.subr.bf16.mxu1 %v14572_v34  ;;  %v14620_v43 = vcombine.high %v1010_v37, %v1014_v40  ;;  %v1017_v34 = vld [vmem:[#allocation5 + $0x1bd0] sm:$0xff]  ;;  %v1058_v2 = vld [vmem:[#allocation5 + $0x1d18] sm:$0xff] }
 0x522   :  { %v14625_v7 = vcombine.low %v1017_v34, %v1021_v45  ;;  %v1062_v36 = vld [vmem:[#allocation5 + $0x1d38] sm:$0xff] }
 0x524   :  { %10716 = vmatpush1.bf16.msra.mxu0 %v14569_v56  ;;  %11208 = vmatpush1.bf16.msra.mxu1 %v14571_v19  ;;  %v14619_v56 = vcombine.low %v1010_v37, %v1014_v40  ;;  %v14626_v19 = vcombine.high %v1017_v34, %v1021_v45  ;;  %v14659_v40 = vcombine.low %v1050_v49, %v1054_v33  ;;  %v1070_v34 = vld [vmem:[#allocation5 + $0x1d78] sm:$0xff] }
 0x525   :  { %10717 = vmatprep.subr.bf16.mxu0 %v14578_v46  ;;  %11209 = vmatprep.subr.bf16.mxu1 %v14580_v54  ;;  %v14628_v46 = vcombine.high %v1018_v47, %v1022_v53  ;;  %v1025_v54 = vld [vmem:[#allocation5 + $0x1c10] sm:$0xff] }
 0x526   :  { %v14633_v58 = vcombine.low %v1025_v54, %v1029_v63 }
 0x528   :  { %10718 = vmatpush1.bf16.msra.mxu0 %v14577_v9  ;;  %11210 = vmatpush1.bf16.msra.mxu1 %v14579_v23  ;;  %v14627_v9 = vcombine.low %v1018_v47, %v1022_v53  ;;  %v14634_v23 = vcombine.high %v1025_v54, %v1029_v63  ;;  %v14667_v47 = vcombine.low %v1058_v2, %v1062_v36  ;;  %v1078_v54 = vld [vmem:[#allocation5 + $0x1db8] sm:$0xff] }
 0x529   :  { %10719 = vmatprep.subr.bf16.mxu0 %v14586_v11  ;;  %11211 = vmatprep.subr.bf16.mxu1 %v14588_v13  ;;  %v14636_v11 = vcombine.high %v1026_v3, %v1030_v6  ;;  %v1033_v13 = vld [vmem:[#allocation5 + $0x1c50] sm:$0xff] }
 0x52a   :  { %v14641_v59 = vcombine.low %v1033_v13, %v1037_v60 }
 0x52c   :  { %10720 = vmatpush1.bf16.msra.mxu0 %v14585_v18  ;;  %11212 = vmatpush1.bf16.msra.mxu1 %v14587_v16  ;;  %v14635_v18 = vcombine.low %v1026_v3, %v1030_v6  ;;  %v14642_v16 = vcombine.high %v1033_v13, %v1037_v60  ;;  %v1086_v13 = vld [vmem:[#allocation5 + $0x1df8] sm:$0xff] }
 0x52d   :  { %10721 = vmatprep.subr.bf16.mxu0 %v14594_v21  ;;  %11213 = vmatprep.subr.bf16.mxu1 %v14596_v22  ;;  %v14644_v21 = vcombine.high %v1034_v14, %v1038_v17  ;;  %v1041_v22 = vld [vmem:[#allocation5 + $0x1c90] sm:$0xff] }
 0x52e   :  { %v14649_v15 = vcombine.low %v1041_v22, %v1045_v26 }
 0x530   :  { %10722 = vmatpush1.bf16.msra.mxu0 %v14593_v29  ;;  %11214 = vmatpush1.bf16.msra.mxu1 %v14595_v55  ;;  %v14643_v29 = vcombine.low %v1034_v14, %v1038_v17  ;;  %v14650_v55 = vcombine.high %v1041_v22, %v1045_v26  ;;  %v1094_v22 = vld [vmem:[#allocation5 + $0x1e38] sm:$0xff] }
 0x531   :  { %10723 = vmatprep.subr.bf16.mxu0 %v14602_v30  ;;  %11215 = vmatprep.subr.bf16.mxu1 %v14604_v28  ;;  %v14652_v30 = vcombine.high %v1042_v27, %v1046_v39  ;;  %v1049_v28 = vld [vmem:[#allocation5 + $0x1cd0] sm:$0xff] }
 0x532   :  { %v14657_v37 = vcombine.low %v1049_v28, %v1053_v31 }
 0x534   :  { %10724 = vmatpush1.bf16.msra.mxu0 %v14601_v25  ;;  %11216 = vmatpush1.bf16.msra.mxu1 %v14603_v35  ;;  %v14658_v25 = vcombine.high %v1049_v28, %v1053_v31  ;;  %v14660_v35 = vcombine.high %v1050_v49, %v1054_v33  ;;  %v1102_v28 = vld [vmem:[#allocation5 + $0x1e78] sm:$0xff] }
 0x535   :  { %10725 = vmatprep.subr.bf16.mxu0 %v14610_v48  ;;  %11217 = vmatprep.subr.bf16.mxu1 %v14612_v12  ;;  %v1057_v48 = vld [vmem:[#allocation5 + $0x1d10] sm:$0xff] }
 0x536   :  { %v1061_v12 = vld [vmem:[#allocation5 + $0x1d30] sm:$0xff] }
 0x537   :  { %v14665_v45 = vcombine.low %v1057_v48, %v1061_v12 }
 0x538   :  { %10726 = vmatpush1.bf16.msra.mxu0 %v14609_v41  ;;  %11218 = vmatpush1.bf16.msra.mxu1 %v14611_v42  ;;  %v14666_v41 = vcombine.high %v1057_v48, %v1061_v12  ;;  %v1065_v42 = vld [vmem:[#allocation5 + $0x1d50] sm:$0xff]  ;;  %v1110_v48 = vld [vmem:[#allocation5 + $0x1eb8] sm:$0xff] }
 0x539   :  { %10727 = vmatprep.subr.bf16.mxu0 %v14618_v57  ;;  %11219 = vmatprep.subr.bf16.mxu1 %v14620_v43  ;;  %v1069_v57 = vld [vmem:[#allocation5 + $0x1d70] sm:$0xff]  ;;  %v1066_v43 = vld [vmem:[#allocation5 + $0x1d58] sm:$0xff] }
 0x53a   :  { %v14674_v53 = vcombine.high %v1065_v42, %v1069_v57  ;;  %v14673_v63 = vcombine.low %v1065_v42, %v1069_v57  ;;  %v14675_v3 = vcombine.low %v1066_v43, %v1070_v34  ;;  %v1118_v42 = vld [vmem:[#allocation5 + $0x1ef8] sm:$0xff] }
 0x53c   :  { %10728 = vmatpush1.bf16.msra.mxu0 %v14617_v52  ;;  %11220 = vmatpush1.bf16.msra.mxu1 %v14619_v56  ;;  %v14676_v52 = vcombine.high %v1066_v43, %v1070_v34  ;;  %v1073_v56 = vld [vmem:[#allocation5 + $0x1d90] sm:$0xff] }
 0x53d   :  { %10729 = vmatprep.subr.bf16.mxu0 %v14626_v19  ;;  %11221 = vmatprep.subr.bf16.mxu1 %v14628_v46  ;;  %v1077_v19 = vld [vmem:[#allocation5 + $0x1db0] sm:$0xff]  ;;  %v1074_v46 = vld [vmem:[#allocation5 + $0x1d98] sm:$0xff] }
 0x53e   :  { %v14682_v6 = vcombine.high %v1073_v56, %v1077_v19  ;;  %v14681_v60 = vcombine.low %v1073_v56, %v1077_v19  ;;  %v14683_v14 = vcombine.low %v1074_v46, %v1078_v54  ;;  %v1126_v56 = vld [vmem:[#allocation5 + $0x1f38] sm:$0xff] }
 0x540   :  { %10730 = vmatpush1.bf16.msra.mxu0 %v14625_v7  ;;  %11222 = vmatpush1.bf16.msra.mxu1 %v14627_v9  ;;  %v14684_v7 = vcombine.high %v1074_v46, %v1078_v54  ;;  %v1081_v9 = vld [vmem:[#allocation5 + $0x1dd0] sm:$0xff] }
 0x541   :  { %10740 = vmatprep.subr.bf16.mxu0 %v14634_v23  ;;  %11232 = vmatprep.subr.bf16.mxu1 %v14636_v11  ;;  %v1085_v23 = vld [vmem:[#allocation5 + $0x1df0] sm:$0xff]  ;;  %v1082_v11 = vld [vmem:[#allocation5 + $0x1dd8] sm:$0xff] }
 0x542   :  { %v14690_v17 = vcombine.high %v1081_v9, %v1085_v23  ;;  %v14689_v26 = vcombine.low %v1081_v9, %v1085_v23  ;;  %v1134_v9 = vld [vmem:[#allocation5 + $0x1f78] sm:$0xff] }
 0x543   :  { %10732 = vmatmul.mubr.bf16.vlgmr.msra.gmra.mrb[4].mxu0 %v16687_v20  ;;  %11224 = vmatmul.mubr.bf16.vlgmr.msra.gmra.mrb[4].mxu1 %v16687_v20  ;;  %v14651_v20 = vcombine.low %v1042_v27, %v1046_v39  ;;  %v14691_v27 = vcombine.low %v1082_v11, %v1086_v13 }
 0x544   :  { %10741 = vmatpush1.bf16.msra.mxu0 %v14633_v58  ;;  %11233 = vmatpush1.bf16.msra.mxu1 %v14635_v18  ;;  %v14692_v58 = vcombine.high %v1082_v11, %v1086_v13  ;;  %v1089_v18 = vld [vmem:[#allocation5 + $0x1e10] sm:$0xff] }
 0x545   :  { %10742 = vmatprep.subr.bf16.mxu0 %v14642_v16  ;;  %11234 = vmatprep.subr.bf16.mxu1 %v14644_v21  ;;  %v1093_v16 = vld [vmem:[#allocation5 + $0x1e30] sm:$0xff]  ;;  %v1090_v21 = vld [vmem:[#allocation5 + $0x1e18] sm:$0xff] }
 0x546   :  { %10772 = vmatprep.mubr.bf16.mxu0 %v16693_v32  ;;  %11264 = vmatprep.mubr.bf16.mxu1 %v16693_v32  ;;  %v14668_v32 = vcombine.high %v1058_v2, %v1062_v36  ;;  %v14698_v39 = vcombine.high %v1089_v18, %v1093_v16  ;;  %v14697_v31 = vcombine.low %v1089_v18, %v1093_v16  ;;  %v1142_v18 = vld [vmem:[#allocation5 + $0x1fb8] sm:$0xff] }
 0x547   :  { %v14699_v49 = vcombine.low %v1090_v21, %v1094_v22 }
 0x548   :  { %10743 = vmatpush1.bf16.msra.mxu0 %v14641_v59  ;;  %11235 = vmatpush1.bf16.msra.mxu1 %v14643_v29  ;;  %v14700_v59 = vcombine.high %v1090_v21, %v1094_v22  ;;  %v1097_v29 = vld [vmem:[#allocation5 + $0x1e50] sm:$0xff] }
 0x549   :  { %10744 = vmatprep.subr.bf16.mxu0 %v14650_v55  ;;  %11236 = vmatprep.subr.bf16.mxu1 %v14652_v30  ;;  %v1101_v55 = vld [vmem:[#allocation5 + $0x1e70] sm:$0xff]  ;;  %v1098_v30 = vld [vmem:[#allocation5 + $0x1e58] sm:$0xff] }
 0x54a   :  { %v14706_v33 = vcombine.high %v1097_v29, %v1101_v55  ;;  %v14705_v12 = vcombine.low %v1097_v29, %v1101_v55  ;;  %v14707_v2 = vcombine.low %v1098_v30, %v1102_v28  ;;  %v1150_v29 = vld [vmem:[#allocation5 + $0x1ff8] sm:$0xff] }
 0x54c   :  { %10745 = vmatpush1.bf16.msra.mxu0 %v14649_v15  ;;  %11237 = vmatpush1.bf16.msra.mxu1 %v14651_v20  ;;  %v14708_v15 = vcombine.high %v1098_v30, %v1102_v28  ;;  %v1105_v20 = vld [vmem:[#allocation5 + $0x1e90] sm:$0xff] }
 0x54d   :  { %10746 = vmatprep.subr.bf16.mxu0 %v14658_v25  ;;  %11238 = vmatprep.subr.bf16.mxu1 %v14660_v35  ;;  %v1109_v25 = vld [vmem:[#allocation5 + $0x1eb0] sm:$0xff]  ;;  %v1106_v35 = vld [vmem:[#allocation5 + $0x1e98] sm:$0xff] }
 0x54e   :  { %v14714_v36 = vcombine.high %v1105_v20, %v1109_v25  ;;  %v14713_v57 = vcombine.low %v1105_v20, %v1109_v25  ;;  %v14715_v43 = vcombine.low %v1106_v35, %v1110_v48  ;;  %v1158_v20 = vld [vmem:[#allocation5 + $0x2038] sm:$0xff] }
 0x550   :  { %10747 = vmatpush1.bf16.msra.mxu0 %v14657_v37  ;;  %11239 = vmatpush1.bf16.msra.mxu1 %v14659_v40  ;;  %v14716_v37 = vcombine.high %v1106_v35, %v1110_v48  ;;  %v1113_v40 = vld [vmem:[#allocation5 + $0x1ed0] sm:$0xff] }
 0x551   :  { %10748 = vmatprep.subr.bf16.mxu0 %v14666_v41  ;;  %11240 = vmatprep.subr.bf16.mxu1 %v14668_v32  ;;  %v1117_v41 = vld [vmem:[#allocation5 + $0x1ef0] sm:$0xff]  ;;  %v1114_v32 = vld [vmem:[#allocation5 + $0x1ed8] sm:$0xff] }
 0x552   :  { %v14722_v34 = vcombine.high %v1113_v40, %v1117_v41  ;;  %v14721_v19 = vcombine.low %v1113_v40, %v1117_v41  ;;  %v14723_v46 = vcombine.low %v1114_v32, %v1118_v42  ;;  %v1166_v40 = vld [vmem:[#allocation5 + $0x2078] sm:$0xff] }
 0x554   :  { %10749 = vmatpush1.bf16.msra.mxu0 %v14665_v45  ;;  %11241 = vmatpush1.bf16.msra.mxu1 %v14667_v47  ;;  %v14724_v45 = vcombine.high %v1114_v32, %v1118_v42  ;;  %v1121_v47 = vld [vmem:[#allocation5 + $0x1f10] sm:$0xff] }
 0x555   :  { %10750 = vmatprep.subr.bf16.mxu0 %v14674_v53  ;;  %11242 = vmatprep.subr.bf16.mxu1 %v14676_v52  ;;  %v1125_v53 = vld [vmem:[#allocation5 + $0x1f30] sm:$0xff]  ;;  %v1122_v52 = vld [vmem:[#allocation5 + $0x1f18] sm:$0xff] }
 0x556   :  { %v14730_v54 = vcombine.high %v1121_v47, %v1125_v53  ;;  %v14729_v23 = vcombine.low %v1121_v47, %v1125_v53  ;;  %v14731_v11 = vcombine.low %v1122_v52, %v1126_v56  ;;  %v1174_v47 = vld [vmem:[#allocation5 + $0x20b8] sm:$0xff] }
 0x558   :  { %10751 = vmatpush1.bf16.msra.mxu0 %v14673_v63  ;;  %11243 = vmatpush1.bf16.msra.mxu1 %v14675_v3  ;;  %v14732_v63 = vcombine.high %v1122_v52, %v1126_v56  ;;  %v1129_v3 = vld [vmem:[#allocation5 + $0x1f50] sm:$0xff] }
 0x559   :  { %10752 = vmatprep.subr.bf16.mxu0 %v14682_v6  ;;  %11244 = vmatprep.subr.bf16.mxu1 %v14684_v7  ;;  %v1133_v6 = vld [vmem:[#allocation5 + $0x1f70] sm:$0xff]  ;;  %v1130_v7 = vld [vmem:[#allocation5 + $0x1f58] sm:$0xff] }
 0x55a   :  { %v14738_v13 = vcombine.high %v1129_v3, %v1133_v6  ;;  %v14737_v16 = vcombine.low %v1129_v3, %v1133_v6  ;;  %v14739_v21 = vcombine.low %v1130_v7, %v1134_v9  ;;  %v1182_v3 = vld [vmem:[#allocation5 + $0x20f8] sm:$0xff] }
 0x55c   :  { %10753 = vmatpush1.bf16.msra.mxu0 %v14681_v60  ;;  %11245 = vmatpush1.bf16.msra.mxu1 %v14683_v14  ;;  %v14740_v60 = vcombine.high %v1130_v7, %v1134_v9  ;;  %v1137_v14 = vld [vmem:[#allocation5 + $0x1f90] sm:$0xff] }
 0x55d   :  { %10754 = vmatprep.subr.bf16.mxu0 %v14690_v17  ;;  %11246 = vmatprep.subr.bf16.mxu1 %v14692_v58  ;;  %v1141_v17 = vld [vmem:[#allocation5 + $0x1fb0] sm:$0xff]  ;;  %v1138_v58 = vld [vmem:[#allocation5 + $0x1f98] sm:$0xff] }
 0x55e   :  { %v14746_v22 = vcombine.high %v1137_v14, %v1141_v17  ;;  %v14745_v55 = vcombine.low %v1137_v14, %v1141_v17  ;;  %v14747_v30 = vcombine.low %v1138_v58, %v1142_v18 }
 0x560   :  { %10755 = vmatpush1.bf16.msra.mxu0 %v14689_v26  ;;  %11247 = vmatpush1.bf16.msra.mxu1 %v14691_v27  ;;  %v14748_v26 = vcombine.high %v1138_v58, %v1142_v18  ;;  %v1145_v27 = vld [vmem:[#allocation5 + $0x1fd0] sm:$0xff] }
 0x561   :  { %10756 = vmatprep.subr.bf16.mxu0 %v14698_v39  ;;  %11248 = vmatprep.subr.bf16.mxu1 %v14700_v59  ;;  %v1149_v39 = vld [vmem:[#allocation5 + $0x1ff0] sm:$0xff]  ;;  %v1146_v59 = vld [vmem:[#allocation5 + $0x1fd8] sm:$0xff] }
 0x562   :  { %v14754_v28 = vcombine.high %v1145_v27, %v1149_v39  ;;  %v14753_v25 = vcombine.low %v1145_v27, %v1149_v39  ;;  %v14755_v35 = vcombine.low %v1146_v59, %v1150_v29  ;;  %v1193_v18 = vld [vmem:[#allocation5 + $0x2150] sm:$0xff] }
 0x564   :  { %10757 = vmatpush1.bf16.msra.mxu0 %v14697_v31  ;;  %11249 = vmatpush1.bf16.msra.mxu1 %v14699_v49  ;;  %v14756_v31 = vcombine.high %v1146_v59, %v1150_v29  ;;  %v1153_v49 = vld [vmem:[#allocation5 + $0x2010] sm:$0xff] }
 0x565   :  { %10758 = vmatprep.subr.bf16.mxu0 %v14706_v33  ;;  %11250 = vmatprep.subr.bf16.mxu1 %v14708_v15  ;;  %v1157_v33 = vld [vmem:[#allocation5 + $0x2030] sm:$0xff]  ;;  %v1154_v15 = vld [vmem:[#allocation5 + $0x2018] sm:$0xff] }
 0x566   :  { %v14762_v48 = vcombine.high %v1153_v49, %v1157_v33  ;;  %v14761_v41 = vcombine.low %v1153_v49, %v1157_v33  ;;  %v14763_v32 = vcombine.low %v1154_v15, %v1158_v20  ;;  %v1201_v29 = vld [vmem:[#allocation5 + $0x2190] sm:$0xff] }
 0x568   :  { %10759 = vmatpush1.bf16.msra.mxu0 %v14705_v12  ;;  %11251 = vmatpush1.bf16.msra.mxu1 %v14707_v2  ;;  %v14764_v12 = vcombine.high %v1154_v15, %v1158_v20  ;;  %v1161_v2 = vld [vmem:[#allocation5 + $0x2050] sm:$0xff] }
 0x569   :  { %10760 = vmatprep.subr.bf16.mxu0 %v14714_v36  ;;  %11252 = vmatprep.subr.bf16.mxu1 %v14716_v37  ;;  %v1165_v36 = vld [vmem:[#allocation5 + $0x2070] sm:$0xff]  ;;  %v1162_v37 = vld [vmem:[#allocation5 + $0x2058] sm:$0xff] }
 0x56a   :  { %v14770_v42 = vcombine.high %v1161_v2, %v1165_v36  ;;  %v14769_v53 = vcombine.low %v1161_v2, %v1165_v36  ;;  %v14771_v52 = vcombine.low %v1162_v37, %v1166_v40  ;;  %v1209_v20 = vld [vmem:[#allocation5 + $0x21d0] sm:$0xff] }
 0x56c   :  { %10761 = vmatpush1.bf16.msra.mxu0 %v14713_v57  ;;  %11253 = vmatpush1.bf16.msra.mxu1 %v14715_v43  ;;  %v14772_v57 = vcombine.high %v1162_v37, %v1166_v40  ;;  %v1169_v43 = vld [vmem:[#allocation5 + $0x2090] sm:$0xff] }
 0x56d   :  { %10762 = vmatprep.subr.bf16.mxu0 %v14722_v34  ;;  %11254 = vmatprep.subr.bf16.mxu1 %v14724_v45  ;;  %v1173_v34 = vld [vmem:[#allocation5 + $0x20b0] sm:$0xff]  ;;  %v1170_v45 = vld [vmem:[#allocation5 + $0x2098] sm:$0xff] }
 0x56e   :  { %v14778_v56 = vcombine.high %v1169_v43, %v1173_v34  ;;  %v14777_v6 = vcombine.low %v1169_v43, %v1173_v34  ;;  %v1217_v40 = vld [vmem:[#allocation5 + $0x2210] sm:$0xff] }
 0x570   :  { %10763 = vmatpush1.bf16.msra.mxu0 %v14721_v19  ;;  %11255 = vmatpush1.bf16.msra.mxu1 %v14723_v46  ;;  %v14780_v19 = vcombine.high %v1170_v45, %v1174_v47  ;;  %v1177_v46 = vld [vmem:[#allocation5 + $0x20d0] sm:$0xff] }
 0x571   :  { %10764 = vmatprep.subr.bf16.mxu0 %v14730_v54  ;;  %11256 = vmatprep.subr.bf16.mxu1 %v14732_v63  ;;  %v1181_v54 = vld [vmem:[#allocation5 + $0x20f0] sm:$0xff]  ;;  %v1178_v63 = vld [vmem:[#allocation5 + $0x20d8] sm:$0xff] }
 0x572   :  { %v14786_v7 = vcombine.high %v1177_v46, %v1181_v54  ;;  %v14788_v9 = vcombine.high %v1178_v63, %v1182_v3  ;;  %v14785_v14 = vcombine.low %v1177_v46, %v1181_v54  ;;  %v14787_v17 = vcombine.low %v1178_v63, %v1182_v3  ;;  %v1233_v3 = vld [vmem:[#allocation5 + $0x2290] sm:$0xff] }
 0x574   :  { %10765 = vmatpush1.bf16.msra.mxu0 %v14729_v23  ;;  %11257 = vmatpush1.bf16.msra.mxu1 %v14731_v11  ;;  %v1185_v23 = vld [vmem:[#allocation5 + $0x2110] sm:$0xff] }
 0x575   :  { %10766 = vmatprep.subr.bf16.mxu0 %v14738_v13  ;;  %11258 = vmatprep.subr.bf16.mxu1 %v14740_v60  ;;  %v1189_v11 = vld [vmem:[#allocation5 + $0x2130] sm:$0xff]  ;;  %v1186_v13 = vld [vmem:[#allocation5 + $0x2118] sm:$0xff] }
 0x576   :  { %v1190_v60 = vld [vmem:[#allocation5 + $0x2138] sm:$0xff]  ;;  %v14794_v58 = vcombine.high %v1185_v23, %v1189_v11 }
 0x577   :  { %v14795_v27 = vcombine.low %v1186_v13, %v1190_v60 }
 0x578   :  { %10767 = vmatpush1.bf16.msra.mxu0 %v14737_v16  ;;  %11259 = vmatpush1.bf16.msra.mxu1 %v14739_v21  ;;  %v1197_v16 = vld [vmem:[#allocation5 + $0x2170] sm:$0xff]  ;;  %v1194_v21 = vld [vmem:[#allocation5 + $0x2158] sm:$0xff] }
 0x579   :  { %10768 = vmatprep.subr.bf16.mxu0 %v14746_v22  ;;  %11260 = vmatprep.subr.bf16.mxu1 %v14748_v26  ;;  %v1198_v22 = vld [vmem:[#allocation5 + $0x2178] sm:$0xff]  ;;  %v14793_v26 = vcombine.low %v1185_v23, %v1189_v11  ;;  %v14802_v39 = vcombine.high %v1193_v18, %v1197_v16 }
 0x57a   :  { %v14804_v59 = vcombine.high %v1194_v21, %v1198_v22  ;;  %v14803_v49 = vcombine.low %v1194_v21, %v1198_v22  ;;  %v1249_v22 = vld [vmem:[#allocation5 + $0x2310] sm:$0xff] }
 0x57c   :  { %10769 = vmatpush1.bf16.msra.mxu0 %v14745_v55  ;;  %11261 = vmatpush1.bf16.msra.mxu1 %v14747_v30  ;;  %v1205_v55 = vld [vmem:[#allocation5 + $0x21b0] sm:$0xff]  ;;  %v1202_v30 = vld [vmem:[#allocation5 + $0x2198] sm:$0xff] }
 0x57d   :  { %10770 = vmatprep.subr.bf16.mxu0 %v14754_v28  ;;  %11262 = vmatprep.subr.bf16.mxu1 %v14756_v31  ;;  %v1206_v28 = vld [vmem:[#allocation5 + $0x21b8] sm:$0xff]  ;;  %v14801_v31 = vcombine.low %v1193_v18, %v1197_v16  ;;  %v14810_v33 = vcombine.high %v1201_v29, %v1205_v55 }
 0x57e   :  { %v14812_v15 = vcombine.high %v1202_v30, %v1206_v28  ;;  %v14811_v2 = vcombine.low %v1202_v30, %v1206_v28  ;;  %v1257_v28 = vld [vmem:[#allocation5 + $0x2350] sm:$0xff] }
 0x580   :  { %10771 = vmatpush1.bf16.msra.mxu0 %v14753_v25  ;;  %11263 = vmatpush1.bf16.msra.mxu1 %v14755_v35  ;;  %v1213_v25 = vld [vmem:[#allocation5 + $0x21f0] sm:$0xff]  ;;  %v1210_v35 = vld [vmem:[#allocation5 + $0x21d8] sm:$0xff] }
 0x581   :  { %10781 = vmatprep.subr.bf16.mxu0 %v14762_v48  ;;  %11273 = vmatprep.subr.bf16.mxu1 %v14764_v12  ;;  %v1214_v48 = vld [vmem:[#allocation5 + $0x21f8] sm:$0xff]  ;;  %v14809_v12 = vcombine.low %v1201_v29, %v1205_v55  ;;  %v14818_v36 = vcombine.high %v1209_v20, %v1213_v25 }
 0x582   :  { %v14820_v37 = vcombine.high %v1210_v35, %v1214_v48  ;;  %v14819_v43 = vcombine.low %v1210_v35, %v1214_v48  ;;  %v1265_v48 = vld [vmem:[#allocation5 + $0x2390] sm:$0xff] }
 0x583   :  { %10773 = vmatmul.mubr.bf16.vlgmr.msra.gmra.mrb[4].mxu0 %v16701_v0  ;;  %11265 = vmatmul.mubr.bf16.vlgmr.msra.gmra.mrb[4].mxu1 %v16701_v0  ;;  %v14779_v0 = vcombine.low %v1170_v45, %v1174_v47  ;;  %v1225_v47 = vld [vmem:[#allocation5 + $0x2250] sm:$0xff] }
 0x584   :  { %10782 = vmatpush1.bf16.msra.mxu0 %v14761_v41  ;;  %11274 = vmatpush1.bf16.msra.mxu1 %v14763_v32  ;;  %v1221_v41 = vld [vmem:[#allocation5 + $0x2230] sm:$0xff]  ;;  %v1218_v32 = vld [vmem:[#allocation5 + $0x2218] sm:$0xff] }
 0x585   :  { %10783 = vmatprep.subr.bf16.mxu0 %v14770_v42  ;;  %11275 = vmatprep.subr.bf16.mxu1 %v14772_v57  ;;  %v1222_v42 = vld [vmem:[#allocation5 + $0x2238] sm:$0xff]  ;;  %v14817_v57 = vcombine.low %v1209_v20, %v1213_v25  ;;  %v14826_v34 = vcombine.high %v1217_v40, %v1221_v41 }
 0x586   :  { %10813 = vmatprep.mubr.bf16.mxu0 %v16707_v10  ;;  %11305 = vmatprep.mubr.bf16.mxu1 %v16707_v10  ;;  %v14796_v10 = vcombine.high %v1186_v13, %v1190_v60  ;;  %v14828_v45 = vcombine.high %v1218_v32, %v1222_v42  ;;  %v14827_v46 = vcombine.low %v1218_v32, %v1222_v42  ;;  %v1241_v60 = vld [vmem:[#allocation5 + $0x22d0] sm:$0xff] }
 0x587   :  { %v1273_v42 = vld [vmem:[#allocation5 + $0x23d0] sm:$0xff] }
 0x588   :  { %10784 = vmatpush1.bf16.msra.mxu0 %v14769_v53  ;;  %11276 = vmatpush1.bf16.msra.mxu1 %v14771_v52  ;;  %v1229_v53 = vld [vmem:[#allocation5 + $0x2270] sm:$0xff]  ;;  %v1226_v52 = vld [vmem:[#allocation5 + $0x2258] sm:$0xff] }
 0x589   :  { %10785 = vmatprep.subr.bf16.mxu0 %v14778_v56  ;;  %11277 = vmatprep.subr.bf16.mxu1 %v14780_v19  ;;  %v1230_v56 = vld [vmem:[#allocation5 + $0x2278] sm:$0xff]  ;;  %v14825_v19 = vcombine.low %v1217_v40, %v1221_v41  ;;  %v14834_v54 = vcombine.high %v1225_v47, %v1229_v53 }
 0x58a   :  { %v14836_v63 = vcombine.high %v1226_v52, %v1230_v56  ;;  %v14835_v23 = vcombine.low %v1226_v52, %v1230_v56  ;;  %v1281_v56 = vld [vmem:[#allocation5 + $0x2410] sm:$0xff] }
 0x58c   :  { %10786 = vmatpush1.bf16.msra.mxu0 %v14777_v6  ;;  %11278 = vmatpush1.bf16.msra.mxu1 %v14779_v0  ;;  %v1237_v6 = vld [vmem:[#allocation5 + $0x22b0] sm:$0xff]  ;;  %v1234_v0 = vld [vmem:[#allocation5 + $0x2298] sm:$0xff] }
 0x58d   :  { %10787 = vmatprep.subr.bf16.mxu0 %v14786_v7  ;;  %11279 = vmatprep.subr.bf16.mxu1 %v14788_v9  ;;  %v1238_v7 = vld [vmem:[#allocation5 + $0x22b8] sm:$0xff]  ;;  %v14833_v9 = vcombine.low %v1225_v47, %v1229_v53  ;;  %v14842_v11 = vcombine.high %v1233_v3, %v1237_v6 }
 0x58e   :  { %v14844_v13 = vcombine.high %v1234_v0, %v1238_v7  ;;  %v14843_v18 = vcombine.low %v1234_v0, %v1238_v7  ;;  %v1289_v7 = vld [vmem:[#allocation5 + $0x2450] sm:$0xff] }
 0x590   :  { %10788 = vmatpush1.bf16.msra.mxu0 %v14785_v14  ;;  %11280 = vmatpush1.bf16.msra.mxu1 %v14787_v17  ;;  %v1245_v14 = vld [vmem:[#allocation5 + $0x22f0] sm:$0xff]  ;;  %v1242_v17 = vld [vmem:[#allocation5 + $0x22d8] sm:$0xff] }
 0x591   :  { %10789 = vmatprep.subr.bf16.mxu0 %v14794_v58  ;;  %11281 = vmatprep.subr.bf16.mxu1 %v14796_v10  ;;  %v1246_v58 = vld [vmem:[#allocation5 + $0x22f8] sm:$0xff]  ;;  %v14841_v10 = vcombine.low %v1233_v3, %v1237_v6  ;;  %v14850_v16 = vcombine.high %v1241_v60, %v1245_v14 }
 0x592   :  { %v14852_v21 = vcombine.high %v1242_v17, %v1246_v58  ;;  %v14851_v29 = vcombine.low %v1242_v17, %v1246_v58  ;;  %v1297_v58 = vld [vmem:[#allocation5 + $0x2490] sm:$0xff] }
 0x594   :  { %10790 = vmatpush1.bf16.msra.mxu0 %v14793_v26  ;;  %11282 = vmatpush1.bf16.msra.mxu1 %v14795_v27  ;;  %v1253_v26 = vld [vmem:[#allocation5 + $0x2330] sm:$0xff]  ;;  %v1250_v27 = vld [vmem:[#allocation5 + $0x2318] sm:$0xff] }
 0x595   :  { %10791 = vmatprep.subr.bf16.mxu0 %v14802_v39  ;;  %11283 = vmatprep.subr.bf16.mxu1 %v14804_v59  ;;  %v1254_v39 = vld [vmem:[#allocation5 + $0x2338] sm:$0xff]  ;;  %v14849_v59 = vcombine.low %v1241_v60, %v1245_v14  ;;  %v14858_v55 = vcombine.high %v1249_v22, %v1253_v26 }
 0x596   :  { %v14860_v30 = vcombine.high %v1250_v27, %v1254_v39  ;;  %v14859_v20 = vcombine.low %v1250_v27, %v1254_v39  ;;  %v1305_v39 = vld [vmem:[#allocation5 + $0x24d0] sm:$0xff] }
 0x598   :  { %10792 = vmatpush1.bf16.msra.mxu0 %v14801_v31  ;;  %11284 = vmatpush1.bf16.msra.mxu1 %v14803_v49  ;;  %v1261_v31 = vld [vmem:[#allocation5 + $0x2370] sm:$0xff]  ;;  %v1258_v49 = vld [vmem:[#allocation5 + $0x2358] sm:$0xff] }
 0x599   :  { %10793 = vmatprep.subr.bf16.mxu0 %v14810_v33  ;;  %11285 = vmatprep.subr.bf16.mxu1 %v14812_v15  ;;  %v1262_v33 = vld [vmem:[#allocation5 + $0x2378] sm:$0xff]  ;;  %v14857_v15 = vcombine.low %v1249_v22, %v1253_v26  ;;  %v14866_v25 = vcombine.high %v1257_v28, %v1261_v31 }
 0x59a   :  { %v14868_v35 = vcombine.high %v1258_v49, %v1262_v33  ;;  %v14867_v40 = vcombine.low %v1258_v49, %v1262_v33  ;;  %v1313_v49 = vld [vmem:[#allocation5 + $0x2510] sm:$0xff] }
 0x59b   :  { %v1317_v33 = vld [vmem:[#allocation5 + $0x2530] sm:$0xff] }
 0x59c   :  { %10794 = vmatpush1.bf16.msra.mxu0 %v14809_v12  ;;  %11286 = vmatpush1.bf16.msra.mxu1 %v14811_v2  ;;  %v1269_v12 = vld [vmem:[#allocation5 + $0x23b0] sm:$0xff]  ;;  %v1266_v2 = vld [vmem:[#allocation5 + $0x2398] sm:$0xff] }
 0x59d   :  { %10795 = vmatprep.subr.bf16.mxu0 %v14818_v36  ;;  %11287 = vmatprep.subr.bf16.mxu1 %v14820_v37  ;;  %v1270_v36 = vld [vmem:[#allocation5 + $0x23b8] sm:$0xff]  ;;  %v14865_v37 = vcombine.low %v1257_v28, %v1261_v31  ;;  %v14874_v41 = vcombine.high %v1265_v48, %v1269_v12 }
 0x59e   :  { %v14876_v32 = vcombine.high %v1266_v2, %v1270_v36  ;;  %v14875_v47 = vcombine.low %v1266_v2, %v1270_v36  ;;  %v1325_v2 = vld [vmem:[#allocation5 + $0x2570] sm:$0xff]  ;;  %v1322_v36 = vld [vmem:[#allocation5 + $0x2558] sm:$0xff] }
 0x5a0   :  { %10796 = vmatpush1.bf16.msra.mxu0 %v14817_v57  ;;  %11288 = vmatpush1.bf16.msra.mxu1 %v14819_v43  ;;  %v1277_v57 = vld [vmem:[#allocation5 + $0x23f0] sm:$0xff]  ;;  %v1274_v43 = vld [vmem:[#allocation5 + $0x23d8] sm:$0xff] }
 0x5a1   :  { %10797 = vmatprep.subr.bf16.mxu0 %v14826_v34  ;;  %11289 = vmatprep.subr.bf16.mxu1 %v14828_v45  ;;  %v1278_v34 = vld [vmem:[#allocation5 + $0x23f8] sm:$0xff]  ;;  %v14873_v45 = vcombine.low %v1265_v48, %v1269_v12  ;;  %v14882_v53 = vcombine.high %v1273_v42, %v1277_v57  ;;  %v14922_v48 = vcombine.high %v1313_v49, %v1317_v33  ;;  %v1321_v12 = vld [vmem:[#allocation5 + $0x2550] sm:$0xff] }
 0x5a2   :  { %v14884_v52 = vcombine.high %v1274_v43, %v1278_v34  ;;  %v14883_v3 = vcombine.low %v1274_v43, %v1278_v34  ;;  %v1333_v43 = vld [vmem:[#allocation5 + $0x25b0] sm:$0xff]  ;;  %v1330_v34 = vld [vmem:[#allocation5 + $0x2598] sm:$0xff] }
 0x5a4   :  { %10798 = vmatpush1.bf16.msra.mxu0 %v14825_v19  ;;  %11290 = vmatpush1.bf16.msra.mxu1 %v14827_v46  ;;  %v1285_v19 = vld [vmem:[#allocation5 + $0x2430] sm:$0xff]  ;;  %v1282_v46 = vld [vmem:[#allocation5 + $0x2418] sm:$0xff] }
 0x5a5   :  { %10799 = vmatprep.subr.bf16.mxu0 %v14834_v54  ;;  %11291 = vmatprep.subr.bf16.mxu1 %v14836_v63  ;;  %v1286_v54 = vld [vmem:[#allocation5 + $0x2438] sm:$0xff]  ;;  %v14881_v63 = vcombine.low %v1273_v42, %v1277_v57  ;;  %v14890_v6 = vcombine.high %v1281_v56, %v1285_v19  ;;  %v1329_v57 = vld [vmem:[#allocation5 + $0x2590] sm:$0xff] }
 0x5a6   :  { %v14892_v0 = vcombine.high %v1282_v46, %v1286_v54  ;;  %v14891_v60 = vcombine.low %v1282_v46, %v1286_v54  ;;  %v1341_v46 = vld [vmem:[#allocation5 + $0x25f0] sm:$0xff]  ;;  %v1338_v54 = vld [vmem:[#allocation5 + $0x25d8] sm:$0xff] }
 0x5a8   :  { %10800 = vmatpush1.bf16.msra.mxu0 %v14833_v9  ;;  %11292 = vmatpush1.bf16.msra.mxu1 %v14835_v23  ;;  %v1293_v9 = vld [vmem:[#allocation5 + $0x2470] sm:$0xff]  ;;  %v1290_v23 = vld [vmem:[#allocation5 + $0x2458] sm:$0xff] }
 0x5a9   :  { %10801 = vmatprep.subr.bf16.mxu0 %v14842_v11  ;;  %11293 = vmatprep.subr.bf16.mxu1 %v14844_v13  ;;  %v1294_v11 = vld [vmem:[#allocation5 + $0x2478] sm:$0xff]  ;;  %v14889_v13 = vcombine.low %v1281_v56, %v1285_v19  ;;  %v14898_v14 = vcombine.high %v1289_v7, %v1293_v9  ;;  %v1337_v19 = vld [vmem:[#allocation5 + $0x25d0] sm:$0xff] }
 0x5aa   :  { %v14900_v17 = vcombine.high %v1290_v23, %v1294_v11  ;;  %v14899_v22 = vcombine.low %v1290_v23, %v1294_v11  ;;  %v1349_v23 = vld [vmem:[#allocation5 + $0x2630] sm:$0xff]  ;;  %v1346_v11 = vld [vmem:[#allocation5 + $0x2618] sm:$0xff] }
 0x5ac   :  { %10802 = vmatpush1.bf16.msra.mxu0 %v14841_v10  ;;  %11294 = vmatpush1.bf16.msra.mxu1 %v14843_v18  ;;  %v1301_v10 = vld [vmem:[#allocation5 + $0x24b0] sm:$0xff]  ;;  %v1298_v18 = vld [vmem:[#allocation5 + $0x2498] sm:$0xff] }
 0x5ad   :  { %10803 = vmatprep.subr.bf16.mxu0 %v14850_v16  ;;  %11295 = vmatprep.subr.bf16.mxu1 %v14852_v21  ;;  %v1302_v16 = vld [vmem:[#allocation5 + $0x24b8] sm:$0xff]  ;;  %v14897_v21 = vcombine.low %v1289_v7, %v1293_v9  ;;  %v14906_v26 = vcombine.high %v1297_v58, %v1301_v10  ;;  %v1345_v9 = vld [vmem:[#allocation5 + $0x2610] sm:$0xff] }
 0x5ae   :  { %v14908_v27 = vcombine.high %v1298_v18, %v1302_v16 }
 0x5b0   :  { %10804 = vmatpush1.bf16.msra.mxu0 %v14849_v59  ;;  %11296 = vmatpush1.bf16.msra.mxu1 %v14851_v29  ;;  %v1309_v59 = vld [vmem:[#allocation5 + $0x24f0] sm:$0xff]  ;;  %v1306_v29 = vld [vmem:[#allocation5 + $0x24d8] sm:$0xff] }
 0x5b1   :  { %10805 = vmatprep.subr.bf16.mxu0 %v14858_v55  ;;  %11297 = vmatprep.subr.bf16.mxu1 %v14860_v30  ;;  %v1310_v55 = vld [vmem:[#allocation5 + $0x24f8] sm:$0xff]  ;;  %v14905_v30 = vcombine.low %v1297_v58, %v1301_v10  ;;  %v14914_v28 = vcombine.high %v1305_v39, %v1309_v59  ;;  %v1353_v10 = vld [vmem:[#allocation5 + $0x2650] sm:$0xff] }
 0x5b2   :  { %v14916_v31 = vcombine.high %v1306_v29, %v1310_v55 }
 0x5b4   :  { %10806 = vmatpush1.bf16.msra.mxu0 %v14857_v15  ;;  %11298 = vmatpush1.bf16.msra.mxu1 %v14859_v20  ;;  %v1314_v15 = vld [vmem:[#allocation5 + $0x2518] sm:$0xff] }
 0x5b5   :  { %10807 = vmatprep.subr.bf16.mxu0 %v14866_v25  ;;  %11299 = vmatprep.subr.bf16.mxu1 %v14868_v35  ;;  %v1318_v20 = vld [vmem:[#allocation5 + $0x2538] sm:$0xff]  ;;  %v14913_v25 = vcombine.low %v1305_v39, %v1309_v59  ;;  %v14915_v35 = vcombine.low %v1306_v29, %v1310_v55  ;;  %v1361_v59 = vld [vmem:[#allocation5 + $0x2690] sm:$0xff] }
 0x5b6   :  { %v1365_v29 = vld [vmem:[#allocation5 + $0x26b0] sm:$0xff]  ;;  %v1362_v55 = vld [vmem:[#allocation5 + $0x2698] sm:$0xff] }
 0x5b8   :  { %10808 = vmatpush1.bf16.msra.mxu0 %v14865_v37  ;;  %11300 = vmatpush1.bf16.msra.mxu1 %v14867_v40  ;;  %v1326_v37 = vld [vmem:[#allocation5 + $0x2578] sm:$0xff]  ;;  %v14921_v40 = vcombine.low %v1313_v49, %v1317_v33  ;;  %v1369_v33 = vld [vmem:[#allocation5 + $0x26d0] sm:$0xff] }
 0x5b9   :  { %10809 = vmatprep.subr.bf16.mxu0 %v14874_v41  ;;  %11301 = vmatprep.subr.bf16.mxu1 %v14876_v32  ;;  %v14923_v41 = vcombine.low %v1314_v15, %v1318_v20  ;;  %v14930_v32 = vcombine.high %v1321_v12, %v1325_v2  ;;  %v14932_v42 = vcombine.high %v1322_v36, %v1326_v37 }
 0x5bc   :  { %10810 = vmatpush1.bf16.msra.mxu0 %v14873_v45  ;;  %11302 = vmatpush1.bf16.msra.mxu1 %v14875_v47  ;;  %v1334_v45 = vld [vmem:[#allocation5 + $0x25b8] sm:$0xff]  ;;  %v14929_v47 = vcombine.low %v1321_v12, %v1325_v2  ;;  %v1377_v2 = vld [vmem:[#allocation5 + $0x2710] sm:$0xff] }
 0x5bd   :  { %10811 = vmatprep.subr.bf16.mxu0 %v14882_v53  ;;  %11303 = vmatprep.subr.bf16.mxu1 %v14884_v52  ;;  %v14931_v53 = vcombine.low %v1322_v36, %v1326_v37  ;;  %v14938_v52 = vcombine.high %v1329_v57, %v1333_v43  ;;  %v14940_v56 = vcombine.high %v1330_v34, %v1334_v45  ;;  %v1381_v36 = vld [vmem:[#allocation5 + $0x2730] sm:$0xff]  ;;  %v1378_v37 = vld [vmem:[#allocation5 + $0x2718] sm:$0xff] }
 0x5c0   :  { %10812 = vmatpush1.bf16.msra.mxu0 %v14881_v63  ;;  %11304 = vmatpush1.bf16.msra.mxu1 %v14883_v3  ;;  %v1342_v63 = vld [vmem:[#allocation5 + $0x25f8] sm:$0xff]  ;;  %v14937_v3 = vcombine.low %v1329_v57, %v1333_v43  ;;  %v1385_v43 = vld [vmem:[#allocation5 + $0x2750] sm:$0xff] }
 0x5c1   :  { %10822 = vmatprep.subr.bf16.mxu0 %v14890_v6  ;;  %11314 = vmatprep.subr.bf16.mxu1 %v14892_v0  ;;  %v14939_v6 = vcombine.low %v1330_v34, %v1334_v45  ;;  %v14946_v0 = vcombine.high %v1337_v19, %v1341_v46  ;;  %v14948_v7 = vcombine.high %v1338_v54, %v1342_v63  ;;  %v1389_v34 = vld [vmem:[#allocation5 + $0x2770] sm:$0xff]  ;;  %v1386_v45 = vld [vmem:[#allocation5 + $0x2758] sm:$0xff] }
 0x5c3   :  { %10814 = vmatmul.mubr.bf16.vlgmr.msra.gmra.mrb[4].mxu0 %v16715_v50  ;;  %11306 = vmatmul.mubr.bf16.vlgmr.msra.gmra.mrb[4].mxu1 %v16715_v50  ;;  %v14907_v50 = vcombine.low %v1298_v18, %v1302_v16  ;;  %v1357_v18 = vld [vmem:[#allocation5 + $0x2670] sm:$0xff]  ;;  %v1354_v16 = vld [vmem:[#allocation5 + $0x2658] sm:$0xff] }
 0x5c4   :  { %10823 = vmatpush1.bf16.msra.mxu0 %v14889_v13  ;;  %11315 = vmatpush1.bf16.msra.mxu1 %v14891_v60  ;;  %v1350_v13 = vld [vmem:[#allocation5 + $0x2638] sm:$0xff]  ;;  %v14945_v60 = vcombine.low %v1337_v19, %v1341_v46  ;;  %v1393_v46 = vld [vmem:[#allocation5 + $0x2790] sm:$0xff] }
 0x5c5   :  { %10824 = vmatprep.subr.bf16.mxu0 %v14898_v14  ;;  %11316 = vmatprep.subr.bf16.mxu1 %v14900_v17  ;;  %v14947_v14 = vcombine.low %v1338_v54, %v1342_v63  ;;  %v14954_v17 = vcombine.high %v1345_v9, %v1349_v23  ;;  %v14956_v58 = vcombine.high %v1346_v11, %v1350_v13  ;;  %v1397_v54 = vld [vmem:[#allocation5 + $0x27b0] sm:$0xff]  ;;  %v1394_v63 = vld [vmem:[#allocation5 + $0x2798] sm:$0xff] }
 0x5c6   :  { %10854 = vmatprep.mubr.bf16.mxu0 %v16721_v1  ;;  %11346 = vmatprep.mubr.bf16.mxu1 %v16721_v1  ;;  %v14924_v1 = vcombine.high %v1314_v15, %v1318_v20  ;;  %v1373_v15 = vld [vmem:[#allocation5 + $0x26f0] sm:$0xff]  ;;  %v1370_v20 = vld [vmem:[#allocation5 + $0x26d8] sm:$0xff] }
 0x5c8   :  { %10825 = vmatpush1.bf16.msra.mxu0 %v14897_v21  ;;  %11317 = vmatpush1.bf16.msra.mxu1 %v14899_v22  ;;  %v1358_v21 = vld [vmem:[#allocation5 + $0x2678] sm:$0xff]  ;;  %v14953_v22 = vcombine.low %v1345_v9, %v1349_v23  ;;  %v1401_v23 = vld [vmem:[#allocation5 + $0x27d0] sm:$0xff] }
 0x5c9   :  { %10826 = vmatprep.subr.bf16.mxu0 %v14906_v26  ;;  %11318 = vmatprep.subr.bf16.mxu1 %v14908_v27  ;;  %v14955_v26 = vcombine.low %v1346_v11, %v1350_v13  ;;  %v14962_v27 = vcombine.high %v1353_v10, %v1357_v18  ;;  %v14964_v39 = vcombine.high %v1354_v16, %v1358_v21  ;;  %v1405_v11 = vld [vmem:[#allocation5 + $0x27f0] sm:$0xff]  ;;  %v1402_v13 = vld [vmem:[#allocation5 + $0x27d8] sm:$0xff] }
 0x5cc   :  { %10827 = vmatpush1.bf16.msra.mxu0 %v14905_v30  ;;  %11319 = vmatpush1.bf16.msra.mxu1 %v14907_v50  ;;  %v1366_v30 = vld [vmem:[#allocation5 + $0x26b8] sm:$0xff]  ;;  %v14961_v50 = vcombine.low %v1353_v10, %v1357_v18  ;;  %v1409_v18 = vld [vmem:[#allocation5 + $0x2810] sm:$0xff] }
 0x5cd   :  { %10828 = vmatprep.subr.bf16.mxu0 %v14914_v28  ;;  %11320 = vmatprep.subr.bf16.mxu1 %v14916_v31  ;;  %v14963_v28 = vcombine.low %v1354_v16, %v1358_v21  ;;  %v14970_v31 = vcombine.high %v1361_v59, %v1365_v29  ;;  %v14972_v49 = vcombine.high %v1362_v55, %v1366_v30  ;;  %v1413_v16 = vld [vmem:[#allocation5 + $0x2830] sm:$0xff]  ;;  %v1410_v21 = vld [vmem:[#allocation5 + $0x2818] sm:$0xff] }
 0x5d0   :  { %10829 = vmatpush1.bf16.msra.mxu0 %v14913_v25  ;;  %11321 = vmatpush1.bf16.msra.mxu1 %v14915_v35  ;;  %v1374_v25 = vld [vmem:[#allocation5 + $0x26f8] sm:$0xff]  ;;  %v14969_v35 = vcombine.low %v1361_v59, %v1365_v29  ;;  %v1417_v29 = vld [vmem:[#allocation5 + $0x2850] sm:$0xff] }
 0x5d1   :  { %10830 = vmatprep.subr.bf16.mxu0 %v14922_v48  ;;  %11322 = vmatprep.subr.bf16.mxu1 %v14924_v1  ;;  %v14971_v48 = vcombine.low %v1362_v55, %v1366_v30  ;;  %v14978_v1 = vcombine.high %v1369_v33, %v1373_v15  ;;  %v14980_v12 = vcombine.high %v1370_v20, %v1374_v25  ;;  %v1421_v55 = vld [vmem:[#allocation5 + $0x2870] sm:$0xff]  ;;  %v1418_v30 = vld [vmem:[#allocation5 + $0x2858] sm:$0xff] }
 0x5d4   :  { %10831 = vmatpush1.bf16.msra.mxu0 %v14921_v40  ;;  %11323 = vmatpush1.bf16.msra.mxu1 %v14923_v41  ;;  %v1382_v40 = vld [vmem:[#allocation5 + $0x2738] sm:$0xff]  ;;  %v14977_v41 = vcombine.low %v1369_v33, %v1373_v15  ;;  %v1425_v15 = vld [vmem:[#allocation5 + $0x2890] sm:$0xff] }
 0x5d5   :  { %10832 = vmatprep.subr.bf16.mxu0 %v14930_v32  ;;  %11324 = vmatprep.subr.bf16.mxu1 %v14932_v42  ;;  %v14979_v32 = vcombine.low %v1370_v20, %v1374_v25  ;;  %v14986_v42 = vcombine.high %v1377_v2, %v1381_v36  ;;  %v14988_v57 = vcombine.high %v1378_v37, %v1382_v40  ;;  %v1429_v20 = vld [vmem:[#allocation5 + $0x28b0] sm:$0xff]  ;;  %v1426_v25 = vld [vmem:[#allocation5 + $0x2898] sm:$0xff] }
 0x5d8   :  { %10833 = vmatpush1.bf16.msra.mxu0 %v14929_v47  ;;  %11325 = vmatpush1.bf16.msra.mxu1 %v14931_v53  ;;  %v1390_v47 = vld [vmem:[#allocation5 + $0x2778] sm:$0xff]  ;;  %v14985_v53 = vcombine.low %v1377_v2, %v1381_v36  ;;  %v1433_v36 = vld [vmem:[#allocation5 + $0x28d0] sm:$0xff] }
 0x5d9   :  { %10834 = vmatprep.subr.bf16.mxu0 %v14938_v52  ;;  %11326 = vmatprep.subr.bf16.mxu1 %v14940_v56  ;;  %v14987_v52 = vcombine.low %v1378_v37, %v1382_v40  ;;  %v14994_v56 = vcombine.high %v1385_v43, %v1389_v34  ;;  %v14996_v19 = vcombine.high %v1386_v45, %v1390_v47  ;;  %v1437_v37 = vld [vmem:[#allocation5 + $0x28f0] sm:$0xff]  ;;  %v1434_v40 = vld [vmem:[#allocation5 + $0x28d8] sm:$0xff] }
 0x5dc   :  { %10835 = vmatpush1.bf16.msra.mxu0 %v14937_v3  ;;  %11327 = vmatpush1.bf16.msra.mxu1 %v14939_v6  ;;  %v1398_v3 = vld [vmem:[#allocation5 + $0x27b8] sm:$0xff]  ;;  %v14993_v6 = vcombine.low %v1385_v43, %v1389_v34  ;;  %v1441_v43 = vld [vmem:[#allocation5 + $0x2910] sm:$0xff] }
 0x5dd   :  { %10836 = vmatprep.subr.bf16.mxu0 %v14946_v0  ;;  %11328 = vmatprep.subr.bf16.mxu1 %v14948_v7  ;;  %v14995_v0 = vcombine.low %v1386_v45, %v1390_v47  ;;  %v15002_v7 = vcombine.high %v1393_v46, %v1397_v54  ;;  %v15004_v9 = vcombine.high %v1394_v63, %v1398_v3  ;;  %v1445_v34 = vld [vmem:[#allocation5 + $0x2930] sm:$0xff]  ;;  %v1442_v45 = vld [vmem:[#allocation5 + $0x2918] sm:$0xff] }
 0x5de   :  { %v1446_v47 = vld [vmem:[#allocation5 + $0x2938] sm:$0xff] }
 0x5e0   :  { %10837 = vmatpush1.bf16.msra.mxu0 %v14945_v60  ;;  %11329 = vmatpush1.bf16.msra.mxu1 %v14947_v14  ;;  %v1406_v60 = vld [vmem:[#allocation5 + $0x27f8] sm:$0xff]  ;;  %v15001_v14 = vcombine.low %v1393_v46, %v1397_v54  ;;  %v1453_v46 = vld [vmem:[#allocation5 + $0x2970] sm:$0xff] }
 0x5e1   :  { %10838 = vmatprep.subr.bf16.mxu0 %v14954_v17  ;;  %11330 = vmatprep.subr.bf16.mxu1 %v14956_v58  ;;  %v15003_v17 = vcombine.low %v1394_v63, %v1398_v3  ;;  %v15010_v58 = vcombine.high %v1401_v23, %v1405_v11  ;;  %v15012_v10 = vcombine.high %v1402_v13, %v1406_v60  ;;  %v1450_v54 = vld [vmem:[#allocation5 + $0x2958] sm:$0xff] }
 0x5e2   :  { %v1454_v63 = vld [vmem:[#allocation5 + $0x2978] sm:$0xff]  ;;  %v15049_v3 = vcombine.low %v1441_v43, %v1445_v34 }
 0x5e4   :  { %10839 = vmatpush1.bf16.msra.mxu0 %v14953_v22  ;;  %11331 = vmatpush1.bf16.msra.mxu1 %v14955_v26  ;;  %v1414_v22 = vld [vmem:[#allocation5 + $0x2838] sm:$0xff]  ;;  %v15009_v26 = vcombine.low %v1401_v23, %v1405_v11  ;;  %v1461_v23 = vld [vmem:[#allocation5 + $0x29b0] sm:$0xff] }
 0x5e5   :  { %10840 = vmatprep.subr.bf16.mxu0 %v14962_v27  ;;  %11332 = vmatprep.subr.bf16.mxu1 %v14964_v39  ;;  %v15011_v27 = vcombine.low %v1402_v13, %v1406_v60  ;;  %v15018_v39 = vcombine.high %v1409_v18, %v1413_v16  ;;  %v15020_v59 = vcombine.high %v1410_v21, %v1414_v22  ;;  %v1458_v11 = vld [vmem:[#allocation5 + $0x2998] sm:$0xff] }
 0x5e6   :  { %v1462_v13 = vld [vmem:[#allocation5 + $0x29b8] sm:$0xff] }
 0x5e8   :  { %10841 = vmatpush1.bf16.msra.mxu0 %v14961_v50  ;;  %11333 = vmatpush1.bf16.msra.mxu1 %v14963_v28  ;;  %v1422_v50 = vld [vmem:[#allocation5 + $0x2878] sm:$0xff]  ;;  %v15017_v28 = vcombine.low %v1409_v18, %v1413_v16  ;;  %v1469_v18 = vld [vmem:[#allocation5 + $0x29f0] sm:$0xff] }
 0x5e9   :  { %10842 = vmatprep.subr.bf16.mxu0 %v14970_v31  ;;  %11334 = vmatprep.subr.bf16.mxu1 %v14972_v49  ;;  %v15019_v31 = vcombine.low %v1410_v21, %v1414_v22  ;;  %v15026_v49 = vcombine.high %v1417_v29, %v1421_v55  ;;  %v15028_v33 = vcombine.high %v1418_v30, %v1422_v50  ;;  %v1466_v16 = vld [vmem:[#allocation5 + $0x29d8] sm:$0xff] }
 0x5ea   :  { %v1470_v21 = vld [vmem:[#allocation5 + $0x29f8] sm:$0xff] }
 0x5ec   :  { %10843 = vmatpush1.bf16.msra.mxu0 %v14969_v35  ;;  %11335 = vmatpush1.bf16.msra.mxu1 %v14971_v48  ;;  %v1430_v35 = vld [vmem:[#allocation5 + $0x28b8] sm:$0xff]  ;;  %v15025_v48 = vcombine.low %v1417_v29, %v1421_v55  ;;  %v1477_v29 = vld [vmem:[#allocation5 + $0x2a30] sm:$0xff] }
 0x5ed   :  { %10844 = vmatprep.subr.bf16.mxu0 %v14978_v1  ;;  %11336 = vmatprep.subr.bf16.mxu1 %v14980_v12  ;;  %v15027_v1 = vcombine.low %v1418_v30, %v1422_v50  ;;  %v15034_v12 = vcombine.high %v1425_v15, %v1429_v20  ;;  %v15036_v2 = vcombine.high %v1426_v25, %v1430_v35  ;;  %v1474_v55 = vld [vmem:[#allocation5 + $0x2a18] sm:$0xff] }
 0x5ee   :  { %v1478_v30 = vld [vmem:[#allocation5 + $0x2a38] sm:$0xff] }
 0x5f0   :  { %10845 = vmatpush1.bf16.msra.mxu0 %v14977_v41  ;;  %11337 = vmatpush1.bf16.msra.mxu1 %v14979_v32  ;;  %v1438_v41 = vld [vmem:[#allocation5 + $0x28f8] sm:$0xff]  ;;  %v15033_v32 = vcombine.low %v1425_v15, %v1429_v20  ;;  %v1485_v15 = vld [vmem:[#allocation5 + $0x2a70] sm:$0xff] }
 0x5f1   :  { %10846 = vmatprep.subr.bf16.mxu0 %v14986_v42  ;;  %11338 = vmatprep.subr.bf16.mxu1 %v14988_v57  ;;  %v15042_v42 = vcombine.high %v1433_v36, %v1437_v37  ;;  %v15044_v57 = vcombine.high %v1434_v40, %v1438_v41  ;;  %v1482_v20 = vld [vmem:[#allocation5 + $0x2a58] sm:$0xff] }
 0x5f4   :  { %10847 = vmatpush1.bf16.msra.mxu0 %v14985_v53  ;;  %11339 = vmatpush1.bf16.msra.mxu1 %v14987_v52  ;;  %v15041_v53 = vcombine.low %v1433_v36, %v1437_v37  ;;  %v15043_v52 = vcombine.low %v1434_v40, %v1438_v41  ;;  %v1493_v36 = vld [vmem:[#allocation5 + $0x2ab0] sm:$0xff]  ;;  %v1490_v37 = vld [vmem:[#allocation5 + $0x2a98] sm:$0xff] }
 0x5f5   :  { %10848 = vmatprep.subr.bf16.mxu0 %v14994_v56  ;;  %11340 = vmatprep.subr.bf16.mxu1 %v14996_v19  ;;  %v15050_v56 = vcombine.high %v1441_v43, %v1445_v34  ;;  %v1449_v19 = vld [vmem:[#allocation5 + $0x2950] sm:$0xff]  ;;  %v1494_v40 = vld [vmem:[#allocation5 + $0x2ab8] sm:$0xff] }
 0x5f6   :  { %v15057_v60 = vcombine.low %v1449_v19, %v1453_v46  ;;  %v1501_v43 = vld [vmem:[#allocation5 + $0x2af0] sm:$0xff]  ;;  %v1498_v34 = vld [vmem:[#allocation5 + $0x2ad8] sm:$0xff] }
 0x5f8   :  { %10849 = vmatpush1.bf16.msra.mxu0 %v14993_v6  ;;  %11341 = vmatpush1.bf16.msra.mxu1 %v14995_v0  ;;  %v15051_v6 = vcombine.low %v1442_v45, %v1446_v47  ;;  %v15058_v0 = vcombine.high %v1449_v19, %v1453_v46  ;;  %v1509_v19 = vld [vmem:[#allocation5 + $0x2b30] sm:$0xff]  ;;  %v1506_v46 = vld [vmem:[#allocation5 + $0x2b18] sm:$0xff] }
 0x5f9   :  { %10850 = vmatprep.subr.bf16.mxu0 %v15002_v7  ;;  %11342 = vmatprep.subr.bf16.mxu1 %v15004_v9  ;;  %v15060_v7 = vcombine.high %v1450_v54, %v1454_v63  ;;  %v1457_v9 = vld [vmem:[#allocation5 + $0x2990] sm:$0xff] }
 0x5fa   :  { %v15065_v22 = vcombine.low %v1457_v9, %v1461_v23 }
 0x5fc   :  { %10851 = vmatpush1.bf16.msra.mxu0 %v15001_v14  ;;  %11343 = vmatpush1.bf16.msra.mxu1 %v15003_v17  ;;  %v15059_v14 = vcombine.low %v1450_v54, %v1454_v63  ;;  %v15066_v17 = vcombine.high %v1457_v9, %v1461_v23  ;;  %v1510_v54 = vld [vmem:[#allocation5 + $0x2b38] sm:$0xff]  ;;  %v1517_v9 = vld [vmem:[#allocation5 + $0x2b70] sm:$0xff] }
 0x5fd   :  { %10852 = vmatprep.subr.bf16.mxu0 %v15010_v58  ;;  %11344 = vmatprep.subr.bf16.mxu1 %v15012_v10  ;;  %v15068_v58 = vcombine.high %v1458_v11, %v1462_v13  ;;  %v1465_v10 = vld [vmem:[#allocation5 + $0x29d0] sm:$0xff]  ;;  %v1514_v23 = vld [vmem:[#allocation5 + $0x2b58] sm:$0xff] }
 0x5fe   :  { %v15073_v50 = vcombine.low %v1465_v10, %v1469_v18 }
 0x600   :  { %10853 = vmatpush1.bf16.msra.mxu0 %v15009_v26  ;;  %11345 = vmatpush1.bf16.msra.mxu1 %v15011_v27  ;;  %v15067_v26 = vcombine.low %v1458_v11, %v1462_v13  ;;  %v15074_v27 = vcombine.high %v1465_v10, %v1469_v18  ;;  %v1518_v11 = vld [vmem:[#allocation5 + $0x2b78] sm:$0xff]  ;;  %v1525_v10 = vld [vmem:[#allocation5 + $0x2bb0] sm:$0xff] }
 0x601   :  { %10863 = vmatprep.subr.bf16.mxu0 %v15018_v39  ;;  %11355 = vmatprep.subr.bf16.mxu1 %v15020_v59  ;;  %v15076_v39 = vcombine.high %v1466_v16, %v1470_v21  ;;  %v1473_v59 = vld [vmem:[#allocation5 + $0x2a10] sm:$0xff]  ;;  %v1522_v18 = vld [vmem:[#allocation5 + $0x2b98] sm:$0xff] }
 0x603   :  { %10855 = vmatmul.mubr.bf16.vlgmr.msra.gmra.mrb[4].mxu0 %v16729_v44  ;;  %11347 = vmatmul.mubr.bf16.vlgmr.msra.gmra.mrb[4].mxu1 %v16729_v44  ;;  %v15035_v44 = vcombine.low %v1426_v25, %v1430_v35  ;;  %v1486_v25 = vld [vmem:[#allocation5 + $0x2a78] sm:$0xff]  ;;  %v15081_v35 = vcombine.low %v1473_v59, %v1477_v29 }
 0x604   :  { %10864 = vmatpush1.bf16.msra.mxu0 %v15017_v28  ;;  %11356 = vmatpush1.bf16.msra.mxu1 %v15019_v31  ;;  %v15075_v28 = vcombine.low %v1466_v16, %v1470_v21  ;;  %v15082_v31 = vcombine.high %v1473_v59, %v1477_v29  ;;  %v1526_v16 = vld [vmem:[#allocation5 + $0x2bb8] sm:$0xff]  ;;  %v1533_v59 = vld [vmem:[#allocation5 + $0x2bf0] sm:$0xff] }
 0x605   :  { %10865 = vmatprep.subr.bf16.mxu0 %v15026_v49  ;;  %11357 = vmatprep.subr.bf16.mxu1 %v15028_v33  ;;  %v15084_v49 = vcombine.high %v1474_v55, %v1478_v30  ;;  %v1481_v33 = vld [vmem:[#allocation5 + $0x2a50] sm:$0xff]  ;;  %v1530_v29 = vld [vmem:[#allocation5 + $0x2bd8] sm:$0xff] }
 0x606   :  { %10895 = vmatprep.mubr.bf16.mxu0 %v16735_v62  ;;  %11387 = vmatprep.mubr.bf16.mxu1 %v16735_v62  ;;  %v15052_v62 = vcombine.high %v1442_v45, %v1446_v47  ;;  %v15089_v41 = vcombine.low %v1481_v33, %v1485_v15  ;;  %v1502_v45 = vld [vmem:[#allocation5 + $0x2af8] sm:$0xff] }
 0x608   :  { %10866 = vmatpush1.bf16.msra.mxu0 %v15025_v48  ;;  %11358 = vmatpush1.bf16.msra.mxu1 %v15027_v1  ;;  %v15083_v48 = vcombine.low %v1474_v55, %v1478_v30  ;;  %v15090_v1 = vcombine.high %v1481_v33, %v1485_v15  ;;  %v1534_v55 = vld [vmem:[#allocation5 + $0x2bf8] sm:$0xff]  ;;  %v1541_v33 = vld [vmem:[#allocation5 + $0x2c30] sm:$0xff] }
 0x609   :  { %10867 = vmatprep.subr.bf16.mxu0 %v15034_v12  ;;  %11359 = vmatprep.subr.bf16.mxu1 %v15036_v2  ;;  %v15092_v12 = vcombine.high %v1482_v20, %v1486_v25  ;;  %v1489_v2 = vld [vmem:[#allocation5 + $0x2a90] sm:$0xff]  ;;  %v1538_v15 = vld [vmem:[#allocation5 + $0x2c18] sm:$0xff] }
 0x60a   :  { %v15097_v47 = vcombine.low %v1489_v2, %v1493_v36 }
 0x60c   :  { %10868 = vmatpush1.bf16.msra.mxu0 %v15033_v32  ;;  %11360 = vmatpush1.bf16.msra.mxu1 %v15035_v44  ;;  %v15091_v32 = vcombine.low %v1482_v20, %v1486_v25  ;;  %v15098_v44 = vcombine.high %v1489_v2, %v1493_v36  ;;  %v1542_v20 = vld [vmem:[#allocation5 + $0x2c38] sm:$0xff]  ;;  %v1549_v2 = vld [vmem:[#allocation5 + $0x2c70] sm:$0xff] }
 0x60d   :  { %10869 = vmatprep.subr.bf16.mxu0 %v15042_v42  ;;  %11361 = vmatprep.subr.bf16.mxu1 %v15044_v57  ;;  %v15100_v42 = vcombine.high %v1490_v37, %v1494_v40  ;;  %v1497_v57 = vld [vmem:[#allocation5 + $0x2ad0] sm:$0xff]  ;;  %v1546_v36 = vld [vmem:[#allocation5 + $0x2c58] sm:$0xff] }
 0x60e   :  { %v15105_v63 = vcombine.low %v1497_v57, %v1501_v43 }
 0x610   :  { %10870 = vmatpush1.bf16.msra.mxu0 %v15041_v53  ;;  %11362 = vmatpush1.bf16.msra.mxu1 %v15043_v52  ;;  %v15099_v53 = vcombine.low %v1490_v37, %v1494_v40  ;;  %v15106_v52 = vcombine.high %v1497_v57, %v1501_v43  ;;  %v1550_v37 = vld [vmem:[#allocation5 + $0x2c78] sm:$0xff]  ;;  %v1557_v57 = vld [vmem:[#allocation5 + $0x2cb0] sm:$0xff] }
 0x611   :  { %10871 = vmatprep.subr.bf16.mxu0 %v15050_v56  ;;  %11363 = vmatprep.subr.bf16.mxu1 %v15052_v62  ;;  %v15108_v56 = vcombine.high %v1498_v34, %v1502_v45  ;;  %v1505_v62 = vld [vmem:[#allocation5 + $0x2b10] sm:$0xff]  ;;  %v1554_v43 = vld [vmem:[#allocation5 + $0x2c98] sm:$0xff] }
 0x612   :  { %v15113_v13 = vcombine.low %v1505_v62, %v1509_v19 }
 0x614   :  { %10872 = vmatpush1.bf16.msra.mxu0 %v15049_v3  ;;  %11364 = vmatpush1.bf16.msra.mxu1 %v15051_v6  ;;  %v15107_v3 = vcombine.low %v1498_v34, %v1502_v45  ;;  %v15114_v6 = vcombine.high %v1505_v62, %v1509_v19  ;;  %v1558_v34 = vld [vmem:[#allocation5 + $0x2cb8] sm:$0xff]  ;;  %v1565_v62 = vld [vmem:[#allocation5 + $0x2cf0] sm:$0xff] }
 0x615   :  { %10873 = vmatprep.subr.bf16.mxu0 %v15058_v0  ;;  %11365 = vmatprep.subr.bf16.mxu1 %v15060_v7  ;;  %v15116_v0 = vcombine.high %v1506_v46, %v1510_v54  ;;  %v1513_v7 = vld [vmem:[#allocation5 + $0x2b50] sm:$0xff]  ;;  %v1562_v19 = vld [vmem:[#allocation5 + $0x2cd8] sm:$0xff] }
 0x616   :  { %v15121_v21 = vcombine.low %v1513_v7, %v1517_v9 }
 0x618   :  { %10874 = vmatpush1.bf16.msra.mxu0 %v15057_v60  ;;  %11366 = vmatpush1.bf16.msra.mxu1 %v15059_v14  ;;  %v15115_v60 = vcombine.low %v1506_v46, %v1510_v54  ;;  %v15122_v14 = vcombine.high %v1513_v7, %v1517_v9  ;;  %v1566_v46 = vld [vmem:[#allocation5 + $0x2cf8] sm:$0xff] }
 0x619   :  { %10875 = vmatprep.subr.bf16.mxu0 %v15066_v17  ;;  %11367 = vmatprep.subr.bf16.mxu1 %v15068_v58  ;;  %v15124_v17 = vcombine.high %v1514_v23, %v1518_v11  ;;  %v1521_v58 = vld [vmem:[#allocation5 + $0x2b90] sm:$0xff]  ;;  %v1570_v7 = vld [vmem:[#allocation5 + $0x2d18] sm:$0xff] }
 0x61a   :  { %v15129_v30 = vcombine.low %v1521_v58, %v1525_v10  ;;  %v1574_v9 = vld [vmem:[#allocation5 + $0x2d38] sm:$0xff] }
 0x61c   :  { %10876 = vmatpush1.bf16.msra.mxu0 %v15065_v22  ;;  %11368 = vmatpush1.bf16.msra.mxu1 %v15067_v26  ;;  %v15123_v22 = vcombine.low %v1514_v23, %v1518_v11  ;;  %v15130_v26 = vcombine.high %v1521_v58, %v1525_v10  ;;  %v15171_v11 = vcombine.low %v1562_v19, %v1566_v46  ;;  %v1582_v58 = vld [vmem:[#allocation5 + $0x2d78] sm:$0xff] }
 0x61d   :  { %10877 = vmatprep.subr.bf16.mxu0 %v15074_v27  ;;  %11369 = vmatprep.subr.bf16.mxu1 %v15076_v39  ;;  %v15132_v27 = vcombine.high %v1522_v18, %v1526_v16  ;;  %v1529_v39 = vld [vmem:[#allocation5 + $0x2bd0] sm:$0xff] }
 0x61e   :  { %v15137_v25 = vcombine.low %v1529_v39, %v1533_v59 }
 0x620   :  { %10878 = vmatpush1.bf16.msra.mxu0 %v15073_v50  ;;  %11370 = vmatpush1.bf16.msra.mxu1 %v15075_v28  ;;  %v15131_v50 = vcombine.low %v1522_v18, %v1526_v16  ;;  %v15138_v28 = vcombine.high %v1529_v39, %v1533_v59  ;;  %v15179_v18 = vcombine.low %v1570_v7, %v1574_v9  ;;  %v1590_v39 = vld [vmem:[#allocation5 + $0x2db8] sm:$0xff] }
 0x621   :  { %10879 = vmatprep.subr.bf16.mxu0 %v15082_v31  ;;  %11371 = vmatprep.subr.bf16.mxu1 %v15084_v49  ;;  %v15140_v31 = vcombine.high %v1530_v29, %v1534_v55  ;;  %v1537_v49 = vld [vmem:[#allocation5 + $0x2c10] sm:$0xff] }
 0x622   :  { %v15145_v40 = vcombine.low %v1537_v49, %v1541_v33 }
 0x624   :  { %10880 = vmatpush1.bf16.msra.mxu0 %v15081_v35  ;;  %11372 = vmatpush1.bf16.msra.mxu1 %v15083_v48  ;;  %v15139_v35 = vcombine.low %v1530_v29, %v1534_v55  ;;  %v15146_v48 = vcombine.high %v1537_v49, %v1541_v33  ;;  %v1598_v49 = vld [vmem:[#allocation5 + $0x2df8] sm:$0xff] }
 0x625   :  { %10881 = vmatprep.subr.bf16.mxu0 %v15090_v1  ;;  %11373 = vmatprep.subr.bf16.mxu1 %v15092_v12  ;;  %v15148_v1 = vcombine.high %v1538_v15, %v1542_v20  ;;  %v1545_v12 = vld [vmem:[#allocation5 + $0x2c50] sm:$0xff] }
 0x626   :  { %v15153_v45 = vcombine.low %v1545_v12, %v1549_v2 }
 0x628   :  { %10882 = vmatpush1.bf16.msra.mxu0 %v15089_v41  ;;  %11374 = vmatpush1.bf16.msra.mxu1 %v15091_v32  ;;  %v15147_v41 = vcombine.low %v1538_v15, %v1542_v20  ;;  %v15154_v32 = vcombine.high %v1545_v12, %v1549_v2  ;;  %v1606_v12 = vld [vmem:[#allocation5 + $0x2e38] sm:$0xff] }
 0x629   :  { %10883 = vmatprep.subr.bf16.mxu0 %v15098_v44  ;;  %11375 = vmatprep.subr.bf16.mxu1 %v15100_v42  ;;  %v15156_v44 = vcombine.high %v1546_v36, %v1550_v37  ;;  %v1553_v42 = vld [vmem:[#allocation5 + $0x2c90] sm:$0xff] }
 0x62a   :  { %v15161_v54 = vcombine.low %v1553_v42, %v1557_v57 }
 0x62c   :  { %10884 = vmatpush1.bf16.msra.mxu0 %v15097_v47  ;;  %11376 = vmatpush1.bf16.msra.mxu1 %v15099_v53  ;;  %v15155_v47 = vcombine.low %v1546_v36, %v1550_v37  ;;  %v15162_v53 = vcombine.high %v1553_v42, %v1557_v57  ;;  %v1614_v42 = vld [vmem:[#allocation5 + $0x2e78] sm:$0xff] }
 0x62d   :  { %10885 = vmatprep.subr.bf16.mxu0 %v15106_v52  ;;  %11377 = vmatprep.subr.bf16.mxu1 %v15108_v56  ;;  %v15164_v52 = vcombine.high %v1554_v43, %v1558_v34  ;;  %v1561_v56 = vld [vmem:[#allocation5 + $0x2cd0] sm:$0xff] }
 0x62e   :  { %v15169_v23 = vcombine.low %v1561_v56, %v1565_v62 }
 0x630   :  { %10886 = vmatpush1.bf16.msra.mxu0 %v15105_v63  ;;  %11378 = vmatpush1.bf16.msra.mxu1 %v15107_v3  ;;  %v15170_v63 = vcombine.high %v1561_v56, %v1565_v62  ;;  %v15172_v3 = vcombine.high %v1562_v19, %v1566_v46  ;;  %v1622_v56 = vld [vmem:[#allocation5 + $0x2eb8] sm:$0xff] }
 0x631   :  { %10887 = vmatprep.subr.bf16.mxu0 %v15114_v6  ;;  %11379 = vmatprep.subr.bf16.mxu1 %v15116_v0  ;;  %v1569_v6 = vld [vmem:[#allocation5 + $0x2d10] sm:$0xff] }
 0x632   :  { %v1573_v0 = vld [vmem:[#allocation5 + $0x2d30] sm:$0xff] }
 0x633   :  { %v15177_v10 = vcombine.low %v1569_v6, %v1573_v0 }
 0x634   :  { %10888 = vmatpush1.bf16.msra.mxu0 %v15113_v13  ;;  %11380 = vmatpush1.bf16.msra.mxu1 %v15115_v60  ;;  %v15178_v13 = vcombine.high %v1569_v6, %v1573_v0  ;;  %v1577_v60 = vld [vmem:[#allocation5 + $0x2d50] sm:$0xff]  ;;  %v1630_v6 = vld [vmem:[#allocation5 + $0x2ef8] sm:$0xff] }
 0x635   :  { %10889 = vmatprep.subr.bf16.mxu0 %v15122_v14  ;;  %11381 = vmatprep.subr.bf16.mxu1 %v15124_v17  ;;  %v1581_v14 = vld [vmem:[#allocation5 + $0x2d70] sm:$0xff]  ;;  %v1578_v17 = vld [vmem:[#allocation5 + $0x2d58] sm:$0xff] }
 0x636   :  { %v15186_v16 = vcombine.high %v1577_v60, %v1581_v14  ;;  %v15185_v59 = vcombine.low %v1577_v60, %v1581_v14  ;;  %v15187_v29 = vcombine.low %v1578_v17, %v1582_v58  ;;  %v1634_v60 = vld [vmem:[#allocation5 + $0x2f18] sm:$0xff] }
 0x637   :  { %v1638_v14 = vld [vmem:[#allocation5 + $0x2f38] sm:$0xff] }
 0x638   :  { %10890 = vmatpush1.bf16.msra.mxu0 %v15121_v21  ;;  %11382 = vmatpush1.bf16.msra.mxu1 %v15123_v22  ;;  %v15188_v21 = vcombine.high %v1578_v17, %v1582_v58  ;;  %v1585_v22 = vld [vmem:[#allocation5 + $0x2d90] sm:$0xff] }
 0x639   :  { %10891 = vmatprep.subr.bf16.mxu0 %v15130_v26  ;;  %11383 = vmatprep.subr.bf16.mxu1 %v15132_v27  ;;  %v1589_v26 = vld [vmem:[#allocation5 + $0x2db0] sm:$0xff]  ;;  %v1586_v27 = vld [vmem:[#allocation5 + $0x2d98] sm:$0xff] }
 0x63a   :  { %v15194_v55 = vcombine.high %v1585_v22, %v1589_v26  ;;  %v15193_v33 = vcombine.low %v1585_v22, %v1589_v26  ;;  %v15195_v15 = vcombine.low %v1586_v27, %v1590_v39  ;;  %v1642_v26 = vld [vmem:[#allocation5 + $0x2f58] sm:$0xff] }
 0x63c   :  { %10892 = vmatpush1.bf16.msra.mxu0 %v15129_v30  ;;  %11384 = vmatpush1.bf16.msra.mxu1 %v15131_v50  ;;  %v15196_v30 = vcombine.high %v1586_v27, %v1590_v39  ;;  %v1593_v50 = vld [vmem:[#allocation5 + $0x2dd0] sm:$0xff]  ;;  %v1646_v27 = vld [vmem:[#allocation5 + $0x2f78] sm:$0xff] }
 0x63d   :  { %10893 = vmatprep.subr.bf16.mxu0 %v15138_v28  ;;  %11385 = vmatprep.subr.bf16.mxu1 %v15140_v31  ;;  %v1597_v28 = vld [vmem:[#allocation5 + $0x2df0] sm:$0xff]  ;;  %v1594_v31 = vld [vmem:[#allocation5 + $0x2dd8] sm:$0xff] }
 0x63e   :  { %v15202_v20 = vcombine.high %v1593_v50, %v1597_v28  ;;  %v15201_v2 = vcombine.low %v1593_v50, %v1597_v28  ;;  %v15203_v36 = vcombine.low %v1594_v31, %v1598_v49  ;;  %v1653_v50 = vld [vmem:[#allocation5 + $0x2fb0] sm:$0xff] }
 0x640   :  { %10894 = vmatpush1.bf16.msra.mxu0 %v15137_v25  ;;  %11386 = vmatpush1.bf16.msra.mxu1 %v15139_v35  ;;  %v15204_v25 = vcombine.high %v1594_v31, %v1598_v49  ;;  %v1601_v35 = vld [vmem:[#allocation5 + $0x2e10] sm:$0xff]  ;;  %v1650_v31 = vld [vmem:[#allocation5 + $0x2f98] sm:$0xff] }
 0x641   :  { %10904 = vmatprep.subr.bf16.mxu0 %v15146_v48  ;;  %11396 = vmatprep.subr.bf16.mxu1 %v15148_v1  ;;  %v1605_v48 = vld [vmem:[#allocation5 + $0x2e30] sm:$0xff]  ;;  %v1602_v1 = vld [vmem:[#allocation5 + $0x2e18] sm:$0xff] }
 0x642   :  { %v15210_v37 = vcombine.high %v1601_v35, %v1605_v48  ;;  %v15209_v57 = vcombine.low %v1601_v35, %v1605_v48  ;;  %v1654_v49 = vld [vmem:[#allocation5 + $0x2fb8] sm:$0xff]  ;;  %v1657_v48 = vld [vmem:[#allocation5 + $0x2fd0] sm:$0xff] }
 0x643   :  { %10896 = vmatmul.mubr.bf16.vlgmr.msra.gmra.mrb[4].mxu0 %v16743_v51  ;;  %11388 = vmatmul.mubr.bf16.vlgmr.msra.gmra.mrb[4].mxu1 %v16743_v51  ;;  %v15163_v51 = vcombine.low %v1554_v43, %v1558_v34  ;;  %v15211_v43 = vcombine.low %v1602_v1, %v1606_v12  ;;  %v15260_v35 = vcombine.high %v1650_v31, %v1654_v49 }
 0x644   :  { %10905 = vmatpush1.bf16.msra.mxu0 %v15145_v40  ;;  %11397 = vmatpush1.bf16.msra.mxu1 %v15147_v41  ;;  %v15212_v40 = vcombine.high %v1602_v1, %v1606_v12  ;;  %v1609_v41 = vld [vmem:[#allocation5 + $0x2e50] sm:$0xff] }
 0x645   :  { %10906 = vmatprep.subr.bf16.mxu0 %v15154_v32  ;;  %11398 = vmatprep.subr.bf16.mxu1 %v15156_v44  ;;  %v1613_v32 = vld [vmem:[#allocation5 + $0x2e70] sm:$0xff]  ;;  %v1610_v44 = vld [vmem:[#allocation5 + $0x2e58] sm:$0xff] }
 0x646   :  { %10936 = vmatprep.mubr.bf16.mxu0 %v16749_v4  ;;  %11428 = vmatprep.mubr.bf16.mxu1 %v16749_v4  ;;  %v15180_v4 = vcombine.high %v1570_v7, %v1574_v9  ;;  %v15218_v34 = vcombine.high %v1609_v41, %v1613_v32  ;;  %v15217_v62 = vcombine.low %v1609_v41, %v1613_v32  ;;  %v1661_v1 = vld [vmem:[#allocation5 + $0x2ff0] sm:$0xff] }
 0x647   :  { %v15219_v19 = vcombine.low %v1610_v44, %v1614_v42  ;;  %v15266_v41 = vcombine.high %v1657_v48, %v1661_v1 }
 0x648   :  { %10907 = vmatpush1.bf16.msra.mxu0 %v15153_v45  ;;  %11399 = vmatpush1.bf16.msra.mxu1 %v15155_v47  ;;  %v15220_v45 = vcombine.high %v1610_v44, %v1614_v42  ;;  %v1617_v47 = vld [vmem:[#allocation5 + $0x2e90] sm:$0xff]  ;;  %v15265_v42 = vcombine.low %v1657_v48, %v1661_v1  ;;  %v15920_v48 = vld [vmem:[#allocation8 + $0x164] ss:$16 sps:$4 sm:$0xff]  }
 0x649   :  { %10908 = vmatprep.subr.bf16.mxu0 %v15162_v53  ;;  %11400 = vmatprep.subr.bf16.mxu1 %v15164_v52  ;;  %v1621_v53 = vld [vmem:[#allocation5 + $0x2eb0] sm:$0xff]  ;;  %v1618_v52 = vld [vmem:[#allocation5 + $0x2e98] sm:$0xff] }
 0x64a   :  { %v15226_v46 = vcombine.high %v1617_v47, %v1621_v53  ;;  %v15225_v0 = vcombine.low %v1617_v47, %v1621_v53  ;;  %v15227_v7 = vcombine.low %v1618_v52, %v1622_v56  ;;  %v15852_v47 = vld [vmem:[#allocation8] ss:$16 sps:$4 sm:$0xff]   ;;  %v15855_v53 = vld [vmem:[#allocation8 + $0x8] ss:$16 sps:$4 sm:$0xff]   ;;  %v15923_v1 = vld [vmem:[#allocation8 + $0x16c] ss:$16 sps:$4 sm:$0xff]  }
 0x64c   :  { %10909 = vmatpush1.bf16.msra.mxu0 %v15161_v54  ;;  %11401 = vmatpush1.bf16.msra.mxu1 %v15163_v51  ;;  %v15228_v54 = vcombine.high %v1618_v52, %v1622_v56  ;;  %v1625_v51 = vld [vmem:[#allocation5 + $0x2ed0] sm:$0xff]  ;;  %v15860_v52 = vld [vmem:[#allocation8 + $0x24] ss:$16 sps:$4 sm:$0xff]  }
 0x64d   :  { %10910 = vmatprep.subr.bf16.mxu0 %v15170_v63  ;;  %11402 = vmatprep.subr.bf16.mxu1 %v15172_v3  ;;  %v1629_v63 = vld [vmem:[#allocation5 + $0x2ef0] sm:$0xff]  ;;  %v1626_v3 = vld [vmem:[#allocation5 + $0x2ed8] sm:$0xff] }
 0x64e   :  { %v15234_v9 = vcombine.high %v1625_v51, %v1629_v63  ;;  %v15233_v17 = vcombine.low %v1625_v51, %v1629_v63  ;;  %v15235_v58 = vcombine.low %v1626_v3, %v1630_v6  ;;  %v15864_v51 = vld [vmem:[#allocation8 + $0x40] ss:$16 sps:$4 sm:$0xff]   ;;  %v15867_v63 = vld [vmem:[#allocation8 + $0x48] ss:$16 sps:$4 sm:$0xff]  }
 0x650   :  { %10911 = vmatpush1.bf16.msra.mxu0 %v15169_v23  ;;  %11403 = vmatpush1.bf16.msra.mxu1 %v15171_v11  ;;  %v15236_v23 = vcombine.high %v1626_v3, %v1630_v6  ;;  %v1633_v11 = vld [vmem:[#allocation5 + $0x2f10] sm:$0xff]  ;;  %v15872_v3 = vld [vmem:[#allocation8 + $0x64] ss:$16 sps:$4 sm:$0xff]  }
 0x651   :  { %10912 = vmatprep.subr.bf16.mxu0 %v15178_v13  ;;  %11404 = vmatprep.subr.bf16.mxu1 %v15180_v4  ;;  %v1637_v13 = vld [vmem:[#allocation5 + $0x2f30] sm:$0xff]  ;;  %v1665_v4 = vlaneseq }
 0x652   :  { %v15241_v39 = vcombine.low %v1633_v11, %v1637_v13  ;;  %v15875_v6 = vld [vmem:[#allocation8 + $0x6c] ss:$16 sps:$4 sm:$0xff]  }
 0x653   :  { %v16815_v22 = vshrl.u32 %v1665_v4, 7  ;;  %v15887_v4 = vld [vmem:[#allocation8 + $0xac] ss:$16 sps:$4 sm:$0xff]  }
 0x654   :  { %10913 = vmatpush1.bf16.msra.mxu0 %v15177_v10  ;;  %11405 = vmatpush1.bf16.msra.mxu1 %v15179_v18  ;;  %v15242_v10 = vcombine.high %v1633_v11, %v1637_v13  ;;  %v15244_v18 = vcombine.high %v1634_v60, %v1638_v14  ;;  %v15879_v11 = vld [vmem:[#allocation8 + $0x88] ss:$16 sps:$4 sm:$0xff]   ;;  %v15884_v13 = vld [vmem:[#allocation8 + $0xa4] ss:$16 sps:$4 sm:$0xff]  }
 0x655   :  { %10914 = vmatprep.subr.bf16.mxu0 %v15186_v16  ;;  %11406 = vmatprep.subr.bf16.mxu1 %v15188_v21  ;;  %v1641_v16 = vld [vmem:[#allocation5 + $0x2f50] sm:$0xff]  ;;  %v1671_v28 = vsub.s32 1, %v16815_v22 }
 0x656   :  { %v1645_v21 = vld [vmem:[#allocation5 + $0x2f70] sm:$0xff] }
 0x658   :  { %10915 = vmatpush1.bf16.msra.mxu0 %v15185_v59  ;;  %11407 = vmatpush1.bf16.msra.mxu1 %v15187_v29  ;;  %v15243_v59 = vcombine.low %v1634_v60, %v1638_v14  ;;  %v15250_v29 = vcombine.high %v1641_v16, %v1645_v21  ;;  %v15882_v60 = vld [vmem:[#allocation8 + $0xa0] ss:$16 sps:$4 sm:$0xff]   ;;  %v15885_v14 = vld [vmem:[#allocation8 + $0xa8] ss:$16 sps:$4 sm:$0xff]  }
 0x659   :  { %10916 = vmatprep.subr.bf16.mxu0 %v15194_v55  ;;  %11408 = vmatprep.subr.bf16.mxu1 %v15196_v30  ;;  %v15252_v55 = vcombine.high %v1642_v26, %v1646_v27  ;;  %v1649_v30 = vld [vmem:[#allocation5 + $0x2f90] sm:$0xff] }
 0x65c   :  { %10917 = vmatpush1.bf16.msra.mxu0 %v15193_v33  ;;  %11409 = vmatpush1.bf16.msra.mxu1 %v15195_v15  ;;  %v16818_v33 = vld [vmem:[#allocation7] sm:$0xff]  ;;  %v15249_v15 = vcombine.low %v1641_v16, %v1645_v21  ;;  %v15896_v16 = vld [vmem:[#allocation8 + $0xe4] ss:$16 sps:$4 sm:$0xff]  }
 0x65d   :  { %10918 = vmatprep.subr.bf16.mxu0 %v15202_v20  ;;  %11410 = vmatprep.subr.bf16.mxu1 %v15204_v25  ;;  %v15251_v20 = vcombine.low %v1642_v26, %v1646_v27  ;;  %v15258_v25 = vcombine.high %v1649_v30, %v1653_v50  ;;  %v1672_v12 = vrot.slane %v16818_v33, %v1671_v28  ;;  %v15899_v21 = vld [vmem:[#allocation8 + $0xec] ss:$16 sps:$4 sm:$0xff]   ;;  %v15894_v26 = vld [vmem:[#allocation8 + $0xe0] ss:$16 sps:$4 sm:$0xff]   ;;  %v15897_v27 = vld [vmem:[#allocation8 + $0xe8] ss:$16 sps:$4 sm:$0xff]  }
 0x65f   :  { %v15603_v44 = vadd.f32 %v16779_v5, %v1672_v12  ;;  %v15863_v5 = vld [vmem:[#allocation8 + $0x2c] ss:$16 sps:$4 sm:$0xff]   ;;  %v15918_v12 = vld [vmem:[#allocation8 + $0x160] ss:$16 sps:$4 sm:$0xff]  }
 0x660   :  { %10919 = vmatpush1.bf16.msra.mxu0 %v15201_v2  ;;  %11411 = vmatpush1.bf16.msra.mxu1 %v15203_v36  ;;  %v1658_v2 = vld [vmem:[#allocation5 + $0x2fd8] sm:$0xff] }
 0x661   :  { %10920 = vmatprep.subr.bf16.mxu0 %v15210_v37  ;;  %11412 = vmatprep.subr.bf16.mxu1 %v15212_v40  ;;  %v1662_v36 = vld [vmem:[#allocation5 + $0x2ff8] sm:$0xff]  ;;  %v15257_v37 = vcombine.low %v1649_v30, %v1653_v50  ;;  %v15259_v40 = vcombine.low %v1650_v31, %v1654_v49  ;;  %v15911_v50 = vld [vmem:[#allocation8 + $0x12c] ss:$16 sps:$4 sm:$0xff]   ;;  %v15909_v49 = vld [vmem:[#allocation8 + $0x128] ss:$16 sps:$4 sm:$0xff]  }
 0x662   :  { %v15268_v32 = vcombine.high %v1658_v2, %v1662_v36  ;;  %v15908_v30 = vld [vmem:[#allocation8 + $0x124] ss:$16 sps:$4 sm:$0xff]   ;;  %v15906_v31 = vld [vmem:[#allocation8 + $0x120] ss:$16 sps:$4 sm:$0xff]  }
 0x664   :  { %10921 = vmatpush1.bf16.msra.mxu0 %v15209_v57  ;;  %11413 = vmatpush1.bf16.msra.mxu1 %v15211_v43  ;;  %v15267_v57 = vcombine.low %v1658_v2, %v1662_v36  ;;  %v15854_v43 = vld [vmem:[#allocation8 + $0x4] ss:$16 sps:$4 sm:$0xff]   ;;  %v15921_v2 = vld [vmem:[#allocation8 + $0x168] ss:$16 sps:$4 sm:$0xff]  }
 0x665   :  { %10922 = vmatprep.subr.bf16.mxu0 %v15218_v34  ;;  %11414 = vmatprep.subr.bf16.mxu1 %v15220_v45  ;;  %v15857_v34 = vld [vmem:[#allocation8 + $0xc] ss:$16 sps:$4 sm:$0xff]   ;;  %v11438_v45 = vmax.f32 %v15603_v44, 0.0  ;;  %v15926_v36 = vld [vmem:[#allocation8 + $0x184] ss:$16 sps:$4 sm:$0xff]  }
 0x666   :  { %v15932_v44 = vld [vmem:[#allocation8 + $0x1a4] ss:$16 sps:$4 sm:$0xff]  }
 0x667   :  { %v11446_v56 = vpack.c.bf16 %v11438_v45, %v11438_v45  ;;  %v15933_v45 = vld [vmem:[#allocation8 + $0x1a8] ss:$16 sps:$4 sm:$0xff]  }
 0x668   :  { %10923 = vmatpush1.bf16.msra.mxu0 %v15217_v62  ;;  %11415 = vmatpush1.bf16.msra.mxu1 %v15219_v19  ;;  %v15858_v62 = vld [vmem:[#allocation8 + $0x20] ss:$16 sps:$4 sm:$0xff]   ;;  %v15861_v19 = vld [vmem:[#allocation8 + $0x28] ss:$16 sps:$4 sm:$0xff]  }
 0x669   :  { %10924 = vmatprep.subr.bf16.mxu0 %v15226_v46  ;;  %11416 = vmatprep.subr.bf16.mxu1 %v15228_v54  ;;  %v15866_v46 = vld [vmem:[#allocation8 + $0x44] ss:$16 sps:$4 sm:$0xff]   ;;  %v15869_v54 = vld [vmem:[#allocation8 + $0x4c] ss:$16 sps:$4 sm:$0xff]  }
 0x66c   :  { %10925 = vmatpush1.bf16.msra.mxu0 %v15225_v0  ;;  %11417 = vmatpush1.bf16.msra.mxu1 %v15227_v7  ;;  %v15873_v0 = vld [vmem:[#allocation8 + $0x68] ss:$16 sps:$4 sm:$0xff]   ;;  %v15878_v7 = vld [vmem:[#allocation8 + $0x84] ss:$16 sps:$4 sm:$0xff]  }
 0x66d   :  { %10926 = vmatprep.subr.bf16.mxu0 %v15234_v9  ;;  %11418 = vmatprep.subr.bf16.mxu1 %v15236_v23  ;;  %v15881_v9 = vld [vmem:[#allocation8 + $0x8c] ss:$16 sps:$4 sm:$0xff]   ;;  %v15876_v23 = vld [vmem:[#allocation8 + $0x80] ss:$16 sps:$4 sm:$0xff]  }
 0x670   :  { %10927 = vmatpush1.bf16.msra.mxu0 %v15233_v17  ;;  %11419 = vmatpush1.bf16.msra.mxu1 %v15235_v58  ;;  %v15890_v17 = vld [vmem:[#allocation8 + $0xc4] ss:$16 sps:$4 sm:$0xff]   ;;  %v15893_v58 = vld [vmem:[#allocation8 + $0xcc] ss:$16 sps:$4 sm:$0xff]  }
 0x671   :  { %10928 = vmatprep.subr.bf16.mxu0 %v15242_v10  ;;  %11420 = vmatprep.subr.bf16.mxu1 %v15244_v18  ;;  %v15888_v10 = vld [vmem:[#allocation8 + $0xc0] ss:$16 sps:$4 sm:$0xff]   ;;  %v15891_v18 = vld [vmem:[#allocation8 + $0xc8] ss:$16 sps:$4 sm:$0xff]  }
 0x674   :  { %10929 = vmatpush1.bf16.msra.mxu0 %v15241_v39  ;;  %11421 = vmatpush1.bf16.msra.mxu1 %v15243_v59  ;;  %v15902_v39 = vld [vmem:[#allocation8 + $0x104] ss:$16 sps:$4 sm:$0xff]   ;;  %v15905_v59 = vld [vmem:[#allocation8 + $0x10c] ss:$16 sps:$4 sm:$0xff]  }
 0x675   :  { %10930 = vmatprep.subr.bf16.mxu0 %v15250_v29  ;;  %11422 = vmatprep.subr.bf16.mxu1 %v15252_v55  ;;  %v15900_v29 = vld [vmem:[#allocation8 + $0x100] ss:$16 sps:$4 sm:$0xff]   ;;  %v15903_v55 = vld [vmem:[#allocation8 + $0x108] ss:$16 sps:$4 sm:$0xff]  }
 0x678   :  { %10931 = vmatpush1.bf16.msra.mxu0 %v15249_v15  ;;  %11423 = vmatpush1.bf16.msra.mxu1 %v15251_v20  ;;  %v15914_v15 = vld [vmem:[#allocation8 + $0x144] ss:$16 sps:$4 sm:$0xff]   ;;  %v15917_v20 = vld [vmem:[#allocation8 + $0x14c] ss:$16 sps:$4 sm:$0xff]  }
 0x679   :  { %10932 = vmatprep.subr.bf16.mxu0 %v15258_v25  ;;  %11424 = vmatprep.subr.bf16.mxu1 %v15260_v35  ;;  %v15912_v25 = vld [vmem:[#allocation8 + $0x140] ss:$16 sps:$4 sm:$0xff]   ;;  %v15915_v35 = vld [vmem:[#allocation8 + $0x148] ss:$16 sps:$4 sm:$0xff]  }
 0x67c   :  { %10933 = vmatpush1.bf16.msra.mxu0 %v15257_v37  ;;  %11425 = vmatpush1.bf16.msra.mxu1 %v15259_v40  ;;  %v15929_v37 = vld [vmem:[#allocation8 + $0x18c] ss:$16 sps:$4 sm:$0xff]   ;;  %v15924_v40 = vld [vmem:[#allocation8 + $0x180] ss:$16 sps:$4 sm:$0xff]  }
 0x67d   :  { %10934 = vmatprep.subr.bf16.mxu0 %v15266_v41  ;;  %11426 = vmatprep.subr.bf16.mxu1 %v15268_v32  ;;  %v1667_v41 = vsub.s32 0, %v16815_v22  ;;  %v15927_v32 = vld [vmem:[#allocation8 + $0x188] ss:$16 sps:$4 sm:$0xff]  }
 0x680   :  { %10935 = vmatpush1.bf16.msra.mxu0 %v15265_v42  ;;  %11427 = vmatpush1.bf16.msra.mxu1 %v15267_v57  ;;  %v15935_v42 = vld [vmem:[#allocation8 + $0x1ac] ss:$16 sps:$4 sm:$0xff]   ;;  %v1679_v57 = vsub.s32 3, %v16815_v22 }
 0x681   :  { %13011 = vmatprep.subr.bf16.mxu0 %v15854_v43  ;;  %13175 = vmatprep.subr.bf16.mxu1 %v15857_v34  ;;  %v15930_v43 = vld [vmem:[#allocation8 + $0x1a0] ss:$16 sps:$4 sm:$0xff]   ;;  %v1668_v34 = vrot.slane %v16818_v33, %v1667_v41 }
 0x683   :  { %10937 = vmatmul.mubr.bf16.vlgmr.msra.gmra.mrb[4].mxu0 %v16757_v24  ;;  %11429 = vmatmul.mubr.bf16.vlgmr.msra.gmra.mrb[4].mxu1 %v16757_v24  ;;  %v15870_v24 = vld [vmem:[#allocation8 + $0x60] ss:$16 sps:$4 sm:$0xff]  }
 0x684   :  { %13012 = vmatpush1.bf16.msra.mxu0 %v15852_v47  ;;  %13043 = vmatprep.mubr.bf16.mxu0 %v11446_v56  ;;  %v15938_v47 = vld [vmem:[#allocation8 + $0x1c4] ss:$16 sps:$4 sm:$0xff]  }
 0x685   :  { %13176 = vmatpush1.bf16.msra.mxu1 %v15855_v53  ;;  %13207 = vmatprep.mubr.bf16.mxu1 %v11446_v56  ;;  %v15941_v53 = vld [vmem:[#allocation8 + $0x1cc] ss:$16 sps:$4 sm:$0xff]   ;;  %v15936_v56 = vld [vmem:[#allocation8 + $0x1c0] ss:$16 sps:$4 sm:$0xff]  }
 0x686   :  { %13013 = vmatprep.subr.bf16.mxu0 %v15860_v52  ;;  %13177 = vmatprep.subr.bf16.mxu1 %v15863_v5  ;;  %v1680_v52 = vrot.slane %v16818_v33, %v1679_v57  ;;  %v15602_v5 = vadd.f32 %v16775_v61, %v1668_v34  ;;  %v15948_v61 = vld [vmem:[#allocation8 + $0x200] ss:$16 sps:$4 sm:$0xff]   ;;  %v16013_v34 = vld [vmem:[#allocation8 + $0x34c] ss:$16 sps:$4 sm:$0xff]  }
 0x688   :  { %13014 = vmatpush1.bf16.msra.mxu0 %v15858_v62  ;;  %v15939_v62 = vld [vmem:[#allocation8 + $0x1c8] ss:$16 sps:$4 sm:$0xff]  }
 0x689   :  { %13178 = vmatpush1.bf16.msra.mxu1 %v15861_v19  ;;  %13015 = vmatprep.subr.bf16.mxu0 %v15866_v46  ;;  %v15944_v19 = vld [vmem:[#allocation8 + $0x1e4] ss:$16 sps:$4 sm:$0xff]   ;;  %v15947_v46 = vld [vmem:[#allocation8 + $0x1ec] ss:$16 sps:$4 sm:$0xff]  }
 0x68a   :  { %13179 = vmatprep.subr.bf16.mxu1 %v15869_v54  ;;  %v15605_v54 = vadd.f32 %v16781_v8, %v1680_v52  ;;  %v15959_v8 = vld [vmem:[#allocation8 + $0x22c] ss:$16 sps:$4 sm:$0xff]  }
 0x68b   :  { %v16019_v52 = vld [vmem:[#allocation8 + $0x36c] ss:$16 sps:$4 sm:$0xff]  }
 0x68c   :  { %13016 = vmatpush1.bf16.msra.mxu0 %v15864_v51  ;;  %v15942_v51 = vld [vmem:[#allocation8 + $0x1e0] ss:$16 sps:$4 sm:$0xff]  }
 0x68d   :  { %13180 = vmatpush1.bf16.msra.mxu1 %v15867_v63  ;;  %13017 = vmatprep.subr.bf16.mxu0 %v15872_v3  ;;  %v11437_v63 = vmax.f32 %v15602_v5, 0.0  ;;  %v15945_v3 = vld [vmem:[#allocation8 + $0x1e8] ss:$16 sps:$4 sm:$0xff]  }
 0x68e   :  { %13181 = vmatprep.subr.bf16.mxu1 %v15875_v6  ;;  %v15950_v6 = vld [vmem:[#allocation8 + $0x204] ss:$16 sps:$4 sm:$0xff]   ;;  %v16017_v5 = vld [vmem:[#allocation8 + $0x368] ss:$16 sps:$4 sm:$0xff]  }
 0x690   :  { %13018 = vmatpush1.bf16.msra.mxu0 %v15870_v24  ;;  %v15953_v24 = vld [vmem:[#allocation8 + $0x20c] ss:$16 sps:$4 sm:$0xff]  }
 0x691   :  { %13182 = vmatpush1.bf16.msra.mxu1 %v15873_v0  ;;  %13019 = vmatprep.subr.bf16.mxu0 %v15878_v7  ;;  %v11440_v0 = vmax.f32 %v15605_v54, 0.0  ;;  %v11445_v7 = vpack.c.bf16 %v11437_v63, %v11437_v63  ;;  %v1675_v54 = vsub.s32 2, %v16815_v22  ;;  %v16028_v63 = vld [vmem:[#allocation8 + $0x3a4] ss:$16 sps:$4 sm:$0xff]  }
 0x692   :  { %13183 = vmatprep.subr.bf16.mxu1 %v15881_v9  ;;  %v15951_v9 = vld [vmem:[#allocation8 + $0x208] ss:$16 sps:$4 sm:$0xff]  }
 0x694   :  { %13020 = vmatpush1.bf16.msra.mxu0 %v15876_v23  ;;  %v15956_v23 = vld [vmem:[#allocation8 + $0x224] ss:$16 sps:$4 sm:$0xff]  }
 0x695   :  { %13184 = vmatpush1.bf16.msra.mxu1 %v15879_v11  ;;  %13021 = vmatprep.subr.bf16.mxu0 %v15884_v13  ;;  %v11448_v11 = vpack.c.bf16 %v11440_v0, %v11440_v0  ;;  %v15954_v13 = vld [vmem:[#allocation8 + $0x220] ss:$16 sps:$4 sm:$0xff]   ;;  %v16029_v0 = vld [vmem:[#allocation8 + $0x3a8] ss:$16 sps:$4 sm:$0xff]  }
 0x696   :  { %13185 = vmatprep.subr.bf16.mxu1 %v15887_v4  ;;  %v15957_v4 = vld [vmem:[#allocation8 + $0x228] ss:$16 sps:$4 sm:$0xff]  }
 0x698   :  { %13022 = vmatpush1.bf16.msra.mxu0 %v15882_v60  ;;  %v15962_v60 = vld [vmem:[#allocation8 + $0x244] ss:$16 sps:$4 sm:$0xff]  }
 0x699   :  { %13186 = vmatpush1.bf16.msra.mxu1 %v15885_v14  ;;  %13023 = vmatprep.subr.bf16.mxu0 %v15890_v17  ;;  %v15965_v14 = vld [vmem:[#allocation8 + $0x24c] ss:$16 sps:$4 sm:$0xff]   ;;  %v15960_v17 = vld [vmem:[#allocation8 + $0x240] ss:$16 sps:$4 sm:$0xff]  }
 0x69a   :  { %13187 = vmatprep.subr.bf16.mxu1 %v15893_v58  ;;  %v15963_v58 = vld [vmem:[#allocation8 + $0x248] ss:$16 sps:$4 sm:$0xff]  }
 0x69c   :  { %13024 = vmatpush1.bf16.msra.mxu0 %v15888_v10  ;;  %v15968_v10 = vld [vmem:[#allocation8 + $0x264] ss:$16 sps:$4 sm:$0xff]  }
 0x69d   :  { %13188 = vmatpush1.bf16.msra.mxu1 %v15891_v18  ;;  %13025 = vmatprep.subr.bf16.mxu0 %v15896_v16  ;;  %v15971_v18 = vld [vmem:[#allocation8 + $0x26c] ss:$16 sps:$4 sm:$0xff]   ;;  %v15966_v16 = vld [vmem:[#allocation8 + $0x260] ss:$16 sps:$4 sm:$0xff]  }
 0x69e   :  { %13189 = vmatprep.subr.bf16.mxu1 %v15899_v21  ;;  %v15969_v21 = vld [vmem:[#allocation8 + $0x268] ss:$16 sps:$4 sm:$0xff]  }
 0x6a0   :  { %13026 = vmatpush1.bf16.msra.mxu0 %v15894_v26  ;;  %v15974_v26 = vld [vmem:[#allocation8 + $0x284] ss:$16 sps:$4 sm:$0xff]  }
 0x6a1   :  { %13190 = vmatpush1.bf16.msra.mxu1 %v15897_v27  ;;  %13027 = vmatprep.subr.bf16.mxu0 %v15902_v39  ;;  %v15977_v27 = vld [vmem:[#allocation8 + $0x28c] ss:$16 sps:$4 sm:$0xff]   ;;  %v15972_v39 = vld [vmem:[#allocation8 + $0x280] ss:$16 sps:$4 sm:$0xff]  }
 0x6a2   :  { %13191 = vmatprep.subr.bf16.mxu1 %v15905_v59  ;;  %v15975_v59 = vld [vmem:[#allocation8 + $0x288] ss:$16 sps:$4 sm:$0xff]  }
 0x6a4   :  { %13028 = vmatpush1.bf16.msra.mxu0 %v15900_v29  ;;  %v15980_v29 = vld [vmem:[#allocation8 + $0x2a4] ss:$16 sps:$4 sm:$0xff]  }
 0x6a5   :  { %13192 = vmatpush1.bf16.msra.mxu1 %v15903_v55  ;;  %13029 = vmatprep.subr.bf16.mxu0 %v15908_v30  ;;  %v15983_v55 = vld [vmem:[#allocation8 + $0x2ac] ss:$16 sps:$4 sm:$0xff]   ;;  %v15978_v30 = vld [vmem:[#allocation8 + $0x2a0] ss:$16 sps:$4 sm:$0xff]  }
 0x6a6   :  { %13193 = vmatprep.subr.bf16.mxu1 %v15911_v50  ;;  %v15981_v50 = vld [vmem:[#allocation8 + $0x2a8] ss:$16 sps:$4 sm:$0xff]  }
 0x6a8   :  { %13030 = vmatpush1.bf16.msra.mxu0 %v15906_v31  ;;  %v15986_v31 = vld [vmem:[#allocation8 + $0x2c4] ss:$16 sps:$4 sm:$0xff]  }
 0x6a9   :  { %13194 = vmatpush1.bf16.msra.mxu1 %v15909_v49  ;;  %13031 = vmatprep.subr.bf16.mxu0 %v15914_v15  ;;  %v15989_v49 = vld [vmem:[#allocation8 + $0x2cc] ss:$16 sps:$4 sm:$0xff]   ;;  %v15984_v15 = vld [vmem:[#allocation8 + $0x2c0] ss:$16 sps:$4 sm:$0xff]  }
 0x6aa   :  { %13195 = vmatprep.subr.bf16.mxu1 %v15917_v20  ;;  %v15987_v20 = vld [vmem:[#allocation8 + $0x2c8] ss:$16 sps:$4 sm:$0xff]  }
 0x6ac   :  { %13032 = vmatpush1.bf16.msra.mxu0 %v15912_v25  ;;  %v15992_v25 = vld [vmem:[#allocation8 + $0x2e4] ss:$16 sps:$4 sm:$0xff]  }
 0x6ad   :  { %13196 = vmatpush1.bf16.msra.mxu1 %v15915_v35  ;;  %13033 = vmatprep.subr.bf16.mxu0 %v15920_v48  ;;  %v15995_v35 = vld [vmem:[#allocation8 + $0x2ec] ss:$16 sps:$4 sm:$0xff]   ;;  %v15990_v48 = vld [vmem:[#allocation8 + $0x2e0] ss:$16 sps:$4 sm:$0xff]  }
 0x6ae   :  { %13197 = vmatprep.subr.bf16.mxu1 %v15923_v1  ;;  %v15993_v1 = vld [vmem:[#allocation8 + $0x2e8] ss:$16 sps:$4 sm:$0xff]  }
 0x6b0   :  { %13034 = vmatpush1.bf16.msra.mxu0 %v15918_v12  ;;  %v15998_v12 = vld [vmem:[#allocation8 + $0x304] ss:$16 sps:$4 sm:$0xff]  }
 0x6b1   :  { %13198 = vmatpush1.bf16.msra.mxu1 %v15921_v2  ;;  %13035 = vmatprep.subr.bf16.mxu0 %v15926_v36  ;;  %v16001_v2 = vld [vmem:[#allocation8 + $0x30c] ss:$16 sps:$4 sm:$0xff]   ;;  %v15996_v36 = vld [vmem:[#allocation8 + $0x300] ss:$16 sps:$4 sm:$0xff]  }
 0x6b2   :  { %13199 = vmatprep.subr.bf16.mxu1 %v15929_v37  ;;  %v15999_v37 = vld [vmem:[#allocation8 + $0x308] ss:$16 sps:$4 sm:$0xff]  }
 0x6b4   :  { %13036 = vmatpush1.bf16.msra.mxu0 %v15924_v40  ;;  %v16004_v40 = vld [vmem:[#allocation8 + $0x324] ss:$16 sps:$4 sm:$0xff]  }
 0x6b5   :  { %13200 = vmatpush1.bf16.msra.mxu1 %v15927_v32  ;;  %13037 = vmatprep.subr.bf16.mxu0 %v15932_v44  ;;  %v16007_v32 = vld [vmem:[#allocation8 + $0x32c] ss:$16 sps:$4 sm:$0xff]   ;;  %v16002_v44 = vld [vmem:[#allocation8 + $0x320] ss:$16 sps:$4 sm:$0xff]  }
 0x6b6   :  { %13201 = vmatprep.subr.bf16.mxu1 %v15935_v42  ;;  %v16005_v42 = vld [vmem:[#allocation8 + $0x328] ss:$16 sps:$4 sm:$0xff]  }
 0x6b8   :  { %13038 = vmatpush1.bf16.msra.mxu0 %v15930_v43  ;;  %v16010_v43 = vld [vmem:[#allocation8 + $0x344] ss:$16 sps:$4 sm:$0xff]  }
 0x6b9   :  { %13202 = vmatpush1.bf16.msra.mxu1 %v15933_v45  ;;  %13039 = vmatprep.subr.bf16.mxu0 %v15938_v47  ;;  %v16008_v45 = vld [vmem:[#allocation8 + $0x340] ss:$16 sps:$4 sm:$0xff]   ;;  %v16011_v47 = vld [vmem:[#allocation8 + $0x348] ss:$16 sps:$4 sm:$0xff]  }
 0x6ba   :  { %13203 = vmatprep.subr.bf16.mxu1 %v15941_v53  ;;  %v16016_v53 = vld [vmem:[#allocation8 + $0x364] ss:$16 sps:$4 sm:$0xff]  }
 0x6bc   :  { %13040 = vmatpush1.bf16.msra.mxu0 %v15936_v56  ;;  %v16014_v56 = vld [vmem:[#allocation8 + $0x360] ss:$16 sps:$4 sm:$0xff]  }
 0x6bd   :  { %13204 = vmatpush1.bf16.msra.mxu1 %v15939_v62  ;;  %13041 = vmatprep.subr.bf16.mxu0 %v15944_v19  ;;  %v16022_v62 = vld [vmem:[#allocation8 + $0x384] ss:$16 sps:$4 sm:$0xff]   ;;  %v16025_v19 = vld [vmem:[#allocation8 + $0x38c] ss:$16 sps:$4 sm:$0xff]  }
 0x6be   :  { %13205 = vmatprep.subr.bf16.mxu1 %v15947_v46  ;;  %v16020_v46 = vld [vmem:[#allocation8 + $0x380] ss:$16 sps:$4 sm:$0xff]  }
 0x6c0   :  { %13042 = vmatpush1.bf16.msra.mxu0 %v15942_v51  ;;  %v16023_v51 = vld [vmem:[#allocation8 + $0x388] ss:$16 sps:$4 sm:$0xff]  }
 0x6c1   :  { %13206 = vmatpush1.bf16.msra.mxu1 %v15945_v3  ;;  %13052 = vmatprep.subr.bf16.mxu0 %v15950_v6  ;;  %v16031_v3 = vld [vmem:[#allocation8 + $0x3ac] ss:$16 sps:$4 sm:$0xff]   ;;  %v16026_v6 = vld [vmem:[#allocation8 + $0x3a0] ss:$16 sps:$4 sm:$0xff]  }
 0x6c2   :  { %13216 = vmatprep.subr.bf16.mxu1 %v15953_v24  ;;  %v1676_v24 = vrot.slane %v16818_v33, %v1675_v54 }
 0x6c3   :  { %13044 = vmatmul.mubr.bf16.vlgmr.msra.gmra.mrb[8].mxu0 %v11445_v7 }
 0x6c4   :  { %13208 = vmatmul.mubr.bf16.vlgmr.msra.gmra.mrb[8].mxu1 %v11445_v7  ;;  %13053 = vmatpush1.bf16.msra.mxu0 %v15948_v61  ;;  %v16034_v61 = vld [vmem:[#allocation8 + $0x3c4] ss:$16 sps:$4 sm:$0xff]   ;;  %v16037_v7 = vld [vmem:[#allocation8 + $0x3cc] ss:$16 sps:$4 sm:$0xff]  }
 0x6c5   :  { %13084 = vmatprep.mubr.bf16.mxu0 %v11448_v11  ;;  %13217 = vmatpush1.bf16.msra.mxu1 %v15951_v9  ;;  %v16032_v9 = vld [vmem:[#allocation8 + $0x3c0] ss:$16 sps:$4 sm:$0xff]  }
 0x6c6   :  { %13248 = vmatprep.mubr.bf16.mxu1 %v11448_v11  ;;  %13054 = vmatprep.subr.bf16.mxu0 %v15956_v23  ;;  %v15604_v23 = vadd.f32 %v16777_v38, %v1676_v24  ;;  %v16035_v11 = vld [vmem:[#allocation8 + $0x3c8] ss:$16 sps:$4 sm:$0xff]   ;;  %v16115_v24 = vld [vmem:[#allocation8 + $0x56c] ss:$16 sps:$4 sm:$0xff]  }
 0x6c7   :  { %13218 = vmatprep.subr.bf16.mxu1 %v15959_v8  ;;  %v16040_v8 = vld [vmem:[#allocation8 + $0x3e4] ss:$16 sps:$4 sm:$0xff]   ;;  %v16047_v38 = vld [vmem:[#allocation8 + $0x408] ss:$16 sps:$4 sm:$0xff]  }
 0x6c8   :  { %13055 = vmatpush1.bf16.msra.mxu0 %v15954_v13  ;;  %v16043_v13 = vld [vmem:[#allocation8 + $0x3ec] ss:$16 sps:$4 sm:$0xff]  }
 0x6c9   :  { %13219 = vmatpush1.bf16.msra.mxu1 %v15957_v4  ;;  %13056 = vmatprep.subr.bf16.mxu0 %v15962_v60  ;;  %v16038_v4 = vld [vmem:[#allocation8 + $0x3e0] ss:$16 sps:$4 sm:$0xff]   ;;  %v11439_v60 = vmax.f32 %v15604_v23, 0.0 }
 0x6ca   :  { %13220 = vmatprep.subr.bf16.mxu1 %v15965_v14  ;;  %v16041_v14 = vld [vmem:[#allocation8 + $0x3e8] ss:$16 sps:$4 sm:$0xff]   ;;  %v16116_v23 = vld [vmem:[#allocation8 + $0x580] ss:$16 sps:$4 sm:$0xff]  }
 0x6cc   :  { %13057 = vmatpush1.bf16.msra.mxu0 %v15960_v17  ;;  %v16046_v17 = vld [vmem:[#allocation8 + $0x404] ss:$16 sps:$4 sm:$0xff]  }
 0x6cd   :  { %13221 = vmatpush1.bf16.msra.mxu1 %v15963_v58  ;;  %13058 = vmatprep.subr.bf16.mxu0 %v15968_v10  ;;  %v16049_v58 = vld [vmem:[#allocation8 + $0x40c] ss:$16 sps:$4 sm:$0xff]   ;;  %v16044_v10 = vld [vmem:[#allocation8 + $0x400] ss:$16 sps:$4 sm:$0xff]  }
 0x6ce   :  { %13222 = vmatprep.subr.bf16.mxu1 %v15971_v18  ;;  %v11447_v18 = vpack.c.bf16 %v11439_v60, %v11439_v60  ;;  %v16125_v60 = vld [vmem:[#allocation8 + $0x5a8] ss:$16 sps:$4 sm:$0xff]  }
 0x6d0   :  { %13059 = vmatpush1.bf16.msra.mxu0 %v15966_v16  ;;  %v16052_v16 = vld [vmem:[#allocation8 + $0x424] ss:$16 sps:$4 sm:$0xff]  }
 0x6d1   :  { %13223 = vmatpush1.bf16.msra.mxu1 %v15969_v21  ;;  %13060 = vmatprep.subr.bf16.mxu0 %v15974_v26  ;;  %v16055_v21 = vld [vmem:[#allocation8 + $0x42c] ss:$16 sps:$4 sm:$0xff]   ;;  %v16050_v26 = vld [vmem:[#allocation8 + $0x420] ss:$16 sps:$4 sm:$0xff]  }
 0x6d2   :  { %13224 = vmatprep.subr.bf16.mxu1 %v15977_v27  ;;  %v16053_v27 = vld [vmem:[#allocation8 + $0x428] ss:$16 sps:$4 sm:$0xff]  }
 0x6d4   :  { %13061 = vmatpush1.bf16.msra.mxu0 %v15972_v39  ;;  %v16058_v39 = vld [vmem:[#allocation8 + $0x444] ss:$16 sps:$4 sm:$0xff]  }
 0x6d5   :  { %13225 = vmatpush1.bf16.msra.mxu1 %v15975_v59  ;;  %13062 = vmatprep.subr.bf16.mxu0 %v15980_v29  ;;  %v16061_v59 = vld [vmem:[#allocation8 + $0x44c] ss:$16 sps:$4 sm:$0xff]   ;;  %v16056_v29 = vld [vmem:[#allocation8 + $0x440] ss:$16 sps:$4 sm:$0xff]  }
 0x6d6   :  { %13226 = vmatprep.subr.bf16.mxu1 %v15983_v55  ;;  %v16059_v55 = vld [vmem:[#allocation8 + $0x448] ss:$16 sps:$4 sm:$0xff]  }
 0x6d8   :  { %13063 = vmatpush1.bf16.msra.mxu0 %v15978_v30  ;;  %v16064_v30 = vld [vmem:[#allocation8 + $0x464] ss:$16 sps:$4 sm:$0xff]  }
 0x6d9   :  { %13227 = vmatpush1.bf16.msra.mxu1 %v15981_v50  ;;  %13064 = vmatprep.subr.bf16.mxu0 %v15986_v31  ;;  %v16067_v50 = vld [vmem:[#allocation8 + $0x46c] ss:$16 sps:$4 sm:$0xff]   ;;  %v16062_v31 = vld [vmem:[#allocation8 + $0x460] ss:$16 sps:$4 sm:$0xff]  }
 0x6da   :  { %13228 = vmatprep.subr.bf16.mxu1 %v15989_v49  ;;  %v16065_v49 = vld [vmem:[#allocation8 + $0x468] ss:$16 sps:$4 sm:$0xff]  }
 0x6dc   :  { %13065 = vmatpush1.bf16.msra.mxu0 %v15984_v15  ;;  %v16070_v15 = vld [vmem:[#allocation8 + $0x484] ss:$16 sps:$4 sm:$0xff]  }
 0x6dd   :  { %13229 = vmatpush1.bf16.msra.mxu1 %v15987_v20  ;;  %13066 = vmatprep.subr.bf16.mxu0 %v15992_v25  ;;  %v16073_v20 = vld [vmem:[#allocation8 + $0x48c] ss:$16 sps:$4 sm:$0xff]   ;;  %v16068_v25 = vld [vmem:[#allocation8 + $0x480] ss:$16 sps:$4 sm:$0xff]  }
 0x6de   :  { %13230 = vmatprep.subr.bf16.mxu1 %v15995_v35  ;;  %v16071_v35 = vld [vmem:[#allocation8 + $0x488] ss:$16 sps:$4 sm:$0xff]  }
 0x6e0   :  { %13067 = vmatpush1.bf16.msra.mxu0 %v15990_v48  ;;  %v16076_v48 = vld [vmem:[#allocation8 + $0x4a4] ss:$16 sps:$4 sm:$0xff]  }
 0x6e1   :  { %13231 = vmatpush1.bf16.msra.mxu1 %v15993_v1  ;;  %13068 = vmatprep.subr.bf16.mxu0 %v15998_v12  ;;  %v16079_v1 = vld [vmem:[#allocation8 + $0x4ac] ss:$16 sps:$4 sm:$0xff]   ;;  %v16074_v12 = vld [vmem:[#allocation8 + $0x4a0] ss:$16 sps:$4 sm:$0xff]  }
 0x6e2   :  { %13232 = vmatprep.subr.bf16.mxu1 %v16001_v2  ;;  %v16077_v2 = vld [vmem:[#allocation8 + $0x4a8] ss:$16 sps:$4 sm:$0xff]  }
 0x6e4   :  { %13069 = vmatpush1.bf16.msra.mxu0 %v15996_v36  ;;  %v16082_v36 = vld [vmem:[#allocation8 + $0x4c4] ss:$16 sps:$4 sm:$0xff]  }
 0x6e5   :  { %13233 = vmatpush1.bf16.msra.mxu1 %v15999_v37  ;;  %13070 = vmatprep.subr.bf16.mxu0 %v16004_v40  ;;  %v16085_v37 = vld [vmem:[#allocation8 + $0x4cc] ss:$16 sps:$4 sm:$0xff]   ;;  %v16080_v40 = vld [vmem:[#allocation8 + $0x4c0] ss:$16 sps:$4 sm:$0xff]  }
 0x6e6   :  { %13234 = vmatprep.subr.bf16.mxu1 %v16007_v32  ;;  %v16083_v32 = vld [vmem:[#allocation8 + $0x4c8] ss:$16 sps:$4 sm:$0xff]  }
 0x6e8   :  { %13071 = vmatpush1.bf16.msra.mxu0 %v16002_v44  ;;  %v16088_v44 = vld [vmem:[#allocation8 + $0x4e4] ss:$16 sps:$4 sm:$0xff]  }
 0x6e9   :  { %13235 = vmatpush1.bf16.msra.mxu1 %v16005_v42  ;;  %13072 = vmatprep.subr.bf16.mxu0 %v16010_v43  ;;  %v16091_v42 = vld [vmem:[#allocation8 + $0x4ec] ss:$16 sps:$4 sm:$0xff]   ;;  %v16086_v43 = vld [vmem:[#allocation8 + $0x4e0] ss:$16 sps:$4 sm:$0xff]  }
 0x6ea   :  { %13236 = vmatprep.subr.bf16.mxu1 %v16013_v34  ;;  %v16089_v34 = vld [vmem:[#allocation8 + $0x4e8] ss:$16 sps:$4 sm:$0xff]  }
 0x6ec   :  { %13073 = vmatpush1.bf16.msra.mxu0 %v16008_v45  ;;  %v16094_v45 = vld [vmem:[#allocation8 + $0x504] ss:$16 sps:$4 sm:$0xff]  }
 0x6ed   :  { %13237 = vmatpush1.bf16.msra.mxu1 %v16011_v47  ;;  %13074 = vmatprep.subr.bf16.mxu0 %v16016_v53  ;;  %v16097_v47 = vld [vmem:[#allocation8 + $0x50c] ss:$16 sps:$4 sm:$0xff]   ;;  %v16092_v53 = vld [vmem:[#allocation8 + $0x500] ss:$16 sps:$4 sm:$0xff]  }
 0x6ee   :  { %13238 = vmatprep.subr.bf16.mxu1 %v16019_v52  ;;  %v16095_v52 = vld [vmem:[#allocation8 + $0x508] ss:$16 sps:$4 sm:$0xff]  }
 0x6f0   :  { %13075 = vmatpush1.bf16.msra.mxu0 %v16014_v56  ;;  %v16100_v56 = vld [vmem:[#allocation8 + $0x524] ss:$16 sps:$4 sm:$0xff]  }
 0x6f1   :  { %13239 = vmatpush1.bf16.msra.mxu1 %v16017_v5  ;;  %13076 = vmatprep.subr.bf16.mxu0 %v16022_v62  ;;  %v16103_v5 = vld [vmem:[#allocation8 + $0x52c] ss:$16 sps:$4 sm:$0xff]   ;;  %v16098_v62 = vld [vmem:[#allocation8 + $0x520] ss:$16 sps:$4 sm:$0xff]  }
 0x6f2   :  { %13240 = vmatprep.subr.bf16.mxu1 %v16025_v19  ;;  %v16101_v19 = vld [vmem:[#allocation8 + $0x528] ss:$16 sps:$4 sm:$0xff]  }
 0x6f4   :  { %13077 = vmatpush1.bf16.msra.mxu0 %v16020_v46  ;;  %v16106_v46 = vld [vmem:[#allocation8 + $0x544] ss:$16 sps:$4 sm:$0xff]  }
 0x6f5   :  { %13241 = vmatpush1.bf16.msra.mxu1 %v16023_v51  ;;  %13078 = vmatprep.subr.bf16.mxu0 %v16028_v63  ;;  %v16109_v51 = vld [vmem:[#allocation8 + $0x54c] ss:$16 sps:$4 sm:$0xff]   ;;  %v16104_v63 = vld [vmem:[#allocation8 + $0x540] ss:$16 sps:$4 sm:$0xff]  }
 0x6f6   :  { %13242 = vmatprep.subr.bf16.mxu1 %v16031_v3  ;;  %v16107_v3 = vld [vmem:[#allocation8 + $0x548] ss:$16 sps:$4 sm:$0xff]  }
 0x6f8   :  { %13079 = vmatpush1.bf16.msra.mxu0 %v16026_v6  ;;  %v16112_v6 = vld [vmem:[#allocation8 + $0x564] ss:$16 sps:$4 sm:$0xff]  }
 0x6f9   :  { %13243 = vmatpush1.bf16.msra.mxu1 %v16029_v0  ;;  %13080 = vmatprep.subr.bf16.mxu0 %v16034_v61  ;;  %v16110_v0 = vld [vmem:[#allocation8 + $0x560] ss:$16 sps:$4 sm:$0xff]   ;;  %v16113_v61 = vld [vmem:[#allocation8 + $0x568] ss:$16 sps:$4 sm:$0xff]  }
 0x6fa   :  { %13244 = vmatprep.subr.bf16.mxu1 %v16037_v7  ;;  %v16118_v7 = vld [vmem:[#allocation8 + $0x584] ss:$16 sps:$4 sm:$0xff]  }
 0x6fc   :  { %13081 = vmatpush1.bf16.msra.mxu0 %v16032_v9  ;;  %v16121_v9 = vld [vmem:[#allocation8 + $0x58c] ss:$16 sps:$4 sm:$0xff]  }
 0x6fd   :  { %13245 = vmatpush1.bf16.msra.mxu1 %v16035_v11  ;;  %13082 = vmatprep.subr.bf16.mxu0 %v16040_v8  ;;  %v16119_v11 = vld [vmem:[#allocation8 + $0x588] ss:$16 sps:$4 sm:$0xff]   ;;  %v16124_v8 = vld [vmem:[#allocation8 + $0x5a4] ss:$16 sps:$4 sm:$0xff]  }
 0x6fe   :  { %13246 = vmatprep.subr.bf16.mxu1 %v16043_v13  ;;  %v16127_v13 = vld [vmem:[#allocation8 + $0x5ac] ss:$16 sps:$4 sm:$0xff]  }
 0x700   :  { %13083 = vmatpush1.bf16.msra.mxu0 %v16038_v4  ;;  %v16122_v4 = vld [vmem:[#allocation8 + $0x5a0] ss:$16 sps:$4 sm:$0xff]  }
 0x701   :  { %13247 = vmatpush1.bf16.msra.mxu1 %v16041_v14  ;;  %13093 = vmatprep.subr.bf16.mxu0 %v16046_v17  ;;  %v16130_v14 = vld [vmem:[#allocation8 + $0x5c4] ss:$16 sps:$4 sm:$0xff]   ;;  %v16133_v17 = vld [vmem:[#allocation8 + $0x5cc] ss:$16 sps:$4 sm:$0xff]  }
 0x702   :  { %13257 = vmatprep.subr.bf16.mxu1 %v16049_v58  ;;  %v16128_v58 = vld [vmem:[#allocation8 + $0x5c0] ss:$16 sps:$4 sm:$0xff]  }
 0x703   :  { %13085 = vmatmul.mubr.bf16.vlgmr.msra.gmra.mrb[8].mxu0 %v11447_v18 }
 0x704   :  { %13249 = vmatmul.mubr.bf16.vlgmr.msra.gmra.mrb[8].mxu1 %v11447_v18  ;;  %13094 = vmatpush1.bf16.msra.mxu0 %v16044_v10  ;;  %v16131_v10 = vld [vmem:[#allocation8 + $0x5c8] ss:$16 sps:$4 sm:$0xff]   ;;  %v16136_v18 = vld [vmem:[#allocation8 + $0x5e4] ss:$16 sps:$4 sm:$0xff]  }
 0x705   :  { %13258 = vmatpush1.bf16.msra.mxu1 %v16047_v38  ;;  %13095 = vmatprep.subr.bf16.mxu0 %v16052_v16  ;;  %v16139_v38 = vld [vmem:[#allocation8 + $0x5ec] ss:$16 sps:$4 sm:$0xff]   ;;  %v16134_v16 = vld [vmem:[#allocation8 + $0x5e0] ss:$16 sps:$4 sm:$0xff]  }
 0x706   :  { %13259 = vmatprep.subr.bf16.mxu1 %v16055_v21  ;;  %v16137_v21 = vld [vmem:[#allocation8 + $0x5e8] ss:$16 sps:$4 sm:$0xff]  }
 0x708   :  { %13096 = vmatpush1.bf16.msra.mxu0 %v16050_v26  ;;  %v16142_v26 = vld [vmem:[#allocation8 + $0x604] ss:$16 sps:$4 sm:$0xff]  }
 0x709   :  { %13260 = vmatpush1.bf16.msra.mxu1 %v16053_v27  ;;  %13097 = vmatprep.subr.bf16.mxu0 %v16058_v39  ;;  %v16145_v27 = vld [vmem:[#allocation8 + $0x60c] ss:$16 sps:$4 sm:$0xff]   ;;  %v1683_v39 = vsub.s32 4, %v16815_v22 }
 0x70a   :  { %13261 = vmatprep.subr.bf16.mxu1 %v16061_v59  ;;  %v1687_v59 = vsub.s32 5, %v16815_v22 }
 0x70c   :  { %13098 = vmatpush1.bf16.msra.mxu0 %v16056_v29  ;;  %v1695_v29 = vsub.s32 7, %v16815_v22 }
 0x70d   :  { %13262 = vmatpush1.bf16.msra.mxu1 %v16059_v55  ;;  %13099 = vmatprep.subr.bf16.mxu0 %v16064_v30  ;;  %v1684_v55 = vrot.slane %v16818_v33, %v1683_v39  ;;  %v1688_v30 = vrot.slane %v16818_v33, %v1687_v59  ;;  %v16194_v39 = vld [vmem:[#allocation8 + $0x720] ss:$16 sps:$4 sm:$0xff]   ;;  %v16197_v59 = vld [vmem:[#allocation8 + $0x728] ss:$16 sps:$4 sm:$0xff]  }
 0x70e   :  { %13263 = vmatprep.subr.bf16.mxu1 %v16067_v50  ;;  %v1696_v50 = vrot.slane %v16818_v33, %v1695_v29  ;;  %v16148_v33 = vld [vmem:[#allocation8 + $0x624] ss:$16 sps:$4 sm:$0xff]  }
 0x70f   :  { %v16202_v29 = vld [vmem:[#allocation8 + $0x744] ss:$16 sps:$4 sm:$0xff]  }
 0x710   :  { %13100 = vmatpush1.bf16.msra.mxu0 %v16062_v31 }
 0x711   :  { %13264 = vmatpush1.bf16.msra.mxu1 %v16065_v49  ;;  %13101 = vmatprep.subr.bf16.mxu0 %v16070_v15 }
 0x712   :  { %13265 = vmatprep.subr.bf16.mxu1 %v16073_v20 }
 0x714   :  { %13102 = vmatpush1.bf16.msra.mxu0 %v16068_v25 }
 0x715   :  { %13266 = vmatpush1.bf16.msra.mxu1 %v16071_v35  ;;  %13103 = vmatprep.subr.bf16.mxu0 %v16076_v48 }
 0x716   :  { %13267 = vmatprep.subr.bf16.mxu1 %v16079_v1 }
 0x718   :  { %13104 = vmatpush1.bf16.msra.mxu0 %v16074_v12 }
 0x719   :  { %13268 = vmatpush1.bf16.msra.mxu1 %v16077_v2  ;;  %13105 = vmatprep.subr.bf16.mxu0 %v16082_v36 }
 0x71a   :  { %13269 = vmatprep.subr.bf16.mxu1 %v16085_v37 }
 0x71c   :  { %13106 = vmatpush1.bf16.msra.mxu0 %v16080_v40 }
 0x71d   :  { %13270 = vmatpush1.bf16.msra.mxu1 %v16083_v32  ;;  %13107 = vmatprep.subr.bf16.mxu0 %v16088_v44 }
 0x71e   :  { %13271 = vmatprep.subr.bf16.mxu1 %v16091_v42  ;;  %v16140_v42 = vld [vmem:[#allocation8 + $0x600] ss:$16 sps:$4 sm:$0xff]  }
 0x720   :  { %13108 = vmatpush1.bf16.msra.mxu0 %v16086_v43  ;;  %v16143_v43 = vld [vmem:[#allocation8 + $0x608] ss:$16 sps:$4 sm:$0xff]  }
 0x721   :  { %13272 = vmatpush1.bf16.msra.mxu1 %v16089_v34  ;;  %13109 = vmatprep.subr.bf16.mxu0 %v16094_v45  ;;  %v16151_v45 = vld [vmem:[#allocation8 + $0x62c] ss:$16 sps:$4 sm:$0xff]  }
 0x722   :  { %13273 = vmatprep.subr.bf16.mxu1 %v16097_v47 }
 0x724   :  { %13110 = vmatpush1.bf16.msra.mxu0 %v16092_v53  ;;  %v16146_v53 = vld [vmem:[#allocation8 + $0x620] ss:$16 sps:$4 sm:$0xff]  }
 0x725   :  { %13274 = vmatpush1.bf16.msra.mxu1 %v16095_v52  ;;  %13111 = vmatprep.subr.bf16.mxu0 %v16100_v56  ;;  %v16149_v52 = vld [vmem:[#allocation8 + $0x628] ss:$16 sps:$4 sm:$0xff]   ;;  %v16154_v56 = vld [vmem:[#allocation8 + $0x644] ss:$16 sps:$4 sm:$0xff]  }
 0x726   :  { %13275 = vmatprep.subr.bf16.mxu1 %v16103_v5  ;;  %v16157_v5 = vld [vmem:[#allocation8 + $0x64c] ss:$16 sps:$4 sm:$0xff]  }
 0x728   :  { %13112 = vmatpush1.bf16.msra.mxu0 %v16098_v62  ;;  %v16152_v62 = vld [vmem:[#allocation8 + $0x640] ss:$16 sps:$4 sm:$0xff]  }
 0x729   :  { %13276 = vmatpush1.bf16.msra.mxu1 %v16101_v19  ;;  %13113 = vmatprep.subr.bf16.mxu0 %v16106_v46  ;;  %v16155_v19 = vld [vmem:[#allocation8 + $0x648] ss:$16 sps:$4 sm:$0xff]   ;;  %v16160_v46 = vld [vmem:[#allocation8 + $0x664] ss:$16 sps:$4 sm:$0xff]  }
 0x72a   :  { %13277 = vmatprep.subr.bf16.mxu1 %v16109_v51  ;;  %v16163_v51 = vld [vmem:[#allocation8 + $0x66c] ss:$16 sps:$4 sm:$0xff]  }
 0x72c   :  { %13114 = vmatpush1.bf16.msra.mxu0 %v16104_v63  ;;  %v16158_v63 = vld [vmem:[#allocation8 + $0x660] ss:$16 sps:$4 sm:$0xff]  }
 0x72d   :  { %13278 = vmatpush1.bf16.msra.mxu1 %v16107_v3  ;;  %13115 = vmatprep.subr.bf16.mxu0 %v16112_v6  ;;  %v16161_v3 = vld [vmem:[#allocation8 + $0x668] ss:$16 sps:$4 sm:$0xff]   ;;  %v16166_v6 = vld [vmem:[#allocation8 + $0x684] ss:$16 sps:$4 sm:$0xff]  }
 0x72e   :  { %13279 = vmatprep.subr.bf16.mxu1 %v16115_v24  ;;  %v16169_v24 = vld [vmem:[#allocation8 + $0x68c] ss:$16 sps:$4 sm:$0xff]  }
 0x730   :  { %13116 = vmatpush1.bf16.msra.mxu0 %v16110_v0  ;;  %v16164_v0 = vld [vmem:[#allocation8 + $0x680] ss:$16 sps:$4 sm:$0xff]  }
 0x731   :  { %13280 = vmatpush1.bf16.msra.mxu1 %v16113_v61  ;;  %13117 = vmatprep.subr.bf16.mxu0 %v16118_v7  ;;  %v16167_v61 = vld [vmem:[#allocation8 + $0x688] ss:$16 sps:$4 sm:$0xff]   ;;  %v16172_v7 = vld [vmem:[#allocation8 + $0x6a4] ss:$16 sps:$4 sm:$0xff]  }
 0x732   :  { %13281 = vmatprep.subr.bf16.mxu1 %v16121_v9  ;;  %v16175_v9 = vld [vmem:[#allocation8 + $0x6ac] ss:$16 sps:$4 sm:$0xff]  }
 0x734   :  { %13118 = vmatpush1.bf16.msra.mxu0 %v16116_v23  ;;  %v16170_v23 = vld [vmem:[#allocation8 + $0x6a0] ss:$16 sps:$4 sm:$0xff]  }
 0x735   :  { %13282 = vmatpush1.bf16.msra.mxu1 %v16119_v11  ;;  %13119 = vmatprep.subr.bf16.mxu0 %v16124_v8  ;;  %v16173_v11 = vld [vmem:[#allocation8 + $0x6a8] ss:$16 sps:$4 sm:$0xff]   ;;  %v16178_v8 = vld [vmem:[#allocation8 + $0x6c4] ss:$16 sps:$4 sm:$0xff]  }
 0x736   :  { %13283 = vmatprep.subr.bf16.mxu1 %v16127_v13  ;;  %v16181_v13 = vld [vmem:[#allocation8 + $0x6cc] ss:$16 sps:$4 sm:$0xff]  }
 0x738   :  { %13120 = vmatpush1.bf16.msra.mxu0 %v16122_v4  ;;  %v16176_v4 = vld [vmem:[#allocation8 + $0x6c0] ss:$16 sps:$4 sm:$0xff]  }
 0x739   :  { %13284 = vmatpush1.bf16.msra.mxu1 %v16125_v60  ;;  %13121 = vmatprep.subr.bf16.mxu0 %v16130_v14  ;;  %v16179_v60 = vld [vmem:[#allocation8 + $0x6c8] ss:$16 sps:$4 sm:$0xff]   ;;  %v16184_v14 = vld [vmem:[#allocation8 + $0x6e4] ss:$16 sps:$4 sm:$0xff]  }
 0x73a   :  { %13285 = vmatprep.subr.bf16.mxu1 %v16133_v17  ;;  %v16187_v17 = vld [vmem:[#allocation8 + $0x6ec] ss:$16 sps:$4 sm:$0xff]  }
 0x73c   :  { %13122 = vmatpush1.bf16.msra.mxu0 %v16128_v58  ;;  %v16182_v58 = vld [vmem:[#allocation8 + $0x6e0] ss:$16 sps:$4 sm:$0xff]  }
 0x73d   :  { %13286 = vmatpush1.bf16.msra.mxu1 %v16131_v10  ;;  %13123 = vmatprep.subr.bf16.mxu0 %v16136_v18  ;;  %v16185_v10 = vld [vmem:[#allocation8 + $0x6e8] ss:$16 sps:$4 sm:$0xff]   ;;  %v16190_v18 = vld [vmem:[#allocation8 + $0x704] ss:$16 sps:$4 sm:$0xff]  }
 0x73e   :  { %13287 = vmatprep.subr.bf16.mxu1 %v16139_v38  ;;  %v16193_v38 = vld [vmem:[#allocation8 + $0x70c] ss:$16 sps:$4 sm:$0xff]  }
 0x740   :  { %13124 = vmatpush1.bf16.msra.mxu0 %v16134_v16  ;;  %v16188_v16 = vld [vmem:[#allocation8 + $0x700] ss:$16 sps:$4 sm:$0xff]  }
 0x741   :  { %13288 = vmatpush1.bf16.msra.mxu1 %v16137_v21  ;;  %13134 = vmatprep.subr.bf16.mxu0 %v16142_v26  ;;  %v16191_v21 = vld [vmem:[#allocation8 + $0x708] ss:$16 sps:$4 sm:$0xff]   ;;  %v16196_v26 = vld [vmem:[#allocation8 + $0x724] ss:$16 sps:$4 sm:$0xff]  }
 0x742   :  { %13298 = vmatprep.subr.bf16.mxu1 %v16145_v27  ;;  %v16199_v27 = vld [vmem:[#allocation8 + $0x72c] ss:$16 sps:$4 sm:$0xff]  }
 0x756   :  { %v10938_v31 = vpop.f32.mrb[4].mxu0  ;;  %v16847_v15 = vpop.f32.mrb[4].mxu1 }
 0x757   :  { %v15606_v49 = vadd.f32 %v10938_v31, %v1684_v55  ;;  %v10940_v20 = vpop.f32.mrb[5].mxu0  ;;  %v11432_v35 = vpop.f32.mrb[5].mxu1  ;;  %v16205_v55 = vld [vmem:[#allocation8 + $0x74c] ss:$16 sps:$4 sm:$0xff]   ;;  %v16208_v31 = vld [vmem:[#allocation8 + $0x764] ss:$16 sps:$4 sm:$0xff]  }
 0x758   :  { %v15607_v25 = vadd.f32 %v10940_v20, %v1688_v30  ;;  %v10942_v48 = vpop.f32.mrb[6].mxu0  ;;  %v15609_v12 = vadd.f32 %v11432_v35, %v1696_v50  ;;  %v11434_v2 = vpop.f32.mrb[6].mxu1  ;;  %v16200_v30 = vld [vmem:[#allocation8 + $0x740] ss:$16 sps:$4 sm:$0xff]   ;;  %v16203_v50 = vld [vmem:[#allocation8 + $0x748] ss:$16 sps:$4 sm:$0xff]  }
 0x759   :  { %v11441_v1 = vmax.f32 %v15606_v49, 0.0  ;;  %v10943_v36 = vpop.f32.mrb[7].mxu0  ;;  %v11435_v40 = vpop.f32.mrb[7].mxu1  ;;  %v16211_v49 = vld [vmem:[#allocation8 + $0x76c] ss:$16 sps:$4 sm:$0xff]   ;;  %v1691_v2 = vsub.s32 6, %v16815_v22 }
 0x75a   :  { %v11442_v37 = vmax.f32 %v15607_v25, 0.0  ;;  %v11444_v32 = vmax.f32 %v15609_v12, 0.0  ;;  %v16206_v20 = vld [vmem:[#allocation8 + $0x760] ss:$16 sps:$4 sm:$0xff]   ;;  %v16209_v25 = vld [vmem:[#allocation8 + $0x768] ss:$16 sps:$4 sm:$0xff]  }
 0x75b   :  { %v11449_v34 = vpack.c.bf16 %v11441_v1, %v11441_v1  ;;  %v16214_v35 = vld [vmem:[#allocation8 + $0x784] ss:$16 sps:$4 sm:$0xff]   ;;  %v16217_v48 = vld [vmem:[#allocation8 + $0x78c] ss:$16 sps:$4 sm:$0xff]   ;;  %v16212_v1 = vld [vmem:[#allocation8 + $0x780] ss:$16 sps:$4 sm:$0xff]  }
 0x75c   :  { %v11450_v44 = vpack.c.bf16 %v11442_v37, %v11442_v37  ;;  %v11452_v47 = vpack.c.bf16 %v11444_v32, %v11444_v32  ;;  %v16215_v12 = vld [vmem:[#allocation8 + $0x788] ss:$16 sps:$4 sm:$0xff]   ;;  %v16220_v36 = vld [vmem:[#allocation8 + $0x7a4] ss:$16 sps:$4 sm:$0xff]   ;;  %v16223_v37 = vld [vmem:[#allocation8 + $0x7ac] ss:$16 sps:$4 sm:$0xff]  }
 0x75d   :  { %v16218_v40 = vld [vmem:[#allocation8 + $0x7a0] ss:$16 sps:$4 sm:$0xff]   ;;  %v16221_v32 = vld [vmem:[#allocation8 + $0x7a8] ss:$16 sps:$4 sm:$0xff]  }
 0x75e   :  { %13125 = vmatprep.mubr.bf16.mxu0 %v11450_v44  ;;  %13289 = vmatprep.mubr.bf16.mxu1 %v11450_v44  ;;  %v16268_v44 = vld [vmem:[#allocation7] sm:$0xff] }
 0x75f   :  { %13126 = vmatmul.mubr.bf16.vlgmr.msra.gmra.mrb[8].mxu0 %v11449_v34  ;;  %13290 = vmatmul.mubr.bf16.vlgmr.msra.gmra.mrb[8].mxu1 %v11449_v34  ;;  %v16229_v34 = vld [vmem:[#allocation8 + $0x7cc] ss:$16 sps:$4 sm:$0xff]  }
 0x760   :  { %13135 = vmatpush1.bf16.msra.mxu0 %v16140_v42  ;;  %13299 = vmatpush1.bf16.msra.mxu1 %v16143_v43  ;;  %v1692_v42 = vrot.slane %v16268_v44, %v1691_v2  ;;  %v16226_v43 = vld [vmem:[#allocation8 + $0x7c4] ss:$16 sps:$4 sm:$0xff]  }
 0x761   :  { %13166 = vmatprep.mubr.bf16.mxu0 %v11452_v47  ;;  %13330 = vmatprep.mubr.bf16.mxu1 %v11452_v47 }
 0x762   :  { %13136 = vmatprep.subr.bf16.mxu0 %v16148_v33  ;;  %13300 = vmatprep.subr.bf16.mxu1 %v16151_v45  ;;  %v16224_v33 = vld [vmem:[#allocation8 + $0x7c0] ss:$16 sps:$4 sm:$0xff]   ;;  %v16227_v45 = vld [vmem:[#allocation8 + $0x7c8] ss:$16 sps:$4 sm:$0xff]   ;;  %v15608_v47 = vadd.f32 %v16847_v15, %v1692_v42 }
 0x763   :  { %v16240_v15 = vld [vmem:[#allocation11 + $0x48] sm:$0xff]  }
 0x764   :  { %13137 = vmatpush1.bf16.msra.mxu0 %v16146_v53  ;;  %13301 = vmatpush1.bf16.msra.mxu1 %v16149_v52  ;;  %v16232_v53 = vld [vmem:[#allocation8 + $0x7e4] ss:$16 sps:$4 sm:$0xff]   ;;  %v16235_v52 = vld [vmem:[#allocation8 + $0x7ec] ss:$16 sps:$4 sm:$0xff]  }
 0x765   :  { %13138 = vmatprep.subr.bf16.mxu0 %v16154_v56  ;;  %13302 = vmatprep.subr.bf16.mxu1 %v16157_v5  ;;  %v16230_v56 = vld [vmem:[#allocation8 + $0x7e0] ss:$16 sps:$4 sm:$0xff]   ;;  %v16233_v5 = vld [vmem:[#allocation8 + $0x7e8] ss:$16 sps:$4 sm:$0xff]  }
 0x768   :  { %13139 = vmatpush1.bf16.msra.mxu0 %v16152_v62  ;;  %13303 = vmatpush1.bf16.msra.mxu1 %v16155_v19  ;;  %v11443_v62 = vmax.f32 %v15608_v47, 0.0  ;;  %v16236_v19 = vld [vmem:[#allocation11 + $0x40] sm:$0xff]  }
 0x769   :  { %13140 = vmatprep.subr.bf16.mxu0 %v16160_v46  ;;  %13304 = vmatprep.subr.bf16.mxu1 %v16163_v51  ;;  %v16237_v46 = vld [vmem:[#allocation11 + $0xc0] sm:$0xff]  }
 0x76a   :  { %v16238_v51 = vld [vmem:[#allocation11] sm:$0xff]  }
 0x76c   :  { %13141 = vmatpush1.bf16.msra.mxu0 %v16158_v63  ;;  %13305 = vmatpush1.bf16.msra.mxu1 %v16161_v3  ;;  %v16239_v63 = vld [vmem:[#allocation11 + $0x80] sm:$0xff]   ;;  %v11451_v3 = vpack.c.bf16 %v11443_v62, %v11443_v62 }
 0x76d   :  { %13142 = vmatprep.subr.bf16.mxu0 %v16166_v6  ;;  %13306 = vmatprep.subr.bf16.mxu1 %v16169_v24  ;;  %v16241_v6 = vld [vmem:[#allocation11 + $0xc8] sm:$0xff]  }
 0x76e   :  { %v16242_v24 = vld [vmem:[#allocation11 + $0x8] sm:$0xff]  }
 0x770   :  { %13143 = vmatpush1.bf16.msra.mxu0 %v16164_v0  ;;  %13307 = vmatpush1.bf16.msra.mxu1 %v16167_v61  ;;  %v16243_v0 = vld [vmem:[#allocation11 + $0x88] sm:$0xff]   ;;  %v16244_v61 = vld [vmem:[#allocation11 + $0x50] sm:$0xff]  }
 0x771   :  { %13144 = vmatprep.subr.bf16.mxu0 %v16172_v7  ;;  %13308 = vmatprep.subr.bf16.mxu1 %v16175_v9  ;;  %v16245_v7 = vld [vmem:[#allocation11 + $0xd0] sm:$0xff]  }
 0x772   :  { %v16246_v9 = vld [vmem:[#allocation11 + $0x10] sm:$0xff]  }
 0x774   :  { %13145 = vmatpush1.bf16.msra.mxu0 %v16170_v23  ;;  %13309 = vmatpush1.bf16.msra.mxu1 %v16173_v11  ;;  %v16247_v23 = vld [vmem:[#allocation11 + $0x90] sm:$0xff]   ;;  %v16248_v11 = vld [vmem:[#allocation11 + $0x58] sm:$0xff]  }
 0x775   :  { %13146 = vmatprep.subr.bf16.mxu0 %v16178_v8  ;;  %13310 = vmatprep.subr.bf16.mxu1 %v16181_v13  ;;  %v16249_v8 = vld [vmem:[#allocation11 + $0xd8] sm:$0xff]  }
 0x776   :  { %v16250_v13 = vld [vmem:[#allocation11 + $0x18] sm:$0xff]  }
 0x778   :  { %13147 = vmatpush1.bf16.msra.mxu0 %v16176_v4  ;;  %13311 = vmatpush1.bf16.msra.mxu1 %v16179_v60  ;;  %v16251_v4 = vld [vmem:[#allocation11 + $0x98] sm:$0xff]   ;;  %v16252_v60 = vld [vmem:[#allocation11 + $0x60] sm:$0xff]  }
 0x779   :  { %13148 = vmatprep.subr.bf16.mxu0 %v16184_v14  ;;  %13312 = vmatprep.subr.bf16.mxu1 %v16187_v17  ;;  %v16253_v14 = vld [vmem:[#allocation11 + $0xe0] sm:$0xff]  }
 0x77a   :  { %v16254_v17 = vld [vmem:[#allocation11 + $0x20] sm:$0xff]  }
 0x77c   :  { %13149 = vmatpush1.bf16.msra.mxu0 %v16182_v58  ;;  %13313 = vmatpush1.bf16.msra.mxu1 %v16185_v10  ;;  %v16255_v58 = vld [vmem:[#allocation11 + $0xa0] sm:$0xff]   ;;  %v16256_v10 = vld [vmem:[#allocation11 + $0x68] sm:$0xff]  }
 0x77d   :  { %13150 = vmatprep.subr.bf16.mxu0 %v16190_v18  ;;  %13314 = vmatprep.subr.bf16.mxu1 %v16193_v38  ;;  %v16257_v18 = vld [vmem:[#allocation11 + $0xe8] sm:$0xff]  }
 0x77e   :  { %v16258_v38 = vld [vmem:[#allocation11 + $0x28] sm:$0xff]  }
 0x780   :  { %13151 = vmatpush1.bf16.msra.mxu0 %v16188_v16  ;;  %13315 = vmatpush1.bf16.msra.mxu1 %v16191_v21  ;;  %v16259_v16 = vld [vmem:[#allocation11 + $0xa8] sm:$0xff]   ;;  %v16260_v21 = vld [vmem:[#allocation11 + $0x70] sm:$0xff]  }
 0x781   :  { %13152 = vmatprep.subr.bf16.mxu0 %v16196_v26  ;;  %13316 = vmatprep.subr.bf16.mxu1 %v16199_v27  ;;  %v16261_v26 = vld [vmem:[#allocation11 + $0xf0] sm:$0xff]  }
 0x782   :  { %v16262_v27 = vld [vmem:[#allocation11 + $0x30] sm:$0xff]  }
 0x784   :  { %13153 = vmatpush1.bf16.msra.mxu0 %v16194_v39  ;;  %13317 = vmatpush1.bf16.msra.mxu1 %v16197_v59  ;;  %v16263_v39 = vld [vmem:[#allocation11 + $0xb0] sm:$0xff]   ;;  %v16264_v59 = vld [vmem:[#allocation11 + $0x78] sm:$0xff]  }
 0x785   :  { %13154 = vmatprep.subr.bf16.mxu0 %v16202_v29  ;;  %13318 = vmatprep.subr.bf16.mxu1 %v16205_v55  ;;  %v16265_v29 = vld [vmem:[#allocation11 + $0xf8] sm:$0xff]  }
 0x786   :  { %v16266_v55 = vld [vmem:[#allocation11 + $0x38] sm:$0xff]  }
 0x788   :  { %13155 = vmatpush1.bf16.msra.mxu0 %v16200_v30  ;;  %13319 = vmatpush1.bf16.msra.mxu1 %v16203_v50  ;;  %v16267_v30 = vld [vmem:[#allocation11 + $0xb8] sm:$0xff]  }
 0x789   :  { %13156 = vmatprep.subr.bf16.mxu0 %v16208_v31  ;;  %13320 = vmatprep.subr.bf16.mxu1 %v16211_v49  ;;  %v11709_v50 = vld [vmem:[#allocation10] sm:$0xf] }
 0x78a   :  { %v11714_v31 = vrot.slane %v11709_v50, %v1667_v41  ;;  %v11722_v49 = vrot.slane %v11709_v50, %v1675_v54 }
 0x78c   :  { %13157 = vmatpush1.bf16.msra.mxu0 %v16206_v20  ;;  %13321 = vmatpush1.bf16.msra.mxu1 %v16209_v25  ;;  %v11718_v20 = vrot.slane %v11709_v50, %v1671_v28  ;;  %v11726_v25 = vrot.slane %v11709_v50, %v1679_v57 }
 0x78d   :  { %13158 = vmatprep.subr.bf16.mxu0 %v16214_v35  ;;  %13322 = vmatprep.subr.bf16.mxu1 %v16217_v48 }
 0x790   :  { %13159 = vmatpush1.bf16.msra.mxu0 %v16212_v1  ;;  %13323 = vmatpush1.bf16.msra.mxu1 %v16215_v12 }
 0x791   :  { %13160 = vmatprep.subr.bf16.mxu0 %v16220_v36  ;;  %13324 = vmatprep.subr.bf16.mxu1 %v16223_v37 }
 0x794   :  { %13161 = vmatpush1.bf16.msra.mxu0 %v16218_v40  ;;  %13325 = vmatpush1.bf16.msra.mxu1 %v16221_v32 }
 0x795   :  { %13162 = vmatprep.subr.bf16.mxu0 %v16226_v43  ;;  %13326 = vmatprep.subr.bf16.mxu1 %v16229_v34 }
 0x798   :  { %13163 = vmatpush1.bf16.msra.mxu0 %v16224_v33  ;;  %13327 = vmatpush1.bf16.msra.mxu1 %v16227_v45 }
 0x799   :  { %13164 = vmatprep.subr.bf16.mxu0 %v16232_v53  ;;  %13328 = vmatprep.subr.bf16.mxu1 %v16235_v52  ;;  %v15525_v52 = vld [vmem:[#allocation13] ss:$0 sm:$0xff] }
 0x79c   :  { %13165 = vmatpush1.bf16.msra.mxu0 %v16230_v56  ;;  %13329 = vmatpush1.bf16.msra.mxu1 %v16233_v5 }
 0x79d   :  { %15558 = vmatprep.subr.bf16.mxu0 %v16236_v19  ;;  %15580 = vmatprep.subr.bf16.mxu1 %v16237_v46 }
 0x79f   :  { %13167 = vmatmul.mubr.bf16.vlgmr.msra.gmra.mrb[8].mxu0 %v11451_v3  ;;  %13331 = vmatmul.mubr.bf16.vlgmr.msra.gmra.mrb[8].mxu1 %v11451_v3 }
 0x7a0   :  { %15559 = vmatpush3.bf16.msra.mxu0 %v16238_v51  ;;  %15581 = vmatpush3.bf16.msra.mxu1 %v16239_v63 }
 0x7a1   :  { %15560 = vmatprep.subr.bf16.mxu0 %v16240_v15  ;;  %15582 = vmatprep.subr.bf16.mxu1 %v16241_v6 }
 0x7a4   :  { %15561 = vmatpush3.bf16.msra.mxu0 %v16242_v24  ;;  %15583 = vmatpush3.bf16.msra.mxu1 %v16243_v0 }
 0x7a5   :  { %15562 = vmatprep.subr.bf16.mxu0 %v16244_v61  ;;  %15584 = vmatprep.subr.bf16.mxu1 %v16245_v7 }
 0x7a8   :  { %15563 = vmatpush3.bf16.msra.mxu0 %v16246_v9  ;;  %15585 = vmatpush3.bf16.msra.mxu1 %v16247_v23 }
 0x7a9   :  { %15564 = vmatprep.subr.bf16.mxu0 %v16248_v11  ;;  %15586 = vmatprep.subr.bf16.mxu1 %v16249_v8 }
 0x7ac   :  { %15565 = vmatpush3.bf16.msra.mxu0 %v16250_v13  ;;  %15587 = vmatpush3.bf16.msra.mxu1 %v16251_v4 }
 0x7ad   :  { %15566 = vmatprep.subr.bf16.mxu0 %v16252_v60  ;;  %15588 = vmatprep.subr.bf16.mxu1 %v16253_v14 }
 0x7b0   :  { %15567 = vmatpush3.bf16.msra.mxu0 %v16254_v17  ;;  %15589 = vmatpush3.bf16.msra.mxu1 %v16255_v58 }
 0x7b1   :  { %15568 = vmatprep.subr.bf16.mxu0 %v16256_v10  ;;  %15590 = vmatprep.subr.bf16.mxu1 %v16257_v18 }
 0x7b4   :  { %15569 = vmatpush3.bf16.msra.mxu0 %v16258_v38  ;;  %15591 = vmatpush3.bf16.msra.mxu1 %v16259_v16 }
 0x7b5   :  { %15570 = vmatprep.subr.bf16.mxu0 %v16260_v21  ;;  %15592 = vmatprep.subr.bf16.mxu1 %v16261_v26 }
 0x7b8   :  { %15571 = vmatpush3.bf16.msra.mxu0 %v16262_v27  ;;  %15593 = vmatpush3.bf16.msra.mxu1 %v16263_v39 }
 0x7b9   :  { %15572 = vmatprep.subr.bf16.mxu0 %v16264_v59  ;;  %15594 = vmatprep.subr.bf16.mxu1 %v16265_v29 }
 0x7bc   :  { %15573 = vmatpush3.bf16.msra.mxu0 %v16266_v55  ;;  %15595 = vmatpush3.bf16.msra.mxu1 %v16267_v30 }
 0x872   :  { %v13168_v35 = vpop.f32.mrb[8].mxu0  ;;  %v13332_v48 = vpop.f32.mrb[8].mxu1 }
 0x873   :  { %v15610_v1 = vadd.f32 %v13168_v35, %v11714_v31  ;;  %v15612_v12 = vadd.f32 %v13332_v48, %v11722_v49  ;;  %v13170_v2 = vpop.f32.mrb[9].mxu0  ;;  %v13334_v36 = vpop.f32.mrb[9].mxu1 }
 0x874   :  { %v15611_v37 = vadd.f32 %v13170_v2, %v11718_v20  ;;  %v15613_v40 = vadd.f32 %v13334_v36, %v11726_v25  ;;  %v13172_v32 = vpop.f32.mrb[10].mxu0  ;;  %v13336_v44 = vpop.f32.mrb[10].mxu1 }
 0x875   :  { %v13339_v41 = vmax.f32 %v15610_v1, 0.0  ;;  %v13341_v42 = vmax.f32 %v15612_v12, 0.0  ;;  %v13173_v43 = vpop.f32.mrb[11].mxu0  ;;  %v13337_v54 = vpop.f32.mrb[11].mxu1 }
 0x876   :  { %v13340_v34 = vmax.f32 %v15611_v37, 0.0  ;;  %v13342_v33 = vmax.f32 %v15613_v40, 0.0 }
 0x877   :  { %v13343_v22 = vpack.c.bf16 %v13339_v41, %v13339_v41  ;;  %v13345_v57 = vpack.c.bf16 %v13341_v42, %v13341_v42 }
 0x878   :  { %v13344_v28 = vpack.c.bf16 %v13340_v34, %v13340_v34  ;;  %v13346_v45 = vpack.c.bf16 %v13342_v33, %v13342_v33 }
 0x87a   :  { %13642 = vmatprep.mubr.bf16.mxu0 %v13344_v28  ;;  %13682 = vmatprep.mubr.bf16.mxu1 %v13346_v45 }
 0x87b   :  { %13643 = vmatmul.mubr.bf16.vlgmr.msra.gmra.mrb[12].mxu0 %v13343_v22  ;;  %13683 = vmatmul.mubr.bf16.vlgmr.msra.gmra.mrb[12].mxu1 %v13345_v57 }
 0x94e   :  { %v15574_v47 = vpop.f32.mrb[12].mxu0  ;;  %v15596_v53 = vpop.f32.mrb[12].mxu1 }
 0x94f   :  { %v15575_v56 = vpop.f32.mrb[13].mxu0  ;;  %v15597_v5 = vpop.f32.mrb[13].mxu1 }
 0x950   :  { %v15576_v62 = vadd.f32 %v15575_v56, %v15574_v47  ;;  %v15598_v19 = vadd.f32 %v15597_v5, %v15596_v53  ;;  %v15577_v46 = vpop.f32.mrb[14].mxu0  ;;  %v15599_v51 = vpop.f32.mrb[14].mxu1 }
 0x951   :  { %v15578_v63 = vpop.f32.mrb[15].mxu0  ;;  %v15600_v3 = vpop.f32.mrb[15].mxu1 }
 0x952   :  { %v13645_v15 = vadd.f32 %v15576_v62, %v15525_v52 }
 0x954   :  { %v13685_v6 = vadd.f32 %v15598_v19, %v13645_v15 }
 0x956   :  { %13690 = vst [vmem:[#allocation14] sm:$0xff] %v13685_v6 }
 0x957   :  { %16434 = shalt.err (!%p16431_p4)
}
 0x958   :  { %s16435_s15 = scalar_lea.hbm %s16878_s7, 128 }
 0x959   :  { %p16436_p5 = scmp.ne.s32.totalorder %s16878_s7, %s16435_s15  ;;  %p16439_p6 = scmp.lt.u32.totalorder %s16435_s15, %s16878_s7 }
 0x95b   :  { %p16441_p7 = pnand %p16439_p6, %p16436_p5 }
 0x95d   :  { %16444 = shalt.err (!%p16441_p7)
}
 0x95e   :  { %13700 = dma.vmem_to_hbm [thread:$0]  %s13698_s13, 128, %s16878_s7, [#allocation4]  }
 0x95f   :  { %16453 = dma.done.wait [#allocation4], 128  }
 0x960   :  { %16454 = vsyncadd [#allocation4], 4294967168 }
 0x961   :  { %13704 = vsyncpa [#allocation3], 1 }
 0x962   :  { %13705 = vsyncpa [#allocation6], 1 }
 0x963   :  { %13706 = vsyncpa [#allocation9], 1 }
 0x964   :  { %13707 = vsyncpa [#allocation12], 1 }
 0x965   :  { %13708 = vsyncpa [#allocation4], 1 }

</bundles_post_ra>
